<compile_context>
chip_gen: v5e
topology: v5e:2x2
jax: 0.10.0
libtpu: 0.0.40
codegen_flags: <defaults>
</compile_context>

<pallas_src>
import jax
import jax.numpy as jnp
from jax import lax
from jax.experimental import pallas as pl
from jax.experimental.pallas import tpu as pltpu


LANE = 128
SUBLANE_BF16 = 16          # bf16 packs 16 rows per vreg sublane group
MAX_HW_TILE = 256          # cap on the MXU contraction (K) tile
EPS = 1e-8                 # torch.nn.functional.cosine_similarity default eps


def _round_up(x, m):
    return ((x + m - 1) // m) * m


# ----------------------------------------------------------------------------
# Per-stage fused kernel: both cosine similarities for one (batch, stage) pair.
#   grid = (B, n_hw_tiles); batch 'parallel', HW reduction 'arbitrary' (last).
#   f*_ref block: (1, HW_TILE, C_pad) bf16, channel-minor (lane axis = C_pad).
# Zero padding is mathematically transparent: padded rows/cols contribute nothing
# to any dot product, squared norm or Gram entry, so the cosines are unchanged.
# ----------------------------------------------------------------------------
def _stage_sim_kernel(f1_ref, f2_ref, out_ref, g1_acc, g2_acc, vec_acc):
    t = pl.program_id(1)
    n_t = pl.num_programs(1)

    f1 = f1_ref[0]                       # (HW_TILE, C_pad) bf16
    f2 = f2_ref[0]

    # Gram updates: G = F^T F, contracting the HW (sublane) axis on the MXU.
    # bf16 inputs, f32 accumulation.  (The PyTorch 1/(C*H*W) scale cancels in the
    # cosine similarity and is dropped.)
    dn = (((0,), (0,)), ((), ()))
    g1_new = lax.dot_general(f1, f1, dn, preferred_element_type=jnp.float32)
    g2_new = lax.dot_general(f2, f2, dn, preferred_element_type=jnp.float32)

    # Flattened-feature cosine terms as per-channel column sums (VPU/XLU work that
    # rides under the MXU); reduced to scalars only at finalize.
    f1f = f1.astype(jnp.float32)
    f2f = f2.astype(jnp.float32)
    p_dot = jnp.sum(f1f * f2f, axis=0, keepdims=True)    # (1, C_pad)
    p_n1 = jnp.sum(f1f * f1f, axis=0, keepdims=True)
    p_n2 = jnp.sum(f2f * f2f, axis=0, keepdims=True)

    # First-tile-assign: no upfront zero-fill of the accumulators.
    @pl.when(t == 0)
    def _():
        g1_acc[...] = g1_new
        g2_acc[...] = g2_new
        vec_acc[0:1, :] = p_dot
        vec_acc[1:2, :] = p_n1
        vec_acc[2:3, :] = p_n2

    @pl.when(t != 0)
    def _():
        g1_acc[...] += g1_new
        g2_acc[...] += g2_new
        vec_acc[0:1, :] += p_dot
        vec_acc[1:2, :] += p_n1
        vec_acc[2:3, :] += p_n2

    # Finalize once the HW reduction is complete for this batch element.
    @pl.when(t == n_t - 1)
    def _():
        fdot = jnp.sum(vec_acc[0:1, :])
        n1sq = jnp.sum(vec_acc[1:2, :])
        n2sq = jnp.sum(vec_acc[2:3, :])
        feat_cos = fdot / jnp.maximum(jnp.sqrt(n1sq * n2sq), EPS)

        g1 = g1_acc[...]
        g2 = g2_acc[...]
        gdot = jnp.sum(g1 * g2)
        gnorm = jnp.sqrt(jnp.sum(g1 * g1) * jnp.sum(g2 * g2))
        gram_cos = gdot / jnp.maximum(gnorm, EPS)

        # Single unmasked lane-dense store of the (1, 8, 128) output tile:
        #   [0,0,0] = feature cosine, [0,0,1] = Gram cosine.
        row = lax.broadcasted_iota(jnp.int32, out_ref.shape, 1)
        col = lax.broadcasted_iota(jnp.int32, out_ref.shape, 2)
        out_ref[...] = (jnp.where((row == 0) & (col == 0), feat_cos, 0.0)
                        + jnp.where((row == 0) & (col == 1), gram_cos, 0.0)
                        ).astype(jnp.float32)


def _stage_cosines(f1, f2):
    """f1, f2: (B, HW, C) channels-last stage features.

    Returns (feature_cosine (B,), gram_cosine (B,)) for this stage."""
    b, hw, c = f1.shape
    c_pad = _round_up(max(int(c), LANE), LANE)
    hw_pad = _round_up(max(int(hw), SUBLANE_BF16), SUBLANE_BF16)
    hw_tile = min(hw_pad, MAX_HW_TILE)
    hw_pad = _round_up(hw_pad, hw_tile)
    n_t = hw_pad // hw_tile

    def prep(f):
        f = f.astype(jnp.bfloat16)
        return jnp.pad(f, ((0, 0), (0, hw_pad - hw), (0, c_pad - c)))

    out = pl.pallas_call(
        _stage_sim_kernel,
        out_shape=jax.ShapeDtypeStruct((b, 8, LANE), jnp.float32),
        grid=(b, n_t),
        in_specs=[
            pl.BlockSpec((1, hw_tile, c_pad), lambda bi, ti: (bi, ti, 0)),
            pl.BlockSpec((1, hw_tile, c_pad), lambda bi, ti: (bi, ti, 0)),
        ],
        out_specs=pl.BlockSpec((1, 8, LANE), lambda bi, ti: (bi, 0, 0)),
        scratch_shapes=[
            pltpu.VMEM((c_pad, c_pad), jnp.float32),   # G1 accumulator
            pltpu.VMEM((c_pad, c_pad), jnp.float32),   # G2 accumulator
            pltpu.VMEM((8, c_pad), jnp.float32),       # rows 0..2: f1.f2, |f1|^2, |f2|^2
        ],
        compiler_params=pltpu.CompilerParams(
            dimension_semantics=("parallel", "arbitrary"),
            vmem_limit_bytes=32 * 1024 * 1024,
        ),
    )(prep(f1), prep(f2))

    return out[:, 0, 0], out[:, 0, 1]


# ----------------------------------------------------------------------------
# Synthetic deterministic encoder ("resnet18"-like pyramid: dims 64/128/256/512,
# spatial strides /4, /8, /16, /32).  Stands in for the external backbone passed
# to Extractor(encoder, args); plain-JAX glue.  Emits channels-last (B, HW, C)
# stage features so nothing is transposed on the way into the kernel.
# ----------------------------------------------------------------------------
BACKBONE_DIMS = [64, 128, 256, 512]   # resnet18 dims from Extractor.backbone_dims
STAGE_NUMBER = 4


def make_encoder_weights(key, in_ch=3):
    ws = []
    c_prev = in_ch
    for c_out in BACKBONE_DIMS:
        key, sub = jax.random.split(key)
        w = jax.random.normal(sub, (c_prev, c_out), jnp.float32) / jnp.sqrt(c_prev)
        ws.append(w)
        c_prev = c_out
    return ws


def encoder(x, weights):
    """x: (B, C_in, H, W) NCHW -> list of stage features, each (B, HW, C)."""
    cur = jnp.transpose(x, (0, 2, 3, 1))        # NHWC once
    feats = []
    for s, w in enumerate(weights):
        factor = 4 if s == 0 else 2
        b, h, wd, c = cur.shape
        # average-pool downsample by `factor`
        cur = cur.reshape(b, h // factor, factor, wd // factor, factor, c).mean(axis=(2, 4))
        b, h, wd, c = cur.shape
        # pointwise (1x1 conv) projection + nonlinearity
        cur = jnp.tanh(cur.reshape(b * h * wd, c) @ w).reshape(b, h, wd, -1)
        feats.append(cur.reshape(b, h * wd, cur.shape[-1]))
    return feats


# ----------------------------------------------------------------------------
# Extractor.forward (mask=None)
# ----------------------------------------------------------------------------
@jax.jit
def extractor_forward(x1, x2, *weights):
    weights = list(weights)
    blocks1 = encoder(x1, weights)
    blocks2 = encoder(x2, weights)

    sim = None
    gram_sim = None
    # PyTorch pops stages from the end; iteration order does not affect the average.
    for f1, f2 in zip(blocks1, blocks2):
        s, g = _stage_cosines(f1, f2)
        sim = s if sim is None else sim + s
        gram_sim = g if gram_sim is None else gram_sim + g
    n = len(blocks1)
    sim = sim / n
    gram_sim = gram_sim / n
    # trailing singleton dim == unsqueeze(dim=1)
    return sim[:, None], gram_sim[:, None]


if __name__ == "__main__":
    key = jax.random.PRNGKey(0)
    k_w, k_x1, k_x2 = jax.random.split(key, 3)

    B, C_IN, H, W = 2, 3, 64, 64
    weights = make_encoder_weights(k_w, in_ch=C_IN)
    x1 = jax.random.normal(k_x1, (B, C_IN, H, W), jnp.float32)
    x2 = jax.random.normal(k_x2, (B, C_IN, H, W), jnp.float32)

    sim, gram_sim = extractor_forward(x1, x2, *weights)
    jax.block_until_ready((sim, gram_sim))

    assert sim.shape == (B, 1) and gram_sim.shape == (B, 1)
    assert bool(jnp.all(jnp.isfinite(sim))) and bool(jnp.all(jnp.isfinite(gram_sim)))
    print("KERNEL_OK")
</pallas_src>

<mosaic_0001>
module attributes {stable_mosaic.version = 11 : i64} {
  func.func @_stage_sim_kernel(%arg0: i32, %arg1: i32, %arg2: memref<1x16x512xbf16, #tpu.memory_space<vmem>>, %arg3: memref<1x16x512xbf16, #tpu.memory_space<vmem>>, %arg4: memref<1x8x128xf32, #tpu.memory_space<vmem>>, %arg5: memref<512x512xf32, #tpu.memory_space<vmem>>, %arg6: memref<512x512xf32, #tpu.memory_space<vmem>>, %arg7: memref<8x512xf32, #tpu.memory_space<vmem>>) attributes {dimension_semantics = [#tpu.dimension_semantics<parallel>, #tpu.dimension_semantics<arbitrary>], iteration_bounds = array<i64: 2, 1>, scalar_prefetch = 0 : i64, scratch_operands = 3 : i64, tpu.core_type = #tpu.core_type<tc>, window_params = [{transform_indices = @transform_0, window_bounds = array<i64: 1, 16, 512>}, {transform_indices = @transform_1, window_bounds = array<i64: 1, 16, 512>}, {transform_indices = @transform_2, window_bounds = array<i64: 1, 8, 128>}]} {
    %c0 = arith.constant 0 : index
    %c0_0 = arith.constant 0 : index
    %c0_1 = arith.constant 0 : index
    %0 = vector.load %arg2[%c0, %c0_0, %c0_1] : memref<1x16x512xbf16, #tpu.memory_space<vmem>>, vector<1x16x512xbf16>
    %1 = vector.shape_cast %0 : vector<1x16x512xbf16> to vector<16x512xbf16>
    %c0_2 = arith.constant 0 : index
    %c0_3 = arith.constant 0 : index
    %c0_4 = arith.constant 0 : index
    %2 = vector.load %arg3[%c0_2, %c0_3, %c0_4] : memref<1x16x512xbf16, #tpu.memory_space<vmem>>, vector<1x16x512xbf16>
    %3 = vector.shape_cast %2 : vector<1x16x512xbf16> to vector<16x512xbf16>
    %cst = arith.constant dense<0.000000e+00> : vector<512x512xf32>
    %4 = tpu.matmul %1, %1, %cst {dimension_numbers = #tpu.dot_dimension_numbers<[0], [0], [1], [1], [0, 1, 1, 1], [], []>} : vector<16x512xbf16>, vector<16x512xbf16>, vector<512x512xf32> -> vector<512x512xf32>
    %cst_5 = arith.constant dense<0.000000e+00> : vector<512x512xf32>
    %5 = tpu.matmul %3, %3, %cst_5 {dimension_numbers = #tpu.dot_dimension_numbers<[0], [0], [1], [1], [0, 1, 1, 1], [], []>} : vector<16x512xbf16>, vector<16x512xbf16>, vector<512x512xf32> -> vector<512x512xf32>
    %6 = arith.extf %1 : vector<16x512xbf16> to vector<16x512xf32>
    %7 = arith.extf %3 : vector<16x512xbf16> to vector<16x512xf32>
    %8 = arith.mulf %6, %7 : vector<16x512xf32>
    %cst_6 = arith.constant dense<0.000000e+00> : vector<512xf32>
    %9 = vector.multi_reduction <add>, %8, %cst_6 [0] : vector<16x512xf32> to vector<512xf32>
    %10 = vector.shape_cast %9 : vector<512xf32> to vector<1x512xf32>
    %11 = arith.mulf %6, %6 : vector<16x512xf32>
    %cst_7 = arith.constant dense<0.000000e+00> : vector<512xf32>
    %12 = vector.multi_reduction <add>, %11, %cst_7 [0] : vector<16x512xf32> to vector<512xf32>
    %13 = vector.shape_cast %12 : vector<512xf32> to vector<1x512xf32>
    %14 = arith.mulf %7, %7 : vector<16x512xf32>
    %cst_8 = arith.constant dense<0.000000e+00> : vector<512xf32>
    %15 = vector.multi_reduction <add>, %14, %cst_8 [0] : vector<16x512xf32> to vector<512xf32>
    %16 = vector.shape_cast %15 : vector<512xf32> to vector<1x512xf32>
    %c0_i32 = arith.constant 0 : i32
    %17 = arith.cmpi eq, %arg1, %c0_i32 : i32
    %18 = arith.extui %17 : i1 to i32
    %c0_i32_9 = arith.constant 0 : i32
    %19 = arith.cmpi ne, %18, %c0_i32_9 : i32
    scf.if %19 {
      %c0_14 = arith.constant 0 : index
      %c0_15 = arith.constant 0 : index
      %26 = vector.load %arg5[%c0_14, %c0_15] : memref<512x512xf32, #tpu.memory_space<vmem>>, vector<512x512xf32>
      tpu.vector_store %arg5[%c0_14, %c0_15], %4 {strides = array<i32>} : memref<512x512xf32, #tpu.memory_space<vmem>>, vector<512x512xf32>,
      %c0_16 = arith.constant 0 : index
      %c0_17 = arith.constant 0 : index
      %27 = vector.load %arg6[%c0_16, %c0_17] : memref<512x512xf32, #tpu.memory_space<vmem>>, vector<512x512xf32>
      tpu.vector_store %arg6[%c0_16, %c0_17], %5 {strides = array<i32>} : memref<512x512xf32, #tpu.memory_space<vmem>>, vector<512x512xf32>,
      %c0_18 = arith.constant 0 : index
      %c0_19 = arith.constant 0 : index
      %28 = vector.load %arg7[%c0_18, %c0_19] : memref<8x512xf32, #tpu.memory_space<vmem>>, vector<1x512xf32>
      tpu.vector_store %arg7[%c0_18, %c0_19], %10 {strides = array<i32>} : memref<8x512xf32, #tpu.memory_space<vmem>>, vector<1x512xf32>,
      %c1 = arith.constant 1 : index
      %c0_20 = arith.constant 0 : index
      %29 = vector.load %arg7[%c1, %c0_20] : memref<8x512xf32, #tpu.memory_space<vmem>>, vector<1x512xf32>
      tpu.vector_store %arg7[%c1, %c0_20], %13 {strides = array<i32>} : memref<8x512xf32, #tpu.memory_space<vmem>>, vector<1x512xf32>,
      %c2 = arith.constant 2 : index
      %c0_21 = arith.constant 0 : index
      %30 = vector.load %arg7[%c2, %c0_21] : memref<8x512xf32, #tpu.memory_space<vmem>>, vector<1x512xf32>
      tpu.vector_store %arg7[%c2, %c0_21], %16 {strides = array<i32>} : memref<8x512xf32, #tpu.memory_space<vmem>>, vector<1x512xf32>,
    } else {
    }
    %c0_i32_10 = arith.constant 0 : i32
    %20 = arith.cmpi ne, %arg1, %c0_i32_10 : i32
    %21 = arith.extui %20 : i1 to i32
    %c0_i32_11 = arith.constant 0 : i32
    %22 = arith.cmpi ne, %21, %c0_i32_11 : i32
    scf.if %22 {
      %c0_14 = arith.constant 0 : index
      %c0_15 = arith.constant 0 : index
      %26 = vector.load %arg5[%c0_14, %c0_15] : memref<512x512xf32, #tpu.memory_space<vmem>>, vector<512x512xf32>
      %27 = arith.addf %26, %4 : vector<512x512xf32>
      %c0_16 = arith.constant 0 : index
      %c0_17 = arith.constant 0 : index
      %28 = vector.load %arg5[%c0_16, %c0_17] : memref<512x512xf32, #tpu.memory_space<vmem>>, vector<512x512xf32>
      tpu.vector_store %arg5[%c0_16, %c0_17], %27 {strides = array<i32>} : memref<512x512xf32, #tpu.memory_space<vmem>>, vector<512x512xf32>,
      %c0_18 = arith.constant 0 : index
      %c0_19 = arith.constant 0 : index
      %29 = vector.load %arg6[%c0_18, %c0_19] : memref<512x512xf32, #tpu.memory_space<vmem>>, vector<512x512xf32>
      %30 = arith.addf %29, %5 : vector<512x512xf32>
      %c0_20 = arith.constant 0 : index
      %c0_21 = arith.constant 0 : index
      %31 = vector.load %arg6[%c0_20, %c0_21] : memref<512x512xf32, #tpu.memory_space<vmem>>, vector<512x512xf32>
      tpu.vector_store %arg6[%c0_20, %c0_21], %30 {strides = array<i32>} : memref<512x512xf32, #tpu.memory_space<vmem>>, vector<512x512xf32>,
      %c0_22 = arith.constant 0 : index
      %c0_23 = arith.constant 0 : index
      %32 = vector.load %arg7[%c0_22, %c0_23] : memref<8x512xf32, #tpu.memory_space<vmem>>, vector<1x512xf32>
      %33 = arith.addf %32, %10 : vector<1x512xf32>
      %c0_24 = arith.constant 0 : index
      %c0_25 = arith.constant 0 : index
      %34 = vector.load %arg7[%c0_24, %c0_25] : memref<8x512xf32, #tpu.memory_space<vmem>>, vector<1x512xf32>
      tpu.vector_store %arg7[%c0_24, %c0_25], %33 {strides = array<i32>} : memref<8x512xf32, #tpu.memory_space<vmem>>, vector<1x512xf32>,
      %c1 = arith.constant 1 : index
      %c0_26 = arith.constant 0 : index
      %35 = vector.load %arg7[%c1, %c0_26] : memref<8x512xf32, #tpu.memory_space<vmem>>, vector<1x512xf32>
      %36 = arith.addf %35, %13 : vector<1x512xf32>
      %c1_27 = arith.constant 1 : index
      %c0_28 = arith.constant 0 : index
      %37 = vector.load %arg7[%c1_27, %c0_28] : memref<8x512xf32, #tpu.memory_space<vmem>>, vector<1x512xf32>
      tpu.vector_store %arg7[%c1_27, %c0_28], %36 {strides = array<i32>} : memref<8x512xf32, #tpu.memory_space<vmem>>, vector<1x512xf32>,
      %c2 = arith.constant 2 : index
      %c0_29 = arith.constant 0 : index
      %38 = vector.load %arg7[%c2, %c0_29] : memref<8x512xf32, #tpu.memory_space<vmem>>, vector<1x512xf32>
      %39 = arith.addf %38, %16 : vector<1x512xf32>
      %c2_30 = arith.constant 2 : index
      %c0_31 = arith.constant 0 : index
      %40 = vector.load %arg7[%c2_30, %c0_31] : memref<8x512xf32, #tpu.memory_space<vmem>>, vector<1x512xf32>
      tpu.vector_store %arg7[%c2_30, %c0_31], %39 {strides = array<i32>} : memref<8x512xf32, #tpu.memory_space<vmem>>, vector<1x512xf32>,
    } else {
    }
    %c0_i32_12 = arith.constant 0 : i32
    %23 = arith.cmpi eq, %arg1, %c0_i32_12 : i32
    %24 = arith.extui %23 : i1 to i32
    %c0_i32_13 = arith.constant 0 : i32
    %25 = arith.cmpi ne, %24, %c0_i32_13 : i32
    scf.if %25 {
      %c0_14 = arith.constant 0 : index
      %c0_15 = arith.constant 0 : index
      %26 = vector.load %arg7[%c0_14, %c0_15] : memref<8x512xf32, #tpu.memory_space<vmem>>, vector<1x512xf32>
      %27 = vector.shape_cast %26 : vector<1x512xf32> to vector<1x1x512xf32>
      %cst_16 = arith.constant dense<0.000000e+00> : vector<1xf32>
      %28 = vector.multi_reduction <add>, %27, %cst_16 [1, 2] : vector<1x1x512xf32> to vector<1xf32>
      %29 = vector.shape_cast %28 : vector<1xf32> to vector<1x1x1xf32>
      %30 = vector.extract %29[0, 0, 0] : f32 from vector<1x1x1xf32>
      %c1 = arith.constant 1 : index
      %c0_17 = arith.constant 0 : index
      %31 = vector.load %arg7[%c1, %c0_17] : memref<8x512xf32, #tpu.memory_space<vmem>>, vector<1x512xf32>
      %32 = vector.shape_cast %31 : vector<1x512xf32> to vector<1x1x512xf32>
      %cst_18 = arith.constant dense<0.000000e+00> : vector<1xf32>
      %33 = vector.multi_reduction <add>, %32, %cst_18 [1, 2] : vector<1x1x512xf32> to vector<1xf32>
      %34 = vector.shape_cast %33 : vector<1xf32> to vector<1x1x1xf32>
      %35 = vector.extract %34[0, 0, 0] : f32 from vector<1x1x1xf32>
      %c2 = arith.constant 2 : index
      %c0_19 = arith.constant 0 : index
      %36 = vector.load %arg7[%c2, %c0_19] : memref<8x512xf32, #tpu.memory_space<vmem>>, vector<1x512xf32>
      %37 = vector.shape_cast %36 : vector<1x512xf32> to vector<1x1x512xf32>
      %cst_20 = arith.constant dense<0.000000e+00> : vector<1xf32>
      %38 = vector.multi_reduction <add>, %37, %cst_20 [1, 2] : vector<1x1x512xf32> to vector<1xf32>
      %39 = vector.shape_cast %38 : vector<1xf32> to vector<1x1x1xf32>
      %40 = vector.extract %39[0, 0, 0] : f32 from vector<1x1x1xf32>
      %41 = arith.mulf %35, %40 : f32
      %42 = math.sqrt %41 : f32
      %cst_21 = arith.constant 9.99999993E-9 : f32
      %43 = arith.maximumf %42, %cst_21 : f32
      %44 = arith.divf %30, %43 : f32
      %c0_22 = arith.constant 0 : index
      %c0_23 = arith.constant 0 : index
      %45 = vector.load %arg5[%c0_22, %c0_23] : memref<512x512xf32, #tpu.memory_space<vmem>>, vector<512x512xf32>
      %c0_24 = arith.constant 0 : index
      %c0_25 = arith.constant 0 : index
      %46 = vector.load %arg6[%c0_24, %c0_25] : memref<512x512xf32, #tpu.memory_space<vmem>>, vector<512x512xf32>
      %47 = arith.mulf %45, %46 : vector<512x512xf32>
      %48 = vector.shape_cast %47 : vector<512x512xf32> to vector<1x512x512xf32>
      %cst_26 = arith.constant dense<0.000000e+00> : vector<1xf32>
      %49 = vector.multi_reduction <add>, %48, %cst_26 [1, 2] : vector<1x512x512xf32> to vector<1xf32>
      %50 = vector.shape_cast %49 : vector<1xf32> to vector<1x1x1xf32>
      %51 = vector.extract %50[0, 0, 0] : f32 from vector<1x1x1xf32>
      %52 = arith.mulf %45, %45 : vector<512x512xf32>
      %53 = vector.shape_cast %52 : vector<512x512xf32> to vector<1x512x512xf32>
      %cst_27 = arith.constant dense<0.000000e+00> : vector<1xf32>
      %54 = vector.multi_reduction <add>, %53, %cst_27 [1, 2] : vector<1x512x512xf32> to vector<1xf32>
      %55 = vector.shape_cast %54 : vector<1xf32> to vector<1x1x1xf32>
      %56 = vector.extract %55[0, 0, 0] : f32 from vector<1x1x1xf32>
      %57 = arith.mulf %46, %46 : vector<512x512xf32>
      %58 = vector.shape_cast %57 : vector<512x512xf32> to vector<1x512x512xf32>
      %cst_28 = arith.constant dense<0.000000e+00> : vector<1xf32>
      %59 = vector.multi_reduction <add>, %58, %cst_28 [1, 2] : vector<1x512x512xf32> to vector<1xf32>
      %60 = vector.shape_cast %59 : vector<1xf32> to vector<1x1x1xf32>
      %61 = vector.extract %60[0, 0, 0] : f32 from vector<1x1x1xf32>
      %62 = arith.mulf %56, %61 : f32
      %63 = math.sqrt %62 : f32
      %cst_29 = arith.constant 9.99999993E-9 : f32
      %64 = arith.maximumf %63, %cst_29 : f32
      %65 = arith.divf %51, %64 : f32
      %66 = tpu.iota {dimensions = array<i32: 1>} : vector<1x8x128xi32>
      %67 = tpu.iota {dimensions = array<i32: 2>} : vector<1x8x128xi32>
      %c0_i32_30 = arith.constant 0 : i32
      %68 = vector.broadcast %c0_i32_30 : i32 to vector<1x8x128xi32>
      %69 = arith.cmpi eq, %66, %68 : vector<1x8x128xi32>
      %c0_i32_31 = arith.constant 0 : i32
      %70 = vector.broadcast %c0_i32_31 : i32 to vector<1x8x128xi32>
      %71 = arith.cmpi eq, %67, %70 : vector<1x8x128xi32>
      %72 = arith.andi %69, %71 : vector<1x8x128xi1>
      %cst_32 = arith.constant 0.000000e+00 : f32
      %73 = vector.broadcast %44 : f32 to vector<1x8x128xf32>
      %74 = vector.broadcast %cst_32 : f32 to vector<1x8x128xf32>
      %75 = arith.select %72, %73, %74 : vector<1x8x128xi1>, vector<1x8x128xf32>
      %c0_i32_33 = arith.constant 0 : i32
      %76 = vector.broadcast %c0_i32_33 : i32 to vector<1x8x128xi32>
      %77 = arith.cmpi eq, %66, %76 : vector<1x8x128xi32>
      %c1_i32 = arith.constant 1 : i32
      %78 = vector.broadcast %c1_i32 : i32 to vector<1x8x128xi32>
      %79 = arith.cmpi eq, %67, %78 : vector<1x8x128xi32>
      %80 = arith.andi %77, %79 : vector<1x8x128xi1>
      %cst_34 = arith.constant 0.000000e+00 : f32
      %81 = vector.broadcast %65 : f32 to vector<1x8x128xf32>
      %82 = vector.broadcast %cst_34 : f32 to vector<1x8x128xf32>
      %83 = arith.select %80, %81, %82 : vector<1x8x128xi1>, vector<1x8x128xf32>
      %84 = arith.addf %75, %83 : vector<1x8x128xf32>
      %c0_35 = arith.constant 0 : index
      %c0_36 = arith.constant 0 : index
      %c0_37 = arith.constant 0 : index
      %85 = vector.load %arg4[%c0_35, %c0_36, %c0_37] : memref<1x8x128xf32, #tpu.memory_space<vmem>>, vector<1x8x128xf32>
      tpu.vector_store %arg4[%c0_35, %c0_36, %c0_37], %84 {strides = array<i32>} : memref<1x8x128xf32, #tpu.memory_space<vmem>>, vector<1x8x128xf32>,
    } else {
    }
    return
  }
  func.func @transform_0(%arg0: i32, %arg1: i32) -> (i32, i32, i32) {
    %c0_i32 = arith.constant 0 : i32
    %c0_i32_0 = arith.constant 0 : i32
    return %arg0, %arg1, %c0_i32 : i32, i32, i32
  }
  func.func @transform_1(%arg0: i32, %arg1: i32) -> (i32, i32, i32) {
    %c0_i32 = arith.constant 0 : i32
    %c0_i32_0 = arith.constant 0 : i32
    return %arg0, %arg1, %c0_i32 : i32, i32, i32
  }
  func.func @transform_2(%arg0: i32, %arg1: i32) -> (i32, i32, i32) {
    %c0_i32 = arith.constant 0 : i32
    %c0_i32_0 = arith.constant 0 : i32
    %c0_i32_1 = arith.constant 0 : i32
    return %arg0, %c0_i32, %c0_i32_0 : i32, i32, i32
  }
}

module attributes {stable_mosaic.version = 11 : i64} {
  func.func @_stage_sim_kernel(%arg0: i32, %arg1: i32, %arg2: memref<1x16x256xbf16, #tpu.memory_space<vmem>>, %arg3: memref<1x16x256xbf16, #tpu.memory_space<vmem>>, %arg4: memref<1x8x128xf32, #tpu.memory_space<vmem>>, %arg5: memref<256x256xf32, #tpu.memory_space<vmem>>, %arg6: memref<256x256xf32, #tpu.memory_space<vmem>>, %arg7: memref<8x256xf32, #tpu.memory_space<vmem>>) attributes {dimension_semantics = [#tpu.dimension_semantics<parallel>, #tpu.dimension_semantics<arbitrary>], iteration_bounds = array<i64: 2, 1>, scalar_prefetch = 0 : i64, scratch_operands = 3 : i64, tpu.core_type = #tpu.core_type<tc>, window_params = [{transform_indices = @transform_0, window_bounds = array<i64: 1, 16, 256>}, {transform_indices = @transform_1, window_bounds = array<i64: 1, 16, 256>}, {transform_indices = @transform_2, window_bounds = array<i64: 1, 8, 128>}]} {
    %c0 = arith.constant 0 : index
    %c0_0 = arith.constant 0 : index
    %c0_1 = arith.constant 0 : index
    %0 = vector.load %arg2[%c0, %c0_0, %c0_1] : memref<1x16x256xbf16, #tpu.memory_space<vmem>>, vector<1x16x256xbf16>
    %1 = vector.shape_cast %0 : vector<1x16x256xbf16> to vector<16x256xbf16>
    %c0_2 = arith.constant 0 : index
    %c0_3 = arith.constant 0 : index
    %c0_4 = arith.constant 0 : index
    %2 = vector.load %arg3[%c0_2, %c0_3, %c0_4] : memref<1x16x256xbf16, #tpu.memory_space<vmem>>, vector<1x16x256xbf16>
    %3 = vector.shape_cast %2 : vector<1x16x256xbf16> to vector<16x256xbf16>
    %cst = arith.constant dense<0.000000e+00> : vector<256x256xf32>
    %4 = tpu.matmul %1, %1, %cst {dimension_numbers = #tpu.dot_dimension_numbers<[0], [0], [1], [1], [0, 1, 1, 1], [], []>} : vector<16x256xbf16>, vector<16x256xbf16>, vector<256x256xf32> -> vector<256x256xf32>
    %cst_5 = arith.constant dense<0.000000e+00> : vector<256x256xf32>
    %5 = tpu.matmul %3, %3, %cst_5 {dimension_numbers = #tpu.dot_dimension_numbers<[0], [0], [1], [1], [0, 1, 1, 1], [], []>} : vector<16x256xbf16>, vector<16x256xbf16>, vector<256x256xf32> -> vector<256x256xf32>
    %6 = arith.extf %1 : vector<16x256xbf16> to vector<16x256xf32>
    %7 = arith.extf %3 : vector<16x256xbf16> to vector<16x256xf32>
    %8 = arith.mulf %6, %7 : vector<16x256xf32>
    %cst_6 = arith.constant dense<0.000000e+00> : vector<256xf32>
    %9 = vector.multi_reduction <add>, %8, %cst_6 [0] : vector<16x256xf32> to vector<256xf32>
    %10 = vector.shape_cast %9 : vector<256xf32> to vector<1x256xf32>
    %11 = arith.mulf %6, %6 : vector<16x256xf32>
    %cst_7 = arith.constant dense<0.000000e+00> : vector<256xf32>
    %12 = vector.multi_reduction <add>, %11, %cst_7 [0] : vector<16x256xf32> to vector<256xf32>
    %13 = vector.shape_cast %12 : vector<256xf32> to vector<1x256xf32>
    %14 = arith.mulf %7, %7 : vector<16x256xf32>
    %cst_8 = arith.constant dense<0.000000e+00> : vector<256xf32>
    %15 = vector.multi_reduction <add>, %14, %cst_8 [0] : vector<16x256xf32> to vector<256xf32>
    %16 = vector.shape_cast %15 : vector<256xf32> to vector<1x256xf32>
    %c0_i32 = arith.constant 0 : i32
    %17 = arith.cmpi eq, %arg1, %c0_i32 : i32
    %18 = arith.extui %17 : i1 to i32
    %c0_i32_9 = arith.constant 0 : i32
    %19 = arith.cmpi ne, %18, %c0_i32_9 : i32
    scf.if %19 {
      %c0_14 = arith.constant 0 : index
      %c0_15 = arith.constant 0 : index
      %26 = vector.load %arg5[%c0_14, %c0_15] : memref<256x256xf32, #tpu.memory_space<vmem>>, vector<256x256xf32>
      tpu.vector_store %arg5[%c0_14, %c0_15], %4 {strides = array<i32>} : memref<256x256xf32, #tpu.memory_space<vmem>>, vector<256x256xf32>,
      %c0_16 = arith.constant 0 : index
      %c0_17 = arith.constant 0 : index
      %27 = vector.load %arg6[%c0_16, %c0_17] : memref<256x256xf32, #tpu.memory_space<vmem>>, vector<256x256xf32>
      tpu.vector_store %arg6[%c0_16, %c0_17], %5 {strides = array<i32>} : memref<256x256xf32, #tpu.memory_space<vmem>>, vector<256x256xf32>,
      %c0_18 = arith.constant 0 : index
      %c0_19 = arith.constant 0 : index
      %28 = vector.load %arg7[%c0_18, %c0_19] : memref<8x256xf32, #tpu.memory_space<vmem>>, vector<1x256xf32>
      tpu.vector_store %arg7[%c0_18, %c0_19], %10 {strides = array<i32>} : memref<8x256xf32, #tpu.memory_space<vmem>>, vector<1x256xf32>,
      %c1 = arith.constant 1 : index
      %c0_20 = arith.constant 0 : index
      %29 = vector.load %arg7[%c1, %c0_20] : memref<8x256xf32, #tpu.memory_space<vmem>>, vector<1x256xf32>
      tpu.vector_store %arg7[%c1, %c0_20], %13 {strides = array<i32>} : memref<8x256xf32, #tpu.memory_space<vmem>>, vector<1x256xf32>,
      %c2 = arith.constant 2 : index
      %c0_21 = arith.constant 0 : index
      %30 = vector.load %arg7[%c2, %c0_21] : memref<8x256xf32, #tpu.memory_space<vmem>>, vector<1x256xf32>
      tpu.vector_store %arg7[%c2, %c0_21], %16 {strides = array<i32>} : memref<8x256xf32, #tpu.memory_space<vmem>>, vector<1x256xf32>,
    } else {
    }
    %c0_i32_10 = arith.constant 0 : i32
    %20 = arith.cmpi ne, %arg1, %c0_i32_10 : i32
    %21 = arith.extui %20 : i1 to i32
    %c0_i32_11 = arith.constant 0 : i32
    %22 = arith.cmpi ne, %21, %c0_i32_11 : i32
    scf.if %22 {
      %c0_14 = arith.constant 0 : index
      %c0_15 = arith.constant 0 : index
      %26 = vector.load %arg5[%c0_14, %c0_15] : memref<256x256xf32, #tpu.memory_space<vmem>>, vector<256x256xf32>
      %27 = arith.addf %26, %4 : vector<256x256xf32>
      %c0_16 = arith.constant 0 : index
      %c0_17 = arith.constant 0 : index
      %28 = vector.load %arg5[%c0_16, %c0_17] : memref<256x256xf32, #tpu.memory_space<vmem>>, vector<256x256xf32>
      tpu.vector_store %arg5[%c0_16, %c0_17], %27 {strides = array<i32>} : memref<256x256xf32, #tpu.memory_space<vmem>>, vector<256x256xf32>,
      %c0_18 = arith.constant 0 : index
      %c0_19 = arith.constant 0 : index
      %29 = vector.load %arg6[%c0_18, %c0_19] : memref<256x256xf32, #tpu.memory_space<vmem>>, vector<256x256xf32>
      %30 = arith.addf %29, %5 : vector<256x256xf32>
      %c0_20 = arith.constant 0 : index
      %c0_21 = arith.constant 0 : index
      %31 = vector.load %arg6[%c0_20, %c0_21] : memref<256x256xf32, #tpu.memory_space<vmem>>, vector<256x256xf32>
      tpu.vector_store %arg6[%c0_20, %c0_21], %30 {strides = array<i32>} : memref<256x256xf32, #tpu.memory_space<vmem>>, vector<256x256xf32>,
      %c0_22 = arith.constant 0 : index
      %c0_23 = arith.constant 0 : index
      %32 = vector.load %arg7[%c0_22, %c0_23] : memref<8x256xf32, #tpu.memory_space<vmem>>, vector<1x256xf32>
      %33 = arith.addf %32, %10 : vector<1x256xf32>
      %c0_24 = arith.constant 0 : index
      %c0_25 = arith.constant 0 : index
      %34 = vector.load %arg7[%c0_24, %c0_25] : memref<8x256xf32, #tpu.memory_space<vmem>>, vector<1x256xf32>
      tpu.vector_store %arg7[%c0_24, %c0_25], %33 {strides = array<i32>} : memref<8x256xf32, #tpu.memory_space<vmem>>, vector<1x256xf32>,
      %c1 = arith.constant 1 : index
      %c0_26 = arith.constant 0 : index
      %35 = vector.load %arg7[%c1, %c0_26] : memref<8x256xf32, #tpu.memory_space<vmem>>, vector<1x256xf32>
      %36 = arith.addf %35, %13 : vector<1x256xf32>
      %c1_27 = arith.constant 1 : index
      %c0_28 = arith.constant 0 : index
      %37 = vector.load %arg7[%c1_27, %c0_28] : memref<8x256xf32, #tpu.memory_space<vmem>>, vector<1x256xf32>
      tpu.vector_store %arg7[%c1_27, %c0_28], %36 {strides = array<i32>} : memref<8x256xf32, #tpu.memory_space<vmem>>, vector<1x256xf32>,
      %c2 = arith.constant 2 : index
      %c0_29 = arith.constant 0 : index
      %38 = vector.load %arg7[%c2, %c0_29] : memref<8x256xf32, #tpu.memory_space<vmem>>, vector<1x256xf32>
      %39 = arith.addf %38, %16 : vector<1x256xf32>
      %c2_30 = arith.constant 2 : index
      %c0_31 = arith.constant 0 : index
      %40 = vector.load %arg7[%c2_30, %c0_31] : memref<8x256xf32, #tpu.memory_space<vmem>>, vector<1x256xf32>
      tpu.vector_store %arg7[%c2_30, %c0_31], %39 {strides = array<i32>} : memref<8x256xf32, #tpu.memory_space<vmem>>, vector<1x256xf32>,
    } else {
    }
    %c0_i32_12 = arith.constant 0 : i32
    %23 = arith.cmpi eq, %arg1, %c0_i32_12 : i32
    %24 = arith.extui %23 : i1 to i32
    %c0_i32_13 = arith.constant 0 : i32
    %25 = arith.cmpi ne, %24, %c0_i32_13 : i32
    scf.if %25 {
      %c0_14 = arith.constant 0 : index
      %c0_15 = arith.constant 0 : index
      %26 = vector.load %arg7[%c0_14, %c0_15] : memref<8x256xf32, #tpu.memory_space<vmem>>, vector<1x256xf32>
      %27 = vector.shape_cast %26 : vector<1x256xf32> to vector<1x1x256xf32>
      %cst_16 = arith.constant dense<0.000000e+00> : vector<1xf32>
      %28 = vector.multi_reduction <add>, %27, %cst_16 [1, 2] : vector<1x1x256xf32> to vector<1xf32>
      %29 = vector.shape_cast %28 : vector<1xf32> to vector<1x1x1xf32>
      %30 = vector.extract %29[0, 0, 0] : f32 from vector<1x1x1xf32>
      %c1 = arith.constant 1 : index
      %c0_17 = arith.constant 0 : index
      %31 = vector.load %arg7[%c1, %c0_17] : memref<8x256xf32, #tpu.memory_space<vmem>>, vector<1x256xf32>
      %32 = vector.shape_cast %31 : vector<1x256xf32> to vector<1x1x256xf32>
      %cst_18 = arith.constant dense<0.000000e+00> : vector<1xf32>
      %33 = vector.multi_reduction <add>, %32, %cst_18 [1, 2] : vector<1x1x256xf32> to vector<1xf32>
      %34 = vector.shape_cast %33 : vector<1xf32> to vector<1x1x1xf32>
      %35 = vector.extract %34[0, 0, 0] : f32 from vector<1x1x1xf32>
      %c2 = arith.constant 2 : index
      %c0_19 = arith.constant 0 : index
      %36 = vector.load %arg7[%c2, %c0_19] : memref<8x256xf32, #tpu.memory_space<vmem>>, vector<1x256xf32>
      %37 = vector.shape_cast %36 : vector<1x256xf32> to vector<1x1x256xf32>
      %cst_20 = arith.constant dense<0.000000e+00> : vector<1xf32>
      %38 = vector.multi_reduction <add>, %37, %cst_20 [1, 2] : vector<1x1x256xf32> to vector<1xf32>
      %39 = vector.shape_cast %38 : vector<1xf32> to vector<1x1x1xf32>
      %40 = vector.extract %39[0, 0, 0] : f32 from vector<1x1x1xf32>
      %41 = arith.mulf %35, %40 : f32
      %42 = math.sqrt %41 : f32
      %cst_21 = arith.constant 9.99999993E-9 : f32
      %43 = arith.maximumf %42, %cst_21 : f32
      %44 = arith.divf %30, %43 : f32
      %c0_22 = arith.constant 0 : index
      %c0_23 = arith.constant 0 : index
      %45 = vector.load %arg5[%c0_22, %c0_23] : memref<256x256xf32, #tpu.memory_space<vmem>>, vector<256x256xf32>
      %c0_24 = arith.constant 0 : index
      %c0_25 = arith.constant 0 : index
      %46 = vector.load %arg6[%c0_24, %c0_25] : memref<256x256xf32, #tpu.memory_space<vmem>>, vector<256x256xf32>
      %47 = arith.mulf %45, %46 : vector<256x256xf32>
      %48 = vector.shape_cast %47 : vector<256x256xf32> to vector<1x256x256xf32>
      %cst_26 = arith.constant dense<0.000000e+00> : vector<1xf32>
      %49 = vector.multi_reduction <add>, %48, %cst_26 [1, 2] : vector<1x256x256xf32> to vector<1xf32>
      %50 = vector.shape_cast %49 : vector<1xf32> to vector<1x1x1xf32>
      %51 = vector.extract %50[0, 0, 0] : f32 from vector<1x1x1xf32>
      %52 = arith.mulf %45, %45 : vector<256x256xf32>
      %53 = vector.shape_cast %52 : vector<256x256xf32> to vector<1x256x256xf32>
      %cst_27 = arith.constant dense<0.000000e+00> : vector<1xf32>
      %54 = vector.multi_reduction <add>, %53, %cst_27 [1, 2] : vector<1x256x256xf32> to vector<1xf32>
      %55 = vector.shape_cast %54 : vector<1xf32> to vector<1x1x1xf32>
      %56 = vector.extract %55[0, 0, 0] : f32 from vector<1x1x1xf32>
      %57 = arith.mulf %46, %46 : vector<256x256xf32>
      %58 = vector.shape_cast %57 : vector<256x256xf32> to vector<1x256x256xf32>
      %cst_28 = arith.constant dense<0.000000e+00> : vector<1xf32>
      %59 = vector.multi_reduction <add>, %58, %cst_28 [1, 2] : vector<1x256x256xf32> to vector<1xf32>
      %60 = vector.shape_cast %59 : vector<1xf32> to vector<1x1x1xf32>
      %61 = vector.extract %60[0, 0, 0] : f32 from vector<1x1x1xf32>
      %62 = arith.mulf %56, %61 : f32
      %63 = math.sqrt %62 : f32
      %cst_29 = arith.constant 9.99999993E-9 : f32
      %64 = arith.maximumf %63, %cst_29 : f32
      %65 = arith.divf %51, %64 : f32
      %66 = tpu.iota {dimensions = array<i32: 1>} : vector<1x8x128xi32>
      %67 = tpu.iota {dimensions = array<i32: 2>} : vector<1x8x128xi32>
      %c0_i32_30 = arith.constant 0 : i32
      %68 = vector.broadcast %c0_i32_30 : i32 to vector<1x8x128xi32>
      %69 = arith.cmpi eq, %66, %68 : vector<1x8x128xi32>
      %c0_i32_31 = arith.constant 0 : i32
      %70 = vector.broadcast %c0_i32_31 : i32 to vector<1x8x128xi32>
      %71 = arith.cmpi eq, %67, %70 : vector<1x8x128xi32>
      %72 = arith.andi %69, %71 : vector<1x8x128xi1>
      %cst_32 = arith.constant 0.000000e+00 : f32
      %73 = vector.broadcast %44 : f32 to vector<1x8x128xf32>
      %74 = vector.broadcast %cst_32 : f32 to vector<1x8x128xf32>
      %75 = arith.select %72, %73, %74 : vector<1x8x128xi1>, vector<1x8x128xf32>
      %c0_i32_33 = arith.constant 0 : i32
      %76 = vector.broadcast %c0_i32_33 : i32 to vector<1x8x128xi32>
      %77 = arith.cmpi eq, %66, %76 : vector<1x8x128xi32>
      %c1_i32 = arith.constant 1 : i32
      %78 = vector.broadcast %c1_i32 : i32 to vector<1x8x128xi32>
      %79 = arith.cmpi eq, %67, %78 : vector<1x8x128xi32>
      %80 = arith.andi %77, %79 : vector<1x8x128xi1>
      %cst_34 = arith.constant 0.000000e+00 : f32
      %81 = vector.broadcast %65 : f32 to vector<1x8x128xf32>
      %82 = vector.broadcast %cst_34 : f32 to vector<1x8x128xf32>
      %83 = arith.select %80, %81, %82 : vector<1x8x128xi1>, vector<1x8x128xf32>
      %84 = arith.addf %75, %83 : vector<1x8x128xf32>
      %c0_35 = arith.constant 0 : index
      %c0_36 = arith.constant 0 : index
      %c0_37 = arith.constant 0 : index
      %85 = vector.load %arg4[%c0_35, %c0_36, %c0_37] : memref<1x8x128xf32, #tpu.memory_space<vmem>>, vector<1x8x128xf32>
      tpu.vector_store %arg4[%c0_35, %c0_36, %c0_37], %84 {strides = array<i32>} : memref<1x8x128xf32, #tpu.memory_space<vmem>>, vector<1x8x128xf32>,
    } else {
    }
    return
  }
  func.func @transform_0(%arg0: i32, %arg1: i32) -> (i32, i32, i32) {
    %c0_i32 = arith.constant 0 : i32
    %c0_i32_0 = arith.constant 0 : i32
    return %arg0, %arg1, %c0_i32 : i32, i32, i32
  }
  func.func @transform_1(%arg0: i32, %arg1: i32) -> (i32, i32, i32) {
    %c0_i32 = arith.constant 0 : i32
    %c0_i32_0 = arith.constant 0 : i32
    return %arg0, %arg1, %c0_i32 : i32, i32, i32
  }
  func.func @transform_2(%arg0: i32, %arg1: i32) -> (i32, i32, i32) {
    %c0_i32 = arith.constant 0 : i32
    %c0_i32_0 = arith.constant 0 : i32
    %c0_i32_1 = arith.constant 0 : i32
    return %arg0, %c0_i32, %c0_i32_0 : i32, i32, i32
  }
}

module attributes {stable_mosaic.version = 11 : i64} {
  func.func @_stage_sim_kernel(%arg0: i32, %arg1: i32, %arg2: memref<1x64x128xbf16, #tpu.memory_space<vmem>>, %arg3: memref<1x64x128xbf16, #tpu.memory_space<vmem>>, %arg4: memref<1x8x128xf32, #tpu.memory_space<vmem>>, %arg5: memref<128x128xf32, #tpu.memory_space<vmem>>, %arg6: memref<128x128xf32, #tpu.memory_space<vmem>>, %arg7: memref<8x128xf32, #tpu.memory_space<vmem>>) attributes {dimension_semantics = [#tpu.dimension_semantics<parallel>, #tpu.dimension_semantics<arbitrary>], iteration_bounds = array<i64: 2, 1>, scalar_prefetch = 0 : i64, scratch_operands = 3 : i64, tpu.core_type = #tpu.core_type<tc>, window_params = [{transform_indices = @transform_0, window_bounds = array<i64: 1, 64, 128>}, {transform_indices = @transform_1, window_bounds = array<i64: 1, 64, 128>}, {transform_indices = @transform_2, window_bounds = array<i64: 1, 8, 128>}]} {
    %c0 = arith.constant 0 : index
    %c0_0 = arith.constant 0 : index
    %c0_1 = arith.constant 0 : index
    %0 = vector.load %arg2[%c0, %c0_0, %c0_1] : memref<1x64x128xbf16, #tpu.memory_space<vmem>>, vector<1x64x128xbf16>
    %1 = vector.shape_cast %0 : vector<1x64x128xbf16> to vector<64x128xbf16>
    %c0_2 = arith.constant 0 : index
    %c0_3 = arith.constant 0 : index
    %c0_4 = arith.constant 0 : index
    %2 = vector.load %arg3[%c0_2, %c0_3, %c0_4] : memref<1x64x128xbf16, #tpu.memory_space<vmem>>, vector<1x64x128xbf16>
    %3 = vector.shape_cast %2 : vector<1x64x128xbf16> to vector<64x128xbf16>
    %cst = arith.constant dense<0.000000e+00> : vector<128x128xf32>
    %4 = tpu.matmul %1, %1, %cst {dimension_numbers = #tpu.dot_dimension_numbers<[0], [0], [1], [1], [0, 1, 1, 1], [], []>} : vector<64x128xbf16>, vector<64x128xbf16>, vector<128x128xf32> -> vector<128x128xf32>
    %cst_5 = arith.constant dense<0.000000e+00> : vector<128x128xf32>
    %5 = tpu.matmul %3, %3, %cst_5 {dimension_numbers = #tpu.dot_dimension_numbers<[0], [0], [1], [1], [0, 1, 1, 1], [], []>} : vector<64x128xbf16>, vector<64x128xbf16>, vector<128x128xf32> -> vector<128x128xf32>
    %6 = arith.extf %1 : vector<64x128xbf16> to vector<64x128xf32>
    %7 = arith.extf %3 : vector<64x128xbf16> to vector<64x128xf32>
    %8 = arith.mulf %6, %7 : vector<64x128xf32>
    %cst_6 = arith.constant dense<0.000000e+00> : vector<128xf32>
    %9 = vector.multi_reduction <add>, %8, %cst_6 [0] : vector<64x128xf32> to vector<128xf32>
    %10 = vector.shape_cast %9 : vector<128xf32> to vector<1x128xf32>
    %11 = arith.mulf %6, %6 : vector<64x128xf32>
    %cst_7 = arith.constant dense<0.000000e+00> : vector<128xf32>
    %12 = vector.multi_reduction <add>, %11, %cst_7 [0] : vector<64x128xf32> to vector<128xf32>
    %13 = vector.shape_cast %12 : vector<128xf32> to vector<1x128xf32>
    %14 = arith.mulf %7, %7 : vector<64x128xf32>
    %cst_8 = arith.constant dense<0.000000e+00> : vector<128xf32>
    %15 = vector.multi_reduction <add>, %14, %cst_8 [0] : vector<64x128xf32> to vector<128xf32>
    %16 = vector.shape_cast %15 : vector<128xf32> to vector<1x128xf32>
    %c0_i32 = arith.constant 0 : i32
    %17 = arith.cmpi eq, %arg1, %c0_i32 : i32
    %18 = arith.extui %17 : i1 to i32
    %c0_i32_9 = arith.constant 0 : i32
    %19 = arith.cmpi ne, %18, %c0_i32_9 : i32
    scf.if %19 {
      %c0_14 = arith.constant 0 : index
      %c0_15 = arith.constant 0 : index
      %26 = vector.load %arg5[%c0_14, %c0_15] : memref<128x128xf32, #tpu.memory_space<vmem>>, vector<128x128xf32>
      tpu.vector_store %arg5[%c0_14, %c0_15], %4 {strides = array<i32>} : memref<128x128xf32, #tpu.memory_space<vmem>>, vector<128x128xf32>,
      %c0_16 = arith.constant 0 : index
      %c0_17 = arith.constant 0 : index
      %27 = vector.load %arg6[%c0_16, %c0_17] : memref<128x128xf32, #tpu.memory_space<vmem>>, vector<128x128xf32>
      tpu.vector_store %arg6[%c0_16, %c0_17], %5 {strides = array<i32>} : memref<128x128xf32, #tpu.memory_space<vmem>>, vector<128x128xf32>,
      %c0_18 = arith.constant 0 : index
      %c0_19 = arith.constant 0 : index
      %28 = vector.load %arg7[%c0_18, %c0_19] : memref<8x128xf32, #tpu.memory_space<vmem>>, vector<1x128xf32>
      tpu.vector_store %arg7[%c0_18, %c0_19], %10 {strides = array<i32>} : memref<8x128xf32, #tpu.memory_space<vmem>>, vector<1x128xf32>,
      %c1 = arith.constant 1 : index
      %c0_20 = arith.constant 0 : index
      %29 = vector.load %arg7[%c1, %c0_20] : memref<8x128xf32, #tpu.memory_space<vmem>>, vector<1x128xf32>
      tpu.vector_store %arg7[%c1, %c0_20], %13 {strides = array<i32>} : memref<8x128xf32, #tpu.memory_space<vmem>>, vector<1x128xf32>,
      %c2 = arith.constant 2 : index
      %c0_21 = arith.constant 0 : index
      %30 = vector.load %arg7[%c2, %c0_21] : memref<8x128xf32, #tpu.memory_space<vmem>>, vector<1x128xf32>
      tpu.vector_store %arg7[%c2, %c0_21], %16 {strides = array<i32>} : memref<8x128xf32, #tpu.memory_space<vmem>>, vector<1x128xf32>,
    } else {
    }
    %c0_i32_10 = arith.constant 0 : i32
    %20 = arith.cmpi ne, %arg1, %c0_i32_10 : i32
    %21 = arith.extui %20 : i1 to i32
    %c0_i32_11 = arith.constant 0 : i32
    %22 = arith.cmpi ne, %21, %c0_i32_11 : i32
    scf.if %22 {
      %c0_14 = arith.constant 0 : index
      %c0_15 = arith.constant 0 : index
      %26 = vector.load %arg5[%c0_14, %c0_15] : memref<128x128xf32, #tpu.memory_space<vmem>>, vector<128x128xf32>
      %27 = arith.addf %26, %4 : vector<128x128xf32>
      %c0_16 = arith.constant 0 : index
      %c0_17 = arith.constant 0 : index
      %28 = vector.load %arg5[%c0_16, %c0_17] : memref<128x128xf32, #tpu.memory_space<vmem>>, vector<128x128xf32>
      tpu.vector_store %arg5[%c0_16, %c0_17], %27 {strides = array<i32>} : memref<128x128xf32, #tpu.memory_space<vmem>>, vector<128x128xf32>,
      %c0_18 = arith.constant 0 : index
      %c0_19 = arith.constant 0 : index
      %29 = vector.load %arg6[%c0_18, %c0_19] : memref<128x128xf32, #tpu.memory_space<vmem>>, vector<128x128xf32>
      %30 = arith.addf %29, %5 : vector<128x128xf32>
      %c0_20 = arith.constant 0 : index
      %c0_21 = arith.constant 0 : index
      %31 = vector.load %arg6[%c0_20, %c0_21] : memref<128x128xf32, #tpu.memory_space<vmem>>, vector<128x128xf32>
      tpu.vector_store %arg6[%c0_20, %c0_21], %30 {strides = array<i32>} : memref<128x128xf32, #tpu.memory_space<vmem>>, vector<128x128xf32>,
      %c0_22 = arith.constant 0 : index
      %c0_23 = arith.constant 0 : index
      %32 = vector.load %arg7[%c0_22, %c0_23] : memref<8x128xf32, #tpu.memory_space<vmem>>, vector<1x128xf32>
      %33 = arith.addf %32, %10 : vector<1x128xf32>
      %c0_24 = arith.constant 0 : index
      %c0_25 = arith.constant 0 : index
      %34 = vector.load %arg7[%c0_24, %c0_25] : memref<8x128xf32, #tpu.memory_space<vmem>>, vector<1x128xf32>
      tpu.vector_store %arg7[%c0_24, %c0_25], %33 {strides = array<i32>} : memref<8x128xf32, #tpu.memory_space<vmem>>, vector<1x128xf32>,
      %c1 = arith.constant 1 : index
      %c0_26 = arith.constant 0 : index
      %35 = vector.load %arg7[%c1, %c0_26] : memref<8x128xf32, #tpu.memory_space<vmem>>, vector<1x128xf32>
      %36 = arith.addf %35, %13 : vector<1x128xf32>
      %c1_27 = arith.constant 1 : index
      %c0_28 = arith.constant 0 : index
      %37 = vector.load %arg7[%c1_27, %c0_28] : memref<8x128xf32, #tpu.memory_space<vmem>>, vector<1x128xf32>
      tpu.vector_store %arg7[%c1_27, %c0_28], %36 {strides = array<i32>} : memref<8x128xf32, #tpu.memory_space<vmem>>, vector<1x128xf32>,
      %c2 = arith.constant 2 : index
      %c0_29 = arith.constant 0 : index
      %38 = vector.load %arg7[%c2, %c0_29] : memref<8x128xf32, #tpu.memory_space<vmem>>, vector<1x128xf32>
      %39 = arith.addf %38, %16 : vector<1x128xf32>
      %c2_30 = arith.constant 2 : index
      %c0_31 = arith.constant 0 : index
      %40 = vector.load %arg7[%c2_30, %c0_31] : memref<8x128xf32, #tpu.memory_space<vmem>>, vector<1x128xf32>
      tpu.vector_store %arg7[%c2_30, %c0_31], %39 {strides = array<i32>} : memref<8x128xf32, #tpu.memory_space<vmem>>, vector<1x128xf32>,
    } else {
    }
    %c0_i32_12 = arith.constant 0 : i32
    %23 = arith.cmpi eq, %arg1, %c0_i32_12 : i32
    %24 = arith.extui %23 : i1 to i32
    %c0_i32_13 = arith.constant 0 : i32
    %25 = arith.cmpi ne, %24, %c0_i32_13 : i32
    scf.if %25 {
      %c0_14 = arith.constant 0 : index
      %c0_15 = arith.constant 0 : index
      %26 = vector.load %arg7[%c0_14, %c0_15] : memref<8x128xf32, #tpu.memory_space<vmem>>, vector<1x128xf32>
      %27 = vector.shape_cast %26 : vector<1x128xf32> to vector<1x1x128xf32>
      %cst_16 = arith.constant dense<0.000000e+00> : vector<1xf32>
      %28 = vector.multi_reduction <add>, %27, %cst_16 [1, 2] : vector<1x1x128xf32> to vector<1xf32>
      %29 = vector.shape_cast %28 : vector<1xf32> to vector<1x1x1xf32>
      %30 = vector.extract %29[0, 0, 0] : f32 from vector<1x1x1xf32>
      %c1 = arith.constant 1 : index
      %c0_17 = arith.constant 0 : index
      %31 = vector.load %arg7[%c1, %c0_17] : memref<8x128xf32, #tpu.memory_space<vmem>>, vector<1x128xf32>
      %32 = vector.shape_cast %31 : vector<1x128xf32> to vector<1x1x128xf32>
      %cst_18 = arith.constant dense<0.000000e+00> : vector<1xf32>
      %33 = vector.multi_reduction <add>, %32, %cst_18 [1, 2] : vector<1x1x128xf32> to vector<1xf32>
      %34 = vector.shape_cast %33 : vector<1xf32> to vector<1x1x1xf32>
      %35 = vector.extract %34[0, 0, 0] : f32 from vector<1x1x1xf32>
      %c2 = arith.constant 2 : index
      %c0_19 = arith.constant 0 : index
      %36 = vector.load %arg7[%c2, %c0_19] : memref<8x128xf32, #tpu.memory_space<vmem>>, vector<1x128xf32>
      %37 = vector.shape_cast %36 : vector<1x128xf32> to vector<1x1x128xf32>
      %cst_20 = arith.constant dense<0.000000e+00> : vector<1xf32>
      %38 = vector.multi_reduction <add>, %37, %cst_20 [1, 2] : vector<1x1x128xf32> to vector<1xf32>
      %39 = vector.shape_cast %38 : vector<1xf32> to vector<1x1x1xf32>
      %40 = vector.extract %39[0, 0, 0] : f32 from vector<1x1x1xf32>
      %41 = arith.mulf %35, %40 : f32
      %42 = math.sqrt %41 : f32
      %cst_21 = arith.constant 9.99999993E-9 : f32
      %43 = arith.maximumf %42, %cst_21 : f32
      %44 = arith.divf %30, %43 : f32
      %c0_22 = arith.constant 0 : index
      %c0_23 = arith.constant 0 : index
      %45 = vector.load %arg5[%c0_22, %c0_23] : memref<128x128xf32, #tpu.memory_space<vmem>>, vector<128x128xf32>
      %c0_24 = arith.constant 0 : index
      %c0_25 = arith.constant 0 : index
      %46 = vector.load %arg6[%c0_24, %c0_25] : memref<128x128xf32, #tpu.memory_space<vmem>>, vector<128x128xf32>
      %47 = arith.mulf %45, %46 : vector<128x128xf32>
      %48 = vector.shape_cast %47 : vector<128x128xf32> to vector<1x128x128xf32>
      %cst_26 = arith.constant dense<0.000000e+00> : vector<1xf32>
      %49 = vector.multi_reduction <add>, %48, %cst_26 [1, 2] : vector<1x128x128xf32> to vector<1xf32>
      %50 = vector.shape_cast %49 : vector<1xf32> to vector<1x1x1xf32>
      %51 = vector.extract %50[0, 0, 0] : f32 from vector<1x1x1xf32>
      %52 = arith.mulf %45, %45 : vector<128x128xf32>
      %53 = vector.shape_cast %52 : vector<128x128xf32> to vector<1x128x128xf32>
      %cst_27 = arith.constant dense<0.000000e+00> : vector<1xf32>
      %54 = vector.multi_reduction <add>, %53, %cst_27 [1, 2] : vector<1x128x128xf32> to vector<1xf32>
      %55 = vector.shape_cast %54 : vector<1xf32> to vector<1x1x1xf32>
      %56 = vector.extract %55[0, 0, 0] : f32 from vector<1x1x1xf32>
      %57 = arith.mulf %46, %46 : vector<128x128xf32>
      %58 = vector.shape_cast %57 : vector<128x128xf32> to vector<1x128x128xf32>
      %cst_28 = arith.constant dense<0.000000e+00> : vector<1xf32>
      %59 = vector.multi_reduction <add>, %58, %cst_28 [1, 2] : vector<1x128x128xf32> to vector<1xf32>
      %60 = vector.shape_cast %59 : vector<1xf32> to vector<1x1x1xf32>
      %61 = vector.extract %60[0, 0, 0] : f32 from vector<1x1x1xf32>
      %62 = arith.mulf %56, %61 : f32
      %63 = math.sqrt %62 : f32
      %cst_29 = arith.constant 9.99999993E-9 : f32
      %64 = arith.maximumf %63, %cst_29 : f32
      %65 = arith.divf %51, %64 : f32
      %66 = tpu.iota {dimensions = array<i32: 1>} : vector<1x8x128xi32>
      %67 = tpu.iota {dimensions = array<i32: 2>} : vector<1x8x128xi32>
      %c0_i32_30 = arith.constant 0 : i32
      %68 = vector.broadcast %c0_i32_30 : i32 to vector<1x8x128xi32>
      %69 = arith.cmpi eq, %66, %68 : vector<1x8x128xi32>
      %c0_i32_31 = arith.constant 0 : i32
      %70 = vector.broadcast %c0_i32_31 : i32 to vector<1x8x128xi32>
      %71 = arith.cmpi eq, %67, %70 : vector<1x8x128xi32>
      %72 = arith.andi %69, %71 : vector<1x8x128xi1>
      %cst_32 = arith.constant 0.000000e+00 : f32
      %73 = vector.broadcast %44 : f32 to vector<1x8x128xf32>
      %74 = vector.broadcast %cst_32 : f32 to vector<1x8x128xf32>
      %75 = arith.select %72, %73, %74 : vector<1x8x128xi1>, vector<1x8x128xf32>
      %c0_i32_33 = arith.constant 0 : i32
      %76 = vector.broadcast %c0_i32_33 : i32 to vector<1x8x128xi32>
      %77 = arith.cmpi eq, %66, %76 : vector<1x8x128xi32>
      %c1_i32 = arith.constant 1 : i32
      %78 = vector.broadcast %c1_i32 : i32 to vector<1x8x128xi32>
      %79 = arith.cmpi eq, %67, %78 : vector<1x8x128xi32>
      %80 = arith.andi %77, %79 : vector<1x8x128xi1>
      %cst_34 = arith.constant 0.000000e+00 : f32
      %81 = vector.broadcast %65 : f32 to vector<1x8x128xf32>
      %82 = vector.broadcast %cst_34 : f32 to vector<1x8x128xf32>
      %83 = arith.select %80, %81, %82 : vector<1x8x128xi1>, vector<1x8x128xf32>
      %84 = arith.addf %75, %83 : vector<1x8x128xf32>
      %c0_35 = arith.constant 0 : index
      %c0_36 = arith.constant 0 : index
      %c0_37 = arith.constant 0 : index
      %85 = vector.load %arg4[%c0_35, %c0_36, %c0_37] : memref<1x8x128xf32, #tpu.memory_space<vmem>>, vector<1x8x128xf32>
      tpu.vector_store %arg4[%c0_35, %c0_36, %c0_37], %84 {strides = array<i32>} : memref<1x8x128xf32, #tpu.memory_space<vmem>>, vector<1x8x128xf32>,
    } else {
    }
    return
  }
  func.func @transform_0(%arg0: i32, %arg1: i32) -> (i32, i32, i32) {
    %c0_i32 = arith.constant 0 : i32
    %c0_i32_0 = arith.constant 0 : i32
    return %arg0, %arg1, %c0_i32 : i32, i32, i32
  }
  func.func @transform_1(%arg0: i32, %arg1: i32) -> (i32, i32, i32) {
    %c0_i32 = arith.constant 0 : i32
    %c0_i32_0 = arith.constant 0 : i32
    return %arg0, %arg1, %c0_i32 : i32, i32, i32
  }
  func.func @transform_2(%arg0: i32, %arg1: i32) -> (i32, i32, i32) {
    %c0_i32 = arith.constant 0 : i32
    %c0_i32_0 = arith.constant 0 : i32
    %c0_i32_1 = arith.constant 0 : i32
    return %arg0, %c0_i32, %c0_i32_0 : i32, i32, i32
  }
}

module attributes {stable_mosaic.version = 11 : i64} {
  func.func @_stage_sim_kernel(%arg0: i32, %arg1: i32, %arg2: memref<1x256x128xbf16, #tpu.memory_space<vmem>>, %arg3: memref<1x256x128xbf16, #tpu.memory_space<vmem>>, %arg4: memref<1x8x128xf32, #tpu.memory_space<vmem>>, %arg5: memref<128x128xf32, #tpu.memory_space<vmem>>, %arg6: memref<128x128xf32, #tpu.memory_space<vmem>>, %arg7: memref<8x128xf32, #tpu.memory_space<vmem>>) attributes {dimension_semantics = [#tpu.dimension_semantics<parallel>, #tpu.dimension_semantics<arbitrary>], iteration_bounds = array<i64: 2, 1>, scalar_prefetch = 0 : i64, scratch_operands = 3 : i64, tpu.core_type = #tpu.core_type<tc>, window_params = [{transform_indices = @transform_0, window_bounds = array<i64: 1, 256, 128>}, {transform_indices = @transform_1, window_bounds = array<i64: 1, 256, 128>}, {transform_indices = @transform_2, window_bounds = array<i64: 1, 8, 128>}]} {
    %c0 = arith.constant 0 : index
    %c0_0 = arith.constant 0 : index
    %c0_1 = arith.constant 0 : index
    %0 = vector.load %arg2[%c0, %c0_0, %c0_1] : memref<1x256x128xbf16, #tpu.memory_space<vmem>>, vector<1x256x128xbf16>
    %1 = vector.shape_cast %0 : vector<1x256x128xbf16> to vector<256x128xbf16>
    %c0_2 = arith.constant 0 : index
    %c0_3 = arith.constant 0 : index
    %c0_4 = arith.constant 0 : index
    %2 = vector.load %arg3[%c0_2, %c0_3, %c0_4] : memref<1x256x128xbf16, #tpu.memory_space<vmem>>, vector<1x256x128xbf16>
    %3 = vector.shape_cast %2 : vector<1x256x128xbf16> to vector<256x128xbf16>
    %cst = arith.constant dense<0.000000e+00> : vector<128x128xf32>
    %4 = tpu.matmul %1, %1, %cst {dimension_numbers = #tpu.dot_dimension_numbers<[0], [0], [1], [1], [0, 1, 1, 1], [], []>} : vector<256x128xbf16>, vector<256x128xbf16>, vector<128x128xf32> -> vector<128x128xf32>
    %cst_5 = arith.constant dense<0.000000e+00> : vector<128x128xf32>
    %5 = tpu.matmul %3, %3, %cst_5 {dimension_numbers = #tpu.dot_dimension_numbers<[0], [0], [1], [1], [0, 1, 1, 1], [], []>} : vector<256x128xbf16>, vector<256x128xbf16>, vector<128x128xf32> -> vector<128x128xf32>
    %6 = arith.extf %1 : vector<256x128xbf16> to vector<256x128xf32>
    %7 = arith.extf %3 : vector<256x128xbf16> to vector<256x128xf32>
    %8 = arith.mulf %6, %7 : vector<256x128xf32>
    %cst_6 = arith.constant dense<0.000000e+00> : vector<128xf32>
    %9 = vector.multi_reduction <add>, %8, %cst_6 [0] : vector<256x128xf32> to vector<128xf32>
    %10 = vector.shape_cast %9 : vector<128xf32> to vector<1x128xf32>
    %11 = arith.mulf %6, %6 : vector<256x128xf32>
    %cst_7 = arith.constant dense<0.000000e+00> : vector<128xf32>
    %12 = vector.multi_reduction <add>, %11, %cst_7 [0] : vector<256x128xf32> to vector<128xf32>
    %13 = vector.shape_cast %12 : vector<128xf32> to vector<1x128xf32>
    %14 = arith.mulf %7, %7 : vector<256x128xf32>
    %cst_8 = arith.constant dense<0.000000e+00> : vector<128xf32>
    %15 = vector.multi_reduction <add>, %14, %cst_8 [0] : vector<256x128xf32> to vector<128xf32>
    %16 = vector.shape_cast %15 : vector<128xf32> to vector<1x128xf32>
    %c0_i32 = arith.constant 0 : i32
    %17 = arith.cmpi eq, %arg1, %c0_i32 : i32
    %18 = arith.extui %17 : i1 to i32
    %c0_i32_9 = arith.constant 0 : i32
    %19 = arith.cmpi ne, %18, %c0_i32_9 : i32
    scf.if %19 {
      %c0_14 = arith.constant 0 : index
      %c0_15 = arith.constant 0 : index
      %26 = vector.load %arg5[%c0_14, %c0_15] : memref<128x128xf32, #tpu.memory_space<vmem>>, vector<128x128xf32>
      tpu.vector_store %arg5[%c0_14, %c0_15], %4 {strides = array<i32>} : memref<128x128xf32, #tpu.memory_space<vmem>>, vector<128x128xf32>,
      %c0_16 = arith.constant 0 : index
      %c0_17 = arith.constant 0 : index
      %27 = vector.load %arg6[%c0_16, %c0_17] : memref<128x128xf32, #tpu.memory_space<vmem>>, vector<128x128xf32>
      tpu.vector_store %arg6[%c0_16, %c0_17], %5 {strides = array<i32>} : memref<128x128xf32, #tpu.memory_space<vmem>>, vector<128x128xf32>,
      %c0_18 = arith.constant 0 : index
      %c0_19 = arith.constant 0 : index
      %28 = vector.load %arg7[%c0_18, %c0_19] : memref<8x128xf32, #tpu.memory_space<vmem>>, vector<1x128xf32>
      tpu.vector_store %arg7[%c0_18, %c0_19], %10 {strides = array<i32>} : memref<8x128xf32, #tpu.memory_space<vmem>>, vector<1x128xf32>,
      %c1 = arith.constant 1 : index
      %c0_20 = arith.constant 0 : index
      %29 = vector.load %arg7[%c1, %c0_20] : memref<8x128xf32, #tpu.memory_space<vmem>>, vector<1x128xf32>
      tpu.vector_store %arg7[%c1, %c0_20], %13 {strides = array<i32>} : memref<8x128xf32, #tpu.memory_space<vmem>>, vector<1x128xf32>,
      %c2 = arith.constant 2 : index
      %c0_21 = arith.constant 0 : index
      %30 = vector.load %arg7[%c2, %c0_21] : memref<8x128xf32, #tpu.memory_space<vmem>>, vector<1x128xf32>
      tpu.vector_store %arg7[%c2, %c0_21], %16 {strides = array<i32>} : memref<8x128xf32, #tpu.memory_space<vmem>>, vector<1x128xf32>,
    } else {
    }
    %c0_i32_10 = arith.constant 0 : i32
    %20 = arith.cmpi ne, %arg1, %c0_i32_10 : i32
    %21 = arith.extui %20 : i1 to i32
    %c0_i32_11 = arith.constant 0 : i32
    %22 = arith.cmpi ne, %21, %c0_i32_11 : i32
    scf.if %22 {
      %c0_14 = arith.constant 0 : index
      %c0_15 = arith.constant 0 : index
      %26 = vector.load %arg5[%c0_14, %c0_15] : memref<128x128xf32, #tpu.memory_space<vmem>>, vector<128x128xf32>
      %27 = arith.addf %26, %4 : vector<128x128xf32>
      %c0_16 = arith.constant 0 : index
      %c0_17 = arith.constant 0 : index
      %28 = vector.load %arg5[%c0_16, %c0_17] : memref<128x128xf32, #tpu.memory_space<vmem>>, vector<128x128xf32>
      tpu.vector_store %arg5[%c0_16, %c0_17], %27 {strides = array<i32>} : memref<128x128xf32, #tpu.memory_space<vmem>>, vector<128x128xf32>,
      %c0_18 = arith.constant 0 : index
      %c0_19 = arith.constant 0 : index
      %29 = vector.load %arg6[%c0_18, %c0_19] : memref<128x128xf32, #tpu.memory_space<vmem>>, vector<128x128xf32>
      %30 = arith.addf %29, %5 : vector<128x128xf32>
      %c0_20 = arith.constant 0 : index
      %c0_21 = arith.constant 0 : index
      %31 = vector.load %arg6[%c0_20, %c0_21] : memref<128x128xf32, #tpu.memory_space<vmem>>, vector<128x128xf32>
      tpu.vector_store %arg6[%c0_20, %c0_21], %30 {strides = array<i32>} : memref<128x128xf32, #tpu.memory_space<vmem>>, vector<128x128xf32>,
      %c0_22 = arith.constant 0 : index
      %c0_23 = arith.constant 0 : index
      %32 = vector.load %arg7[%c0_22, %c0_23] : memref<8x128xf32, #tpu.memory_space<vmem>>, vector<1x128xf32>
      %33 = arith.addf %32, %10 : vector<1x128xf32>
      %c0_24 = arith.constant 0 : index
      %c0_25 = arith.constant 0 : index
      %34 = vector.load %arg7[%c0_24, %c0_25] : memref<8x128xf32, #tpu.memory_space<vmem>>, vector<1x128xf32>
      tpu.vector_store %arg7[%c0_24, %c0_25], %33 {strides = array<i32>} : memref<8x128xf32, #tpu.memory_space<vmem>>, vector<1x128xf32>,
      %c1 = arith.constant 1 : index
      %c0_26 = arith.constant 0 : index
      %35 = vector.load %arg7[%c1, %c0_26] : memref<8x128xf32, #tpu.memory_space<vmem>>, vector<1x128xf32>
      %36 = arith.addf %35, %13 : vector<1x128xf32>
      %c1_27 = arith.constant 1 : index
      %c0_28 = arith.constant 0 : index
      %37 = vector.load %arg7[%c1_27, %c0_28] : memref<8x128xf32, #tpu.memory_space<vmem>>, vector<1x128xf32>
      tpu.vector_store %arg7[%c1_27, %c0_28], %36 {strides = array<i32>} : memref<8x128xf32, #tpu.memory_space<vmem>>, vector<1x128xf32>,
      %c2 = arith.constant 2 : index
      %c0_29 = arith.constant 0 : index
      %38 = vector.load %arg7[%c2, %c0_29] : memref<8x128xf32, #tpu.memory_space<vmem>>, vector<1x128xf32>
      %39 = arith.addf %38, %16 : vector<1x128xf32>
      %c2_30 = arith.constant 2 : index
      %c0_31 = arith.constant 0 : index
      %40 = vector.load %arg7[%c2_30, %c0_31] : memref<8x128xf32, #tpu.memory_space<vmem>>, vector<1x128xf32>
      tpu.vector_store %arg7[%c2_30, %c0_31], %39 {strides = array<i32>} : memref<8x128xf32, #tpu.memory_space<vmem>>, vector<1x128xf32>,
    } else {
    }
    %c0_i32_12 = arith.constant 0 : i32
    %23 = arith.cmpi eq, %arg1, %c0_i32_12 : i32
    %24 = arith.extui %23 : i1 to i32
    %c0_i32_13 = arith.constant 0 : i32
    %25 = arith.cmpi ne, %24, %c0_i32_13 : i32
    scf.if %25 {
      %c0_14 = arith.constant 0 : index
      %c0_15 = arith.constant 0 : index
      %26 = vector.load %arg7[%c0_14, %c0_15] : memref<8x128xf32, #tpu.memory_space<vmem>>, vector<1x128xf32>
      %27 = vector.shape_cast %26 : vector<1x128xf32> to vector<1x1x128xf32>
      %cst_16 = arith.constant dense<0.000000e+00> : vector<1xf32>
      %28 = vector.multi_reduction <add>, %27, %cst_16 [1, 2] : vector<1x1x128xf32> to vector<1xf32>
      %29 = vector.shape_cast %28 : vector<1xf32> to vector<1x1x1xf32>
      %30 = vector.extract %29[0, 0, 0] : f32 from vector<1x1x1xf32>
      %c1 = arith.constant 1 : index
      %c0_17 = arith.constant 0 : index
      %31 = vector.load %arg7[%c1, %c0_17] : memref<8x128xf32, #tpu.memory_space<vmem>>, vector<1x128xf32>
      %32 = vector.shape_cast %31 : vector<1x128xf32> to vector<1x1x128xf32>
      %cst_18 = arith.constant dense<0.000000e+00> : vector<1xf32>
      %33 = vector.multi_reduction <add>, %32, %cst_18 [1, 2] : vector<1x1x128xf32> to vector<1xf32>
      %34 = vector.shape_cast %33 : vector<1xf32> to vector<1x1x1xf32>
      %35 = vector.extract %34[0, 0, 0] : f32 from vector<1x1x1xf32>
      %c2 = arith.constant 2 : index
      %c0_19 = arith.constant 0 : index
      %36 = vector.load %arg7[%c2, %c0_19] : memref<8x128xf32, #tpu.memory_space<vmem>>, vector<1x128xf32>
      %37 = vector.shape_cast %36 : vector<1x128xf32> to vector<1x1x128xf32>
      %cst_20 = arith.constant dense<0.000000e+00> : vector<1xf32>
      %38 = vector.multi_reduction <add>, %37, %cst_20 [1, 2] : vector<1x1x128xf32> to vector<1xf32>
      %39 = vector.shape_cast %38 : vector<1xf32> to vector<1x1x1xf32>
      %40 = vector.extract %39[0, 0, 0] : f32 from vector<1x1x1xf32>
      %41 = arith.mulf %35, %40 : f32
      %42 = math.sqrt %41 : f32
      %cst_21 = arith.constant 9.99999993E-9 : f32
      %43 = arith.maximumf %42, %cst_21 : f32
      %44 = arith.divf %30, %43 : f32
      %c0_22 = arith.constant 0 : index
      %c0_23 = arith.constant 0 : index
      %45 = vector.load %arg5[%c0_22, %c0_23] : memref<128x128xf32, #tpu.memory_space<vmem>>, vector<128x128xf32>
      %c0_24 = arith.constant 0 : index
      %c0_25 = arith.constant 0 : index
      %46 = vector.load %arg6[%c0_24, %c0_25] : memref<128x128xf32, #tpu.memory_space<vmem>>, vector<128x128xf32>
      %47 = arith.mulf %45, %46 : vector<128x128xf32>
      %48 = vector.shape_cast %47 : vector<128x128xf32> to vector<1x128x128xf32>
      %cst_26 = arith.constant dense<0.000000e+00> : vector<1xf32>
      %49 = vector.multi_reduction <add>, %48, %cst_26 [1, 2] : vector<1x128x128xf32> to vector<1xf32>
      %50 = vector.shape_cast %49 : vector<1xf32> to vector<1x1x1xf32>
      %51 = vector.extract %50[0, 0, 0] : f32 from vector<1x1x1xf32>
      %52 = arith.mulf %45, %45 : vector<128x128xf32>
      %53 = vector.shape_cast %52 : vector<128x128xf32> to vector<1x128x128xf32>
      %cst_27 = arith.constant dense<0.000000e+00> : vector<1xf32>
      %54 = vector.multi_reduction <add>, %53, %cst_27 [1, 2] : vector<1x128x128xf32> to vector<1xf32>
      %55 = vector.shape_cast %54 : vector<1xf32> to vector<1x1x1xf32>
      %56 = vector.extract %55[0, 0, 0] : f32 from vector<1x1x1xf32>
      %57 = arith.mulf %46, %46 : vector<128x128xf32>
      %58 = vector.shape_cast %57 : vector<128x128xf32> to vector<1x128x128xf32>
      %cst_28 = arith.constant dense<0.000000e+00> : vector<1xf32>
      %59 = vector.multi_reduction <add>, %58, %cst_28 [1, 2] : vector<1x128x128xf32> to vector<1xf32>
      %60 = vector.shape_cast %59 : vector<1xf32> to vector<1x1x1xf32>
      %61 = vector.extract %60[0, 0, 0] : f32 from vector<1x1x1xf32>
      %62 = arith.mulf %56, %61 : f32
      %63 = math.sqrt %62 : f32
      %cst_29 = arith.constant 9.99999993E-9 : f32
      %64 = arith.maximumf %63, %cst_29 : f32
      %65 = arith.divf %51, %64 : f32
      %66 = tpu.iota {dimensions = array<i32: 1>} : vector<1x8x128xi32>
      %67 = tpu.iota {dimensions = array<i32: 2>} : vector<1x8x128xi32>
      %c0_i32_30 = arith.constant 0 : i32
      %68 = vector.broadcast %c0_i32_30 : i32 to vector<1x8x128xi32>
      %69 = arith.cmpi eq, %66, %68 : vector<1x8x128xi32>
      %c0_i32_31 = arith.constant 0 : i32
      %70 = vector.broadcast %c0_i32_31 : i32 to vector<1x8x128xi32>
      %71 = arith.cmpi eq, %67, %70 : vector<1x8x128xi32>
      %72 = arith.andi %69, %71 : vector<1x8x128xi1>
      %cst_32 = arith.constant 0.000000e+00 : f32
      %73 = vector.broadcast %44 : f32 to vector<1x8x128xf32>
      %74 = vector.broadcast %cst_32 : f32 to vector<1x8x128xf32>
      %75 = arith.select %72, %73, %74 : vector<1x8x128xi1>, vector<1x8x128xf32>
      %c0_i32_33 = arith.constant 0 : i32
      %76 = vector.broadcast %c0_i32_33 : i32 to vector<1x8x128xi32>
      %77 = arith.cmpi eq, %66, %76 : vector<1x8x128xi32>
      %c1_i32 = arith.constant 1 : i32
      %78 = vector.broadcast %c1_i32 : i32 to vector<1x8x128xi32>
      %79 = arith.cmpi eq, %67, %78 : vector<1x8x128xi32>
      %80 = arith.andi %77, %79 : vector<1x8x128xi1>
      %cst_34 = arith.constant 0.000000e+00 : f32
      %81 = vector.broadcast %65 : f32 to vector<1x8x128xf32>
      %82 = vector.broadcast %cst_34 : f32 to vector<1x8x128xf32>
      %83 = arith.select %80, %81, %82 : vector<1x8x128xi1>, vector<1x8x128xf32>
      %84 = arith.addf %75, %83 : vector<1x8x128xf32>
      %c0_35 = arith.constant 0 : index
      %c0_36 = arith.constant 0 : index
      %c0_37 = arith.constant 0 : index
      %85 = vector.load %arg4[%c0_35, %c0_36, %c0_37] : memref<1x8x128xf32, #tpu.memory_space<vmem>>, vector<1x8x128xf32>
      tpu.vector_store %arg4[%c0_35, %c0_36, %c0_37], %84 {strides = array<i32>} : memref<1x8x128xf32, #tpu.memory_space<vmem>>, vector<1x8x128xf32>,
    } else {
    }
    return
  }
  func.func @transform_0(%arg0: i32, %arg1: i32) -> (i32, i32, i32) {
    %c0_i32 = arith.constant 0 : i32
    %c0_i32_0 = arith.constant 0 : i32
    return %arg0, %arg1, %c0_i32 : i32, i32, i32
  }
  func.func @transform_1(%arg0: i32, %arg1: i32) -> (i32, i32, i32) {
    %c0_i32 = arith.constant 0 : i32
    %c0_i32_0 = arith.constant 0 : i32
    return %arg0, %arg1, %c0_i32 : i32, i32, i32
  }
  func.func @transform_2(%arg0: i32, %arg1: i32) -> (i32, i32, i32) {
    %c0_i32 = arith.constant 0 : i32
    %c0_i32_0 = arith.constant 0 : i32
    %c0_i32_1 = arith.constant 0 : i32
    return %arg0, %c0_i32, %c0_i32_0 : i32, i32, i32
  }
}

</mosaic_0001>

<bundles_post_ra>
// kernel: extractor_forward.6
= control target key start
LH: loop header
LB: loop body
LE: loop exit
PB: predicated region body
PF: predicated region fallthrough
CT: control target
= control target key end

     0   :  { %s2342_s9 = smov 0   ;;  %s2344_s10 = smov 0   ;;  %s2854_s0 = inlined_call_operand.vmem [shape: bf16[2,16,256], index: 0, kind: input, shape index: {}]   ;;  %s2855_s1 = inlined_call_operand.vmem [shape: bf16[2,16,256], index: 1, kind: input, shape index: {}]   ;;  %s2856_s2 = inlined_call_operand.vmem [shape: f32[2,8,128], index: 2, kind: output, shape index: {}]  }
   0x1   :  { %s2346_s11 = smov 0  }
   0x2 LB: > { %s24_s12 = sadd.s32 1, %s2320_s10  ;;  %p2154_p0 = scmp.ge.s32.totalorder %s2324_s11, 1  ;;  %s2324_s11 = sphi %s2346_s11, %s12_s11   ;;  %s2320_s10 = sphi %s2344_s10, %s2862_s10   ;;  %s2316_s9 = sphi %s2342_s9, %s2861_s9  }
   0x3   : > { %p26_p1 = scmp.ge.s32.totalorder %s24_s12, 2  ;;  %p150_p2 = scmp.lt.s32.totalorder %s2324_s11, 3 }
   0x5   : > { %s2864_s12 = smov (%p26_p1, %s24_s12), 0  ;;  %p151_p3 = pnand %p2154_p0, %p150_p2 }
   0x6   : > { %p187_p4 = scmp.lt.s32.totalorder (!%p151_p3), %s2316_s9, 1  ;;  %s2326_s25 = smov (!%p151_p3), 1e-08  }
   0x7   : > { %154 = sbr.rel (%p151_p3) target bundleno = 1036 (0x40c), region = 28 }
   0xc   : > { %s2866_s9 = smov (!%p187_p4, %s2316_s9), 1  ;;  %vm251_vm0 = vcmask 130048   ;;  %vm935_vm1 = vcmask 1040384  }
   0xd   : > { %s2242_s13 = sshll.u32 %s2866_s9, 4  ;;  %s2159_s8 = sshll.u32 %s2866_s9, 3 }
   0xe   : > { %s206_s16 = scalar_lea.vmem %s2855_s1, %s2242_s13  ;;  %s195_s19 = scalar_lea.vmem %s2854_s0, %s2242_s13 }
   0xf   : > { %v2246_v0 = vld [vmem:[%s206_s16 + $0x4] sm:$0xf]  ;;  %v2202_v1 = vld [vmem:[%s206_s16] sm:$0xf]  ;;  %v216_v2 = vld [vmem:[%s206_s16 + $0x8] sm:$0xff] }
  0x10   : > { %v2204_v3 = vld [vmem:[%s206_s16 + $0x8] sm:$0xf0]  ;;  %v2247_v4 = vld [vmem:[%s206_s16 + $0x4] sm:$0xf0]  ;;  %v2369_v5 = vunpack.c.l.bf16 %v216_v2  ;;  %v2371_v6 = vunpack.c.h.bf16 %v216_v2  ;;  %v213_v7 = vld [vmem:[%s195_s19] sm:$0xff] }
  0x11   : > { %v2203_v8 = vor.u32 %v2247_v4, %v2202_v1  ;;  %v2207_v9 = vor.u32 %v2246_v0, %v2204_v3  ;;  %v214_v10 = vld [vmem:[%s195_s19 + $0x8] sm:$0xff]  ;;  %v215_v11 = vld [vmem:[%s206_s16] sm:$0xff]  ;;  %v2373_v12 = vunpack.c.l.bf16 %v213_v7  ;;  %v2375_v13 = vunpack.c.h.bf16 %v213_v7  ;;  %s211_s16 = scalar_lea.vmem %s2856_s2, %s2159_s8 }
  0x12   : > { %v2377_v14 = vunpack.c.l.bf16 %v214_v10  ;;  %v2379_v15 = vunpack.c.h.bf16 %v214_v10  ;;  %v2244_v16 = vld [vmem:[%s195_s19 + $0x4] sm:$0xf]  ;;  %v2381_v17 = vunpack.c.l.bf16 %v215_v11  ;;  %v743_v18 = vunpack.c.h.bf16 %v215_v11  ;;  %v2162_v19 = vld [vmem:[%s195_s19] sm:$0xf]  ;;  %v2164_v20 = vld [vmem:[%s195_s19 + $0x8] sm:$0xf0] }
  0x13   : > { %488 = vxpose.binary.xlu0.c.b16.start.end [1/2] (short) %v2207_v9, %v2203_v8, 128  ;;  %v2245_v21 = vld [vmem:[%s195_s19 + $0x4] sm:$0xf0]  ;;  %v2167_v27 = vor.u32 %v2244_v16, %v2164_v20  ;;  %v785_v49 = vmul.f32 %v2371_v6, %v2371_v6  ;;  %v765_v51 = vmul.f32 %v2375_v13, %v2375_v13 }
  0x14   : > { %v748_v22 = vmul.f32 %v2369_v5, %v2377_v14  ;;  %v749_v23 = vmul.f32 %v2371_v6, %v2379_v15  ;;  %567 = vmatpush.bf16.msra.mxu2 %v2203_v8  ;;  %v746_v24 = vmul.f32 %v2381_v17, %v2373_v12  ;;  %v747_v25 = vmul.f32 %v743_v18, %v2375_v13 }
  0x15   : > { %656 = vmatpush.bf16.msra.mxu3 %v2207_v9  ;;  %v2163_v26 = vor.u32 %v2245_v21, %v2162_v19  ;;  %396 = vmatpush.bf16.msra.mxu1 %v2167_v27  ;;  %v767_v52 = vmul.f32 %v2379_v15, %v2379_v15  ;;  %v783_v53 = vmul.f32 %v743_v18, %v743_v18 }
  0x16   : > { %v2390_v28 = vadd.f32 %v748_v22, %v746_v24  ;;  %v757_v29 = vadd.f32 %v749_v23, %v747_v25  ;;  %v784_v55 = vmul.f32 %v2369_v5, %v2369_v5  ;;  %v764_v56 = vmul.f32 %v2373_v12, %v2373_v12 }
  0x17   : > { %307 = vmatpush.bf16.msra.mxu0 %v2163_v26  ;;  %v766_v57 = vmul.f32 %v2377_v14, %v2377_v14  ;;  %v782_v58 = vmul.f32 %v2381_v17, %v2381_v17  ;;  %v775_v61 = vadd.f32 %v767_v52, %v765_v51  ;;  %v793_v62 = vadd.f32 %v785_v49, %v783_v53 }
  0x18   : > { %v758_v50 = vrot.slane %v757_v29, 4  ;;  %v751_v59 = vrot.slane %v2390_v28, 4 }
  0x19   : > { %v768_v1 = vadd.f32 %v766_v57, %v764_v56  ;;  %v786_v2 = vadd.f32 %v784_v55, %v782_v58  ;;  %v776_v5 = vrot.slane %v775_v61, 4  ;;  %v794_v6 = vrot.slane %v793_v62, 4 }
  0x1a   : > { %v759_v60 = vadd.f32 %v758_v50, %v757_v29  ;;  %v752_v3 = vadd.f32 %v751_v59, %v2390_v28 }
  0x1b   : > { %v769_v8 = vrot.slane %v768_v1, 4  ;;  %v787_v9 = vrot.slane %v786_v2, 4  ;;  %v777_v12 = vadd.f32 %v776_v5, %v775_v61  ;;  %v795_v13 = vadd.f32 %v794_v6, %v793_v62 }
  0x1c   : > { %v760_v4 = vrot.slane %v759_v60, 2  ;;  %v753_v10 = vrot.slane %v752_v3, 2 }
  0x1d   : > { %v770_v16 = vadd.f32 %v769_v8, %v768_v1  ;;  %v788_v17 = vadd.f32 %v787_v9, %v786_v2  ;;  %v778_v20 = vrot.slane %v777_v12, 2  ;;  %v796_v21 = vrot.slane %v795_v13, 2 }
  0x1e   : > { %v761_v11 = vadd.f32 %v760_v4, %v759_v60  ;;  %v754_v18 = vadd.f32 %v753_v10, %v752_v3 }
  0x1f   : > { %v771_v23 = vrot.slane %v770_v16, 2  ;;  %v789_v24 = vrot.slane %v788_v17, 2  ;;  %v797_v28 = vadd.f32 %v796_v21, %v795_v13 }
  0x20   : > { %v762_v19 = vrot.slane %v761_v11, 1  ;;  %v755_v25 = vrot.slane %v754_v18, 1 }
  0x93   : > { %227 = vxpose.binary.xlu0.c.b16.start.end [1/2] (short) %v2167_v27, %v2163_v26, 128  ;;  %v763_v26 = vadd.f32 %v762_v19, %v761_v11  ;;  %v779_v27 = vadd.f32 %v778_v20, %v777_v12 }
  0xbf   : > { %v496_v30 = vpop.trf.xlu0 }
  0xc0   : > { %2208 = vmatmul.msk.bf16.vlgmr.msra.gmra.mxu2 %vm251_vm0, %v496_v30  ;;  %2224 = vmatmul.msk.bf16.vlgmr.msra.gmra.mxu3 %vm251_vm0, %v496_v30 }
  0xc7   : > { %v497_v31 = vpop.trf.xlu0 }
  0xcf   : > { %v498_v32 = vpop.trf.xlu0 }
  0xd0   : > { %2209 = vmatmul.msk.bf16.gmra.mxu2 %vm251_vm0, %v498_v32  ;;  %2225 = vmatmul.msk.bf16.gmra.mxu3 %vm251_vm0, %v498_v32  ;;  %v790_v32 = vadd.f32 %v789_v24, %v788_v17 }
  0xd7   : > { %v499_v33 = vpop.trf.xlu0 }
  0xdf   : > { %v500_v34 = vpop.trf.xlu0 }
  0xe0   : > { %2210 = vmatmul.msk.bf16.gmra.mxu2 %vm251_vm0, %v500_v34  ;;  %2226 = vmatmul.msk.bf16.gmra.mxu3 %vm251_vm0, %v500_v34  ;;  %v780_v34 = vrot.slane %v779_v27, 1 }
  0xe2   : > { %v781_v49 = vadd.f32 %v780_v34, %v779_v27 }
  0xe4   : > { %v946_v57 = vrot.slane %v781_v49, 7 }
  0xe7   : > { %v2398_v35 = vpop.trf.xlu0 }
  0xef   : > { %v502_v36 = vpop.trf.xlu0 }
  0xf0   : > { %2211 = vmatmul.msk.bf16.gmra.mxu2 %vm251_vm0, %v502_v36  ;;  %2227 = vmatmul.msk.bf16.gmra.mxu3 %vm251_vm0, %v502_v36  ;;  %v798_v36 = vrot.slane %v797_v28, 1 }
  0xf2   : > { %v799_v50 = vadd.f32 %v798_v36, %v797_v28 }
  0xf4   : > { %v954_v58 = vrot.slane %v799_v50, 7 }
  0xf7   : > { %v2402_v37 = vpop.trf.xlu0 }
  0xff   : > { %v504_v38 = vpop.trf.xlu0 }
 0x100   : > { %2212 = vmatmul.msk.bf16.gmra.mxu2 %vm251_vm0, %v504_v38  ;;  %2228 = vmatmul.msk.bf16.gmra.mxu3 %vm251_vm0, %v504_v38  ;;  %v934_v38 = vrot.slane %v763_v26, 7 }
 0x107   : > { %v2406_v39 = vpop.trf.xlu0 }
 0x10f   : > { %v506_v40 = vpop.trf.xlu0 }
 0x110   : > { %2213 = vmatmul.msk.bf16.gmra.mxu2 %vm251_vm0, %v506_v40  ;;  %2229 = vmatmul.msk.bf16.gmra.mxu3 %vm251_vm0, %v506_v40 }
 0x117   : > { %v2410_v41 = vpop.trf.xlu0 }
 0x11f   : > { %v508_v42 = vpop.trf.xlu0 }
 0x120   : > { %2214 = vmatmul.msk.bf16.gmra.mxu2 %vm251_vm0, %v508_v42  ;;  %2230 = vmatmul.msk.bf16.gmra.mxu3 %vm251_vm0, %v508_v42  ;;  %v938_v42 = vlaneseq }
 0x122   : > { %vm2476_vm2 = vcmp.lt.s32.totalorder %v938_v42, 256 }
 0x127   : > { %v2414_v43 = vpop.trf.xlu0 }
 0x12f   : > { %v510_v44 = vpop.trf.xlu0 }
 0x130   : > { %2215 = vmatmul.msk.bf16.gmra.mxu2 %vm251_vm0, %v510_v44  ;;  %2231 = vmatmul.msk.bf16.gmra.mxu3 %vm251_vm0, %v510_v44 }
 0x137   : > { %v2418_v45 = vpop.trf.xlu0 }
 0x13f   : > { %v235_v46 = vpop.trf.xlu0 }
 0x140   : > { %2168 = vmatmul.msk.bf16.vlgmr.msra.gmra.mxu0 %vm251_vm0, %v235_v46  ;;  %2184 = vmatmul.msk.bf16.vlgmr.msra.gmra.mxu1 %vm251_vm0, %v235_v46  ;;  %v791_v46 = vrot.slane %v790_v32, 1 }
 0x141   : > { %2216 = vmatmul.msk.bf16.gmra.mxu2 %vm251_vm0, %v497_v31  ;;  %2232 = vmatmul.msk.bf16.gmra.mxu3 %vm251_vm0, %v497_v31  ;;  %v772_v31 = vadd.f32 %v771_v23, %v770_v16 }
 0x142   : > { %v792_v56 = vadd.f32 %v791_v46, %v790_v32 }
 0x143   : > { %v2424_v47 = vpop.f32.mrf.mxu2  ;;  %v2426_v48 = vpop.f32.mrf.mxu3  ;;  %v773_v44 = vrot.slane %v772_v31, 1 }
 0x144   : > { %v1875_v59 = vmul.f32 %v2424_v47, %v2424_v47  ;;  %v1876_v60 = vmul.f32 %v2426_v48, %v2426_v48  ;;  %v955_v5 = vsel %vm935_vm1, %v792_v56, %v954_v58 }
 0x145   : > { %958 = vst.msk [vmem:[#allocation4 + $0x2] ss:$8 sm:$0x3] %vm2476_vm2, %v955_v5 }
 0x146   : > { %v1939_v1 = vadd.f32 %v1876_v60, %v1875_v59 }
 0x147   : > { %v2434_v54 = vpop.trf.xlu0 }
 0x14b   : > { %v2445_v63 = vpop.f32.mrf.mxu2  ;;  %v2447_v0 = vpop.f32.mrf.mxu3 }
 0x14c   : > { %v1877_v62 = vmul.f32 %v2445_v63, %v2445_v63  ;;  %v1878_v12 = vmul.f32 %v2447_v0, %v2447_v0  ;;  %v1424_v23 = vld [vmem:[#allocation4 + $0x2] ss:$8 sm:$0x3] }
 0x14d   : > { %v1426_v24 = vperm.slane %v1424_v23, 0 }
 0x14e   : > { %v1940_v9 = vadd.f32 %v1939_v1, %v1877_v62 }
 0x14f   : > { %v237_v7 = vpop.trf.xlu0 }
 0x150   : > { %2169 = vmatmul.msk.bf16.gmra.mxu0 %vm251_vm0, %v237_v7  ;;  %2185 = vmatmul.msk.bf16.gmra.mxu1 %vm251_vm0, %v237_v7 }
 0x151   : > { %2217 = vmatmul.msk.bf16.gmra.mxu2 %vm251_vm0, %v499_v33  ;;  %2233 = vmatmul.msk.bf16.gmra.mxu3 %vm251_vm0, %v499_v33  ;;  %v756_v33 = vadd.f32 %v755_v25, %v754_v18  ;;  %v1941_v18 = vadd.f32 %v1940_v9, %v1878_v12  ;;  %v1427_v25 = vperm.slane %v1424_v23, 1 }
 0x153   : > { %v2454_v14 = vpop.f32.mrf.mxu2  ;;  %v2456_v15 = vpop.f32.mrf.mxu3  ;;  %v936_v53 = vsel %vm935_vm1, %v756_v33, %v934_v38  ;;  %v1431_v33 = vsel %vm935_vm1, %v1427_v25, 0.0 }
 0x154   : > { %942 = vst.msk [vmem:[#allocation4] ss:$8 sm:$0x3] %vm2476_vm2, %v936_v53  ;;  %v1879_v13 = vmul.f32 %v2454_v14, %v2454_v14  ;;  %v1880_v27 = vmul.f32 %v2456_v15, %v2456_v15 }
 0x156   : > { %v1942_v19 = vadd.f32 %v1941_v18, %v1879_v13 }
 0x157   : > { %v2458_v22 = vpop.trf.xlu0 }
 0x158   : > { %v1943_v34 = vadd.f32 %v1942_v19, %v1880_v27 }
 0x15b   : > { %v2460_v29 = vpop.f32.mrf.mxu2  ;;  %v2462_v30 = vpop.f32.mrf.mxu3  ;;  %v1385_v4 = vld [vmem:[#allocation4] ss:$8 sm:$0x3] }
 0x15c   : > { %v1387_v7 = vperm.slane %v1385_v4, 0  ;;  %v1388_v8 = vperm.slane %v1385_v4, 1  ;;  %v1881_v28 = vmul.f32 %v2460_v29, %v2460_v29  ;;  %v1882_v50 = vmul.f32 %v2462_v30, %v2462_v30 }
 0x15e   : > { %v1392_v10 = vsel %vm935_vm1, %v1387_v7, 0.0  ;;  %v1393_v11 = vsel %vm935_vm1, %v1388_v8, 0.0  ;;  %v1944_v49 = vadd.f32 %v1943_v34, %v1881_v28 }
 0x15f   : > { %v239_v40 = vpop.trf.xlu0  ;;  %v1394_v17 = vadd.f32 %v1393_v11, %v1392_v10 }
 0x160   : > { %2170 = vmatmul.msk.bf16.gmra.mxu0 %vm251_vm0, %v239_v40  ;;  %2186 = vmatmul.msk.bf16.gmra.mxu1 %vm251_vm0, %v239_v40  ;;  %v1945_v56 = vadd.f32 %v1944_v49, %v1882_v50 }
 0x161   : > { %2218 = vmatmul.msk.bf16.gmra.mxu2 %vm251_vm0, %v2398_v35  ;;  %2234 = vmatmul.msk.bf16.gmra.mxu3 %vm251_vm0, %v2398_v35  ;;  %v774_v35 = vadd.f32 %v773_v44, %v772_v31 }
 0x162   : > { %1395 = vadd.xlane.f32.xlu1 %v1394_v17 }
 0x163   : > { %v2470_v51 = vpop.f32.mrf.mxu2  ;;  %v2472_v52 = vpop.f32.mrf.mxu3  ;;  %v947_v6 = vsel %vm935_vm1, %v774_v35, %v946_v57 }
 0x164   : > { %950 = vst.msk [vmem:[#allocation4 + $0x1] ss:$8 sm:$0x3] %vm2476_vm2, %v947_v6  ;;  %v1883_v53 = vmul.f32 %v2470_v51, %v2470_v51  ;;  %v1884_v59 = vmul.f32 %v2472_v52, %v2472_v52 }
 0x166   : > { %v1946_v57 = vadd.f32 %v1945_v56, %v1883_v53 }
 0x167   : > { %v2486_v61 = vpop.trf.xlu0 }
 0x168   : > { %v1947_v62 = vadd.f32 %v1946_v57, %v1884_v59 }
 0x16b   : > { %v2490_v2 = vpop.f32.mrf.mxu2  ;;  %v2492_v3 = vpop.f32.mrf.mxu3  ;;  %v1405_v26 = vld [vmem:[#allocation4 + $0x1] ss:$8 sm:$0x3] }
 0x16c   : > { %v1407_v31 = vperm.slane %v1405_v26, 0  ;;  %v1408_v32 = vperm.slane %v1405_v26, 1  ;;  %v1885_v60 = vmul.f32 %v2490_v2, %v2490_v2  ;;  %v1886_v6 = vmul.f32 %v2492_v3, %v2492_v3 }
 0x16e   : > { %v1411_v40 = vsel %vm935_vm1, %v1407_v31, 0.0  ;;  %v1412_v44 = vsel %vm935_vm1, %v1408_v32, 0.0  ;;  %v1948_v5 = vadd.f32 %v1947_v62, %v1885_v60 }
 0x16f   : > { %v241_v16 = vpop.trf.xlu0  ;;  %v1413_v46 = vadd.f32 %v1412_v44, %v1411_v40 }
 0x170   : > { %2171 = vmatmul.msk.bf16.gmra.mxu0 %vm251_vm0, %v241_v16  ;;  %2187 = vmatmul.msk.bf16.gmra.mxu1 %vm251_vm0, %v241_v16  ;;  %v1949_v9 = vadd.f32 %v1948_v5, %v1886_v6 }
 0x171   : > { %2219 = vmatmul.msk.bf16.gmra.mxu2 %vm251_vm0, %v2402_v37  ;;  %2235 = vmatmul.msk.bf16.gmra.mxu3 %vm251_vm0, %v2402_v37  ;;  %v1430_v37 = vsel %vm935_vm1, %v1426_v24, 0.0 }
 0x172   : > { %v1432_v38 = vadd.f32 %v1431_v33, %v1430_v37  ;;  %1414 = vadd.xlane.f32.xlu1 %v1413_v46 }
 0x173   : > { %v2512_v20 = vpop.f32.mrf.mxu2  ;;  %v2514_v21 = vpop.f32.mrf.mxu3 }
 0x174   : > { %1433 = vadd.xlane.f32.xlu2 %v1432_v38  ;;  %v1887_v7 = vmul.f32 %v2512_v20, %v2512_v20 }
 0x176   : > { %v1950_v10 = vadd.f32 %v1949_v9, %v1887_v7 }
 0x177   : > { %v2522_v36 = vpop.trf.xlu0 }
 0x17b   : > { %v2530_v55 = vpop.f32.mrf.mxu2  ;;  %v2532_v35 = vpop.f32.mrf.mxu3 }
 0x17c   : > { %v1889_v13 = vmul.f32 %v2530_v55, %v2530_v55  ;;  %v1890_v19 = vmul.f32 %v2532_v35, %v2532_v35 }
 0x17f   : > { %v243_v58 = vpop.trf.xlu0 }
 0x180   : > { %2172 = vmatmul.msk.bf16.gmra.mxu0 %vm251_vm0, %v243_v58  ;;  %2188 = vmatmul.msk.bf16.gmra.mxu1 %vm251_vm0, %v243_v58 }
 0x181   : > { %2220 = vmatmul.msk.bf16.gmra.mxu2 %vm251_vm0, %v2406_v39  ;;  %2236 = vmatmul.msk.bf16.gmra.mxu3 %vm251_vm0, %v2406_v39  ;;  %v1888_v39 = vmul.f32 %v2514_v21, %v2514_v21 }
 0x183   : > { %v2544_v1 = vpop.f32.mrf.mxu2  ;;  %v2546_v4 = vpop.f32.mrf.mxu3  ;;  %v1951_v16 = vadd.f32 %v1950_v10, %v1888_v39 }
 0x184   : > { %v1891_v23 = vmul.f32 %v2544_v1, %v2544_v1  ;;  %v1892_v31 = vmul.f32 %v2546_v4, %v2546_v4 }
 0x185   : > { %v1952_v18 = vadd.f32 %v1951_v16, %v1889_v13 }
 0x187   : > { %v2552_v8 = vpop.trf.xlu0  ;;  %v1953_v26 = vadd.f32 %v1952_v18, %v1890_v19 }
 0x189   : > { %v1954_v27 = vadd.f32 %v1953_v26, %v1891_v23 }
 0x18b   : > { %v2554_v11 = vpop.f32.mrf.mxu2  ;;  %v2556_v12 = vpop.f32.mrf.mxu3  ;;  %v1955_v32 = vadd.f32 %v1954_v27, %v1892_v31 }
 0x18c   : > { %v1894_v38 = vmul.f32 %v2556_v12, %v2556_v12 }
 0x18f   : > { %v245_v17 = vpop.trf.xlu0 }
 0x190   : > { %2173 = vmatmul.msk.bf16.gmra.mxu0 %vm251_vm0, %v245_v17  ;;  %2189 = vmatmul.msk.bf16.gmra.mxu1 %vm251_vm0, %v245_v17 }
 0x191   : > { %2221 = vmatmul.msk.bf16.gmra.mxu2 %vm251_vm0, %v2410_v41  ;;  %2237 = vmatmul.msk.bf16.gmra.mxu3 %vm251_vm0, %v2410_v41  ;;  %v1893_v41 = vmul.f32 %v2554_v11, %v2554_v11 }
 0x193   : > { %v2572_v24 = vpop.f32.mrf.mxu2  ;;  %v2574_v25 = vpop.f32.mrf.mxu3  ;;  %v1956_v34 = vadd.f32 %v1955_v32, %v1893_v41 }
 0x194   : > { %v1895_v40 = vmul.f32 %v2572_v24, %v2572_v24  ;;  %v1896_v56 = vmul.f32 %v2574_v25, %v2574_v25 }
 0x195   : > { %v1957_v46 = vadd.f32 %v1956_v34, %v1894_v38 }
 0x197   : > { %v2576_v28 = vpop.trf.xlu0  ;;  %v1958_v49 = vadd.f32 %v1957_v46, %v1895_v40 }
 0x199   : > { %v1959_v58 = vadd.f32 %v1958_v49, %v1896_v56 }
 0x19b   : > { %v2582_v37 = vpop.f32.mrf.mxu2  ;;  %v2584_v33 = vpop.f32.mrf.mxu3 }
 0x19c   : > { %v1897_v57 = vmul.f32 %v2582_v37, %v2582_v37  ;;  %v1898_v62 = vmul.f32 %v2584_v33, %v2584_v33 }
 0x19e   : > { %v1960_v60 = vadd.f32 %v1959_v58, %v1897_v57 }
 0x19f   : > { %v247_v44 = vpop.trf.xlu0 }
 0x1a0   : > { %2174 = vmatmul.msk.bf16.gmra.mxu0 %vm251_vm0, %v247_v44  ;;  %2190 = vmatmul.msk.bf16.gmra.mxu1 %vm251_vm0, %v247_v44  ;;  %v1961_v7 = vadd.f32 %v1960_v60, %v1898_v62 }
 0x1a1   : > { %2222 = vmatmul.msk.bf16.gmra.mxu2 %vm251_vm0, %v2414_v43  ;;  %2238 = vmatmul.msk.bf16.gmra.mxu3 %vm251_vm0, %v2414_v43 }
 0x1a3   : > { %v2596_v50 = vpop.f32.mrf.mxu2  ;;  %v2598_v53 = vpop.f32.mrf.mxu3 }
 0x1a4   : > { %v1899_v43 = vmul.f32 %v2596_v50, %v2596_v50  ;;  %v1900_v39 = vmul.f32 %v2598_v53, %v2598_v53 }
 0x1a6   : > { %v1962_v9 = vadd.f32 %v1961_v7, %v1899_v43 }
 0x1a7   : > { %v2604_v59 = vpop.trf.xlu0 }
 0x1a8   : > { %v1963_v16 = vadd.f32 %v1962_v9, %v1900_v39 }
 0x1ab   : > { %v2610_v5 = vpop.f32.mrf.mxu2  ;;  %v2612_v6 = vpop.f32.mrf.mxu3 }
 0x1ac   : > { %v1901_v13 = vmul.f32 %v2610_v5, %v2610_v5  ;;  %v1902_v23 = vmul.f32 %v2612_v6, %v2612_v6 }
 0x1ae   : > { %v1964_v19 = vadd.f32 %v1963_v16, %v1901_v13 }
 0x1af   : > { %v249_v10 = vpop.trf.xlu0 }
 0x1b0   : > { %2175 = vmatmul.msk.bf16.gmra.mxu0 %vm251_vm0, %v249_v10  ;;  %2191 = vmatmul.msk.bf16.gmra.mxu1 %vm251_vm0, %v249_v10  ;;  %v1965_v27 = vadd.f32 %v1964_v19, %v1902_v23 }
 0x1b1   : > { %2223 = vmatmul.msk.bf16.gmra.mxu2 %vm251_vm0, %v2418_v45  ;;  %2239 = vmatmul.msk.bf16.gmra.mxu3 %vm251_vm0, %v2418_v45 }
 0x1b3   : > { %v2624_v17 = vpop.f32.mrf.mxu2  ;;  %v2626_v18 = vpop.f32.mrf.mxu3 }
 0x1b4   : > { %v1903_v26 = vmul.f32 %v2624_v17, %v2624_v17  ;;  %v1904_v45 = vmul.f32 %v2626_v18, %v2626_v18 }
 0x1b6   : > { %v1966_v31 = vadd.f32 %v1965_v27, %v1903_v26 }
 0x1b8   : > { %v1967_v56 = vadd.f32 %v1966_v31, %v1904_v45 }
 0x1bb   : > { %v2632_v41 = vpop.f32.mrf.mxu2  ;;  %v2634_v32 = vpop.f32.mrf.mxu3 }
 0x1bc   : > { %v1905_v34 = vmul.f32 %v2632_v41, %v2632_v41  ;;  %v1906_v43 = vmul.f32 %v2634_v32, %v2634_v32 }
 0x1bd   : > { %v309_v38 = vpop.f32.mrf.mxu0  ;;  %v398_v40 = vpop.f32.mrf.mxu1 }
 0x1be   : > { %v1603_v44 = vmul.f32 %v2424_v47, %v309_v38  ;;  %v1739_v46 = vmul.f32 %v309_v38, %v309_v38  ;;  %v1604_v49 = vmul.f32 %v2426_v48, %v398_v40  ;;  %v1740_v57 = vmul.f32 %v398_v40, %v398_v40 }
 0x1bf   : > { %v1968_v60 = vadd.f32 %v1967_v56, %v1905_v34 }
 0x1c0   : > { %v1667_v58 = vadd.f32 %v1604_v49, %v1603_v44  ;;  %2176 = vmatmul.msk.bf16.gmra.mxu0 %vm251_vm0, %v2434_v54  ;;  %2192 = vmatmul.msk.bf16.gmra.mxu1 %vm251_vm0, %v2434_v54  ;;  %v1803_v62 = vadd.f32 %v1740_v57, %v1739_v46 }
 0x1c1   : > { %v1969_v9 = vadd.f32 %v1968_v60, %v1906_v43 }
 0x1c4   : > { %v2648_v7 = vpop.f32.mrf.mxu2  ;;  %v2650_v47 = vpop.f32.mrf.mxu3 }
 0x1c5   : > { %v1907_v48 = vmul.f32 %v2648_v7, %v2648_v7  ;;  %v311_v10 = vpop.f32.mrf.mxu0  ;;  %v400_v39 = vpop.f32.mrf.mxu1  ;;  %v1908_v54 = vmul.f32 %v2650_v47, %v2650_v47 }
 0x1c6   : > { %v1605_v13 = vmul.f32 %v2445_v63, %v311_v10  ;;  %v1741_v16 = vmul.f32 %v311_v10, %v311_v10  ;;  %v1606_v27 = vmul.f32 %v2447_v0, %v400_v39  ;;  %v1742_v31 = vmul.f32 %v400_v39, %v400_v39 }
 0x1c7   : > { %v1970_v19 = vadd.f32 %v1969_v9, %v1907_v48 }
 0x1c8   : > { %v1668_v23 = vadd.f32 %v1667_v58, %v1605_v13  ;;  %v1804_v26 = vadd.f32 %v1803_v62, %v1741_v16 }
 0x1c9   : > { %v1971_v45 = vadd.f32 %v1970_v19, %v1908_v54 }
 0x1ca   : > { %v1669_v34 = vadd.f32 %v1668_v23, %v1606_v27  ;;  %v1805_v38 = vadd.f32 %v1804_v26, %v1742_v31 }
 0x1cc   : > { %v2658_v40 = vpop.f32.mrf.mxu2  ;;  %v2660_v44 = vpop.f32.mrf.mxu3 }
 0x1cd   : > { %v1909_v63 = vmul.f32 %v2658_v40, %v2658_v40  ;;  %v314_v46 = vpop.f32.mrf.mxu0  ;;  %v403_v49 = vpop.f32.mrf.mxu1  ;;  %v1910_v0 = vmul.f32 %v2660_v44, %v2660_v44 }
 0x1ce   : > { %v1607_v56 = vmul.f32 %v2454_v14, %v314_v46  ;;  %v1743_v57 = vmul.f32 %v314_v46, %v314_v46  ;;  %v1608_v60 = vmul.f32 %v2456_v15, %v403_v49  ;;  %v1744_v9 = vmul.f32 %v403_v49, %v403_v49 }
 0x1cf   : > { %v1972_v58 = vadd.f32 %v1971_v45, %v1909_v63 }
 0x1d0   : > { %v1670_v62 = vadd.f32 %v1669_v34, %v1607_v56  ;;  %v1806_v43 = vadd.f32 %v1805_v38, %v1743_v57  ;;  %2177 = vmatmul.msk.bf16.gmra.mxu0 %vm251_vm0, %v2458_v22  ;;  %2193 = vmatmul.msk.bf16.gmra.mxu1 %vm251_vm0, %v2458_v22 }
 0x1d1   : > { %v2672_v48 = vadd.f32 %v1972_v58, %v1910_v0 }
 0x1d2   : > { %v1671_v10 = vadd.f32 %v1670_v62, %v1608_v60  ;;  %v1807_v14 = vadd.f32 %v1806_v43, %v1744_v9 }
 0x1d5   : > { %v316_v39 = vpop.f32.mrf.mxu0  ;;  %v405_v13 = vpop.f32.mrf.mxu1 }
 0x1d6   : > { %v1609_v16 = vmul.f32 %v2460_v29, %v316_v39  ;;  %v1745_v19 = vmul.f32 %v316_v39, %v316_v39  ;;  %v1610_v23 = vmul.f32 %v2462_v30, %v405_v13  ;;  %v1746_v26 = vmul.f32 %v405_v13, %v405_v13 }
 0x1d8   : > { %v1672_v54 = vadd.f32 %v1671_v10, %v1609_v16  ;;  %v1808_v15 = vadd.f32 %v1807_v14, %v1745_v19 }
 0x1da   : > { %v1673_v27 = vadd.f32 %v1672_v54, %v1610_v23  ;;  %v1809_v31 = vadd.f32 %v1808_v15, %v1746_v26 }
 0x1dd   : > { %v319_v45 = vpop.f32.mrf.mxu0  ;;  %v408_v34 = vpop.f32.mrf.mxu1 }
 0x1de   : > { %v1611_v22 = vmul.f32 %v2470_v51, %v319_v45  ;;  %v1747_v38 = vmul.f32 %v319_v45, %v319_v45  ;;  %v1612_v63 = vmul.f32 %v2472_v52, %v408_v34  ;;  %v1748_v56 = vmul.f32 %v408_v34, %v408_v34  ;;  %v1396_v51 = vpop.xlane.xlu1 %1395 }
 0x1df   : > { %v1397_v10 = vrot.slane %v1396_v51, 4 }
 0x1e0   : > { %v1674_v46 = vadd.f32 %v1673_v27, %v1611_v22  ;;  %v1810_v49 = vadd.f32 %v1809_v31, %v1747_v38  ;;  %2178 = vmatmul.msk.bf16.gmra.mxu0 %vm251_vm0, %v2486_v61  ;;  %2194 = vmatmul.msk.bf16.gmra.mxu1 %vm251_vm0, %v2486_v61 }
 0x1e1   : > { %v1398_v13 = vadd.f32 %v1397_v10, %v1396_v51 }
 0x1e2   : > { %v1675_v29 = vadd.f32 %v1674_v46, %v1612_v63  ;;  %v1811_v30 = vadd.f32 %v1810_v49, %v1748_v56 }
 0x1e3   : > { %v1399_v26 = vrot.slane %v1398_v13, 2 }
 0x1e5   : > { %v321_v57 = vpop.f32.mrf.mxu0  ;;  %v410_v58 = vpop.f32.mrf.mxu1  ;;  %v1400_v56 = vadd.f32 %v1399_v26, %v1398_v13 }
 0x1e6   : > { %v1613_v0 = vmul.f32 %v2490_v2, %v321_v57  ;;  %v1749_v60 = vmul.f32 %v321_v57, %v321_v57  ;;  %v1614_v52 = vmul.f32 %v2492_v3, %v410_v58  ;;  %v1750_v9 = vmul.f32 %v410_v58, %v410_v58  ;;  %v1415_v23 = vpop.xlane.xlu1 %1414 }
 0x1e7   : > { %v1434_v15 = vpop.xlane.xlu2 %1433  ;;  %v1416_v31 = vrot.slane %v1415_v23, 4 }
 0x1e8   : > { %v1676_v62 = vadd.f32 %v1675_v29, %v1613_v0  ;;  %v1812_v43 = vadd.f32 %v1811_v30, %v1749_v60  ;;  %v1435_v27 = vrot.slane %v1434_v15, 4  ;;  %v1401_v30 = vrot.slane %v1400_v56, 1 }
 0x1e9   : > { %v1417_v38 = vadd.f32 %v1416_v31, %v1415_v23 }
 0x1ea   : > { %v1677_v14 = vadd.f32 %v1676_v62, %v1614_v52  ;;  %v1813_v39 = vadd.f32 %v1812_v43, %v1750_v9  ;;  %v1436_v22 = vadd.f32 %v1435_v27, %v1434_v15  ;;  %v1402_v60 = vadd.f32 %v1401_v30, %v1400_v56 }
 0x1eb   : > { %v1418_v49 = vrot.slane %v1417_v38, 2 }
 0x1ec   : > { %v1437_v46 = vrot.slane %v1436_v22, 2  ;;  %2248 = vpush %v1402_v60 }
 0x1ed   : > { %v324_v16 = vpop.f32.mrf.mxu0  ;;  %v413_v19 = vpop.f32.mrf.mxu1  ;;  %v1419_v57 = vadd.f32 %v1418_v49, %v1417_v38 }
 0x1ee   : > { %v1615_v61 = vmul.f32 %v2512_v20, %v324_v16  ;;  %v1751_v54 = vmul.f32 %v324_v16, %v324_v16  ;;  %v1616_v2 = vmul.f32 %v2514_v21, %v413_v19  ;;  %v1752_v3 = vmul.f32 %v413_v19, %v413_v19 }
 0x1ef   : > { %v1420_v51 = vrot.slane %v1419_v57, 1  ;;  %v1438_v62 = vadd.f32 %v1437_v46, %v1436_v22 }
 0x1f0   : > { %v1678_v45 = vadd.f32 %v1677_v14, %v1615_v61  ;;  %v1814_v34 = vadd.f32 %v1813_v39, %v1751_v54  ;;  %2179 = vmatmul.msk.bf16.gmra.mxu0 %vm251_vm0, %v2522_v36  ;;  %2195 = vmatmul.msk.bf16.gmra.mxu1 %vm251_vm0, %v2522_v36 }
 0x1f1   : > { %v1421_v10 = vadd.f32 %v1420_v51, %v1419_v57  ;;  %v1439_v14 = vrot.slane %v1438_v62, 1 }
 0x1f2   : > { %v1679_v20 = vadd.f32 %v1678_v45, %v1616_v2  ;;  %v1815_v63 = vadd.f32 %v1814_v34, %v1752_v3 }
 0x1f3   : > { %2250 = vpush %v1421_v10  ;;  %v1440_v16 = vadd.f32 %v1439_v14, %v1438_v62 }
 0x1f5   : > { %v326_v21 = vpop.f32.mrf.mxu0  ;;  %v415_v29 = vpop.f32.mrf.mxu1  ;;  %2252 = vpush %v1440_v16 }
 0x1f6   : > { %v1617_v58 = vmul.f32 %v2530_v55, %v326_v21  ;;  %v1753_v0 = vmul.f32 %v326_v21, %v326_v21  ;;  %v1618_v36 = vmul.f32 %v2532_v35, %v415_v29  ;;  %v1754_v9 = vmul.f32 %v415_v29, %v415_v29 }
 0x1f8   : > { %v1680_v43 = vadd.f32 %v1679_v20, %v1617_v58  ;;  %v1816_v52 = vadd.f32 %v1815_v63, %v1753_v0 }
 0x1fa   : > { %v1681_v39 = vadd.f32 %v1680_v43, %v1618_v36  ;;  %v1817_v13 = vadd.f32 %v1816_v52, %v1754_v9 }
 0x1fd   : > { %v329_v19 = vpop.f32.mrf.mxu0  ;;  %v418_v61 = vpop.f32.mrf.mxu1 }
 0x1fe   : > { %v1619_v55 = vmul.f32 %v2544_v1, %v329_v19  ;;  %v1755_v54 = vmul.f32 %v329_v19, %v329_v19  ;;  %v1620_v15 = vmul.f32 %v2546_v4, %v418_v61  ;;  %v1756_v26 = vmul.f32 %v418_v61, %v418_v61 }
 0x200   : > { %v1682_v23 = vadd.f32 %v1681_v39, %v1619_v55  ;;  %v1818_v2 = vadd.f32 %v1817_v13, %v1755_v54  ;;  %2180 = vmatmul.msk.bf16.gmra.mxu0 %vm251_vm0, %v2552_v8  ;;  %2196 = vmatmul.msk.bf16.gmra.mxu1 %vm251_vm0, %v2552_v8 }
 0x202   : > { %v1683_v35 = vadd.f32 %v1682_v23, %v1620_v15  ;;  %v1819_v27 = vadd.f32 %v1818_v2, %v1756_v26 }
 0x205   : > { %v331_v31 = vpop.f32.mrf.mxu0  ;;  %v420_v45 = vpop.f32.mrf.mxu1 }
 0x206   : > { %v1621_v34 = vmul.f32 %v2554_v11, %v331_v31  ;;  %v1757_v3 = vmul.f32 %v331_v31, %v331_v31  ;;  %v1622_v4 = vmul.f32 %v2556_v12, %v420_v45  ;;  %v1758_v38 = vmul.f32 %v420_v45, %v420_v45 }
 0x208   : > { %v1684_v1 = vadd.f32 %v1683_v35, %v1621_v34  ;;  %v1820_v22 = vadd.f32 %v1819_v27, %v1757_v3  ;;  %v250_v27 = vpop.trf.xlu0 }
 0x20a   : > { %v1685_v20 = vadd.f32 %v1684_v1, %v1622_v4  ;;  %v1821_v63 = vadd.f32 %v1820_v22, %v1758_v38  ;;  %v2722_v4 = vpop.f32.mrf.mxu2 }
 0x20d   : > { %v334_v46 = vpop.f32.mrf.mxu0  ;;  %v423_v49 = vpop.f32.mrf.mxu1 }
 0x20e   : > { %v1623_v56 = vmul.f32 %v2572_v24, %v334_v46  ;;  %v1759_v21 = vmul.f32 %v334_v46, %v334_v46  ;;  %v1624_v8 = vmul.f32 %v2574_v25, %v423_v49  ;;  %v1760_v57 = vmul.f32 %v423_v49, %v423_v49 }
 0x210   : > { %v1686_v29 = vadd.f32 %v1685_v20, %v1623_v56  ;;  %v1822_v30 = vadd.f32 %v1821_v63, %v1759_v21  ;;  %2181 = vmatmul.msk.bf16.gmra.mxu0 %vm251_vm0, %v2576_v28  ;;  %2197 = vmatmul.msk.bf16.gmra.mxu1 %vm251_vm0, %v2576_v28  ;;  %v2724_v63 = vpop.f32.mrf.mxu3 }
 0x212   : > { %v1687_v11 = vadd.f32 %v1686_v29, %v1624_v8  ;;  %v1823_v12 = vadd.f32 %v1822_v30, %v1760_v57 }
 0x215   : > { %v336_v58 = vpop.f32.mrf.mxu0  ;;  %v425_v0 = vpop.f32.mrf.mxu1 }
 0x216   : > { %v1625_v60 = vmul.f32 %v2582_v37, %v336_v58  ;;  %v1761_v51 = vmul.f32 %v336_v58, %v336_v58  ;;  %v1626_v25 = vmul.f32 %v2584_v33, %v425_v0  ;;  %v1762_v43 = vmul.f32 %v425_v0, %v425_v0  ;;  %v2728_v0 = vpop.f32.mrf.mxu2 }
 0x218   : > { %v1688_v24 = vadd.f32 %v1687_v11, %v1625_v60  ;;  %v1824_v62 = vadd.f32 %v1823_v12, %v1761_v51 }
 0x21a   : > { %v1689_v52 = vadd.f32 %v1688_v24, %v1626_v25  ;;  %v1825_v36 = vadd.f32 %v1824_v62, %v1762_v43  ;;  %v2730_v62 = vpop.f32.mrf.mxu3 }
 0x21d   : > { %v339_v9 = vpop.f32.mrf.mxu0  ;;  %v428_v10 = vpop.f32.mrf.mxu1  ;;  %s2716_s20 = spop %2248 }
 0x21e   : > { %v1627_v14 = vmul.f32 %v2596_v50, %v339_v9  ;;  %v1763_v39 = vmul.f32 %v339_v9, %v339_v9  ;;  %v1628_v28 = vmul.f32 %v2598_v53, %v428_v10  ;;  %v1764_v19 = vmul.f32 %v428_v10, %v428_v10  ;;  %v2732_v10 = vpop.f32.mrf.mxu2 }
 0x220   : > { %v1690_v13 = vadd.f32 %v1689_v52, %v1627_v14  ;;  %v1826_v16 = vadd.f32 %v1825_v36, %v1763_v39  ;;  %2182 = vmatmul.msk.bf16.gmra.mxu0 %vm251_vm0, %v2604_v59  ;;  %2198 = vmatmul.msk.bf16.gmra.mxu1 %vm251_vm0, %v2604_v59 }
 0x222   : > { %v1691_v37 = vadd.f32 %v1690_v13, %v1628_v28  ;;  %v1827_v33 = vadd.f32 %v1826_v16, %v1764_v19  ;;  %v2734_v39 = vpop.f32.mrf.mxu3 }
 0x224   : > { %s2251_s21 = spop %2250 }
 0x225   : > { %v341_v61 = vpop.f32.mrf.mxu0  ;;  %v430_v55 = vpop.f32.mrf.mxu1 }
 0x226   : > { %v1629_v54 = vmul.f32 %v2610_v5, %v341_v61  ;;  %v1765_v15 = vmul.f32 %v341_v61, %v341_v61  ;;  %v1630_v53 = vmul.f32 %v2612_v6, %v430_v55  ;;  %v1766_v2 = vmul.f32 %v430_v55, %v430_v55  ;;  %s2253_s22 = spop %2252  ;;  %v2736_v16 = vpop.f32.mrf.mxu2 }
 0x227   : > { %s1442_s23 = smul.f32 %s2253_s22, %s2251_s21 }
 0x228   : > { %v1692_v50 = vadd.f32 %v1691_v37, %v1629_v54  ;;  %v1828_v23 = vadd.f32 %v1827_v33, %v1765_v15 }
 0x229   : > { %v1443_v6 = vstv %s1442_s23 }
 0x22a   : > { %v1693_v26 = vadd.f32 %v1692_v50, %v1630_v53  ;;  %v1829_v35 = vadd.f32 %v1828_v23, %v1766_v2  ;;  %2294 = vrsqrt.f32 %v1443_v6  ;;  %vm1451_vm3 = vcmp.eq.f32.partialorder %v1443_v6, inf  ;;  %v2738_v19 = vpop.f32.mrf.mxu3 }
 0x22b   : > { %v1454_v52 = vand.u32 2147483648, %v1443_v6  ;;  %vm1453_vm4 = vcmp.eq.f32.partialorder %v1443_v6, 0.0 }
 0x22d   : > { %v344_v31 = vpop.f32.mrf.mxu0  ;;  %v433_v59 = vpop.f32.mrf.mxu1 }
 0x22e   : > { %v1631_v45 = vmul.f32 %v2624_v17, %v344_v31  ;;  %v1767_v34 = vmul.f32 %v344_v31, %v344_v31  ;;  %v1632_v5 = vmul.f32 %v2626_v18, %v433_v59  ;;  %v1768_v22 = vmul.f32 %v433_v59, %v433_v59  ;;  %v2740_v61 = vpop.f32.mrf.mxu2 }
 0x230   : > { %v1694_v3 = vadd.f32 %v1693_v26, %v1631_v45  ;;  %v1830_v1 = vadd.f32 %v1829_v35, %v1767_v34  ;;  %2183 = vmatmul.msk.bf16.gmra.mxu0 %vm251_vm0, %v250_v27  ;;  %2199 = vmatmul.msk.bf16.gmra.mxu1 %vm251_vm0, %v250_v27  ;;  %v2295_v56 = vpop.eup %2294 }
 0x231   : > { %v1445_v57 = vmul.f32 %v2295_v56, %v1443_v6 }
 0x232   : > { %v1695_v38 = vadd.f32 %v1694_v3, %v1632_v5  ;;  %v1831_v20 = vadd.f32 %v1830_v1, %v1768_v22  ;;  %v2743_v15 = vpop.f32.mrf.mxu3 }
 0x233   : > { %v1446_v58 = vmul.f32 %v2295_v56, %v1445_v57 }
 0x235   : > { %v346_v17 = vpop.f32.mrf.mxu0  ;;  %v435_v46 = vpop.f32.mrf.mxu1  ;;  %v1447_v24 = vmul.f32 0.5, %v1446_v58 }
 0x236   : > { %v1633_v18 = vmul.f32 %v2632_v41, %v346_v17  ;;  %v1769_v49 = vmul.f32 %v346_v17, %v346_v17  ;;  %v1634_v29 = vmul.f32 %v2634_v32, %v435_v46  ;;  %v1770_v30 = vmul.f32 %v435_v46, %v435_v46  ;;  %v2747_v34 = vpop.f32.mrf.mxu2 }
 0x237   : > { %v1448_v25 = vsub.f32 1.5, %v1447_v24 }
 0x238   : > { %v1696_v21 = vadd.f32 %v1695_v38, %v1633_v18  ;;  %v1832_v8 = vadd.f32 %v1831_v20, %v1769_v49 }
 0x239   : > { %v1449_v41 = vmul.f32 %v2295_v56, %v1448_v25 }
 0x23a   : > { %v1697_v11 = vadd.f32 %v1696_v21, %v1634_v29  ;;  %v1833_v12 = vadd.f32 %v1832_v8, %v1770_v30  ;;  %v2749_v22 = vpop.f32.mrf.mxu3 }
 0x23b   : > { %v1450_v43 = vmul.f32 %v1449_v41, %v1443_v6 }
 0x23d   : > { %v349_v60 = vpop.f32.mrf.mxu0  ;;  %v438_v51 = vpop.f32.mrf.mxu1  ;;  %v1452_v9 = vsel %vm1451_vm3, %v1443_v6, %v1450_v43 }
 0x23e   : > { %v1455_v14 = vsel %vm1453_vm4, %v1454_v52, %v1452_v9  ;;  %v1635_v55 = vmul.f32 %v2648_v7, %v349_v60  ;;  %v1771_v54 = vmul.f32 %v349_v60, %v349_v60  ;;  %v1636_v26 = vmul.f32 %v2650_v47, %v438_v51 }
 0x23f   : > { %2254 = vpush %v1455_v14  ;;  %v1772_v35 = vmul.f32 %v438_v51, %v438_v51  ;;  %v1912_v60 = vmul.f32 %v2724_v63, %v2724_v63 }
 0x240   : > { %v1698_v53 = vadd.f32 %v1697_v11, %v1635_v55  ;;  %v1834_v2 = vadd.f32 %v1833_v12, %v1771_v54  ;;  %v2758_v11 = vpop.f32.mrf.mxu2 }
 0x242   : > { %v1699_v59 = vadd.f32 %v1698_v53, %v1636_v26  ;;  %v1835_v45 = vadd.f32 %v1834_v2, %v1772_v35  ;;  %v2764_v51 = vpop.f32.mrf.mxu3 }
 0x245   : > { %v351_v36 = vpop.f32.mrf.mxu0  ;;  %v440_v32 = vpop.f32.mrf.mxu1 }
 0x246   : > { %v1637_v27 = vmul.f32 %v2658_v40, %v351_v36  ;;  %v1773_v31 = vmul.f32 %v351_v36, %v351_v36  ;;  %v1638_v6 = vmul.f32 %v2660_v44, %v440_v32  ;;  %v1774_v38 = vmul.f32 %v440_v32, %v440_v32 }
 0x247   : > { %v1911_v40 = vmul.f32 %v2722_v4, %v2722_v4 }
 0x248   : > { %v1700_v5 = vadd.f32 %v1699_v59, %v1637_v27  ;;  %v1836_v3 = vadd.f32 %v1835_v45, %v1773_v31  ;;  %v2774_v53 = vpop.f32.mrf.mxu2  ;;  %v1916_v31 = vmul.f32 %v2734_v39, %v2734_v39  ;;  %v1917_v59 = vmul.f32 %v2736_v16, %v2736_v16 }
 0x249   : > { %v1974_v30 = vadd.f32 %v2672_v48, %v1911_v40 }
 0x24a   : > { %v1701_v17 = vadd.f32 %v1700_v5, %v1638_v6  ;;  %v1837_v46 = vadd.f32 %v1836_v3, %v1774_v38 }
 0x24b   : > { %v1975_v41 = vadd.f32 %v1974_v30, %v1912_v60 }
 0x24d   : > { %v354_v28 = vpop.f32.mrf.mxu0  ;;  %v443_v13 = vpop.f32.mrf.mxu1 }
 0x24e   : > { %v1639_v20 = vmul.f32 %v2722_v4, %v354_v28  ;;  %v1775_v47 = vmul.f32 %v354_v28, %v354_v28  ;;  %v1640_v56 = vmul.f32 %v2724_v63, %v443_v13  ;;  %v1776_v21 = vmul.f32 %v443_v13, %v443_v13 }
 0x24f   : > { %v1913_v4 = vmul.f32 %v2728_v0, %v2728_v0  ;;  %v1914_v63 = vmul.f32 %v2730_v62, %v2730_v62 }
 0x250   : > { %v1702_v18 = vadd.f32 %v1701_v17, %v1639_v20  ;;  %v1838_v49 = vadd.f32 %v1837_v46, %v1775_v47 }
 0x251   : > { %v1976_v32 = vadd.f32 %v1975_v41, %v1913_v4 }
 0x252   : > { %v1703_v12 = vadd.f32 %v1702_v18, %v1640_v56  ;;  %v1839_v58 = vadd.f32 %v1838_v49, %v1776_v21  ;;  %v2789_v49 = vpop.f32.mrf.mxu2 }
 0x253   : > { %v1977_v54 = vadd.f32 %v1976_v32, %v1914_v63  ;;  %v1921_v63 = vmul.f32 %v2747_v34, %v2747_v34 }
 0x255   : > { %v356_v37 = vpop.f32.mrf.mxu0  ;;  %v445_v33 = vpop.f32.mrf.mxu1 }
 0x256   : > { %v1641_v8 = vmul.f32 %v2728_v0, %v356_v37  ;;  %v1777_v29 = vmul.f32 %v356_v37, %v356_v37  ;;  %v1642_v43 = vmul.f32 %v2730_v62, %v445_v33  ;;  %v1778_v48 = vmul.f32 %v445_v33, %v445_v33  ;;  %v2778_v62 = vpop.f32.mrf.mxu3 }
 0x257   : > { %v1915_v0 = vmul.f32 %v2732_v10, %v2732_v10 }
 0x258   : > { %v1704_v24 = vadd.f32 %v1703_v12, %v1641_v8  ;;  %v1840_v25 = vadd.f32 %v1839_v58, %v1777_v29  ;;  %v1919_v29 = vmul.f32 %v2740_v61, %v2740_v61 }
 0x259   : > { %v1978_v35 = vadd.f32 %v1977_v54, %v1915_v0 }
 0x25a   : > { %v1705_v9 = vadd.f32 %v1704_v24, %v1642_v43  ;;  %v1841_v14 = vadd.f32 %v1840_v25, %v1778_v48 }
 0x25b   : > { %v1979_v3 = vadd.f32 %v1978_v35, %v1916_v31 }
 0x25d   : > { %v359_v50 = vpop.f32.mrf.mxu0  ;;  %v448_v23 = vpop.f32.mrf.mxu1  ;;  %v1980_v46 = vadd.f32 %v1979_v3, %v1917_v59 }
 0x25e   : > { %v1643_v52 = vmul.f32 %v2732_v10, %v359_v50  ;;  %v1779_v36 = vmul.f32 %v359_v50, %v359_v50  ;;  %v1644_v33 = vmul.f32 %v2734_v39, %v448_v23  ;;  %v1780_v50 = vmul.f32 %v448_v23, %v448_v23  ;;  %v2794_v12 = vpop.f32.mrf.mxu3 }
 0x25f   : > { %v1918_v39 = vmul.f32 %v2738_v19, %v2738_v19 }
 0x260   : > { %v1706_v37 = vadd.f32 %v1705_v9, %v1643_v52  ;;  %v1842_v55 = vadd.f32 %v1841_v14, %v1779_v36  ;;  %v1920_v14 = vmul.f32 %v2743_v15, %v2743_v15 }
 0x261   : > { %v1981_v8 = vadd.f32 %v1980_v46, %v1918_v39  ;;  %v1924_v39 = vmul.f32 %v2764_v51, %v2764_v51 }
 0x262   : > { %v1707_v27 = vadd.f32 %v1706_v37, %v1644_v33  ;;  %v1843_v10 = vadd.f32 %v1842_v55, %v1780_v50 }
 0x263   : > { %v1982_v52 = vadd.f32 %v1981_v8, %v1919_v29 }
 0x265   : > { %v361_v7 = vpop.f32.mrf.mxu0  ;;  %v450_v1 = vpop.f32.mrf.mxu1  ;;  %v1983_v33 = vadd.f32 %v1982_v52, %v1920_v14 }
 0x266   : > { %v1645_v2 = vmul.f32 %v2736_v16, %v361_v7  ;;  %v1781_v26 = vmul.f32 %v361_v7, %v361_v7  ;;  %v1646_v38 = vmul.f32 %v2738_v19, %v450_v1  ;;  %v1782_v20 = vmul.f32 %v450_v1, %v450_v1  ;;  %v725_v31 = vpop.f32.mrf.mxu3 }
 0x268   : > { %v1708_v23 = vadd.f32 %v1707_v27, %v1645_v2  ;;  %v1844_v5 = vadd.f32 %v1843_v10, %v1781_v26  ;;  %v636_v2 = vpop.f32.mrf.mxu2 }
 0x26a   : > { %v1709_v40 = vadd.f32 %v1708_v23, %v1646_v38  ;;  %v1845_v18 = vadd.f32 %v1844_v5, %v1782_v20  ;;  %v1923_v23 = vmul.f32 %v2758_v11, %v2758_v11 }
 0x26d   : > { %v364_v44 = vpop.f32.mrf.mxu0  ;;  %v453_v57 = vpop.f32.mrf.mxu1 }
 0x26e   : > { %v1647_v47 = vmul.f32 %v2740_v61, %v364_v44  ;;  %v1783_v17 = vmul.f32 %v364_v44, %v364_v44  ;;  %v1648_v1 = vmul.f32 %v2743_v15, %v453_v57  ;;  %v1784_v44 = vmul.f32 %v453_v57, %v453_v57 }
 0x270   : > { %s2255_s24 = spop %2254  ;;  %v1710_v56 = vadd.f32 %v1709_v40, %v1647_v47  ;;  %v1846_v21 = vadd.f32 %v1845_v18, %v1783_v17 }
 0x271   : > { %s1457_s26 = smax.f32 %s2326_s25, %s2255_s24 }
 0x272   : > { %v1458_v45 = vstv %s1457_s26  ;;  %v1711_v43 = vadd.f32 %v1710_v56, %v1648_v1  ;;  %v1847_v48 = vadd.f32 %v1846_v21, %v1784_v44  ;;  %v639_v56 = vpop.f32.mrf.mxu2 }
 0x273   : > { %2296 = vrcp.f32 %v1458_v45  ;;  %v1470_v4 = vand.u32 2147483648, %v1458_v45  ;;  %vm1464_vm5 = vweird.f32 %v1458_v45  ;;  %v1468_v41 = vand.u32 2147483647, %v1458_v45 }
 0x275   : > { %v366_v28 = vpop.f32.mrf.mxu0  ;;  %v2772_v13 = vpop.f32.mrf.mxu1  ;;  %v1471_v57 = vor.u32 1.1754944e-38, %v1470_v4  ;;  %vm1469_vm8 = vcmp.eq.f32.partialorder %v1468_v41, 8.507059e+37 }
 0x276   : > { %v1649_v58 = vmul.f32 %v2747_v34, %v366_v28  ;;  %v1785_v60 = vmul.f32 %v366_v28, %v366_v28  ;;  %v1650_v28 = vmul.f32 %v2749_v22, %v2772_v13  ;;  %v1786_v37 = vmul.f32 %v2772_v13, %v2772_v13 }
 0x277   : > { %v1984_v34 = vadd.f32 %v1983_v33, %v1921_v63  ;;  %v1922_v13 = vmul.f32 %v2749_v22, %v2749_v22  ;;  %v1925_v22 = vmul.f32 %v2774_v53, %v2774_v53 }
 0x278   : > { %v1712_v36 = vadd.f32 %v1711_v43, %v1649_v58  ;;  %v1848_v32 = vadd.f32 %v1847_v48, %v1785_v60 }
 0x279   : > { %v2297_v16 = vpop.eup %2296  ;;  %v1985_v20 = vadd.f32 %v1984_v34, %v1922_v13 }
 0x27a   : > { %v1460_v30 = vmul.f32 %v2297_v16, %v1458_v45  ;;  %vm1465_vm6 = vweird.f32 %v2297_v16  ;;  %v1713_v15 = vadd.f32 %v1712_v36, %v1650_v28  ;;  %v1849_v26 = vadd.f32 %v1848_v32, %v1786_v37 }
 0x27b   : > { %vm2797_vm7 = vmor %vm1464_vm5, %vm1465_vm6  ;;  %v1986_v46 = vadd.f32 %v1985_v20, %v1923_v23 }
 0x27c   : > { %v1461_v25 = vsub.f32 1.0, %v1460_v30  ;;  %v728_v30 = vpop.f32.mrf.mxu3 }
 0x27d   : > { %v369_v7 = vpop.f32.mrf.mxu0  ;;  %v458_v6 = vpop.f32.mrf.mxu1  ;;  %v1987_v1 = vadd.f32 %v1986_v46, %v1924_v39 }
 0x27e   : > { %v1462_v61 = vmul.f32 %v2297_v16, %v1461_v25  ;;  %v1651_v55 = vmul.f32 %v2758_v11, %v369_v7  ;;  %v1787_v54 = vmul.f32 %v369_v7, %v369_v7  ;;  %v1652_v5 = vmul.f32 %v2764_v51, %v458_v6 }
 0x27f   : > { %v1788_v3 = vmul.f32 %v458_v6, %v458_v6  ;;  %v1988_v60 = vadd.f32 %v1987_v1, %v1925_v22  ;;  %v1926_v51 = vmul.f32 %v2778_v62, %v2778_v62 }
 0x280   : > { %v1463_v0 = vadd.f32 %v2297_v16, %v1462_v61  ;;  %v1714_v59 = vadd.f32 %v1713_v15, %v1651_v55  ;;  %v1850_v45 = vadd.f32 %v1849_v26, %v1787_v54 }
 0x281   : > { %v1989_v48 = vadd.f32 %v1988_v60, %v1926_v51 }
 0x282   : > { %v1467_v50 = vsel %vm2797_vm7, %v2297_v16, %v1463_v0  ;;  %v1715_v47 = vadd.f32 %v1714_v59, %v1652_v5  ;;  %v1851_v17 = vadd.f32 %v1850_v45, %v1788_v3  ;;  %v1929_v0 = vmul.f32 %v636_v2, %v636_v2 }
 0x283   : > { %v1472_v35 = vsel %vm1469_vm8, %v1471_v57, %v1467_v50  ;;  %v641_v57 = vpop.f32.mrf.mxu2  ;;  %v1930_v59 = vmul.f32 %v725_v31, %v725_v31  ;;  %v1931_v45 = vmul.f32 %v639_v56, %v639_v56 }
 0x284   : > { %2256 = vpush %v1472_v35  ;;  %v730_v28 = vpop.f32.mrf.mxu3 }
 0x285   : > { %v371_v19 = vpop.f32.mrf.mxu0  ;;  %v460_v24 = vpop.f32.mrf.mxu1 }
 0x286   : > { %v1653_v7 = vmul.f32 %v2774_v53, %v371_v19  ;;  %v1789_v38 = vmul.f32 %v371_v19, %v371_v19  ;;  %v1654_v6 = vmul.f32 %v2778_v62, %v460_v24  ;;  %v1790_v21 = vmul.f32 %v460_v24, %v460_v24 }
 0x287   : > { %v1927_v53 = vmul.f32 %v2789_v49, %v2789_v49  ;;  %v1928_v62 = vmul.f32 %v2794_v12, %v2794_v12 }
 0x288   : > { %v1716_v40 = vadd.f32 %v1715_v47, %v1653_v7  ;;  %v1852_v18 = vadd.f32 %v1851_v17, %v1789_v38 }
 0x289   : > { %v1990_v9 = vadd.f32 %v1989_v48, %v1927_v53 }
 0x28a   : > { %v1717_v44 = vadd.f32 %v1716_v40, %v1654_v6  ;;  %v1853_v58 = vadd.f32 %v1852_v18, %v1790_v21  ;;  %v1932_v40 = vmul.f32 %v728_v30, %v728_v30  ;;  %v1933_v18 = vmul.f32 %v641_v57, %v641_v57 }
 0x28b   : > { %v1991_v33 = vadd.f32 %v1990_v9, %v1928_v62  ;;  %v644_v3 = vpop.f32.mrf.mxu2 }
 0x28c   : > { %v733_v47 = vpop.f32.mrf.mxu3  ;;  %v1935_v60 = vmul.f32 %v644_v3, %v644_v3 }
 0x28d   : > { %v374_v27 = vpop.f32.mrf.mxu0  ;;  %v463_v10 = vpop.f32.mrf.mxu1  ;;  %v1992_v26 = vadd.f32 %v1991_v33, %v1929_v0 }
 0x28e   : > { %v1655_v8 = vmul.f32 %v2789_v49, %v374_v27  ;;  %v1791_v29 = vmul.f32 %v374_v27, %v374_v27  ;;  %v1656_v25 = vmul.f32 %v2794_v12, %v463_v10  ;;  %v1792_v41 = vmul.f32 %v463_v10, %v463_v10 }
 0x290   : > { %v1718_v4 = vadd.f32 %v1717_v44, %v1655_v8  ;;  %v1854_v19 = vadd.f32 %v1853_v58, %v1791_v29  ;;  %v1934_v58 = vmul.f32 %v730_v28, %v730_v28 }
 0x292   : > { %v1719_v36 = vadd.f32 %v1718_v4, %v1656_v25  ;;  %v1855_v32 = vadd.f32 %v1854_v19, %v1792_v41 }
 0x293   : > { %v646_v4 = vpop.f32.mrf.mxu2 }
 0x295   : > { %v376_v16 = vpop.f32.mrf.mxu0  ;;  %v465_v11 = vpop.f32.mrf.mxu1 }
 0x296   : > { %v1657_v24 = vmul.f32 %v636_v2, %v376_v16  ;;  %v1793_v43 = vmul.f32 %v376_v16, %v376_v16  ;;  %v1658_v49 = vmul.f32 %v725_v31, %v465_v11  ;;  %v1794_v37 = vmul.f32 %v465_v11, %v465_v11 }
 0x297   : > { %v1993_v2 = vadd.f32 %v1992_v26, %v1930_v59 }
 0x298   : > { %v1720_v14 = vadd.f32 %v1719_v36, %v1657_v24  ;;  %v1856_v63 = vadd.f32 %v1855_v32, %v1793_v43 }
 0x299   : > { %v1994_v20 = vadd.f32 %v1993_v2, %v1931_v45 }
 0x29a   : > { %v1721_v50 = vadd.f32 %v1720_v14, %v1658_v49  ;;  %v1857_v15 = vadd.f32 %v1856_v63, %v1794_v37  ;;  %v1936_v14 = vmul.f32 %v733_v47, %v733_v47  ;;  %v1937_v63 = vmul.f32 %v646_v4, %v646_v4 }
 0x29b   : > { %v1995_v6 = vadd.f32 %v1994_v20, %v1932_v40 }
 0x29d   : > { %v379_v52 = vpop.f32.mrf.mxu0  ;;  %v468_v61 = vpop.f32.mrf.mxu1  ;;  %v1996_v29 = vadd.f32 %v1995_v6, %v1933_v18 }
 0x29e   : > { %v1659_v55 = vmul.f32 %v639_v56, %v379_v52  ;;  %v1795_v54 = vmul.f32 %v379_v52, %v379_v52  ;;  %v1660_v13 = vmul.f32 %v728_v30, %v468_v61  ;;  %v1796_v23 = vmul.f32 %v468_v61, %v468_v61  ;;  %v735_v61 = vpop.f32.mrf.mxu3 }
 0x29f   : > { %v1997_v53 = vadd.f32 %v1996_v29, %v1934_v58  ;;  %v1938_v37 = vmul.f32 %v735_v61, %v735_v61 }
 0x2a0   : > { %v1722_v27 = vadd.f32 %v1721_v50, %v1659_v55  ;;  %v1858_v10 = vadd.f32 %v1857_v15, %v1795_v54 }
 0x2a1   : > { %v1998_v52 = vadd.f32 %v1997_v53, %v1935_v60 }
 0x2a2   : > { %v1723_v7 = vadd.f32 %v1722_v27, %v1660_v13  ;;  %v1859_v38 = vadd.f32 %v1858_v10, %v1796_v23 }
 0x2a5   : > { %v381_v35 = vpop.f32.mrf.mxu0  ;;  %v470_v34 = vpop.f32.mrf.mxu1 }
 0x2a6   : > { %v1661_v5 = vmul.f32 %v641_v57, %v381_v35  ;;  %v1797_v12 = vmul.f32 %v381_v35, %v381_v35  ;;  %v1662_v16 = vmul.f32 %v730_v28, %v470_v34  ;;  %v1798_v11 = vmul.f32 %v470_v34, %v470_v34 }
 0x2a7   : > { %v1999_v28 = vadd.f32 %v1998_v52, %v1936_v14 }
 0x2a8   : > { %v1724_v17 = vadd.f32 %v1723_v7, %v1661_v5  ;;  %v1860_v46 = vadd.f32 %v1859_v38, %v1797_v12 }
 0x2a9   : > { %v2000_v49 = vadd.f32 %v1999_v28, %v1937_v63 }
 0x2aa   : > { %v1725_v21 = vadd.f32 %v1724_v17, %v1662_v16  ;;  %v1861_v8 = vadd.f32 %v1860_v46, %v1798_v11 }
 0x2ab   : > { %v2001_v55 = vadd.f32 %v2000_v49, %v1938_v37 }
 0x2ad   : > { %v384_v39 = vpop.f32.mrf.mxu0  ;;  %v473_v22 = vpop.f32.mrf.mxu1 }
 0x2ae   : > { %v1663_v31 = vmul.f32 %v644_v3, %v384_v39  ;;  %v1799_v56 = vmul.f32 %v384_v39, %v384_v39  ;;  %v1664_v19 = vmul.f32 %v733_v47, %v473_v22  ;;  %v1800_v51 = vmul.f32 %v473_v22, %v473_v22 }
 0x2b0   : > { %v1726_v1 = vadd.f32 %v1725_v21, %v1663_v31  ;;  %v1862_v44 = vadd.f32 %v1861_v8, %v1799_v56 }
 0x2b2   : > { %v1727_v41 = vadd.f32 %v1726_v1, %v1664_v19  ;;  %v1863_v24 = vadd.f32 %v1862_v44, %v1800_v51 }
 0x2b5   : > { %v386_v30 = vpop.f32.mrf.mxu0  ;;  %v475_v25 = vpop.f32.mrf.mxu1  ;;  %s2831_s27 = spop %2256 }
 0x2b6   : > { %v1665_v43 = vmul.f32 %v646_v4, %v386_v30  ;;  %v1801_v48 = vmul.f32 %v386_v30, %v386_v30  ;;  %v1666_v9 = vmul.f32 %v735_v61, %v475_v25  ;;  %v1802_v57 = vmul.f32 %v475_v25, %v475_v25  ;;  %s1474_s6 = smul.f32 %s2831_s27, %s2716_s20 }
 0x2b7   : > { %v2045_v30 = vshrl.u32 %v938_v42, 7  ;;  %v2047_v25 = vand.u32 127, %v938_v42 }
 0x2b8   : > { %v1728_v36 = vadd.f32 %v1727_v41, %v1665_v43  ;;  %v1864_v32 = vadd.f32 %v1863_v24, %v1801_v48  ;;  %v2051_v41 = vstv %s1474_s6 }
 0x2b9   : > { %vm2048_vm15 = vcmp.eq.s32.totalorder %v2045_v30, 0  ;;  %vm2049_vm0 = vcmp.eq.s32.totalorder %v2047_v25, 0  ;;  %vm2053_vm1 = vcmp.eq.s32.totalorder %v2047_v25, 1 }
 0x2ba   : > { %v1729_v62 = vadd.f32 %v1728_v36, %v1666_v9  ;;  %v1865_v0 = vadd.f32 %v1864_v32, %v1802_v57  ;;  %vm2050_vm2 = vmand %vm2048_vm15, %vm2049_vm0 }
 0x2bb   : > { %vm2054_vm3 = vmand %vm2048_vm15, %vm2053_vm1  ;;  %v2052_v43 = vsel %vm2050_vm2, %v2051_v41, 0.0 }
 0x2bc   : > { %1730 = vadd.xlane.f32.xlu2 %v1729_v62  ;;  %1866 = vadd.xlane.f32.xlu1 %v1865_v0 }
 0x2c4   : > { %2002 = vadd.xlane.f32.xlu2 %v2001_v55 }
 0x32f   : > { %v1731_v54 = vpop.xlane.xlu2 %1730  ;;  %v1867_v33 = vpop.xlane.xlu1 %1866 }
 0x330   : > { %v1732_v50 = vrot.slane %v1731_v54, 4  ;;  %v1868_v15 = vrot.slane %v1867_v33, 4 }
 0x332   : > { %v1733_v26 = vadd.f32 %v1732_v50, %v1731_v54  ;;  %v1869_v35 = vadd.f32 %v1868_v15, %v1867_v33 }
 0x334   : > { %v1734_v34 = vrot.slane %v1733_v26, 2  ;;  %v1870_v27 = vrot.slane %v1869_v35, 2 }
 0x336   : > { %v1871_v10 = vadd.f32 %v1870_v27, %v1869_v35  ;;  %v1735_v59 = vadd.f32 %v1734_v34, %v1733_v26 }
 0x337   : > { %v2003_v45 = vpop.xlane.xlu2 %2002 }
 0x338   : > { %v2004_v13 = vrot.slane %v2003_v45, 4  ;;  %v1736_v23 = vrot.slane %v1735_v59, 1  ;;  %v1872_v5 = vrot.slane %v1871_v10, 1 }
 0x33a   : > { %v2005_v12 = vadd.f32 %v2004_v13, %v2003_v45  ;;  %v1737_v2 = vadd.f32 %v1736_v23, %v1735_v59  ;;  %v1873_v3 = vadd.f32 %v1872_v5, %v1871_v10 }
 0x33c   : > { %v2006_v7 = vrot.slane %v2005_v12, 2  ;;  %2258 = vpush %v1737_v2 }
 0x33d   : > { %2260 = vpush %v1873_v3 }
 0x33e   : > { %v2007_v38 = vadd.f32 %v2006_v7, %v2005_v12 }
 0x340   : > { %v2008_v20 = vrot.slane %v2007_v38, 1 }
 0x342   : > { %v2009_v47 = vadd.f32 %v2008_v20, %v2007_v38 }
 0x344   : > { %2262 = vpush %v2009_v47 }
 0x36d   : > { %s2833_s28 = spop %2258 }
 0x36e   : > { %s2261_s29 = spop %2260 }
 0x375   : > { %s2263_s30 = spop %2262 }
 0x376   : > { %s2011_s3 = smul.f32 %s2263_s30, %s2261_s29 }
 0x378   : > { %v2012_v17 = vstv %s2011_s3 }
 0x379   : > { %2298 = vrsqrt.f32 %v2012_v17  ;;  %vm2020_vm9 = vcmp.eq.f32.partialorder %v2012_v17, inf  ;;  %v2023_v31 = vand.u32 2147483648, %v2012_v17  ;;  %vm2022_vm10 = vcmp.eq.f32.partialorder %v2012_v17, 0.0 }
 0x37f   : > { %v2299_v46 = vpop.eup %2298 }
 0x380   : > { %v2014_v40 = vmul.f32 %v2299_v46, %v2012_v17 }
 0x382   : > { %v2015_v18 = vmul.f32 %v2299_v46, %v2014_v40 }
 0x384   : > { %v2016_v39 = vmul.f32 0.5, %v2015_v18 }
 0x386   : > { %v2017_v22 = vsub.f32 1.5, %v2016_v39 }
 0x388   : > { %v2018_v16 = vmul.f32 %v2299_v46, %v2017_v22 }
 0x38a   : > { %v2019_v11 = vmul.f32 %v2018_v16, %v2012_v17 }
 0x38c   : > { %v2021_v56 = vsel %vm2020_vm9, %v2012_v17, %v2019_v11 }
 0x38d   : > { %v2024_v6 = vsel %vm2022_vm10, %v2023_v31, %v2021_v56 }
 0x38e   : > { %2264 = vpush %v2024_v6 }
 0x3bf   : > { %s2265_s4 = spop %2264 }
 0x3c0   : > { %s2026_s5 = smax.f32 %s2326_s25, %s2265_s4 }
 0x3c1   : > { %v2027_v21 = vstv %s2026_s5 }
 0x3c2   : > { %2300 = vrcp.f32 %v2027_v21  ;;  %v2039_v44 = vand.u32 2147483648, %v2027_v21  ;;  %v2037_v60 = vand.u32 2147483647, %v2027_v21  ;;  %vm2033_vm12 = vweird.f32 %v2027_v21 }
 0x3c4   : > { %v2040_v19 = vor.u32 1.1754944e-38, %v2039_v44  ;;  %vm2038_vm14 = vcmp.eq.f32.partialorder %v2037_v60, 8.507059e+37 }
 0x3c8   : > { %v2301_v8 = vpop.eup %2300 }
 0x3c9   : > { %v2029_v29 = vmul.f32 %v2301_v8, %v2027_v21  ;;  %vm2034_vm11 = vweird.f32 %v2301_v8 }
 0x3ca   : > { %vm2035_vm13 = vmor %vm2033_vm12, %vm2034_vm11 }
 0x3cb   : > { %v2030_v1 = vsub.f32 1.0, %v2029_v29 }
 0x3cd   : > { %v2031_v58 = vmul.f32 %v2301_v8, %v2030_v1 }
 0x3cf   : > { %v2032_v4 = vadd.f32 %v2301_v8, %v2031_v58 }
 0x3d1   : > { %v2036_v51 = vsel %vm2035_vm13, %v2301_v8, %v2032_v4 }
 0x3d2   : > { %v2041_v53 = vsel %vm2038_vm14, %v2040_v19, %v2036_v51 }
 0x3d3   : > { %2266 = vpush %v2041_v53 }
 0x404   : > { %s2267_s7 = spop %2266 }
 0x405   : > { %s2043_s13 = smul.f32 %s2267_s7, %s2833_s28 }
 0x407   : > { %v2055_v24 = vstv %s2043_s13 }
 0x408   : > { %v2056_v48 = vsel %vm2054_vm3, %v2055_v24, 0.0 }
 0x409   : > { %v2057_v52 = vadd.f32 %v2056_v48, %v2052_v43 }
 0x40b   : > { %2058 = vst [vmem:[%s211_s16] sm:$0xff] %v2057_v52 }
 0x40c PF: > { %s12_s11 = sadd.s32 1, %s2324_s11   ;;  %s2861_s9 = smov %s2320_s10 }
 0x40d   : > { %p9_p5 = scmp.ge.s32.totalorder %s12_s11, 4   ;;  %s2862_s10 = smov %s2864_s12 }
 0x40f   :  { %11 = sbr.rel (!%p9_p5) target bundleno = 2 (0x2), region = 79 }

// kernel: extractor_forward.5
= control target key start
LH: loop header
LB: loop body
LE: loop exit
PB: predicated region body
PF: predicated region fallthrough
CT: control target
= control target key end

     0   :  { %s1224_s9 = smov 0   ;;  %s1226_s10 = smov 0   ;;  %s1396_s0 = inlined_call_operand.vmem [shape: bf16[2,64,128], index: 0, kind: input, shape index: {}]   ;;  %s1397_s1 = inlined_call_operand.vmem [shape: bf16[2,64,128], index: 1, kind: input, shape index: {}]   ;;  %s1398_s2 = inlined_call_operand.vmem [shape: f32[2,8,128], index: 2, kind: output, shape index: {}]  }
   0x1   :  { %s1228_s11 = smov 0  }
   0x2 LB: > { %s24_s12 = sadd.s32 1, %s1202_s10  ;;  %p1036_p0 = scmp.ge.s32.totalorder %s1206_s11, 1  ;;  %s1206_s11 = sphi %s1228_s11, %s12_s11   ;;  %s1202_s10 = sphi %s1226_s10, %s1400_s10   ;;  %s1198_s9 = sphi %s1224_s9, %s1399_s9  }
   0x3   : > { %p26_p1 = scmp.ge.s32.totalorder %s24_s12, 2  ;;  %p148_p2 = scmp.lt.s32.totalorder %s1206_s11, 3 }
   0x5   : > { %s1402_s12 = smov (%p26_p1, %s24_s12), 0  ;;  %p149_p3 = pnand %p1036_p0, %p148_p2 }
   0x6   : > { %p183_p4 = scmp.lt.s32.totalorder (!%p149_p3), %s1198_s9, 1  ;;  %s1208_s25 = smov (!%p149_p3), 1e-08  }
   0x7   : > { %152 = sbr.rel (%p149_p3) target bundleno = 790 (0x316), region = 28 }
   0xc   : > { %s1404_s9 = smov (!%p183_p4, %s1198_s9), 1  ;;  %vm681_vm0 = vcmask 1040384   ;;  %vm263_vm1 = vcmask 523264  }
   0xd   : > { %s1092_s13 = sshll.u32 %s1404_s9, 5  ;;  %s1041_s8 = sshll.u32 %s1404_s9, 3 }
   0xe   : > { %s1248_s16 = scalar_lea.vmem %s1396_s0, %s1092_s13  ;;  %s1253_s19 = scalar_lea.vmem %s1397_s1, %s1092_s13 }
   0xf   : > { %v1094_v0 = vld [vmem:[%s1248_s16] sm:$0xff]  ;;  %v1258_v2 = vld [vmem:[%s1248_s16 + $0x18] sm:$0xff]  ;;  %v1268_v4 = vld [vmem:[%s1248_s16 + $0x10] sm:$0xff] }
  0x10   : > { %v1098_v1 = vld [vmem:[%s1253_s19] sm:$0xff]  ;;  %v1261_v3 = vld [vmem:[%s1253_s19 + $0x18] sm:$0xff]  ;;  %292 = vmatpush.bf16.msra.mxu0 %v1258_v2  ;;  %1102 = vmatpush.bf16.msra.mxu2 %v1258_v2  ;;  %v1100_v5 = vld [vmem:[%s1253_s19 + $0x10] sm:$0xff] }
  0x11   : > { %1156 = vxpose.binary.xlu0.c.b16.start [1/8] (short) %v1098_v1, %v1094_v0, 128  ;;  %v1095_v6 = vld [vmem:[%s1248_s16 + $0x8] sm:$0xff]  ;;  %v207_v8 = vld [vmem:[%s1248_s16] sm:$0xff]   ;;  %v211_v10 = vld [vmem:[%s1248_s16 + $0x10] sm:$0xff]  }
  0x12   : > { %405 = vmatpush.bf16.msra.mxu1 %v1261_v3  ;;  %1106 = vmatpush.bf16.msra.mxu3 %v1261_v3  ;;  %v1099_v7 = vld [vmem:[%s1253_s19 + $0x8] sm:$0xff]  ;;  %v215_v11 = vld [vmem:[%s1253_s19] sm:$0xff]   ;;  %v450_v13 = vunpack.c.l.bf16 %v207_v8  ;;  %v451_v14 = vunpack.c.h.bf16 %v207_v8  ;;  %v219_v16 = vld [vmem:[%s1253_s19 + $0x10] sm:$0xff]   ;;  %v454_v22 = vunpack.c.l.bf16 %v211_v10  ;;  %v455_v29 = vunpack.c.h.bf16 %v211_v10 }
  0x13   : > { %v209_v9 = vld [vmem:[%s1248_s16 + $0x8] sm:$0xff]   ;;  %v458_v18 = vunpack.c.l.bf16 %v215_v11  ;;  %v459_v19 = vunpack.c.h.bf16 %v215_v11  ;;  %v462_v23 = vunpack.c.l.bf16 %v219_v16  ;;  %v213_v27 = vld [vmem:[%s1248_s16 + $0x18] sm:$0xff]   ;;  %v463_v30 = vunpack.c.h.bf16 %v219_v16  ;;  %s205_s16 = scalar_lea.vmem %s1398_s2, %s1041_s8 }
  0x14   : > { %293 = vmatpush.bf16.msra.mxu0 %v1268_v4  ;;  %1103 = vmatpush.bf16.msra.mxu2 %v1268_v4  ;;  %v217_v12 = vld [vmem:[%s1253_s19 + $0x8] sm:$0xff]   ;;  %v452_v15 = vunpack.c.l.bf16 %v209_v9  ;;  %v453_v17 = vunpack.c.h.bf16 %v209_v9  ;;  %v221_v28 = vld [vmem:[%s1253_s19 + $0x18] sm:$0xff]   ;;  %v456_v33 = vunpack.c.l.bf16 %v213_v27  ;;  %v457_v40 = vunpack.c.h.bf16 %v213_v27 }
  0x15   : > { %v460_v20 = vunpack.c.l.bf16 %v217_v12  ;;  %v461_v21 = vunpack.c.h.bf16 %v217_v12  ;;  %v466_v24 = vmul.f32 %v458_v18, %v450_v13  ;;  %v467_v25 = vmul.f32 %v459_v19, %v451_v14 }
  0x16   : > { %406 = vmatpush.bf16.msra.mxu1 %v1100_v5  ;;  %1107 = vmatpush.bf16.msra.mxu3 %v1100_v5  ;;  %v464_v34 = vunpack.c.l.bf16 %v221_v28  ;;  %v470_v35 = vmul.f32 %v462_v23, %v454_v22  ;;  %v508_v37 = vmul.f32 %v458_v18, %v458_v18  ;;  %v509_v38 = vmul.f32 %v459_v19, %v459_v19 }
  0x17   : > { %v468_v26 = vmul.f32 %v460_v20, %v452_v15  ;;  %v469_v31 = vmul.f32 %v461_v21, %v453_v17  ;;  %v474_v32 = vadd.f32 %v467_v25, %v466_v24  ;;  %v510_v39 = vmul.f32 %v460_v20, %v460_v20 }
  0x18   : > { %294 = vmatpush.bf16.msra.mxu0 %v1095_v6  ;;  %1104 = vmatpush.bf16.msra.mxu2 %v1095_v6  ;;  %v465_v41 = vunpack.c.h.bf16 %v221_v28  ;;  %v471_v42 = vmul.f32 %v463_v30, %v455_v29  ;;  %v511_v44 = vmul.f32 %v461_v21, %v461_v21  ;;  %v516_v45 = vadd.f32 %v509_v38, %v508_v37 }
  0x19   : > { %v475_v36 = vadd.f32 %v474_v32, %v468_v26  ;;  %v472_v46 = vmul.f32 %v464_v34, %v456_v33  ;;  %v512_v48 = vmul.f32 %v462_v23, %v462_v23  ;;  %v487_v52 = vmul.f32 %v450_v13, %v450_v13 }
  0x1a   : > { %407 = vmatpush.bf16.msra.mxu1 %v1099_v7  ;;  %1108 = vmatpush.bf16.msra.mxu3 %v1099_v7  ;;  %v517_v49 = vadd.f32 %v516_v45, %v510_v39  ;;  %v473_v50 = vmul.f32 %v465_v41, %v457_v40  ;;  %v488_v53 = vmul.f32 %v451_v14, %v451_v14 }
  0x1b   : > { %v476_v43 = vadd.f32 %v475_v36, %v469_v31  ;;  %v513_v54 = vmul.f32 %v463_v30, %v463_v30  ;;  %v489_v56 = vmul.f32 %v452_v15, %v452_v15  ;;  %v514_v58 = vmul.f32 %v464_v34, %v464_v34 }
  0x1c   : > { %295 = vmatpush.bf16.msra.mxu0 %v1094_v0  ;;  %1105 = vmatpush.bf16.msra.mxu2 %v1094_v0  ;;  %v518_v55 = vadd.f32 %v517_v49, %v511_v44  ;;  %v490_v60 = vmul.f32 %v453_v17, %v453_v17  ;;  %v495_v61 = vadd.f32 %v488_v53, %v487_v52 }
  0x1d   : > { %v477_v47 = vadd.f32 %v476_v43, %v470_v35  ;;  %v515_v63 = vmul.f32 %v465_v41, %v465_v41  ;;  %v492_v9 = vmul.f32 %v455_v29, %v455_v29  ;;  %v494_v15 = vmul.f32 %v457_v40, %v457_v40 }
  0x1e   : > { %408 = vmatpush.bf16.msra.mxu1 %v1098_v1  ;;  %1109 = vmatpush.bf16.msra.mxu3 %v1098_v1  ;;  %v519_v59 = vadd.f32 %v518_v55, %v512_v48  ;;  %v491_v1 = vmul.f32 %v454_v22, %v454_v22 }
  0x1f   : > { %v478_v51 = vadd.f32 %v477_v47, %v471_v42 }
  0x20   : > { %v520_v0 = vadd.f32 %v519_v59, %v513_v54 }
  0x21   : > { %1157 = vxpose.binary.xlu0.c.b16.cont [2/8] (short) %v1099_v7, %v1095_v6, 128  ;;  %v479_v57 = vadd.f32 %v478_v51, %v472_v46  ;;  %v496_v6 = vadd.f32 %v495_v61, %v489_v56 }
  0x22   : > { %v521_v8 = vadd.f32 %v520_v0, %v514_v58 }
  0x23   : > { %v480_v62 = vadd.f32 %v479_v57, %v473_v50  ;;  %v497_v10 = vadd.f32 %v496_v6, %v490_v60 }
  0x24   : > { %v522_v12 = vadd.f32 %v521_v8, %v515_v63 }
  0x25   : > { %v481_v7 = vrot.slane %v480_v62, 4 }
  0x26   : > { %v523_v14 = vrot.slane %v522_v12, 4 }
  0x27   : > { %v482_v11 = vadd.f32 %v481_v7, %v480_v62 }
  0x28   : > { %v524_v17 = vadd.f32 %v523_v14, %v522_v12 }
  0x29   : > { %v483_v13 = vrot.slane %v482_v11, 2 }
  0x2a   : > { %v525_v21 = vrot.slane %v524_v17, 2 }
  0x2b   : > { %v484_v18 = vadd.f32 %v483_v13, %v482_v11 }
  0x2c   : > { %v526_v24 = vadd.f32 %v525_v21, %v524_v17 }
  0x2d   : > { %v485_v20 = vrot.slane %v484_v18, 1 }
  0x2e   : > { %v527_v26 = vrot.slane %v526_v24, 1 }
  0x2f   : > { %v486_v22 = vadd.f32 %v485_v20, %v484_v18 }
  0x30   : > { %v528_v28 = vadd.f32 %v527_v26, %v526_v24 }
  0x31   : > { %1158 = vxpose.binary.xlu0.c.b16.cont [3/8] (short) %v1100_v5, %v1268_v4, 128  ;;  %v493_v4 = vmul.f32 %v456_v33, %v456_v33  ;;  %v498_v5 = vadd.f32 %v497_v10, %v491_v1  ;;  %565 = vst [vmem:[#allocation4] sm:$0x1] %v486_v22 }
  0x32   : > { %567 = vst [vmem:[#allocation4 + $0x2] sm:$0x1] %v528_v28 }
  0x33   : > { %v499_v16 = vadd.f32 %v498_v5, %v492_v9 }
  0x35   : > { %v500_v19 = vadd.f32 %v499_v16, %v493_v4 }
  0x37   : > { %v501_v23 = vadd.f32 %v500_v19, %v494_v15 }
  0x38   : > { %v680_v31 = vld [vmem:[#allocation4] sm:$0x1] }
  0x39   : > { %v502_v25 = vrot.slane %v501_v23, 4  ;;  %v682_v33 = vsel %vm681_vm0, %v680_v31, 0.0  ;;  %v703_v35 = vld [vmem:[#allocation4 + $0x2] sm:$0x1] }
  0x3a   : > { %683 = vadd.xlane.f32.xlu1 %v682_v33  ;;  %v704_v36 = vsel %vm681_vm0, %v703_v35, 0.0 }
  0x3b   : > { %v503_v27 = vadd.f32 %v502_v25, %v501_v23  ;;  %705 = vadd.xlane.f32.xlu2 %v704_v36 }
  0x3d   : > { %v504_v29 = vrot.slane %v503_v27, 2 }
  0x3f   : > { %v505_v30 = vadd.f32 %v504_v29, %v503_v27 }
  0x41   : > { %1159 = vxpose.binary.xlu0.c.b16.end [4/8] (short) %v1261_v3, %v1258_v2, 128  ;;  %v506_v32 = vrot.slane %v505_v30, 1 }
  0x43   : > { %v507_v34 = vadd.f32 %v506_v32, %v505_v30 }
  0x45   : > { %566 = vst [vmem:[#allocation4 + $0x1] sm:$0x1] %v507_v34 }
  0x4c   : > { %v692_v2 = vld [vmem:[#allocation4 + $0x1] sm:$0x1] }
  0x4d   : > { %v693_v3 = vsel %vm681_vm0, %v692_v2, 0.0 }
  0x4e   : > { %694 = vadd.xlane.f32.xlu1 %v693_v3 }
  0xad   : > { %v684_v44 = vpop.xlane.xlu1 %683 }
  0xae   : > { %v706_v45 = vpop.xlane.xlu2 %705  ;;  %v685_v46 = vrot.slane %v684_v44, 4 }
  0xaf   : > { %v707_v47 = vrot.slane %v706_v45, 4 }
  0xb0   : > { %v686_v48 = vadd.f32 %v685_v46, %v684_v44 }
  0xb1   : > { %v708_v49 = vadd.f32 %v707_v47, %v706_v45 }
  0xb2   : > { %v687_v53 = vrot.slane %v686_v48, 2 }
  0xb3   : > { %v709_v54 = vrot.slane %v708_v49, 2 }
  0xb4   : > { %v688_v57 = vadd.f32 %v687_v53, %v686_v48 }
  0xb5   : > { %v710_v59 = vadd.f32 %v709_v54, %v708_v49 }
  0xb6   : > { %v689_v61 = vrot.slane %v688_v57, 1 }
  0xb7   : > { %v711_v63 = vrot.slane %v710_v59, 1 }
  0xb8   : > { %v690_v0 = vadd.f32 %v689_v61, %v688_v57 }
  0xb9   : > { %v712_v6 = vadd.f32 %v711_v63, %v710_v59 }
  0xba   : > { %1110 = vpush %v690_v0 }
  0xbd   : > { %v1160_v37 = vpop.trf.xlu0 }
  0xbe   : > { %1058 = vmatmul.msk.bf16.vlgmr.msra.gmra.mxu0 %vm263_vm1, %v1160_v37 }
  0xc1   : > { %v695_v51 = vpop.xlane.xlu1 %694 }
  0xc2   : > { %v696_v52 = vrot.slane %v695_v51, 4 }
  0xc4   : > { %v697_v55 = vadd.f32 %v696_v52, %v695_v51 }
  0xc5   : > { %v1161_v38 = vpop.trf.xlu0 }
  0xc6   : > { %1082 = vmatmul.msk.bf16.vlgmr.msra.gmra.mxu1 %vm263_vm1, %v1161_v38  ;;  %v698_v56 = vrot.slane %v697_v55, 2 }
  0xc8   : > { %v699_v58 = vadd.f32 %v698_v56, %v697_v55 }
  0xca   : > { %v700_v62 = vrot.slane %v699_v58, 1 }
  0xcc   : > { %v701_v1 = vadd.f32 %v700_v62, %v699_v58 }
  0xcd   : > { %v1162_v39 = vpop.trf.xlu0 }
  0xce   : > { %1059 = vmatmul.msk.bf16.gmra.mxu0 %vm263_vm1, %v1162_v39  ;;  %1112 = vpush %v701_v1 }
  0xcf   : > { %1114 = vpush %v712_v6 }
  0xd5   : > { %v1163_v40 = vpop.trf.xlu0 }
  0xd6   : > { %1083 = vmatmul.msk.bf16.gmra.mxu1 %vm263_vm1, %v1163_v40 }
  0xdd   : > { %v1164_v41 = vpop.trf.xlu0 }
  0xde   : > { %1060 = vmatmul.msk.bf16.gmra.mxu0 %vm263_vm1, %v1164_v41 }
  0xe5   : > { %v1165_v42 = vpop.trf.xlu0 }
  0xe6   : > { %1084 = vmatmul.msk.bf16.gmra.mxu1 %vm263_vm1, %v1165_v42 }
  0xeb   : > { %s1301_s20 = spop %1110 }
  0xed   : > { %v1166_v43 = vpop.trf.xlu0 }
  0xee   : > { %1061 = vmatmul.msk.bf16.gmra.mxu0 %vm263_vm1, %v1166_v43 }
  0xf5   : > { %v1167_v50 = vpop.trf.xlu0 }
  0xf6   : > { %1085 = vmatmul.msk.bf16.gmra.mxu1 %vm263_vm1, %v1167_v50 }
  0xfd   : > { %v1168_v60 = vpop.trf.xlu0 }
  0xfe   : > { %1062 = vmatmul.msk.bf16.vlgmr.msra.gmra.mxu2 %vm263_vm1, %v1168_v60 }
  0xff   : > { %s1113_s21 = spop %1112 }
 0x100   : > { %s1115_s22 = spop %1114 }
 0x101   : > { %s714_s23 = smul.f32 %s1115_s22, %s1113_s21 }
 0x103   : > { %v715_v5 = vstv %s714_s23 }
 0x104   : > { %1176 = vrsqrt.f32 %v715_v5  ;;  %vm723_vm2 = vcmp.eq.f32.partialorder %v715_v5, inf  ;;  %v726_v19 = vand.u32 2147483648, %v715_v5  ;;  %vm725_vm3 = vcmp.eq.f32.partialorder %v715_v5, 0.0 }
 0x105   : > { %v1169_v7 = vpop.trf.xlu0 }
 0x106   : > { %1086 = vmatmul.msk.bf16.vlgmr.msra.gmra.mxu3 %vm263_vm1, %v1169_v7 }
 0x10a   : > { %v1177_v13 = vpop.eup %1176 }
 0x10b   : > { %v717_v14 = vmul.f32 %v1177_v13, %v715_v5 }
 0x10d   : > { %v1170_v8 = vpop.trf.xlu0  ;;  %v718_v15 = vmul.f32 %v1177_v13, %v717_v14 }
 0x10e   : > { %1063 = vmatmul.msk.bf16.gmra.mxu2 %vm263_vm1, %v1170_v8 }
 0x10f   : > { %v719_v16 = vmul.f32 0.5, %v718_v15 }
 0x111   : > { %v720_v18 = vsub.f32 1.5, %v719_v16 }
 0x113   : > { %v721_v17 = vmul.f32 %v1177_v13, %v720_v18 }
 0x115   : > { %v1171_v9 = vpop.trf.xlu0  ;;  %v722_v20 = vmul.f32 %v721_v17, %v715_v5 }
 0x116   : > { %1087 = vmatmul.msk.bf16.gmra.mxu3 %vm263_vm1, %v1171_v9 }
 0x117   : > { %v724_v21 = vsel %vm723_vm2, %v715_v5, %v722_v20 }
 0x118   : > { %v727_v23 = vsel %vm725_vm3, %v726_v19, %v724_v21 }
 0x119   : > { %1116 = vpush %v727_v23 }
 0x11d   : > { %v1172_v10 = vpop.trf.xlu0 }
 0x11e   : > { %1064 = vmatmul.msk.bf16.gmra.mxu2 %vm263_vm1, %v1172_v10 }
 0x125   : > { %v1173_v11 = vpop.trf.xlu0 }
 0x126   : > { %1088 = vmatmul.msk.bf16.gmra.mxu3 %vm263_vm1, %v1173_v11 }
 0x12d   : > { %v1174_v12 = vpop.trf.xlu0 }
 0x12e   : > { %1065 = vmatmul.msk.bf16.gmra.mxu2 %vm263_vm1, %v1174_v12 }
 0x135   : > { %v1175_v4 = vpop.trf.xlu0 }
 0x136   : > { %1089 = vmatmul.msk.bf16.gmra.mxu3 %vm263_vm1, %v1175_v4 }
 0x13b   : > { %v297_v22 = vpop.f32.mrf.mxu0 }
 0x13c   : > { %v819_v53 = vmul.f32 %v297_v22, %v297_v22 }
 0x143   : > { %v1304_v24 = vpop.f32.mrf.mxu1  ;;  %v299_v25 = vpop.f32.mrf.mxu0 }
 0x144   : > { %v820_v52 = vmul.f32 %v299_v25, %v299_v25  ;;  %v779_v6 = vmul.f32 %v1304_v24, %v297_v22  ;;  %v859_v22 = vmul.f32 %v1304_v24, %v1304_v24 }
 0x146   : > { %v835_v55 = vadd.f32 %v820_v52, %v819_v53 }
 0x14a   : > { %s1117_s24 = spop %1116 }
 0x14b   : > { %v1306_v26 = vpop.f32.mrf.mxu1  ;;  %v302_v27 = vpop.f32.mrf.mxu0  ;;  %s729_s26 = smax.f32 %s1208_s25, %s1117_s24 }
 0x14c   : > { %v730_v31 = vstv %s729_s26  ;;  %v821_v54 = vmul.f32 %v302_v27, %v302_v27  ;;  %v780_v62 = vmul.f32 %v1306_v26, %v299_v25  ;;  %v860_v17 = vmul.f32 %v1306_v26, %v1306_v26 }
 0x14d   : > { %1178 = vrcp.f32 %v730_v31  ;;  %v742_v37 = vand.u32 2147483648, %v730_v31  ;;  %vm736_vm4 = vweird.f32 %v730_v31  ;;  %v740_v39 = vand.u32 2147483647, %v730_v31 }
 0x14e   : > { %v836_v59 = vadd.f32 %v835_v55, %v821_v54  ;;  %v795_v10 = vadd.f32 %v780_v62, %v779_v6  ;;  %v875_v26 = vadd.f32 %v860_v17, %v859_v22 }
 0x14f   : > { %v743_v41 = vor.u32 1.1754944e-38, %v742_v37  ;;  %vm741_vm7 = vcmp.eq.f32.partialorder %v740_v39, 8.507059e+37 }
 0x153   : > { %v1308_v28 = vpop.f32.mrf.mxu1  ;;  %v304_v29 = vpop.f32.mrf.mxu0 }
 0x154   : > { %v1179_v34 = vpop.eup %1178  ;;  %v822_v56 = vmul.f32 %v304_v29, %v304_v29  ;;  %v781_v7 = vmul.f32 %v1308_v28, %v302_v27  ;;  %v861_v25 = vmul.f32 %v1308_v28, %v1308_v28 }
 0x155   : > { %v732_v2 = vmul.f32 %v1179_v34, %v730_v31  ;;  %vm737_vm5 = vweird.f32 %v1179_v34 }
 0x156   : > { %vm738_vm6 = vmor %vm736_vm4, %vm737_vm5  ;;  %v837_v63 = vadd.f32 %v836_v59, %v822_v56  ;;  %v796_v14 = vadd.f32 %v795_v10, %v781_v7  ;;  %v876_v39 = vadd.f32 %v875_v26, %v861_v25 }
 0x157   : > { %v733_v3 = vsub.f32 1.0, %v732_v2 }
 0x159   : > { %v734_v38 = vmul.f32 %v1179_v34, %v733_v3 }
 0x15b   : > { %v1313_v32 = vpop.f32.mrf.mxu1  ;;  %v307_v33 = vpop.f32.mrf.mxu0  ;;  %v735_v42 = vadd.f32 %v1179_v34, %v734_v38 }
 0x15c   : > { %v823_v60 = vmul.f32 %v307_v33, %v307_v33  ;;  %v782_v11 = vmul.f32 %v1313_v32, %v304_v29  ;;  %v862_v2 = vmul.f32 %v1313_v32, %v1313_v32 }
 0x15d   : > { %v739_v46 = vsel %vm738_vm6, %v1179_v34, %v735_v42 }
 0x15e   : > { %v744_v47 = vsel %vm741_vm7, %v743_v41, %v739_v46  ;;  %v838_v8 = vadd.f32 %v837_v63, %v823_v60  ;;  %v797_v19 = vadd.f32 %v796_v14, %v782_v11  ;;  %v877_v52 = vadd.f32 %v876_v39, %v862_v2 }
 0x15f   : > { %1118 = vpush %v744_v47 }
 0x163   : > { %v420_v40 = vpop.f32.mrf.mxu1  ;;  %v309_v43 = vpop.f32.mrf.mxu0 }
 0x164   : > { %v824_v0 = vmul.f32 %v309_v43, %v309_v43  ;;  %v783_v15 = vmul.f32 %v420_v40, %v307_v33  ;;  %v863_v41 = vmul.f32 %v420_v40, %v420_v40 }
 0x166   : > { %v839_v12 = vadd.f32 %v838_v8, %v824_v0  ;;  %v798_v29 = vadd.f32 %v797_v19, %v783_v15  ;;  %v878_v59 = vadd.f32 %v877_v52, %v863_v41 }
 0x16b   : > { %v422_v48 = vpop.f32.mrf.mxu1  ;;  %v312_v51 = vpop.f32.mrf.mxu0 }
 0x16c   : > { %v825_v9 = vmul.f32 %v312_v51, %v312_v51  ;;  %v784_v20 = vmul.f32 %v422_v48, %v309_v43  ;;  %v864_v32 = vmul.f32 %v422_v48, %v422_v48 }
 0x16e   : > { %v840_v16 = vadd.f32 %v839_v12, %v825_v9  ;;  %v799_v3 = vadd.f32 %v798_v29, %v784_v20  ;;  %v879_v0 = vadd.f32 %v878_v59, %v864_v32 }
 0x173   : > { %v425_v61 = vpop.f32.mrf.mxu1  ;;  %v314_v1 = vpop.f32.mrf.mxu0 }
 0x174   : > { %v826_v4 = vmul.f32 %v314_v1, %v314_v1  ;;  %v785_v31 = vmul.f32 %v425_v61, %v312_v51  ;;  %v865_v40 = vmul.f32 %v425_v61, %v425_v61 }
 0x176   : > { %v841_v21 = vadd.f32 %v840_v16, %v826_v4  ;;  %v800_v43 = vadd.f32 %v799_v3, %v785_v31  ;;  %v880_v8 = vadd.f32 %v879_v0, %v865_v40 }
 0x17b   : > { %v427_v27 = vpop.f32.mrf.mxu1 }
 0x17c   : > { %v786_v37 = vmul.f32 %v427_v27, %v314_v1  ;;  %v866_v1 = vmul.f32 %v427_v27, %v427_v27 }
 0x17e   : > { %v801_v53 = vadd.f32 %v800_v43, %v786_v37  ;;  %v881_v4 = vadd.f32 %v880_v8, %v866_v1 }
 0x181   : > { %v1311_v30 = vpop.f32.mrf.mxu2 }
 0x182   : > { %v827_v18 = vmul.f32 %v1311_v30, %v1311_v30 }
 0x184   : > { %v842_v33 = vadd.f32 %v841_v21, %v827_v18 }
 0x189   : > { %v1315_v35 = vpop.f32.mrf.mxu2  ;;  %v1317_v36 = vpop.f32.mrf.mxu3 }
 0x18a   : > { %v828_v23 = vmul.f32 %v1315_v35, %v1315_v35  ;;  %v787_v46 = vmul.f32 %v1317_v36, %v1311_v30 }
 0x18c   : > { %v843_v38 = vadd.f32 %v842_v33, %v828_v23  ;;  %v802_v60 = vadd.f32 %v801_v53, %v787_v46 }
 0x190   : > { %s1375_s27 = spop %1118 }
 0x191   : > { %v1319_v44 = vpop.f32.mrf.mxu2  ;;  %v1321_v45 = vpop.f32.mrf.mxu3  ;;  %s746_s6 = smul.f32 %s1375_s27, %s1301_s20 }
 0x192   : > { %v829_v34 = vmul.f32 %v1319_v44, %v1319_v44  ;;  %v788_v54 = vmul.f32 %v1321_v45, %v1315_v35  ;;  %v867_v35 = vmul.f32 %v1317_v36, %v1317_v36  ;;  %v868_v14 = vmul.f32 %v1321_v45, %v1321_v45 }
 0x194   : > { %v844_v47 = vadd.f32 %v843_v38, %v829_v34  ;;  %v803_v6 = vadd.f32 %v802_v60, %v788_v54  ;;  %v882_v18 = vadd.f32 %v881_v4, %v867_v35 }
 0x196   : > { %v883_v20 = vadd.f32 %v882_v18, %v868_v14  ;;  %v932_v18 = vlaneseq }
 0x199   : > { %v1323_v49 = vpop.f32.mrf.mxu2  ;;  %v1325_v50 = vpop.f32.mrf.mxu3 }
 0x19a   : > { %v830_v24 = vmul.f32 %v1323_v49, %v1323_v49  ;;  %v789_v62 = vmul.f32 %v1325_v50, %v1319_v44  ;;  %v869_v17 = vmul.f32 %v1325_v50, %v1325_v50 }
 0x19c   : > { %v845_v55 = vadd.f32 %v844_v47, %v830_v24  ;;  %v804_v61 = vadd.f32 %v803_v6, %v789_v62  ;;  %v884_v22 = vadd.f32 %v883_v20, %v869_v17  ;;  %v933_v17 = vshrl.u32 %v932_v18, 7 }
 0x19e   : > { %vm936_vm14 = vcmp.eq.s32.totalorder %v933_v17, 0 }
 0x1a1   : > { %v1327_v57 = vpop.f32.mrf.mxu2  ;;  %v1329_v58 = vpop.f32.mrf.mxu3 }
 0x1a2   : > { %v831_v51 = vmul.f32 %v1327_v57, %v1327_v57  ;;  %v790_v48 = vmul.f32 %v1329_v58, %v1323_v49 }
 0x1a4   : > { %v846_v63 = vadd.f32 %v845_v55, %v831_v51  ;;  %v805_v15 = vadd.f32 %v804_v61, %v790_v48 }
 0x1a9   : > { %v329_v5 = vpop.f32.mrf.mxu2  ;;  %v1335_v13 = vpop.f32.mrf.mxu3 }
 0x1aa   : > { %v832_v56 = vmul.f32 %v329_v5, %v329_v5  ;;  %v791_v11 = vmul.f32 %v1335_v13, %v1327_v57  ;;  %v870_v57 = vmul.f32 %v1329_v58, %v1329_v58  ;;  %v871_v45 = vmul.f32 %v1335_v13, %v1335_v13 }
 0x1ac   : > { %v847_v7 = vadd.f32 %v846_v63, %v832_v56  ;;  %v806_v36 = vadd.f32 %v805_v15, %v791_v11  ;;  %v885_v27 = vadd.f32 %v884_v22, %v870_v57 }
 0x1ae   : > { %v886_v33 = vadd.f32 %v885_v27, %v871_v45 }
 0x1b1   : > { %v332_v28 = vpop.f32.mrf.mxu2  ;;  %v442_v42 = vpop.f32.mrf.mxu3 }
 0x1b2   : > { %v833_v30 = vmul.f32 %v332_v28, %v332_v28  ;;  %v792_v16 = vmul.f32 %v442_v42, %v329_v5  ;;  %v872_v29 = vmul.f32 %v442_v42, %v442_v42 }
 0x1b4   : > { %v848_v12 = vadd.f32 %v847_v7, %v833_v30  ;;  %v807_v21 = vadd.f32 %v806_v36, %v792_v16  ;;  %v887_v34 = vadd.f32 %v886_v33, %v872_v29  ;;  %v935_v36 = vand.u32 127, %v932_v18 }
 0x1b6   : > { %vm937_vm15 = vcmp.eq.s32.totalorder %v935_v36, 0  ;;  %vm941_vm0 = vcmp.eq.s32.totalorder %v935_v36, 1 }
 0x1b7   : > { %vm938_vm1 = vmand %vm936_vm14, %vm937_vm15 }
 0x1b8   : > { %vm942_vm2 = vmand %vm936_vm14, %vm941_vm0 }
 0x1b9   : > { %v334_v9 = vpop.f32.mrf.mxu2  ;;  %v445_v10 = vpop.f32.mrf.mxu3 }
 0x1ba   : > { %v834_v44 = vmul.f32 %v334_v9, %v334_v9  ;;  %v793_v19 = vmul.f32 %v445_v10, %v332_v28  ;;  %v873_v50 = vmul.f32 %v445_v10, %v445_v10 }
 0x1bc   : > { %v849_v49 = vadd.f32 %v848_v12, %v834_v44  ;;  %v808_v5 = vadd.f32 %v807_v21, %v793_v19  ;;  %v888_v2 = vadd.f32 %v887_v34, %v873_v50  ;;  %v939_v19 = vstv %s746_s6 }
 0x1bd   : > { %v940_v57 = vsel %vm938_vm1, %v939_v19, 0.0 }
 0x1be   : > { %850 = vadd.xlane.f32.xlu1 %v849_v49 }
 0x1c1   : > { %v447_v23 = vpop.f32.mrf.mxu3 }
 0x1c2   : > { %v794_v25 = vmul.f32 %v447_v23, %v334_v9  ;;  %v874_v26 = vmul.f32 %v447_v23, %v447_v23 }
 0x1c4   : > { %v809_v31 = vadd.f32 %v808_v5, %v794_v25  ;;  %v889_v3 = vadd.f32 %v888_v2, %v874_v26 }
 0x1c6   : > { %810 = vadd.xlane.f32.xlu2 %v809_v31 }
 0x1ce   : > { %890 = vadd.xlane.f32.xlu2 %v889_v3 }
 0x231   : > { %v851_v58 = vpop.xlane.xlu1 %850 }
 0x232   : > { %v852_v37 = vrot.slane %v851_v58, 4 }
 0x234   : > { %v853_v38 = vadd.f32 %v852_v37, %v851_v58 }
 0x236   : > { %v854_v24 = vrot.slane %v853_v38, 2 }
 0x238   : > { %v855_v28 = vadd.f32 %v854_v24, %v853_v38 }
 0x239   : > { %v811_v39 = vpop.xlane.xlu2 %810 }
 0x23a   : > { %v812_v41 = vrot.slane %v811_v39, 4  ;;  %v856_v47 = vrot.slane %v855_v28, 1 }
 0x23c   : > { %v813_v13 = vadd.f32 %v812_v41, %v811_v39  ;;  %v857_v54 = vadd.f32 %v856_v47, %v855_v28 }
 0x23e   : > { %v814_v43 = vrot.slane %v813_v13, 2 }
 0x240   : > { %v815_v46 = vadd.f32 %v814_v43, %v813_v13 }
 0x241   : > { %v891_v42 = vpop.xlane.xlu2 %890 }
 0x242   : > { %v892_v51 = vrot.slane %v891_v42, 4  ;;  %v816_v52 = vrot.slane %v815_v46, 1 }
 0x244   : > { %v893_v32 = vadd.f32 %v892_v51, %v891_v42  ;;  %v817_v53 = vadd.f32 %v816_v52, %v815_v46 }
 0x246   : > { %v894_v55 = vrot.slane %v893_v32, 2  ;;  %1120 = vpush %v817_v53 }
 0x247   : > { %1122 = vpush %v857_v54 }
 0x248   : > { %v895_v56 = vadd.f32 %v894_v55, %v893_v32 }
 0x24a   : > { %v896_v59 = vrot.slane %v895_v56, 1 }
 0x24c   : > { %v897_v40 = vadd.f32 %v896_v59, %v895_v56 }
 0x24e   : > { %1124 = vpush %v897_v40 }
 0x277   : > { %s1377_s28 = spop %1120 }
 0x278   : > { %s1123_s29 = spop %1122 }
 0x27f   : > { %s1125_s30 = spop %1124 }
 0x280   : > { %s899_s3 = smul.f32 %s1125_s30, %s1123_s29 }
 0x282   : > { %v900_v60 = vstv %s899_s3 }
 0x283   : > { %1180 = vrsqrt.f32 %v900_v60  ;;  %vm908_vm8 = vcmp.eq.f32.partialorder %v900_v60, inf  ;;  %v911_v7 = vand.u32 2147483648, %v900_v60  ;;  %vm910_vm9 = vcmp.eq.f32.partialorder %v900_v60, 0.0 }
 0x289   : > { %v1181_v62 = vpop.eup %1180 }
 0x28a   : > { %v902_v63 = vmul.f32 %v1181_v62, %v900_v60 }
 0x28c   : > { %v903_v30 = vmul.f32 %v1181_v62, %v902_v63 }
 0x28e   : > { %v904_v0 = vmul.f32 0.5, %v903_v30 }
 0x290   : > { %v905_v1 = vsub.f32 1.5, %v904_v0 }
 0x292   : > { %v906_v6 = vmul.f32 %v1181_v62, %v905_v1 }
 0x294   : > { %v907_v48 = vmul.f32 %v906_v6, %v900_v60 }
 0x296   : > { %v909_v8 = vsel %vm908_vm8, %v900_v60, %v907_v48 }
 0x297   : > { %v912_v35 = vsel %vm910_vm9, %v911_v7, %v909_v8 }
 0x298   : > { %1126 = vpush %v912_v35 }
 0x2c9   : > { %s1127_s4 = spop %1126 }
 0x2ca   : > { %s914_s5 = smax.f32 %s1208_s25, %s1127_s4 }
 0x2cb   : > { %v915_v9 = vstv %s914_s5 }
 0x2cc   : > { %1182 = vrcp.f32 %v915_v9  ;;  %v927_v44 = vand.u32 2147483648, %v915_v9  ;;  %v925_v4 = vand.u32 2147483647, %v915_v9  ;;  %vm921_vm11 = vweird.f32 %v915_v9 }
 0x2ce   : > { %v928_v15 = vor.u32 1.1754944e-38, %v927_v44  ;;  %vm926_vm13 = vcmp.eq.f32.partialorder %v925_v4, 8.507059e+37 }
 0x2d2   : > { %v1183_v10 = vpop.eup %1182 }
 0x2d3   : > { %v917_v61 = vmul.f32 %v1183_v10, %v915_v9  ;;  %vm922_vm10 = vweird.f32 %v1183_v10 }
 0x2d4   : > { %vm923_vm12 = vmor %vm921_vm11, %vm922_vm10 }
 0x2d5   : > { %v918_v11 = vsub.f32 1.0, %v917_v61 }
 0x2d7   : > { %v919_v12 = vmul.f32 %v1183_v10, %v918_v11 }
 0x2d9   : > { %v920_v14 = vadd.f32 %v1183_v10, %v919_v12 }
 0x2db   : > { %v924_v16 = vsel %vm923_vm12, %v1183_v10, %v920_v14 }
 0x2dc   : > { %v929_v49 = vsel %vm926_vm13, %v928_v15, %v924_v16 }
 0x2dd   : > { %1128 = vpush %v929_v49 }
 0x30e   : > { %s1129_s7 = spop %1128 }
 0x30f   : > { %s931_s13 = smul.f32 %s1129_s7, %s1377_s28 }
 0x311   : > { %v943_v20 = vstv %s931_s13 }
 0x312   : > { %v944_v21 = vsel %vm942_vm2, %v943_v20, 0.0 }
 0x313   : > { %v945_v23 = vadd.f32 %v944_v21, %v940_v57 }
 0x315   : > { %946 = vst [vmem:[%s205_s16] sm:$0xff] %v945_v23 }
 0x316 PF: > { %s12_s11 = sadd.s32 1, %s1206_s11   ;;  %s1399_s9 = smov %s1202_s10 }
 0x317   : > { %p9_p5 = scmp.ge.s32.totalorder %s12_s11, 4   ;;  %s1400_s10 = smov %s1402_s12 }
 0x319   :  { %11 = sbr.rel (!%p9_p5) target bundleno = 2 (0x2), region = 73 }

// kernel: extractor_forward.4
= control target key start
LH: loop header
LB: loop body
LE: loop exit
PB: predicated region body
PF: predicated region fallthrough
CT: control target
= control target key end

     0   :  { %s1823_s9 = smov 0   ;;  %s1825_s10 = smov 0   ;;  %s2227_s0 = inlined_call_operand.vmem [shape: bf16[2,256,128], index: 0, kind: input, shape index: {}]   ;;  %s2228_s1 = inlined_call_operand.vmem [shape: bf16[2,256,128], index: 1, kind: input, shape index: {}]   ;;  %s2229_s2 = inlined_call_operand.vmem [shape: f32[2,8,128], index: 2, kind: output, shape index: {}]  }
   0x1   :  { %s1827_s11 = smov 0  }
   0x2 LB: > { %s24_s12 = sadd.s32 1, %s1801_s10  ;;  %p1500_p0 = scmp.ge.s32.totalorder %s1805_s11, 1  ;;  %s1805_s11 = sphi %s1827_s11, %s12_s11   ;;  %s1801_s10 = sphi %s1825_s10, %s2231_s10   ;;  %s1797_s9 = sphi %s1823_s9, %s2230_s9  }
   0x3   : > { %p26_p1 = scmp.ge.s32.totalorder %s24_s12, 2  ;;  %p148_p2 = scmp.lt.s32.totalorder %s1805_s11, 3 }
   0x5   : > { %s2233_s12 = smov (%p26_p1, %s24_s12), 0  ;;  %p149_p3 = pnand %p1500_p0, %p148_p2 }
   0x6   : > { %p183_p4 = scmp.lt.s32.totalorder (!%p149_p3), %s1797_s9, 1  ;;  %s1807_s25 = smov (!%p149_p3), 1e-08  }
   0x7   : > { %152 = sbr.rel (%p149_p3) target bundleno = 796 (0x31c), region = 28 }
   0xc   : > { %s2235_s9 = smov (!%p183_p4, %s1797_s9), 1  ;;  %vm1145_vm0 = vcmask 1040384  }
   0xd   : > { %s1636_s13 = sshll.u32 %s2235_s9, 7  ;;  %s1505_s8 = sshll.u32 %s2235_s9, 3 }
   0xe   : > { %s1847_s16 = scalar_lea.vmem %s2228_s1, %s1636_s13  ;;  %s1852_s19 = scalar_lea.vmem %s2227_s0, %s1636_s13 }
   0xf   : > { %v1855_v0 = vld [vmem:[%s1847_s16] sm:$0xff]  ;;  %v208_v10 = vld [vmem:[%s1852_s19 + $0x8] sm:$0xff]   ;;  %v210_v22 = vld [vmem:[%s1852_s19 + $0x10] sm:$0xff]  }
  0x10   : > { %v1858_v1 = vld [vmem:[%s1847_s16 + $0x40] sm:$0xff]  ;;  %v240_v11 = vld [vmem:[%s1847_s16 + $0x8] sm:$0xff]   ;;  %v724_v12 = vunpack.c.l.bf16 %v208_v10  ;;  %v725_v17 = vunpack.c.h.bf16 %v208_v10  ;;  %v242_v23 = vld [vmem:[%s1847_s16 + $0x10] sm:$0xff]   ;;  %v726_v26 = vunpack.c.l.bf16 %v210_v22  ;;  %v727_v30 = vunpack.c.h.bf16 %v210_v22 }
  0x11   : > { %v1861_v2 = vld [vmem:[%s1852_s19] sm:$0xff]  ;;  %1727 = vxpose.binary.xlu0.c.b16.start [1/16] %v1858_v1, %v1855_v0, 128  ;;  %v1878_v13 = vunpack.c.l.bf16 %v240_v11  ;;  %v1883_v16 = vld [vmem:[%s1847_s16 + $0x8] sm:$0xff]  ;;  %v1885_v18 = vunpack.c.h.bf16 %v240_v11  ;;  %v1899_v27 = vunpack.c.l.bf16 %v242_v23  ;;  %v1902_v31 = vunpack.c.h.bf16 %v242_v23  ;;  %v212_v34 = vld [vmem:[%s1852_s19 + $0x18] sm:$0xff]  }
  0x12   : > { %v1864_v3 = vld [vmem:[%s1852_s19 + $0x40] sm:$0xff]  ;;  %v1889_v21 = vld [vmem:[%s1847_s16 + $0x48] sm:$0xff]  ;;  %v244_v35 = vld [vmem:[%s1847_s16 + $0x18] sm:$0xff]   ;;  %v728_v36 = vunpack.c.l.bf16 %v212_v34  ;;  %v729_v42 = vunpack.c.h.bf16 %v212_v34  ;;  %v857_v48 = vmul.f32 %v724_v12, %v724_v12  ;;  %v858_v54 = vmul.f32 %v725_v17, %v725_v17 }
  0x13   : > { %1751 = vxpose.binary.xlu1.c.b16.start [1/16] %v1864_v3, %v1861_v2, 128  ;;  %v206_v4 = vld [vmem:[%s1852_s19] sm:$0xff]   ;;  %v788_v19 = vmul.f32 %v1878_v13, %v724_v12  ;;  %v1894_v24 = vld [vmem:[%s1852_s19 + $0x8] sm:$0xff]  ;;  %v789_v28 = vmul.f32 %v1885_v18, %v725_v17  ;;  %v790_v32 = vmul.f32 %v1899_v27, %v726_v26  ;;  %v1911_v37 = vunpack.c.l.bf16 %v244_v35  ;;  %v1941_v23 = vld [vmem:[%s1847_s16 + $0x50] sm:$0xff] }
  0x14   : > { %v238_v5 = vld [vmem:[%s1847_s16] sm:$0xff]   ;;  %v722_v6 = vunpack.c.l.bf16 %v206_v4  ;;  %v723_v7 = vunpack.c.h.bf16 %v206_v4  ;;  %v1897_v25 = vld [vmem:[%s1852_s19 + $0x48] sm:$0xff]  ;;  %v791_v38 = vmul.f32 %v1902_v31, %v727_v30  ;;  %v1914_v43 = vunpack.c.h.bf16 %v244_v35 }
  0x15   : > { %v1872_v8 = vunpack.c.l.bf16 %v238_v5  ;;  %v1874_v9 = vunpack.c.h.bf16 %v238_v5  ;;  %v792_v44 = vmul.f32 %v1911_v37, %v728_v36  ;;  %v214_v46 = vld [vmem:[%s1852_s19 + $0x20] sm:$0xff]   ;;  %v216_v60 = vld [vmem:[%s1852_s19 + $0x28] sm:$0xff]   ;;  %v859_v62 = vmul.f32 %v726_v26, %v726_v26  ;;  %v218_v26 = vld [vmem:[%s1852_s19 + $0x30] sm:$0xff]  }
  0x16   : > { %v855_v40 = vmul.f32 %v722_v6, %v722_v6  ;;  %v856_v41 = vmul.f32 %v723_v7, %v723_v7  ;;  %v246_v47 = vld [vmem:[%s1847_s16 + $0x20] sm:$0xff]   ;;  %v730_v50 = vunpack.c.l.bf16 %v214_v46  ;;  %v793_v52 = vmul.f32 %v1914_v43, %v729_v42  ;;  %v248_v61 = vld [vmem:[%s1847_s16 + $0x28] sm:$0xff]  }
  0x17   : > { %v786_v14 = vmul.f32 %v1872_v8, %v722_v6  ;;  %v787_v15 = vmul.f32 %v1874_v9, %v723_v7  ;;  %v1919_v51 = vunpack.c.l.bf16 %v246_v47  ;;  %v731_v56 = vunpack.c.h.bf16 %v214_v46 }
  0x18   : > { %v887_v49 = vadd.f32 %v856_v41, %v855_v40  ;;  %v1922_v57 = vunpack.c.h.bf16 %v246_v47  ;;  %v732_v4 = vunpack.c.l.bf16 %v216_v60  ;;  %v1927_v5 = vunpack.c.l.bf16 %v248_v61 }
  0x19   : > { %v818_v20 = vadd.f32 %v787_v15, %v786_v14  ;;  %v794_v58 = vmul.f32 %v1919_v51, %v730_v50  ;;  %v860_v10 = vmul.f32 %v727_v30, %v727_v30  ;;  %v924_v12 = vmul.f32 %v1872_v8, %v1872_v8  ;;  %v1935_v15 = vld [vmem:[%s1847_s16 + $0x10] sm:$0xff] }
  0x1a   : > { %v888_v55 = vadd.f32 %v887_v49, %v857_v48  ;;  %v795_v6 = vmul.f32 %v1922_v57, %v731_v56  ;;  %v925_v14 = vmul.f32 %v1874_v9, %v1874_v9  ;;  %v733_v17 = vunpack.c.h.bf16 %v216_v60  ;;  %v1948_v9 = vld [vmem:[%s1852_s19 + $0x10] sm:$0xff]  ;;  %v220_v48 = vld [vmem:[%s1852_s19 + $0x38] sm:$0xff]  }
  0x1b   : > { %v819_v29 = vadd.f32 %v818_v20, %v788_v19  ;;  %v1937_v19 = vunpack.c.h.bf16 %v248_v61  ;;  %v796_v20 = vmul.f32 %v1927_v5, %v732_v4  ;;  %v926_v8 = vmul.f32 %v1878_v13, %v1878_v13  ;;  %v252_v49 = vld [vmem:[%s1847_s16 + $0x38] sm:$0xff]  }
  0x1c   : > { %v889_v63 = vadd.f32 %v888_v55, %v858_v54  ;;  %v734_v34 = vunpack.c.l.bf16 %v218_v26  ;;  %v862_v40 = vmul.f32 %v729_v42, %v729_v42  ;;  %v735_v13 = vunpack.c.h.bf16 %v218_v26 }
  0x1d   : > { %v820_v33 = vadd.f32 %v819_v29, %v789_v28  ;;  %v250_v28 = vld [vmem:[%s1847_s16 + $0x30] sm:$0xff]   ;;  %v861_v29 = vmul.f32 %v728_v36, %v728_v36  ;;  %v927_v36 = vmul.f32 %v1885_v18, %v1885_v18  ;;  %v928_v42 = vmul.f32 %v1899_v27, %v1899_v27 }
  0x1e   : > { %v890_v11 = vadd.f32 %v889_v63, %v859_v62  ;;  %v1953_v35 = vunpack.c.l.bf16 %v250_v28  ;;  %v736_v18 = vunpack.c.l.bf16 %v220_v48  ;;  %v1969_v54 = vunpack.c.l.bf16 %v252_v49 }
  0x1f   : > { %v821_v39 = vadd.f32 %v820_v33, %v790_v32  ;;  %v956_v32 = vadd.f32 %v925_v14, %v924_v12  ;;  %v1951_v33 = vld [vmem:[%s1852_s19 + $0x50] sm:$0xff]  ;;  %v737_v62 = vunpack.c.h.bf16 %v220_v48  ;;  %v1974_v63 = vunpack.c.h.bf16 %v252_v49 }
  0x20   : > { %v891_v30 = vadd.f32 %v890_v11, %v860_v10  ;;  %v798_v46 = vmul.f32 %v1953_v35, %v734_v34  ;;  %v800_v27 = vmul.f32 %v1969_v54, %v736_v18  ;;  %v254_v10 = vld [vmem:[%s1847_s16 + $0x40] sm:$0xff]   ;;  %v865_v11 = vmul.f32 %v732_v4, %v732_v4 }
  0x21   : > { %1728 = vxpose.binary.xlu0.c.b16.cont [2/16] %v1889_v21, %v1883_v16, 128  ;;  %v822_v45 = vadd.f32 %v821_v39, %v791_v38  ;;  %v797_v38 = vmul.f32 %v1937_v19, %v733_v17  ;;  %v868_v49 = vmul.f32 %v735_v13, %v735_v13 }
  0x22   : > { %v892_v41 = vadd.f32 %v891_v30, %v861_v29  ;;  %v931_v30 = vmul.f32 %v1914_v43, %v1914_v43 }
  0x23   : > { %1752 = vxpose.binary.xlu1.c.b16.cont [2/16] %v1897_v25, %v1894_v24, 128  ;;  %v823_v53 = vadd.f32 %v822_v45, %v792_v44  ;;  %v957_v44 = vadd.f32 %v956_v32, %v926_v8  ;;  %v1958_v45 = vunpack.c.h.bf16 %v250_v28  ;;  %v866_v28 = vmul.f32 %v733_v17, %v733_v17 }
  0x24   : > { %v1986_v32 = vunpack.c.h.bf16 %v254_v10  ;;  %v932_v17 = vmul.f32 %v1919_v51, %v1919_v51 }
  0x25   : > { %v824_v59 = vadd.f32 %v823_v53, %v793_v52  ;;  %v863_v52 = vmul.f32 %v730_v50, %v730_v50  ;;  %v893_v53 = vadd.f32 %v892_v41, %v862_v40  ;;  %v799_v55 = vmul.f32 %v1958_v45, %v735_v13  ;;  %v256_v40 = vld [vmem:[%s1847_s16 + $0x48] sm:$0xff]  }
  0x26   : > { %v929_v50 = vmul.f32 %v1902_v31, %v1902_v31  ;;  %v958_v61 = vadd.f32 %v957_v44, %v927_v36  ;;  %v801_v31 = vmul.f32 %v1974_v63, %v737_v62  ;;  %v867_v41 = vmul.f32 %v734_v34, %v734_v34 }
  0x27   : > { %v825_v7 = vadd.f32 %v824_v59, %v794_v58  ;;  %v864_v59 = vmul.f32 %v731_v56, %v731_v56  ;;  %v894_v60 = vadd.f32 %v893_v53, %v863_v52  ;;  %v930_v56 = vmul.f32 %v1911_v37, %v1911_v37 }
  0x28   : > { %v959_v14 = vadd.f32 %v958_v61, %v928_v42  ;;  %v933_v34 = vmul.f32 %v1922_v57, %v1922_v57  ;;  %v1999_v42 = vld [vmem:[%s1847_s16 + $0x18] sm:$0xff]  ;;  %v258_v61 = vld [vmem:[%s1847_s16 + $0x50] sm:$0xff]  }
  0x29   : > { %v826_v22 = vadd.f32 %v825_v7, %v795_v6  ;;  %v222_v7 = vld [vmem:[%s1852_s19 + $0x40] sm:$0xff]   ;;  %v895_v12 = vadd.f32 %v894_v60, %v864_v59  ;;  %v2005_v60 = vld [vmem:[%s1847_s16 + $0x58] sm:$0xff] }
  0x2a   : > { %v960_v8 = vadd.f32 %v959_v14, %v929_v50  ;;  %v739_v4 = vunpack.c.h.bf16 %v222_v7  ;;  %v226_v50 = vld [vmem:[%s1852_s19 + $0x50] sm:$0xff]   ;;  %v2013_v57 = vld [vmem:[%s1852_s19 + $0x58] sm:$0xff]  ;;  %v870_v14 = vmul.f32 %v737_v62, %v737_v62  ;;  %v935_v62 = vmul.f32 %v1937_v19, %v1937_v19 }
  0x2b   : > { %v827_v39 = vadd.f32 %v826_v22, %v796_v20  ;;  %v738_v20 = vunpack.c.l.bf16 %v222_v7  ;;  %v1981_v22 = vunpack.c.l.bf16 %v254_v10  ;;  %v896_v29 = vadd.f32 %v895_v12, %v865_v11  ;;  %v2010_v7 = vld [vmem:[%s1852_s19 + $0x18] sm:$0xff] }
  0x2c   : > { %v961_v44 = vadd.f32 %v960_v8, %v930_v56  ;;  %v742_v10 = vunpack.c.l.bf16 %v226_v50  ;;  %v2015_v11 = vunpack.c.l.bf16 %v258_v61 }
  0x2d   : > { %v828_v47 = vadd.f32 %v827_v39, %v797_v38  ;;  %v802_v38 = vmul.f32 %v1981_v22, %v738_v20  ;;  %v224_v39 = vld [vmem:[%s1852_s19 + $0x48] sm:$0xff]   ;;  %v897_v36 = vadd.f32 %v896_v29, %v866_v28  ;;  %v743_v28 = vunpack.c.h.bf16 %v226_v50 }
  0x2e   : > { %v740_v43 = vunpack.c.l.bf16 %v224_v39  ;;  %v962_v53 = vadd.f32 %v961_v44, %v931_v30  ;;  %v741_v51 = vunpack.c.h.bf16 %v224_v39  ;;  %v2020_v29 = vunpack.c.h.bf16 %v258_v61 }
  0x2f   : > { %v829_v58 = vadd.f32 %v828_v47, %v798_v46  ;;  %v1993_v46 = vunpack.c.l.bf16 %v256_v40  ;;  %v803_v47 = vmul.f32 %v1986_v32, %v739_v4  ;;  %v898_v52 = vadd.f32 %v897_v36, %v867_v41 }
  0x30   : > { %v806_v30 = vmul.f32 %v2015_v11, %v742_v10  ;;  %v871_v39 = vmul.f32 %v738_v20, %v738_v20  ;;  %v807_v36 = vmul.f32 %v2020_v29, %v743_v28  ;;  %v872_v44 = vmul.f32 %v739_v4, %v739_v4 }
  0x31   : > { %1729 = vxpose.binary.xlu0.c.b16.cont [3/16] %v1941_v23, %v1935_v15, 128  ;;  %v830_v6 = vadd.f32 %v829_v58, %v799_v55  ;;  %v2001_v55 = vunpack.c.h.bf16 %v256_v40  ;;  %v804_v58 = vmul.f32 %v1993_v46, %v740_v43  ;;  %v899_v13 = vadd.f32 %v898_v52, %v868_v49 }
  0x32   : > { %v936_v20 = vmul.f32 %v1953_v35, %v1953_v35  ;;  %v937_v4 = vmul.f32 %v1958_v45, %v1958_v45 }
  0x33   : > { %1753 = vxpose.binary.xlu1.c.b16.cont [3/16] %v1951_v33, %v1948_v9, 128  ;;  %v831_v26 = vadd.f32 %v830_v6, %v800_v27  ;;  %v869_v27 = vmul.f32 %v736_v18, %v736_v18  ;;  %v963_v6 = vadd.f32 %v962_v53, %v932_v17  ;;  %v230_v53 = vld [vmem:[%s1852_s19 + $0x60] sm:$0xff]  }
  0x34   : > { %v805_v12 = vmul.f32 %v2001_v55, %v741_v51 }
  0x35   : > { %v832_v37 = vadd.f32 %v831_v26, %v801_v31  ;;  %v900_v31 = vadd.f32 %v899_v13, %v869_v27  ;;  %v934_v26 = vmul.f32 %v1927_v5, %v1927_v5  ;;  %v964_v18 = vadd.f32 %v963_v6, %v933_v34 }
  0x36   : > { %v746_v27 = vunpack.c.l.bf16 %v230_v53 }
  0x37   : > { %v833_v48 = vadd.f32 %v832_v37, %v802_v38  ;;  %v228_v38 = vld [vmem:[%s1852_s19 + $0x58] sm:$0xff]   ;;  %v901_v40 = vadd.f32 %v900_v31, %v870_v14  ;;  %v938_v14 = vmul.f32 %v1969_v54, %v1969_v54 }
  0x38   : > { %v260_v37 = vld [vmem:[%s1847_s16 + $0x58] sm:$0xff]   ;;  %v744_v5 = vunpack.c.l.bf16 %v228_v38  ;;  %v745_v49 = vunpack.c.h.bf16 %v228_v38  ;;  %v875_v38 = vmul.f32 %v742_v10, %v742_v10  ;;  %v940_v10 = vmul.f32 %v1981_v22, %v1981_v22  ;;  %v2075_v22 = vld [vmem:[%s1852_s19 + $0x60] sm:$0xff] }
  0x39   : > { %v834_v59 = vadd.f32 %v833_v48, %v803_v47  ;;  %v2031_v41 = vunpack.c.l.bf16 %v260_v37  ;;  %v902_v47 = vadd.f32 %v901_v40, %v871_v39  ;;  %v965_v48 = vadd.f32 %v964_v18, %v934_v26 }
  0x3a   : > { %v2036_v52 = vunpack.c.h.bf16 %v260_v37 }
  0x3b   : > { %v835_v56 = vadd.f32 %v834_v59, %v804_v58  ;;  %v808_v19 = vmul.f32 %v2031_v41, %v744_v5  ;;  %v262_v58 = vld [vmem:[%s1847_s16 + $0x60] sm:$0xff]   ;;  %v873_v59 = vmul.f32 %v740_v43, %v740_v43  ;;  %v903_v50 = vadd.f32 %v902_v47, %v872_v44 }
  0x3c   : > { %v966_v61 = vadd.f32 %v965_v48, %v935_v62  ;;  %v2043_v13 = vunpack.c.l.bf16 %v262_v58  ;;  %v809_v35 = vmul.f32 %v2036_v52, %v745_v49  ;;  %v747_v43 = vunpack.c.h.bf16 %v230_v53  ;;  %v2067_v53 = vld [vmem:[%s1847_s16 + $0x60] sm:$0xff] }
  0x3d   : > { %v836_v8 = vadd.f32 %v835_v56, %v805_v12  ;;  %v874_v12 = vmul.f32 %v741_v51, %v741_v51  ;;  %v904_v56 = vadd.f32 %v903_v50, %v873_v59  ;;  %v2048_v26 = vunpack.c.h.bf16 %v262_v58  ;;  %v234_v58 = vld [vmem:[%s1852_s19 + $0x70] sm:$0xff]  }
  0x3e   : > { %v967_v31 = vadd.f32 %v966_v61, %v936_v20  ;;  %v810_v18 = vmul.f32 %v2043_v13, %v746_v27  ;;  %v939_v51 = vmul.f32 %v1974_v63, %v1974_v63  ;;  %v2061_v20 = vld [vmem:[%s1847_s16 + $0x20] sm:$0xff]  ;;  %v266_v59 = vld [vmem:[%s1847_s16 + $0x70] sm:$0xff]   ;;  %v877_v50 = vmul.f32 %v744_v5, %v744_v5 }
  0x3f   : > { %v837_v17 = vadd.f32 %v836_v8, %v806_v30  ;;  %v232_v30 = vld [vmem:[%s1852_s19 + $0x68] sm:$0xff]   ;;  %v905_v37 = vadd.f32 %v904_v56, %v874_v12  ;;  %v811_v62 = vmul.f32 %v2048_v26, %v747_v43  ;;  %v2072_v61 = vld [vmem:[%s1852_s19 + $0x20] sm:$0xff]  ;;  %v941_v5 = vmul.f32 %v1986_v32, %v1986_v32  ;;  %v2094_v32 = vld [vmem:[%s1847_s16 + $0x38] sm:$0xff] }
  0x40   : > { %v264_v8 = vld [vmem:[%s1847_s16 + $0x68] sm:$0xff]   ;;  %v968_v39 = vadd.f32 %v967_v31, %v937_v4  ;;  %v748_v54 = vunpack.c.l.bf16 %v232_v30  ;;  %v749_v63 = vunpack.c.h.bf16 %v232_v30  ;;  %v2082_v30 = vunpack.c.h.bf16 %v266_v59  ;;  %624 = vmatpush.bf16.msra.mxu2 %v2094_v32 }
  0x41   : > { %1730 = vxpose.binary.xlu0.c.b16.cont [4/16] %v2005_v60, %v1999_v42, 128  ;;  %v838_v34 = vadd.f32 %v837_v17, %v807_v36  ;;  %v2055_v40 = vunpack.c.l.bf16 %v264_v8  ;;  %v876_v17 = vmul.f32 %v743_v28, %v743_v28  ;;  %v906_v44 = vadd.f32 %v905_v37, %v875_v38  ;;  %v236_v37 = vld [vmem:[%s1852_s19 + $0x78] sm:$0xff]  }
  0x42   : > { %v969_v47 = vadd.f32 %v968_v39, %v938_v14  ;;  %v2063_v48 = vunpack.c.h.bf16 %v264_v8  ;;  %v878_v14 = vmul.f32 %v745_v49, %v745_v49  ;;  %v879_v39 = vmul.f32 %v746_v27, %v746_v27 }
  0x43   : > { %1754 = vxpose.binary.xlu1.c.b16.cont [4/16] %v2013_v57, %v2010_v7, 128  ;;  %v839_v6 = vadd.f32 %v838_v34, %v808_v19  ;;  %v812_v19 = vmul.f32 %v2055_v40, %v748_v54  ;;  %v907_v28 = vadd.f32 %v906_v44, %v876_v17  ;;  %v752_v17 = vunpack.c.l.bf16 %v236_v37 }
  0x44   : > { %v970_v4 = vadd.f32 %v969_v47, %v939_v51  ;;  %v813_v12 = vmul.f32 %v2063_v48, %v749_v63  ;;  %v268_v51 = vld [vmem:[%s1847_s16 + $0x78] sm:$0xff]   ;;  %v942_v49 = vmul.f32 %v1993_v46, %v1993_v46  ;;  %v880_v27 = vmul.f32 %v747_v43, %v747_v43 }
  0x45   : > { %v840_v45 = vadd.f32 %v839_v6, %v809_v35  ;;  %v750_v35 = vunpack.c.l.bf16 %v234_v58  ;;  %v2077_v6 = vunpack.c.l.bf16 %v266_v59  ;;  %v908_v31 = vadd.f32 %v907_v28, %v877_v50 }
  0x46   : > { %v2099_v44 = vunpack.c.l.bf16 %v268_v51  ;;  %v943_v46 = vmul.f32 %v2001_v55, %v2001_v55  ;;  %v2104_v59 = vunpack.c.h.bf16 %v268_v51  ;;  %v944_v43 = vmul.f32 %v2015_v11, %v2015_v11  ;;  %v2115_v55 = vld [vmem:[%s1847_s16 + $0x70] sm:$0xff] }
  0x47   : > { %v841_v36 = vadd.f32 %v840_v45, %v810_v18  ;;  %v971_v18 = vadd.f32 %v970_v4, %v940_v10  ;;  %v751_v45 = vunpack.c.h.bf16 %v234_v58  ;;  %v814_v8 = vmul.f32 %v2077_v6, %v750_v35 }
  0x48   : > { %v753_v58 = vunpack.c.h.bf16 %v236_v37  ;;  %v816_v50 = vmul.f32 %v2099_v44, %v752_v17  ;;  %v881_v4 = vmul.f32 %v748_v54, %v748_v54  ;;  %v883_v51 = vmul.f32 %v750_v35, %v750_v35 }
  0x49   : > { %v842_v34 = vadd.f32 %v841_v36, %v811_v62  ;;  %v909_v62 = vadd.f32 %v908_v31, %v878_v14  ;;  %v2097_v36 = vld [vmem:[%s1847_s16 + $0x78] sm:$0xff]  ;;  %v815_v10 = vmul.f32 %v2082_v30, %v751_v45  ;;  %v2112_v14 = vld [vmem:[%s1847_s16 + $0x30] sm:$0xff] }
  0x4a   : > { %673 = vmatpush.bf16.msra.mxu3 %v2097_v36  ;;  %v817_v31 = vmul.f32 %v2104_v59, %v753_v58  ;;  %625 = vmatpush.bf16.msra.mxu2 %v2112_v14 }
  0x4b   : > { %v843_v56 = vadd.f32 %v842_v34, %v812_v19  ;;  %v910_v19 = vadd.f32 %v909_v62, %v879_v39  ;;  %v972_v34 = vadd.f32 %v971_v18, %v941_v5  ;;  %v882_v18 = vmul.f32 %v749_v63, %v749_v63  ;;  %v1667_v63 = vld [vmem:[%s1847_s16 + $0x68] sm:$0xff] }
  0x4c   : > { %v946_v39 = vmul.f32 %v2031_v41, %v2031_v41  ;;  %v948_v41 = vmul.f32 %v2043_v13, %v2043_v13  ;;  %v2140_v13 = vld [vmem:[%s1852_s19 + $0x78] sm:$0xff] }
  0x4d   : > { %v844_v38 = vadd.f32 %v843_v56, %v813_v12  ;;  %v911_v12 = vadd.f32 %v910_v19, %v880_v27  ;;  %v973_v56 = vadd.f32 %v972_v34, %v942_v49  ;;  %v1659_v49 = vld [vmem:[%s1847_s16 + $0x28] sm:$0xff]  ;;  %447 = vmatpush.bf16.msra.mxu1 %v2140_v13  ;;  %s205_s16 = scalar_lea.vmem %s2229_s2, %s1505_s8 }
  0x4e   : > { %674 = vmatpush.bf16.msra.mxu3 %v2115_v55  ;;  %626 = vmatpush.bf16.msra.mxu2 %v1659_v49 }
  0x4f   : > { %v845_v47 = vadd.f32 %v844_v38, %v814_v8  ;;  %v912_v8 = vadd.f32 %v911_v12, %v881_v4  ;;  %v945_v38 = vmul.f32 %v2020_v29, %v2020_v29  ;;  %v974_v54 = vadd.f32 %v973_v56, %v943_v46  ;;  %v1651_v4 = vld [vmem:[%s1852_s19 + $0x68] sm:$0xff] }
  0x50   : > { %v947_v29 = vmul.f32 %v2036_v52, %v2036_v52  ;;  %v885_v46 = vmul.f32 %v752_v17, %v752_v17  ;;  %v949_v52 = vmul.f32 %v2048_v26, %v2048_v26  ;;  %v2137_v17 = vld [vmem:[%s1852_s19 + $0x38] sm:$0xff] }
  0x51   : > { %1731 = vxpose.binary.xlu0.c.b16.cont [5/16] %v2067_v53, %v2061_v20, 128  ;;  %v846_v28 = vadd.f32 %v845_v47, %v815_v10  ;;  %v913_v11 = vadd.f32 %v912_v8, %v882_v18  ;;  %v975_v62 = vadd.f32 %v974_v54, %v944_v43  ;;  %v1644_v54 = vld [vmem:[%s1852_s19 + $0x30] sm:$0xff] }
  0x52   : > { %v884_v47 = vmul.f32 %v751_v45, %v751_v45  ;;  %675 = vmatpush.bf16.msra.mxu3 %v1667_v63  ;;  %v886_v45 = vmul.f32 %v753_v58, %v753_v58  ;;  %627 = vmatpush.bf16.msra.mxu2 %v2061_v20  ;;  %v950_v58 = vmul.f32 %v2055_v40, %v2055_v40 }
  0x53   : > { %1755 = vxpose.binary.xlu1.c.b16.cont [5/16] %v2075_v22, %v2072_v61, 128  ;;  %v847_v5 = vadd.f32 %v846_v28, %v816_v50  ;;  %v914_v27 = vadd.f32 %v913_v11, %v883_v51  ;;  %v976_v35 = vadd.f32 %v975_v62, %v945_v38  ;;  %v1643_v28 = vld [vmem:[%s1852_s19 + $0x28] sm:$0xff] }
  0x54   : > { %v951_v20 = vmul.f32 %v2063_v48, %v2063_v48  ;;  %398 = vmatpush.bf16.msra.mxu0 %v2137_v17  ;;  %v952_v51 = vmul.f32 %v2077_v6, %v2077_v6  ;;  %v953_v48 = vmul.f32 %v2082_v30, %v2082_v30 }
  0x55   : > { %v848_v37 = vadd.f32 %v847_v5, %v817_v31  ;;  %v915_v34 = vadd.f32 %v914_v27, %v884_v47  ;;  %v977_v50 = vadd.f32 %v976_v35, %v946_v39 }
  0x56   : > { %676 = vmatpush.bf16.msra.mxu3 %v2067_v53  ;;  %628 = vmatpush.bf16.msra.mxu2 %v1999_v42 }
  0x57   : > { %v849_v10 = vrot.slane %v848_v37, 4  ;;  %v916_v43 = vadd.f32 %v915_v34, %v885_v46  ;;  %v978_v56 = vadd.f32 %v977_v50, %v947_v29 }
  0x58   : > { %399 = vmatpush.bf16.msra.mxu0 %v1644_v54 }
  0x59   : > { %v850_v19 = vadd.f32 %v849_v10, %v848_v37  ;;  %v917_v5 = vadd.f32 %v916_v43, %v886_v45  ;;  %v979_v18 = vadd.f32 %v978_v56, %v948_v41  ;;  %v1652_v37 = vld [vmem:[%s1852_s19 + $0x70] sm:$0xff] }
  0x5a   : > { %677 = vmatpush.bf16.msra.mxu3 %v2005_v60  ;;  %448 = vmatpush.bf16.msra.mxu1 %v1652_v37  ;;  %v954_v60 = vmul.f32 %v2099_v44, %v2099_v44 }
  0x5b   : > { %v851_v12 = vrot.slane %v850_v19, 2  ;;  %v918_v8 = vrot.slane %v917_v5, 4  ;;  %v980_v38 = vadd.f32 %v979_v18, %v949_v52  ;;  %629 = vmatpush.bf16.msra.mxu2 %v1935_v15 }
  0x5c   : > { %400 = vmatpush.bf16.msra.mxu0 %v1643_v28 }
  0x5d   : > { %v852_v31 = vadd.f32 %v851_v12, %v850_v19  ;;  %v919_v40 = vadd.f32 %v918_v8, %v917_v5  ;;  %v981_v11 = vadd.f32 %v980_v38, %v950_v58 }
  0x5e   : > { %678 = vmatpush.bf16.msra.mxu3 %v1941_v23  ;;  %449 = vmatpush.bf16.msra.mxu1 %v1651_v4 }
  0x5f   : > { %v853_v26 = vrot.slane %v852_v31, 1  ;;  %v920_v39 = vrot.slane %v919_v40, 2  ;;  %v982_v62 = vadd.f32 %v981_v11, %v951_v20  ;;  %630 = vmatpush.bf16.msra.mxu2 %v1883_v16 }
  0x60   : > { %401 = vmatpush.bf16.msra.mxu0 %v2072_v61 }
  0x61   : > { %1732 = vxpose.binary.xlu0.c.b16.cont [6/16] %v1667_v63, %v1659_v49, 128  ;;  %v854_v53 = vadd.f32 %v853_v26, %v852_v31  ;;  %v921_v42 = vadd.f32 %v920_v39, %v919_v40  ;;  %v983_v49 = vadd.f32 %v982_v62, %v952_v51 }
  0x62   : > { %v955_v63 = vmul.f32 %v2104_v59, %v2104_v59  ;;  %679 = vmatpush.bf16.msra.mxu3 %v1889_v21  ;;  %450 = vmatpush.bf16.msra.mxu1 %v2075_v22 }
  0x63   : > { %1756 = vxpose.binary.xlu1.c.b16.cont [6/16] %v1651_v4, %v1643_v28, 128  ;;  %1029 = vst [vmem:[#allocation4] sm:$0x1] %v854_v53  ;;  %v922_v6 = vrot.slane %v921_v42, 1  ;;  %v984_v10 = vadd.f32 %v983_v49, %v953_v48 }
  0x64   : > { %631 = vmatpush.bf16.msra.mxu2 %v1855_v0  ;;  %402 = vmatpush.bf16.msra.mxu0 %v2010_v7 }
  0x65   : > { %v923_v30 = vadd.f32 %v922_v6, %v921_v42  ;;  %v985_v23 = vadd.f32 %v984_v10, %v954_v60 }
  0x66   : > { %680 = vmatpush.bf16.msra.mxu3 %v1858_v1  ;;  %451 = vmatpush.bf16.msra.mxu1 %v2013_v57 }
  0x67   : > { %1030 = vst [vmem:[#allocation4 + $0x1] sm:$0x1] %v923_v30  ;;  %v986_v44 = vadd.f32 %v985_v23, %v955_v63 }
  0x68   : > { %403 = vmatpush.bf16.msra.mxu0 %v1948_v9 }
  0x69   : > { %v987_v16 = vrot.slane %v986_v44, 4 }
  0x6a   : > { %v1144_v15 = vld [vmem:[#allocation4] sm:$0x1]  ;;  %452 = vmatpush.bf16.msra.mxu1 %v1951_v33 }
  0x6b   : > { %v1146_v47 = vsel %vm1145_vm0, %v1144_v15, 0.0  ;;  %v988_v21 = vadd.f32 %v987_v16, %v986_v44 }
  0x6c   : > { %1147 = vadd.xlane.f32.xlu2 %v1146_v47  ;;  %404 = vmatpush.bf16.msra.mxu0 %v1894_v24 }
  0x6d   : > { %v989_v59 = vrot.slane %v988_v21, 2 }
  0x6e   : > { %v1156_v27 = vld [vmem:[#allocation4 + $0x1] sm:$0x1]  ;;  %453 = vmatpush.bf16.msra.mxu1 %v1897_v25 }
  0x6f   : > { %v1157_v61 = vsel %vm1145_vm0, %v1156_v27, 0.0  ;;  %v990_v29 = vadd.f32 %v989_v59, %v988_v21 }
  0x70   : > { %405 = vmatpush.bf16.msra.mxu0 %v1861_v2 }
  0x71   : > { %1733 = vxpose.binary.xlu0.c.b16.cont [7/16] %v2115_v55, %v2112_v14, 128  ;;  %v991_v0 = vrot.slane %v990_v29, 1 }
  0x72   : > { %454 = vmatpush.bf16.msra.mxu1 %v1864_v3 }
  0x73   : > { %1757 = vxpose.binary.xlu1.c.b16.cont [7/16] %v1652_v37, %v1644_v54, 128  ;;  %v992_v22 = vadd.f32 %v991_v0, %v990_v29 }
  0x74   : > { %1158 = vadd.xlane.f32.xlu2 %v1157_v61 }
  0x75   : > { %1031 = vst [vmem:[#allocation4 + $0x2] sm:$0x1] %v992_v22 }
  0x7c   : > { %v1167_v1 = vld [vmem:[#allocation4 + $0x2] sm:$0x1] }
  0x7d   : > { %v1168_v9 = vsel %vm1145_vm0, %v1167_v1, 0.0 }
  0x7e   : > { %1169 = vadd.xlane.f32.xlu2 %v1168_v9 }
  0x81   : > { %1734 = vxpose.binary.xlu0.c.b16.end [8/16] %v2097_v36, %v2094_v32, 128 }
  0x83   : > { %1758 = vxpose.binary.xlu1.c.b16.end [8/16] %v2140_v13, %v2137_v17, 128 }
  0xbd   : > { %v1735_v33 = vpop.trf.xlu0 }
  0xbe   : > { %632 = vmatmul.bf16.vlgmr.msra.gmra.mxu2 %v1735_v33 }
  0xbf   : > { %v1759_v7 = vpop.trf.xlu1 }
  0xc0   : > { %406 = vmatmul.bf16.vlgmr.msra.gmra.mxu0 %v1759_v7 }
  0xc5   : > { %v1736_v24 = vpop.trf.xlu0 }
  0xc6   : > { %681 = vmatmul.bf16.vlgmr.msra.gmra.mxu3 %v1736_v24 }
  0xc7   : > { %v1760_v25 = vpop.trf.xlu1 }
  0xc8   : > { %455 = vmatmul.bf16.vlgmr.msra.gmra.mxu1 %v1760_v25 }
  0xcd   : > { %v1737_v2 = vpop.trf.xlu0 }
  0xce   : > { %637 = vmatmul.bf16.gmra.mxu2 %v1737_v2 }
  0xcf   : > { %v1761_v3 = vpop.trf.xlu1 }
  0xd0   : > { %411 = vmatmul.bf16.gmra.mxu0 %v1761_v3 }
  0xd5   : > { %v1738_v57 = vpop.trf.xlu0 }
  0xd6   : > { %686 = vmatmul.bf16.gmra.mxu3 %v1738_v57 }
  0xd7   : > { %v1762_v32 = vpop.trf.xlu1 }
  0xd8   : > { %460 = vmatmul.bf16.gmra.mxu1 %v1762_v32 }
  0xdd   : > { %v1739_v36 = vpop.trf.xlu0 }
  0xde   : > { %642 = vmatmul.bf16.gmra.mxu2 %v1739_v36 }
  0xdf   : > { %v1763_v14 = vpop.trf.xlu1  ;;  %v1148_v55 = vpop.xlane.xlu2 %1147 }
  0xe0   : > { %416 = vmatmul.bf16.gmra.mxu0 %v1763_v14  ;;  %v1149_v41 = vrot.slane %v1148_v55, 4 }
  0xe2   : > { %v1150_v4 = vadd.f32 %v1149_v41, %v1148_v55 }
  0xe4   : > { %v1151_v43 = vrot.slane %v1150_v4, 2 }
  0xe5   : > { %v1740_v35 = vpop.trf.xlu0 }
  0xe6   : > { %691 = vmatmul.bf16.gmra.mxu3 %v1740_v35  ;;  %v1152_v17 = vadd.f32 %v1151_v43, %v1150_v4 }
  0xe7   : > { %v1764_v19 = vpop.trf.xlu1  ;;  %v1159_v46 = vpop.xlane.xlu2 %1158 }
  0xe8   : > { %465 = vmatmul.bf16.gmra.mxu1 %v1764_v19  ;;  %v1160_v50 = vrot.slane %v1159_v46, 4  ;;  %v1153_v58 = vrot.slane %v1152_v17, 1 }
  0xea   : > { %v1161_v12 = vadd.f32 %v1160_v50, %v1159_v46  ;;  %v1154_v20 = vadd.f32 %v1153_v58, %v1152_v17 }
  0xec   : > { %v1162_v52 = vrot.slane %v1161_v12, 2  ;;  %1682 = vpush %v1154_v20 }
  0xed   : > { %v1741_v34 = vpop.trf.xlu0 }
  0xee   : > { %647 = vmatmul.bf16.gmra.mxu2 %v1741_v34  ;;  %v1163_v13 = vadd.f32 %v1162_v52, %v1161_v12 }
  0xef   : > { %v1765_v28 = vpop.trf.xlu1 }
  0xf0   : > { %421 = vmatmul.bf16.gmra.mxu0 %v1765_v28  ;;  %v1164_v18 = vrot.slane %v1163_v13, 1 }
  0xf1   : > { %v1170_v31 = vpop.xlane.xlu2 %1169 }
  0xf2   : > { %v1171_v5 = vrot.slane %v1170_v31, 4  ;;  %v1165_v38 = vadd.f32 %v1164_v18, %v1163_v13 }
  0xf4   : > { %v1172_v26 = vadd.f32 %v1171_v5, %v1170_v31  ;;  %1684 = vpush %v1165_v38 }
  0xf5   : > { %v1742_v45 = vpop.trf.xlu0 }
  0xf6   : > { %696 = vmatmul.bf16.gmra.mxu3 %v1742_v45  ;;  %v1173_v54 = vrot.slane %v1172_v26, 2 }
  0xf7   : > { %v1766_v56 = vpop.trf.xlu1 }
  0xf8   : > { %470 = vmatmul.bf16.gmra.mxu1 %v1766_v56  ;;  %v1174_v37 = vadd.f32 %v1173_v54, %v1172_v26 }
  0xfa   : > { %v1175_v40 = vrot.slane %v1174_v37, 1 }
  0xfc   : > { %v1176_v51 = vadd.f32 %v1175_v40, %v1174_v37 }
  0xfd   : > { %v1743_v8 = vpop.trf.xlu0 }
  0xfe   : > { %652 = vmatmul.bf16.gmra.mxu2 %v1743_v8  ;;  %1686 = vpush %v1176_v51 }
  0xff   : > { %v1767_v53 = vpop.trf.xlu1 }
 0x100   : > { %426 = vmatmul.bf16.gmra.mxu0 %v1767_v53 }
 0x105   : > { %v1744_v11 = vpop.trf.xlu0 }
 0x106   : > { %701 = vmatmul.bf16.gmra.mxu3 %v1744_v11 }
 0x107   : > { %v1768_v39 = vpop.trf.xlu1 }
 0x108   : > { %475 = vmatmul.bf16.gmra.mxu1 %v1768_v39 }
 0x10d   : > { %v1745_v48 = vpop.trf.xlu0 }
 0x10e   : > { %657 = vmatmul.bf16.gmra.mxu2 %v1745_v48 }
 0x10f   : > { %v1769_v62 = vpop.trf.xlu1 }
 0x110   : > { %431 = vmatmul.bf16.gmra.mxu0 %v1769_v62 }
 0x115   : > { %v1746_v42 = vpop.trf.xlu0 }
 0x116   : > { %706 = vmatmul.bf16.gmra.mxu3 %v1746_v42 }
 0x117   : > { %v1770_v60 = vpop.trf.xlu1 }
 0x118   : > { %480 = vmatmul.bf16.gmra.mxu1 %v1770_v60 }
 0x11d   : > { %v1747_v49 = vpop.trf.xlu0  ;;  %s2185_s20 = spop %1682 }
 0x11e   : > { %662 = vmatmul.bf16.gmra.mxu2 %v1747_v49 }
 0x11f   : > { %v1771_v6 = vpop.trf.xlu1 }
 0x120   : > { %436 = vmatmul.bf16.gmra.mxu0 %v1771_v6 }
 0x125   : > { %v1748_v63 = vpop.trf.xlu0  ;;  %s1685_s21 = spop %1684 }
 0x126   : > { %711 = vmatmul.bf16.gmra.mxu3 %v1748_v63 }
 0x127   : > { %v1772_v10 = vpop.trf.xlu1 }
 0x128   : > { %485 = vmatmul.bf16.gmra.mxu1 %v1772_v10 }
 0x12d   : > { %v1749_v15 = vpop.trf.xlu0 }
 0x12e   : > { %667 = vmatmul.bf16.gmra.mxu2 %v1749_v15 }
 0x12f   : > { %v1773_v30 = vpop.trf.xlu1  ;;  %s1687_s22 = spop %1686 }
 0x130   : > { %441 = vmatmul.bf16.gmra.mxu0 %v1773_v30  ;;  %s1178_s23 = smul.f32 %s1687_s22, %s1685_s21 }
 0x132   : > { %v1179_v44 = vstv %s1178_s23 }
 0x133   : > { %1775 = vrsqrt.f32 %v1179_v44  ;;  %vm1187_vm1 = vcmp.eq.f32.partialorder %v1179_v44, inf  ;;  %v1190_v2 = vand.u32 2147483648, %v1179_v44  ;;  %vm1189_vm2 = vcmp.eq.f32.partialorder %v1179_v44, 0.0 }
 0x135   : > { %v1750_v23 = vpop.trf.xlu0 }
 0x136   : > { %716 = vmatmul.bf16.gmra.mxu3 %v1750_v23 }
 0x137   : > { %v1774_v47 = vpop.trf.xlu1 }
 0x138   : > { %490 = vmatmul.bf16.gmra.mxu1 %v1774_v47 }
 0x139   : > { %v1776_v21 = vpop.eup %1775 }
 0x13a   : > { %v1181_v27 = vmul.f32 %v1776_v21, %v1179_v44 }
 0x13c   : > { %v1182_v0 = vmul.f32 %v1776_v21, %v1181_v27 }
 0x13d   : > { %v407_v16 = vpop.f32.mrf.mxu0 }
 0x13e   : > { %v1183_v1 = vmul.f32 0.5, %v1182_v0 }
 0x140   : > { %v1184_v9 = vsub.f32 1.5, %v1183_v1 }
 0x141   : > { %v633_v59 = vpop.f32.mrf.mxu2 }
 0x142   : > { %v1185_v25 = vmul.f32 %v1776_v21, %v1184_v9 }
 0x144   : > { %v1186_v36 = vmul.f32 %v1185_v25, %v1179_v44 }
 0x145   : > { %v409_v61 = vpop.f32.mrf.mxu0  ;;  %v456_v29 = vpop.f32.mrf.mxu1 }
 0x146   : > { %v457_v22 = vadd.f32 %v456_v29, %v407_v16  ;;  %v1188_v55 = vsel %vm1187_vm1, %v1179_v44, %v1186_v36 }
 0x147   : > { %v1191_v46 = vsel %vm1189_vm2, %v1190_v2, %v1188_v55 }
 0x148   : > { %v1283_v35 = vmul.f32 %v457_v22, %v457_v22  ;;  %1688 = vpush %v1191_v46 }
 0x149   : > { %v635_v33 = vpop.f32.mrf.mxu2  ;;  %v682_v7 = vpop.f32.mrf.mxu3 }
 0x14a   : > { %v683_v24 = vadd.f32 %v682_v7, %v633_v59 }
 0x14c   : > { %v1243_v3 = vmul.f32 %v683_v24, %v457_v22  ;;  %v1323_v4 = vmul.f32 %v683_v24, %v683_v24 }
 0x14d   : > { %v412_v57 = vpop.f32.mrf.mxu0  ;;  %v458_v32 = vpop.f32.mrf.mxu1 }
 0x14e   : > { %v459_v14 = vadd.f32 %v458_v32, %v409_v61 }
 0x150   : > { %v1284_v19 = vmul.f32 %v459_v14, %v459_v14 }
 0x151   : > { %v638_v41 = vpop.f32.mrf.mxu2  ;;  %v684_v50 = vpop.f32.mrf.mxu3 }
 0x152   : > { %v1299_v34 = vadd.f32 %v1284_v19, %v1283_v35  ;;  %v685_v28 = vadd.f32 %v684_v50, %v635_v33 }
 0x154   : > { %v1244_v12 = vmul.f32 %v685_v28, %v459_v14  ;;  %v1324_v45 = vmul.f32 %v685_v28, %v685_v28 }
 0x155   : > { %v414_v43 = vpop.f32.mrf.mxu0  ;;  %v461_v52 = vpop.f32.mrf.mxu1 }
 0x156   : > { %v462_v56 = vadd.f32 %v461_v52, %v412_v57  ;;  %v1259_v31 = vadd.f32 %v1244_v12, %v1243_v3  ;;  %v1339_v17 = vadd.f32 %v1324_v45, %v1323_v4 }
 0x158   : > { %v1285_v13 = vmul.f32 %v462_v56, %v462_v56 }
 0x159   : > { %v640_v58 = vpop.f32.mrf.mxu2  ;;  %v687_v18 = vpop.f32.mrf.mxu3 }
 0x15a   : > { %v1300_v5 = vadd.f32 %v1299_v34, %v1285_v13  ;;  %v688_v26 = vadd.f32 %v687_v18, %v638_v41 }
 0x15c   : > { %v1245_v8 = vmul.f32 %v688_v26, %v462_v56  ;;  %v1325_v20 = vmul.f32 %v688_v26, %v688_v26 }
 0x15d   : > { %v417_v38 = vpop.f32.mrf.mxu0  ;;  %v463_v53 = vpop.f32.mrf.mxu1 }
 0x15e   : > { %v464_v54 = vadd.f32 %v463_v53, %v414_v43  ;;  %v1260_v37 = vadd.f32 %v1259_v31, %v1245_v8  ;;  %v1340_v40 = vadd.f32 %v1339_v17, %v1325_v20 }
 0x160   : > { %v1286_v51 = vmul.f32 %v464_v54, %v464_v54 }
 0x161   : > { %v643_v39 = vpop.f32.mrf.mxu2  ;;  %v689_v48 = vpop.f32.mrf.mxu3 }
 0x162   : > { %v1301_v11 = vadd.f32 %v1300_v5, %v1286_v51  ;;  %v690_v62 = vadd.f32 %v689_v48, %v640_v58 }
 0x164   : > { %v1246_v42 = vmul.f32 %v690_v62, %v464_v54  ;;  %v1326_v60 = vmul.f32 %v690_v62, %v690_v62 }
 0x165   : > { %v2187_v49 = vpop.f32.mrf.mxu0  ;;  %v466_v6 = vpop.f32.mrf.mxu1 }
 0x166   : > { %v467_v63 = vadd.f32 %v466_v6, %v417_v38  ;;  %v1261_v10 = vadd.f32 %v1260_v37, %v1246_v42  ;;  %v1341_v15 = vadd.f32 %v1340_v40, %v1326_v60 }
 0x168   : > { %v1287_v30 = vmul.f32 %v467_v63, %v467_v63 }
 0x169   : > { %v2191_v47 = vpop.f32.mrf.mxu2  ;;  %v692_v44 = vpop.f32.mrf.mxu3 }
 0x16a   : > { %v2189_v23 = vadd.f32 %v1301_v11, %v1287_v30  ;;  %v693_v16 = vadd.f32 %v692_v44, %v643_v39 }
 0x16c   : > { %v1247_v21 = vmul.f32 %v693_v16, %v467_v63  ;;  %v1327_v59 = vmul.f32 %v693_v16, %v693_v16 }
 0x16d   : > { %v422_v27 = vpop.f32.mrf.mxu0  ;;  %v468_v61 = vpop.f32.mrf.mxu1 }
 0x16e   : > { %v2193_v29 = vadd.f32 %v1261_v10, %v1247_v21  ;;  %v2195_v0 = vadd.f32 %v1341_v15, %v1327_v59  ;;  %v469_v54 = vadd.f32 %v468_v61, %v2187_v49 }
 0x170   : > { %v1288_v51 = vmul.f32 %v469_v54, %v469_v54 }
 0x171   : > { %v648_v22 = vpop.f32.mrf.mxu2  ;;  %v694_v1 = vpop.f32.mrf.mxu3 }
 0x172   : > { %v695_v42 = vadd.f32 %v694_v1, %v2191_v47  ;;  %v1303_v6 = vadd.f32 %v2189_v23, %v1288_v51 }
 0x174   : > { %v1248_v49 = vmul.f32 %v695_v42, %v469_v54 }
 0x175   : > { %v424_v9 = vpop.f32.mrf.mxu0  ;;  %v471_v33 = vpop.f32.mrf.mxu1 }
 0x176   : > { %v472_v37 = vadd.f32 %v471_v33, %v422_v27 }
 0x178   : > { %v1289_v48 = vmul.f32 %v472_v37, %v472_v37 }
 0x179   : > { %v650_v7 = vpop.f32.mrf.mxu2  ;;  %v697_v24 = vpop.f32.mrf.mxu3  ;;  %s1689_s24 = spop %1688 }
 0x17a   : > { %s1193_s26 = smax.f32 %s1807_s25, %s1689_s24  ;;  %v698_v30 = vadd.f32 %v697_v24, %v648_v22  ;;  %v1304_v44 = vadd.f32 %v1303_v6, %v1289_v48 }
 0x17b   : > { %v1194_v32 = vstv %s1193_s26 }
 0x17c   : > { %1777 = vrcp.f32 %v1194_v32  ;;  %v1206_v50 = vand.u32 2147483648, %v1194_v32  ;;  %vm1200_vm3 = vweird.f32 %v1194_v32  ;;  %v1204_v4 = vand.u32 2147483647, %v1194_v32 }
 0x17d   : > { %v427_v25 = vpop.f32.mrf.mxu0  ;;  %v473_v2 = vpop.f32.mrf.mxu1 }
 0x17e   : > { %v1207_v45 = vor.u32 1.1754944e-38, %v1206_v50  ;;  %vm1205_vm6 = vcmp.eq.f32.partialorder %v1204_v4, 8.507059e+37  ;;  %v474_v11 = vadd.f32 %v473_v2, %v424_v9  ;;  %v1249_v2 = vmul.f32 %v698_v30, %v472_v37 }
 0x180   : > { %v1290_v63 = vmul.f32 %v474_v11, %v474_v11 }
 0x181   : > { %v2197_v3 = vpop.f32.mrf.mxu2  ;;  %v699_v57 = vpop.f32.mrf.mxu3 }
 0x182   : > { %v1778_v19 = vpop.eup %1777  ;;  %v700_v59 = vadd.f32 %v699_v57, %v650_v7  ;;  %v1305_v27 = vadd.f32 %v1304_v44, %v1290_v63 }
 0x183   : > { %v1196_v46 = vmul.f32 %v1778_v19, %v1194_v32  ;;  %vm1201_vm4 = vweird.f32 %v1778_v19 }
 0x184   : > { %vm1202_vm5 = vmor %vm1200_vm3, %vm1201_vm4 }
 0x185   : > { %v429_v36 = vpop.f32.mrf.mxu0  ;;  %v476_v14 = vpop.f32.mrf.mxu1  ;;  %v1197_v28 = vsub.f32 1.0, %v1196_v46 }
 0x186   : > { %v477_v62 = vadd.f32 %v476_v14, %v427_v25  ;;  %v1250_v14 = vmul.f32 %v700_v59, %v474_v11 }
 0x187   : > { %v1198_v12 = vmul.f32 %v1778_v19, %v1197_v28 }
 0x188   : > { %v1291_v16 = vmul.f32 %v477_v62, %v477_v62 }
 0x189   : > { %v655_v55 = vpop.f32.mrf.mxu2  ;;  %v702_v35 = vpop.f32.mrf.mxu3  ;;  %v1199_v56 = vadd.f32 %v1778_v19, %v1198_v12 }
 0x18a   : > { %v703_v25 = vadd.f32 %v702_v35, %v2197_v3  ;;  %v1306_v1 = vadd.f32 %v1305_v27, %v1291_v16  ;;  %v1328_v3 = vmul.f32 %v695_v42, %v695_v42 }
 0x18b   : > { %v1203_v31 = vsel %vm1202_vm5, %v1778_v19, %v1199_v56 }
 0x18c   : > { %v1208_v5 = vsel %vm1205_vm6, %v1207_v45, %v1203_v31  ;;  %v1251_v57 = vmul.f32 %v703_v25, %v477_v62 }
 0x18d   : > { %v432_v34 = vpop.f32.mrf.mxu0  ;;  %v478_v41 = vpop.f32.mrf.mxu1  ;;  %1690 = vpush %v1208_v5 }
 0x18e   : > { %v479_v10 = vadd.f32 %v478_v41, %v429_v36  ;;  %v1263_v36 = vadd.f32 %v2193_v29, %v1248_v49 }
 0x190   : > { %v1292_v61 = vmul.f32 %v479_v10, %v479_v10  ;;  %v1264_v7 = vadd.f32 %v1263_v36, %v1249_v2 }
 0x191   : > { %v658_v43 = vpop.f32.mrf.mxu2  ;;  %v704_v52 = vpop.f32.mrf.mxu3 }
 0x192   : > { %v705_v22 = vadd.f32 %v704_v52, %v655_v55  ;;  %v1307_v19 = vadd.f32 %v1306_v1, %v1292_v61  ;;  %v1265_v35 = vadd.f32 %v1264_v7, %v1250_v14 }
 0x194   : > { %v1252_v45 = vmul.f32 %v705_v22, %v479_v10  ;;  %v1266_v55 = vadd.f32 %v1265_v35, %v1251_v57 }
 0x195   : > { %v434_v17 = vpop.f32.mrf.mxu0  ;;  %v481_v13 = vpop.f32.mrf.mxu1 }
 0x196   : > { %v482_v21 = vadd.f32 %v481_v13, %v432_v34  ;;  %v1329_v13 = vmul.f32 %v698_v30, %v698_v30 }
 0x198   : > { %v1293_v32 = vmul.f32 %v482_v21, %v482_v21 }
 0x199   : > { %v660_v58 = vpop.f32.mrf.mxu2  ;;  %v707_v18 = vpop.f32.mrf.mxu3 }
 0x19a   : > { %v708_v41 = vadd.f32 %v707_v18, %v658_v43  ;;  %v1308_v50 = vadd.f32 %v1307_v19, %v1293_v32  ;;  %v1330_v43 = vmul.f32 %v700_v59, %v700_v59  ;;  %v1267_v18 = vadd.f32 %v1266_v55, %v1252_v45 }
 0x19c   : > { %v1253_v52 = vmul.f32 %v708_v41, %v482_v21  ;;  %v1333_v59 = vmul.f32 %v708_v41, %v708_v41 }
 0x19d   : > { %v483_v26 = vpop.f32.mrf.mxu1  ;;  %v437_v8 = vpop.f32.mrf.mxu0 }
 0x19e   : > { %v484_v9 = vadd.f32 %v483_v26, %v434_v17 }
 0x1a0   : > { %v1294_v46 = vmul.f32 %v484_v9, %v484_v9 }
 0x1a1   : > { %v709_v20 = vpop.f32.mrf.mxu3  ;;  %v663_v38 = vpop.f32.mrf.mxu2 }
 0x1a2   : > { %v1309_v56 = vadd.f32 %v1308_v50, %v1294_v46  ;;  %v710_v31 = vadd.f32 %v709_v20, %v660_v58  ;;  %v1331_v58 = vmul.f32 %v703_v25, %v703_v25  ;;  %v1268_v20 = vadd.f32 %v1267_v18, %v1253_v52 }
 0x1a5   : > { %v486_v53 = vpop.f32.mrf.mxu1  ;;  %v439_v40 = vpop.f32.mrf.mxu0 }
 0x1a6   : > { %v487_v23 = vadd.f32 %v486_v53, %v437_v8  ;;  %v1343_v53 = vadd.f32 %v2195_v0, %v1328_v3 }
 0x1a8   : > { %v1295_v28 = vmul.f32 %v487_v23, %v487_v23  ;;  %v1344_v62 = vadd.f32 %v1343_v53, %v1329_v13 }
 0x1a9   : > { %v712_v39 = vpop.f32.mrf.mxu3  ;;  %v665_v15 = vpop.f32.mrf.mxu2 }
 0x1aa   : > { %v1310_v5 = vadd.f32 %v1309_v56, %v1295_v28  ;;  %v713_v26 = vadd.f32 %v712_v39, %v663_v38  ;;  %v1345_v10 = vadd.f32 %v1344_v62, %v1330_v43  ;;  %v1332_v38 = vmul.f32 %v705_v22, %v705_v22 }
 0x1ac   : > { %v1255_v42 = vmul.f32 %v713_v26, %v487_v23  ;;  %v1346_v49 = vadd.f32 %v1345_v10, %v1331_v58 }
 0x1ad   : > { %v488_v60 = vpop.f32.mrf.mxu1  ;;  %v442_v47 = vpop.f32.mrf.mxu0 }
 0x1ae   : > { %v489_v34 = vadd.f32 %v488_v60, %v439_v40  ;;  %v1254_v40 = vmul.f32 %v710_v31, %v484_v9  ;;  %v1347_v61 = vadd.f32 %v1346_v49, %v1332_v38  ;;  %v1334_v9 = vmul.f32 %v710_v31, %v710_v31 }
 0x1b0   : > { %v1296_v17 = vmul.f32 %v489_v34, %v489_v34  ;;  %v1269_v39 = vadd.f32 %v1268_v20, %v1254_v40  ;;  %v1348_v25 = vadd.f32 %v1347_v61, %v1333_v59 }
 0x1b1   : > { %v714_v33 = vpop.f32.mrf.mxu3  ;;  %v668_v4 = vpop.f32.mrf.mxu2 }
 0x1b2   : > { %v1311_v51 = vadd.f32 %v1310_v5, %v1296_v17  ;;  %v715_v11 = vadd.f32 %v714_v33, %v665_v15  ;;  %v1270_v27 = vadd.f32 %v1269_v39, %v1255_v42  ;;  %v1349_v32 = vadd.f32 %v1348_v25, %v1334_v9 }
 0x1b4   : > { %v1256_v30 = vmul.f32 %v715_v11, %v489_v34  ;;  %v1336_v23 = vmul.f32 %v715_v11, %v715_v11 }
 0x1b5   : > { %v491_v24 = vpop.f32.mrf.mxu1  ;;  %v444_v54 = vpop.f32.mrf.mxu0 }
 0x1b6   : > { %v492_v12 = vadd.f32 %v491_v24, %v442_v47  ;;  %v1271_v33 = vadd.f32 %v1270_v27, %v1256_v30  ;;  %v1335_v47 = vmul.f32 %v713_v26, %v713_v26 }
 0x1b8   : > { %v1297_v8 = vmul.f32 %v492_v12, %v492_v12  ;;  %v1350_v14 = vadd.f32 %v1349_v32, %v1335_v47 }
 0x1b9   : > { %v717_v29 = vpop.f32.mrf.mxu3  ;;  %v670_v0 = vpop.f32.mrf.mxu2 }
 0x1ba   : > { %v718_v60 = vadd.f32 %v717_v29, %v668_v4  ;;  %v1312_v63 = vadd.f32 %v1311_v51, %v1297_v8  ;;  %v1351_v24 = vadd.f32 %v1350_v14, %v1336_v23 }
 0x1bc   : > { %v1257_v15 = vmul.f32 %v718_v60, %v492_v12  ;;  %v1337_v22 = vmul.f32 %v718_v60, %v718_v60 }
 0x1bd   : > { %v493_v37 = vpop.f32.mrf.mxu1 }
 0x1be   : > { %v494_v48 = vadd.f32 %v493_v37, %v444_v54  ;;  %v1272_v1 = vadd.f32 %v1271_v33, %v1257_v15  ;;  %v1352_v46 = vadd.f32 %v1351_v24, %v1337_v22  ;;  %s2206_s27 = spop %1690 }
 0x1bf   : > { %s1210_s6 = smul.f32 %s2206_s27, %s2185_s20 }
 0x1c0   : > { %v1298_v6 = vmul.f32 %v494_v48, %v494_v48 }
 0x1c1   : > { %v719_v44 = vpop.f32.mrf.mxu3  ;;  %v1403_v27 = vstv %s1210_s6 }
 0x1c2   : > { %v1313_v16 = vadd.f32 %v1312_v63, %v1298_v6  ;;  %v720_v21 = vadd.f32 %v719_v44, %v670_v0 }
 0x1c4   : > { %1314 = vadd.xlane.f32.xlu2 %v1313_v16  ;;  %v1258_v2 = vmul.f32 %v720_v21, %v494_v48  ;;  %v1338_v19 = vmul.f32 %v720_v21, %v720_v21  ;;  %v1396_v21 = vlaneseq }
 0x1c6   : > { %v1273_v36 = vadd.f32 %v1272_v1, %v1258_v2  ;;  %v1353_v34 = vadd.f32 %v1352_v46, %v1338_v19  ;;  %v1397_v49 = vshrl.u32 %v1396_v21, 7  ;;  %v1399_v59 = vand.u32 127, %v1396_v21 }
 0x1c8   : > { %vm1400_vm13 = vcmp.eq.s32.totalorder %v1397_v49, 0  ;;  %vm1401_vm14 = vcmp.eq.s32.totalorder %v1399_v59, 0  ;;  %vm1405_vm15 = vcmp.eq.s32.totalorder %v1399_v59, 1 }
 0x1c9   : > { %vm1402_vm0 = vmand %vm1400_vm13, %vm1401_vm14 }
 0x1ca   : > { %vm1406_vm1 = vmand %vm1400_vm13, %vm1405_vm15  ;;  %v1404_v61 = vsel %vm1402_vm0, %v1403_v27, 0.0 }
 0x1cc   : > { %1274 = vadd.xlane.f32.xlu2 %v1273_v36 }
 0x1d4   : > { %1354 = vadd.xlane.f32.xlu2 %v1353_v34 }
 0x237   : > { %v1315_v7 = vpop.xlane.xlu2 %1314 }
 0x238   : > { %v1316_v57 = vrot.slane %v1315_v7, 4 }
 0x23a   : > { %v1317_v41 = vadd.f32 %v1316_v57, %v1315_v7 }
 0x23c   : > { %v1318_v50 = vrot.slane %v1317_v41, 2 }
 0x23e   : > { %v1319_v3 = vadd.f32 %v1318_v50, %v1317_v41 }
 0x23f   : > { %v1275_v28 = vpop.xlane.xlu2 %1274 }
 0x240   : > { %v1276_v4 = vrot.slane %v1275_v28, 4  ;;  %v1320_v31 = vrot.slane %v1319_v3, 1 }
 0x242   : > { %v1277_v12 = vadd.f32 %v1276_v4, %v1275_v28  ;;  %v1321_v52 = vadd.f32 %v1320_v31, %v1319_v3 }
 0x244   : > { %v1278_v35 = vrot.slane %v1277_v12, 2 }
 0x246   : > { %v1279_v45 = vadd.f32 %v1278_v35, %v1277_v12 }
 0x247   : > { %v1355_v56 = vpop.xlane.xlu2 %1354 }
 0x248   : > { %v1356_v17 = vrot.slane %v1355_v56, 4  ;;  %v1280_v29 = vrot.slane %v1279_v45, 1 }
 0x24a   : > { %v1357_v13 = vadd.f32 %v1356_v17, %v1355_v56  ;;  %v1281_v55 = vadd.f32 %v1280_v29, %v1279_v45 }
 0x24c   : > { %v1358_v5 = vrot.slane %v1357_v13, 2  ;;  %1692 = vpush %v1281_v55 }
 0x24d   : > { %1694 = vpush %v1321_v52 }
 0x24e   : > { %v1359_v26 = vadd.f32 %v1358_v5, %v1357_v13 }
 0x250   : > { %v1360_v8 = vrot.slane %v1359_v26, 1 }
 0x252   : > { %v1361_v53 = vadd.f32 %v1360_v8, %v1359_v26 }
 0x254   : > { %1696 = vpush %v1361_v53 }
 0x27d   : > { %s2208_s28 = spop %1692 }
 0x27e   : > { %s1695_s29 = spop %1694 }
 0x285   : > { %s1697_s30 = spop %1696 }
 0x286   : > { %s1363_s3 = smul.f32 %s1697_s30, %s1695_s29 }
 0x288   : > { %v1364_v43 = vstv %s1363_s3 }
 0x289   : > { %1779 = vrsqrt.f32 %v1364_v43  ;;  %vm1372_vm7 = vcmp.eq.f32.partialorder %v1364_v43, inf  ;;  %v1375_v62 = vand.u32 2147483648, %v1364_v43  ;;  %vm1374_vm8 = vcmp.eq.f32.partialorder %v1364_v43, 0.0 }
 0x28f   : > { %v1780_v18 = vpop.eup %1779 }
 0x290   : > { %v1366_v54 = vmul.f32 %v1780_v18, %v1364_v43 }
 0x292   : > { %v1367_v37 = vmul.f32 %v1780_v18, %v1366_v54 }
 0x294   : > { %v1368_v40 = vmul.f32 0.5, %v1367_v37 }
 0x296   : > { %v1369_v51 = vsub.f32 1.5, %v1368_v40 }
 0x298   : > { %v1370_v11 = vmul.f32 %v1780_v18, %v1369_v51 }
 0x29a   : > { %v1371_v48 = vmul.f32 %v1370_v11, %v1364_v43 }
 0x29c   : > { %v1373_v58 = vsel %vm1372_vm7, %v1364_v43, %v1371_v48 }
 0x29d   : > { %v1376_v20 = vsel %vm1374_vm8, %v1375_v62, %v1373_v58 }
 0x29e   : > { %1698 = vpush %v1376_v20 }
 0x2cf   : > { %s1699_s4 = spop %1698 }
 0x2d0   : > { %s1378_s5 = smax.f32 %s1807_s25, %s1699_s4 }
 0x2d1   : > { %v1379_v42 = vstv %s1378_s5 }
 0x2d2   : > { %1781 = vrcp.f32 %v1379_v42  ;;  %v1391_v10 = vand.u32 2147483648, %v1379_v42  ;;  %v1389_v39 = vand.u32 2147483647, %v1379_v42  ;;  %vm1385_vm10 = vweird.f32 %v1379_v42 }
 0x2d4   : > { %v1392_v0 = vor.u32 1.1754944e-38, %v1391_v10  ;;  %vm1390_vm12 = vcmp.eq.f32.partialorder %v1389_v39, 8.507059e+37 }
 0x2d8   : > { %v1782_v60 = vpop.eup %1781 }
 0x2d9   : > { %v1381_v6 = vmul.f32 %v1782_v60, %v1379_v42  ;;  %vm1386_vm9 = vweird.f32 %v1782_v60 }
 0x2da   : > { %vm1387_vm11 = vmor %vm1385_vm10, %vm1386_vm9 }
 0x2db   : > { %v1382_v63 = vsub.f32 1.0, %v1381_v6 }
 0x2dd   : > { %v1383_v38 = vmul.f32 %v1782_v60, %v1382_v63 }
 0x2df   : > { %v1384_v30 = vadd.f32 %v1782_v60, %v1383_v38 }
 0x2e1   : > { %v1388_v44 = vsel %vm1387_vm11, %v1782_v60, %v1384_v30 }
 0x2e2   : > { %v1393_v16 = vsel %vm1390_vm12, %v1392_v0, %v1388_v44 }
 0x2e3   : > { %1700 = vpush %v1393_v16 }
 0x314   : > { %s1701_s7 = spop %1700 }
 0x315   : > { %s1395_s13 = smul.f32 %s1701_s7, %s2208_s28 }
 0x317   : > { %v1407_v15 = vstv %s1395_s13 }
 0x318   : > { %v1408_v9 = vsel %vm1406_vm1, %v1407_v15, 0.0 }
 0x319   : > { %v1409_v33 = vadd.f32 %v1408_v9, %v1404_v61 }
 0x31b   : > { %1410 = vst [vmem:[%s205_s16] sm:$0xff] %v1409_v33 }
 0x31c PF: > { %s12_s11 = sadd.s32 1, %s1805_s11   ;;  %s2230_s9 = smov %s1801_s10 }
 0x31d   : > { %p9_p5 = scmp.ge.s32.totalorder %s12_s11, 4   ;;  %s2231_s10 = smov %s2233_s12 }
 0x31f   :  { %11 = sbr.rel (!%p9_p5) target bundleno = 2 (0x2), region = 73 }

// kernel: extractor_forward.7
= control target key start
LH: loop header
LB: loop body
LE: loop exit
PB: predicated region body
PF: predicated region fallthrough
CT: control target
= control target key end

     0   :  { %s6916_s9 = smov 0   ;;  %s6918_s10 = smov 0   ;;  %s8886_s0 = inlined_call_operand.vmem [shape: bf16[2,16,512], index: 0, kind: input, shape index: {}]   ;;  %s8887_s1 = inlined_call_operand.vmem [shape: bf16[2,16,512], index: 1, kind: input, shape index: {}]   ;;  %s8888_s2 = inlined_call_operand.vmem [shape: f32[2,8,128], index: 2, kind: output, shape index: {}]  }
   0x1   :  { %s6920_s11 = smov 0  }
   0x2 LB: > { %s24_s12 = sadd.s32 1, %s6894_s10  ;;  %p6516_p0 = scmp.ge.s32.totalorder %s6898_s11, 1  ;;  %s6898_s11 = sphi %s6920_s11, %s12_s11   ;;  %s6894_s10 = sphi %s6918_s10, %s9549_s10   ;;  %s6890_s9 = sphi %s6916_s9, %s9548_s9  }
   0x3   : > { %p26_p1 = scmp.ge.s32.totalorder %s24_s12, 2  ;;  %p150_p2 = scmp.lt.s32.totalorder %s6898_s11, 3 }
   0x5   : > { %s9551_s12 = smov (%p26_p1, %s24_s12), 0  ;;  %p151_p3 = pnand %p6516_p0, %p150_p2 }
   0x7   : > { %154 = sbr.rel (%p151_p3) target bundleno = 1685 (0x695), region = 28 }
   0xc   : > { %p187_p4 = scmp.lt.s32.totalorder %s6890_s9, 1  ;;  %vm289_vm0 = vcmask 130048   ;;  %vm2549_vm1 = vcmask 1040384   ;;  %vm2551_vm2 = vcmask 1042434   ;;  %vm2553_vm3 = vcmask 1041408  }
   0xd   : > { %s6900_s25 = smov 1e-08  }
   0xe   : > { %s9553_s9 = smov (!%p187_p4, %s6890_s9), 1 }
   0xf   : > { %s6812_s13 = sshll.u32 %s9553_s9, 5  ;;  %s6521_s8 = sshll.u32 %s9553_s9, 3 }
  0x10   : > { %s6940_s16 = scalar_lea.vmem %s8886_s0, %s6812_s13  ;;  %s6953_s19 = scalar_lea.vmem %s8887_s1, %s6812_s13 }
  0x11   : > { %v6814_v0 = vld [vmem:[%s6940_s16 + $0x4] sm:$0xf]  ;;  %v6524_v1 = vld [vmem:[%s6940_s16] sm:$0xf]  ;;  %v6526_v2 = vld [vmem:[%s6940_s16 + $0x10] sm:$0xf0] }
  0x12   : > { %v6816_v3 = vld [vmem:[%s6940_s16 + $0xc] sm:$0xf0]  ;;  %v6529_v4 = vor.u32 %v6814_v0, %v6526_v2  ;;  %v6532_v5 = vld [vmem:[%s6940_s16 + $0x8] sm:$0xf]  ;;  %v6817_v6 = vld [vmem:[%s6940_s16 + $0x14] sm:$0xf0] }
  0x13   : > { %v6525_v7 = vor.u32 %v6816_v3, %v6524_v1  ;;  %v6533_v8 = vor.u32 %v6817_v6, %v6532_v5  ;;  %v6815_v9 = vld [vmem:[%s6940_s16 + $0xc] sm:$0xf]  ;;  %v6534_v10 = vld [vmem:[%s6940_s16 + $0x18] sm:$0xf0]  ;;  %v6676_v12 = vld [vmem:[%s6953_s19 + $0x8] sm:$0xf] }
  0x14   : > { %562 = vmatpush.bf16.msra.mxu1 %v6529_v4  ;;  %v6537_v11 = vor.u32 %v6815_v9, %v6534_v10  ;;  %v6821_v13 = vld [vmem:[%s6953_s19 + $0x14] sm:$0xf0]  ;;  %v6668_v14 = vld [vmem:[%s6953_s19] sm:$0xf]  ;;  %v6820_v16 = vld [vmem:[%s6953_s19 + $0xc] sm:$0xf0] }
  0x15   : > { %241 = vxpose.binary.xlu0.c.b16.start.end [1/2] (short) %v6529_v4, %v6525_v7, 128  ;;  %v6677_v15 = vor.u32 %v6821_v13, %v6676_v12  ;;  %v6819_v17 = vld [vmem:[%s6953_s19 + $0xc] sm:$0xf]  ;;  %v6678_v18 = vld [vmem:[%s6953_s19 + $0x18] sm:$0xf0]  ;;  %v6669_v19 = vor.u32 %v6820_v16, %v6668_v14  ;;  %v6818_v21 = vld [vmem:[%s6953_s19 + $0x4] sm:$0xf] }
  0x16   : > { %393 = vmatpush.bf16.msra.mxu0 %v6525_v7  ;;  %731 = vmatpush.bf16.msra.mxu2 %v6533_v8  ;;  %v6681_v20 = vor.u32 %v6819_v17, %v6678_v18  ;;  %v6670_v22 = vld [vmem:[%s6953_s19 + $0x10] sm:$0xf0] }
  0x17   : > { %900 = vmatpush.bf16.msra.mxu3 %v6537_v11  ;;  %v6673_v23 = vor.u32 %v6818_v21, %v6670_v22 }
  0x19   : > { %1402 = vmatpush.bf16.msrb.mxu1 %v6673_v23 }
  0x1a   : > { %1571 = vmatpush.bf16.msrb.mxu2 %v6677_v15  ;;  %1233 = vmatpush.bf16.msrb.mxu0 %v6669_v19 }
  0x1b   : > { %1740 = vmatpush.bf16.msrb.mxu3 %v6681_v20 }
  0x1c   : > { %1082 = vxpose.binary.xlu1.c.b16.start.end [1/2] (short) %v6673_v23, %v6669_v19, 128 }
  0x95   : > { %265 = vxpose.binary.xlu0.c.b16.start.end [1/2] (short) %v6537_v11, %v6533_v8, 128 }
  0x9c   : > { %1106 = vxpose.binary.xlu1.c.b16.start.end [1/2] (short) %v6681_v20, %v6677_v15, 128 }
  0xc1   : > { %v249_v24 = vpop.trf.xlu0 }
  0xc2   : > { %6538 = vmatmul.msk.bf16.vlgmr.msra.gmra.mxu0 %vm289_vm0, %v249_v24  ;;  %6570 = vmatmul.msk.bf16.vlgmr.msra.gmra.mxu1 %vm289_vm0, %v249_v24 }
  0xc3   : > { %6602 = vmatmul.msk.bf16.vlgmr.msra.gmra.mxu2 %vm289_vm0, %v249_v24  ;;  %6634 = vmatmul.msk.bf16.vlgmr.msra.gmra.mxu3 %vm289_vm0, %v249_v24 }
  0xc9   : > { %v250_v25 = vpop.trf.xlu0 }
  0xd1   : > { %v251_v26 = vpop.trf.xlu0 }
  0xd2   : > { %6539 = vmatmul.msk.bf16.gmra.mxu0 %vm289_vm0, %v251_v26  ;;  %6571 = vmatmul.msk.bf16.gmra.mxu1 %vm289_vm0, %v251_v26 }
  0xd3   : > { %6603 = vmatmul.msk.bf16.gmra.mxu2 %vm289_vm0, %v251_v26  ;;  %6635 = vmatmul.msk.bf16.gmra.mxu3 %vm289_vm0, %v251_v26 }
  0xd9   : > { %v6971_v27 = vpop.trf.xlu0 }
  0xe1   : > { %v253_v28 = vpop.trf.xlu0 }
  0xe2   : > { %6540 = vmatmul.msk.bf16.gmra.mxu0 %vm289_vm0, %v253_v28  ;;  %6572 = vmatmul.msk.bf16.gmra.mxu1 %vm289_vm0, %v253_v28 }
  0xe3   : > { %6604 = vmatmul.msk.bf16.gmra.mxu2 %vm289_vm0, %v253_v28  ;;  %6636 = vmatmul.msk.bf16.gmra.mxu3 %vm289_vm0, %v253_v28 }
  0xe9   : > { %v6977_v29 = vpop.trf.xlu0 }
  0xf1   : > { %v255_v30 = vpop.trf.xlu0 }
  0xf2   : > { %6541 = vmatmul.msk.bf16.gmra.mxu0 %vm289_vm0, %v255_v30  ;;  %6573 = vmatmul.msk.bf16.gmra.mxu1 %vm289_vm0, %v255_v30 }
  0xf3   : > { %6605 = vmatmul.msk.bf16.gmra.mxu2 %vm289_vm0, %v255_v30  ;;  %6637 = vmatmul.msk.bf16.gmra.mxu3 %vm289_vm0, %v255_v30 }
  0xf9   : > { %v6983_v31 = vpop.trf.xlu0 }
 0x101   : > { %v257_v32 = vpop.trf.xlu0 }
 0x102   : > { %6542 = vmatmul.msk.bf16.gmra.mxu0 %vm289_vm0, %v257_v32  ;;  %6574 = vmatmul.msk.bf16.gmra.mxu1 %vm289_vm0, %v257_v32 }
 0x103   : > { %6606 = vmatmul.msk.bf16.gmra.mxu2 %vm289_vm0, %v257_v32  ;;  %6638 = vmatmul.msk.bf16.gmra.mxu3 %vm289_vm0, %v257_v32 }
 0x109   : > { %v6989_v33 = vpop.trf.xlu0 }
 0x111   : > { %v259_v34 = vpop.trf.xlu0 }
 0x112   : > { %6543 = vmatmul.msk.bf16.gmra.mxu0 %vm289_vm0, %v259_v34  ;;  %6575 = vmatmul.msk.bf16.gmra.mxu1 %vm289_vm0, %v259_v34 }
 0x113   : > { %6607 = vmatmul.msk.bf16.gmra.mxu2 %vm289_vm0, %v259_v34  ;;  %6639 = vmatmul.msk.bf16.gmra.mxu3 %vm289_vm0, %v259_v34 }
 0x119   : > { %v6995_v35 = vpop.trf.xlu0 }
 0x121   : > { %v261_v36 = vpop.trf.xlu0 }
 0x122   : > { %6544 = vmatmul.msk.bf16.gmra.mxu0 %vm289_vm0, %v261_v36  ;;  %6576 = vmatmul.msk.bf16.gmra.mxu1 %vm289_vm0, %v261_v36 }
 0x123   : > { %6608 = vmatmul.msk.bf16.gmra.mxu2 %vm289_vm0, %v261_v36  ;;  %6640 = vmatmul.msk.bf16.gmra.mxu3 %vm289_vm0, %v261_v36 }
 0x129   : > { %v7001_v37 = vpop.trf.xlu0 }
 0x131   : > { %v263_v38 = vpop.trf.xlu0 }
 0x132   : > { %6545 = vmatmul.msk.bf16.gmra.mxu0 %vm289_vm0, %v263_v38  ;;  %6577 = vmatmul.msk.bf16.gmra.mxu1 %vm289_vm0, %v263_v38 }
 0x133   : > { %6609 = vmatmul.msk.bf16.gmra.mxu2 %vm289_vm0, %v263_v38  ;;  %6641 = vmatmul.msk.bf16.gmra.mxu3 %vm289_vm0, %v263_v38 }
 0x13f   : > { %v7007_v39 = vpop.f32.mrf.mxu0  ;;  %v7009_v40 = vpop.f32.mrf.mxu1 }
 0x140   : > { %v5333_v41 = vmul.f32 %v7007_v39, %v7007_v39  ;;  %v5334_v42 = vmul.f32 %v7009_v40, %v7009_v40 }
 0x142   : > { %6546 = vmatmul.msk.bf16.gmra.mxu0 %vm289_vm0, %v250_v25  ;;  %6578 = vmatmul.msk.bf16.gmra.mxu1 %vm289_vm0, %v250_v25  ;;  %v5589_v45 = vadd.f32 %v5334_v42, %v5333_v41 }
 0x143   : > { %6610 = vmatmul.msk.bf16.gmra.mxu2 %vm289_vm0, %v250_v25  ;;  %6642 = vmatmul.msk.bf16.gmra.mxu3 %vm289_vm0, %v250_v25 }
 0x146   : > { %v7019_v43 = vpop.f32.mrf.mxu2  ;;  %v7021_v44 = vpop.f32.mrf.mxu3 }
 0x147   : > { %v5335_v46 = vmul.f32 %v7019_v43, %v7019_v43  ;;  %v7025_v47 = vpop.f32.mrf.mxu0  ;;  %v7027_v48 = vpop.f32.mrf.mxu1  ;;  %v5336_v50 = vmul.f32 %v7021_v44, %v7021_v44 }
 0x148   : > { %v5337_v52 = vmul.f32 %v7025_v47, %v7025_v47  ;;  %v5338_v54 = vmul.f32 %v7027_v48, %v7027_v48 }
 0x149   : > { %v5590_v49 = vadd.f32 %v5589_v45, %v5335_v46 }
 0x14b   : > { %v5591_v51 = vadd.f32 %v5590_v49, %v5336_v50 }
 0x14d   : > { %v5592_v53 = vadd.f32 %v5591_v51, %v5337_v52 }
 0x14e   : > { %v7035_v55 = vpop.f32.mrf.mxu2  ;;  %v7037_v56 = vpop.f32.mrf.mxu3 }
 0x14f   : > { %v5593_v57 = vadd.f32 %v5592_v53, %v5338_v54  ;;  %v5339_v58 = vmul.f32 %v7035_v55, %v7035_v55  ;;  %v7041_v59 = vpop.f32.mrf.mxu0  ;;  %v7043_v60 = vpop.f32.mrf.mxu1  ;;  %v5340_v62 = vmul.f32 %v7037_v56, %v7037_v56 }
 0x150   : > { %v5341_v0 = vmul.f32 %v7041_v59, %v7041_v59  ;;  %v5342_v2 = vmul.f32 %v7043_v60, %v7043_v60 }
 0x151   : > { %v5594_v61 = vadd.f32 %v5593_v57, %v5339_v58 }
 0x152   : > { %6547 = vmatmul.msk.bf16.gmra.mxu0 %vm289_vm0, %v6971_v27  ;;  %6579 = vmatmul.msk.bf16.gmra.mxu1 %vm289_vm0, %v6971_v27 }
 0x153   : > { %v5595_v63 = vadd.f32 %v5594_v61, %v5340_v62  ;;  %6611 = vmatmul.msk.bf16.gmra.mxu2 %vm289_vm0, %v6971_v27  ;;  %6643 = vmatmul.msk.bf16.gmra.mxu3 %vm289_vm0, %v6971_v27 }
 0x155   : > { %v5596_v1 = vadd.f32 %v5595_v63, %v5341_v0 }
 0x156   : > { %v7059_v3 = vpop.f32.mrf.mxu2  ;;  %v7061_v4 = vpop.f32.mrf.mxu3 }
 0x157   : > { %v5597_v5 = vadd.f32 %v5596_v1, %v5342_v2  ;;  %v5343_v6 = vmul.f32 %v7059_v3, %v7059_v3  ;;  %v7065_v7 = vpop.f32.mrf.mxu0  ;;  %v7067_v8 = vpop.f32.mrf.mxu1  ;;  %v5344_v10 = vmul.f32 %v7061_v4, %v7061_v4 }
 0x158   : > { %v5345_v12 = vmul.f32 %v7065_v7, %v7065_v7  ;;  %v5346_v14 = vmul.f32 %v7067_v8, %v7067_v8 }
 0x159   : > { %v5598_v9 = vadd.f32 %v5597_v5, %v5343_v6 }
 0x15b   : > { %v5599_v11 = vadd.f32 %v5598_v9, %v5344_v10 }
 0x15d   : > { %v5600_v13 = vadd.f32 %v5599_v11, %v5345_v12 }
 0x15e   : > { %v7075_v15 = vpop.f32.mrf.mxu2  ;;  %v7077_v16 = vpop.f32.mrf.mxu3 }
 0x15f   : > { %v5601_v17 = vadd.f32 %v5600_v13, %v5346_v14  ;;  %v5347_v18 = vmul.f32 %v7075_v15, %v7075_v15  ;;  %v7081_v19 = vpop.f32.mrf.mxu0  ;;  %v7083_v20 = vpop.f32.mrf.mxu1  ;;  %v5348_v22 = vmul.f32 %v7077_v16, %v7077_v16 }
 0x160   : > { %v5349_v24 = vmul.f32 %v7081_v19, %v7081_v19  ;;  %v5350_v26 = vmul.f32 %v7083_v20, %v7083_v20 }
 0x161   : > { %v5602_v21 = vadd.f32 %v5601_v17, %v5347_v18 }
 0x162   : > { %6548 = vmatmul.msk.bf16.gmra.mxu0 %vm289_vm0, %v6977_v29  ;;  %6580 = vmatmul.msk.bf16.gmra.mxu1 %vm289_vm0, %v6977_v29 }
 0x163   : > { %v5603_v23 = vadd.f32 %v5602_v21, %v5348_v22  ;;  %6612 = vmatmul.msk.bf16.gmra.mxu2 %vm289_vm0, %v6977_v29  ;;  %6644 = vmatmul.msk.bf16.gmra.mxu3 %vm289_vm0, %v6977_v29 }
 0x165   : > { %v5604_v25 = vadd.f32 %v5603_v23, %v5349_v24 }
 0x166   : > { %v7099_v27 = vpop.f32.mrf.mxu2  ;;  %v7101_v28 = vpop.f32.mrf.mxu3 }
 0x167   : > { %9109 = vst [vmem:[#allocation5_spill] sm:$0xff] %v7099_v27  ;;  %v5605_v30 = vadd.f32 %v5604_v25, %v5350_v26  ;;  %v5351_v32 = vmul.f32 %v7099_v27, %v7099_v27  ;;  %v7105_v34 = vpop.f32.mrf.mxu0  ;;  %v7107_v36 = vpop.f32.mrf.mxu1  ;;  %v5352_v29 = vmul.f32 %v7101_v28, %v7101_v28 }
 0x168   : > { %9110 = vst [vmem:[#allocation6_spill] sm:$0xff] %v7101_v28  ;;  %v5353_v42 = vmul.f32 %v7105_v34, %v7105_v34  ;;  %v5354_v46 = vmul.f32 %v7107_v36, %v7107_v36 }
 0x169   : > { %9111 = vst [vmem:[#allocation7_spill] sm:$0xff] %v7105_v34  ;;  %v5606_v38 = vadd.f32 %v5605_v30, %v5351_v32 }
 0x16a   : > { %9112 = vst [vmem:[#allocation8_spill] sm:$0xff] %v7107_v36 }
 0x16b   : > { %v5607_v41 = vadd.f32 %v5606_v38, %v5352_v29 }
 0x16d   : > { %v5608_v45 = vadd.f32 %v5607_v41, %v5353_v42 }
 0x16e   : > { %v7115_v49 = vpop.f32.mrf.mxu2  ;;  %v7117_v50 = vpop.f32.mrf.mxu3 }
 0x16f   : > { %9113 = vst [vmem:[#allocation9_spill] sm:$0xff] %v7115_v49  ;;  %v5609_v51 = vadd.f32 %v5608_v45, %v5354_v46  ;;  %v5355_v52 = vmul.f32 %v7115_v49, %v7115_v49  ;;  %v7121_v53 = vpop.f32.mrf.mxu0  ;;  %v7123_v54 = vpop.f32.mrf.mxu1  ;;  %v5356_v58 = vmul.f32 %v7117_v50, %v7117_v50 }
 0x170   : > { %9114 = vst [vmem:[#allocation10_spill] sm:$0xff] %v7117_v50  ;;  %v5357_v62 = vmul.f32 %v7121_v53, %v7121_v53  ;;  %v5358_v0 = vmul.f32 %v7123_v54, %v7123_v54 }
 0x171   : > { %9115 = vst [vmem:[#allocation11_spill] sm:$0xff] %v7121_v53  ;;  %v5610_v57 = vadd.f32 %v5609_v51, %v5355_v52 }
 0x172   : > { %9116 = vst [vmem:[#allocation12_spill] sm:$0xff] %v7123_v54  ;;  %6549 = vmatmul.msk.bf16.gmra.mxu0 %vm289_vm0, %v6983_v31  ;;  %6581 = vmatmul.msk.bf16.gmra.mxu1 %vm289_vm0, %v6983_v31 }
 0x173   : > { %v5611_v61 = vadd.f32 %v5610_v57, %v5356_v58  ;;  %6613 = vmatmul.msk.bf16.gmra.mxu2 %vm289_vm0, %v6983_v31  ;;  %6645 = vmatmul.msk.bf16.gmra.mxu3 %vm289_vm0, %v6983_v31 }
 0x175   : > { %v5612_v63 = vadd.f32 %v5611_v61, %v5357_v62 }
 0x176   : > { %v7139_v1 = vpop.f32.mrf.mxu2  ;;  %v7141_v2 = vpop.f32.mrf.mxu3 }
 0x177   : > { %9117 = vst [vmem:[#allocation13_spill] sm:$0xff] %v7139_v1  ;;  %v5613_v5 = vadd.f32 %v5612_v63, %v5358_v0  ;;  %v5359_v6 = vmul.f32 %v7139_v1, %v7139_v1  ;;  %v7145_v9 = vpop.f32.mrf.mxu0  ;;  %v7147_v10 = vpop.f32.mrf.mxu1  ;;  %v5360_v31 = vmul.f32 %v7141_v2, %v7141_v2 }
 0x178   : > { %9118 = vst [vmem:[#allocation14_spill] sm:$0xff] %v7141_v2  ;;  %v5361_v13 = vmul.f32 %v7145_v9, %v7145_v9  ;;  %v5362_v17 = vmul.f32 %v7147_v10, %v7147_v10 }
 0x179   : > { %9119 = vst [vmem:[#allocation15_spill] sm:$0xff] %v7145_v9  ;;  %v5614_v11 = vadd.f32 %v5613_v5, %v5359_v6 }
 0x17a   : > { %9120 = vst [vmem:[#allocation16_spill] sm:$0xff] %v7147_v10 }
 0x17b   : > { %v5615_v12 = vadd.f32 %v5614_v11, %v5360_v31 }
 0x17d   : > { %v5616_v14 = vadd.f32 %v5615_v12, %v5361_v13 }
 0x17e   : > { %v7155_v18 = vpop.f32.mrf.mxu2  ;;  %v7157_v21 = vpop.f32.mrf.mxu3 }
 0x17f   : > { %9121 = vst [vmem:[#allocation17_spill] sm:$0xff] %v7155_v18  ;;  %v5617_v22 = vadd.f32 %v5616_v14, %v5362_v17  ;;  %v5363_v23 = vmul.f32 %v7155_v18, %v7155_v18  ;;  %v7161_v24 = vpop.f32.mrf.mxu0  ;;  %v7163_v25 = vpop.f32.mrf.mxu1  ;;  %v5364_v30 = vmul.f32 %v7157_v21, %v7157_v21 }
 0x180   : > { %9122 = vst [vmem:[#allocation18_spill] sm:$0xff] %v7157_v21  ;;  %v5365_v38 = vmul.f32 %v7161_v24, %v7161_v24  ;;  %v5366_v41 = vmul.f32 %v7163_v25, %v7163_v25 }
 0x181   : > { %9123 = vst [vmem:[#allocation19_spill] sm:$0xff] %v7161_v24  ;;  %v5618_v26 = vadd.f32 %v5617_v22, %v5363_v23 }
 0x182   : > { %9124 = vst [vmem:[#allocation20_spill] sm:$0xff] %v7163_v25  ;;  %6550 = vmatmul.msk.bf16.gmra.mxu0 %vm289_vm0, %v6989_v33  ;;  %6582 = vmatmul.msk.bf16.gmra.mxu1 %vm289_vm0, %v6989_v33 }
 0x183   : > { %v5619_v32 = vadd.f32 %v5618_v26, %v5364_v30  ;;  %6614 = vmatmul.msk.bf16.gmra.mxu2 %vm289_vm0, %v6989_v33  ;;  %6646 = vmatmul.msk.bf16.gmra.mxu3 %vm289_vm0, %v6989_v33 }
 0x185   : > { %v5620_v29 = vadd.f32 %v5619_v32, %v5365_v38 }
 0x186   : > { %v7179_v42 = vpop.f32.mrf.mxu2  ;;  %v7181_v45 = vpop.f32.mrf.mxu3 }
 0x187   : > { %9125 = vst [vmem:[#allocation21_spill] sm:$0xff] %v7179_v42  ;;  %v5621_v46 = vadd.f32 %v5620_v29, %v5366_v41  ;;  %v5367_v51 = vmul.f32 %v7179_v42, %v7179_v42  ;;  %v7185_v52 = vpop.f32.mrf.mxu0  ;;  %v7187_v57 = vpop.f32.mrf.mxu1  ;;  %v5368_v33 = vmul.f32 %v7181_v45, %v7181_v45 }
 0x188   : > { %9126 = vst [vmem:[#allocation22_spill] sm:$0xff] %v7181_v45  ;;  %v5369_v62 = vmul.f32 %v7185_v52, %v7185_v52  ;;  %v5370_v0 = vmul.f32 %v7187_v57, %v7187_v57 }
 0x189   : > { %9127 = vst [vmem:[#allocation23_spill] sm:$0xff] %v7185_v52  ;;  %v5622_v58 = vadd.f32 %v5621_v46, %v5367_v51 }
 0x18a   : > { %9128 = vst [vmem:[#allocation24_spill] sm:$0xff] %v7187_v57 }
 0x18b   : > { %v5623_v61 = vadd.f32 %v5622_v58, %v5368_v33  ;;  %v264_v33 = vpop.trf.xlu0 }
 0x18d   : > { %v5624_v63 = vadd.f32 %v5623_v61, %v5369_v62 }
 0x18e   : > { %v7195_v5 = vpop.f32.mrf.mxu2  ;;  %v7197_v6 = vpop.f32.mrf.mxu3 }
 0x18f   : > { %9129 = vst [vmem:[#allocation25_spill] sm:$0xff] %v7195_v5  ;;  %v5625_v11 = vadd.f32 %v5624_v63, %v5370_v0  ;;  %v5371_v31 = vmul.f32 %v7195_v5, %v7195_v5  ;;  %v7201_v12 = vpop.f32.mrf.mxu0  ;;  %v7203_v13 = vpop.f32.mrf.mxu1  ;;  %v5372_v17 = vmul.f32 %v7197_v6, %v7197_v6 }
 0x190   : > { %9130 = vst [vmem:[#allocation26_spill] sm:$0xff] %v7197_v6  ;;  %v5373_v23 = vmul.f32 %v7201_v12, %v7201_v12  ;;  %v5374_v30 = vmul.f32 %v7203_v13, %v7203_v13  ;;  %v219_v6 = vld [vmem:[%s6953_s19 + $0x10] sm:$0xff] }
 0x191   : > { %9131 = vst [vmem:[#allocation27_spill] sm:$0xff] %v7201_v12  ;;  %v5626_v14 = vadd.f32 %v5625_v11, %v5371_v31  ;;  %v218_v12 = vld [vmem:[%s6953_s19 + $0x8] sm:$0xff]  ;;  %v8097_v21 = vunpack.c.l.bf16 %v219_v6 }
 0x192   : > { %9132 = vst [vmem:[#allocation28_spill] sm:$0xff] %v7203_v13  ;;  %6551 = vmatmul.msk.bf16.gmra.mxu0 %vm289_vm0, %v6995_v35  ;;  %6583 = vmatmul.msk.bf16.gmra.mxu1 %vm289_vm0, %v6995_v35  ;;  %v8093_v25 = vunpack.c.l.bf16 %v218_v12  ;;  %v8095_v24 = vunpack.c.h.bf16 %v218_v12 }
 0x193   : > { %v5627_v22 = vadd.f32 %v5626_v14, %v5372_v17  ;;  %6615 = vmatmul.msk.bf16.gmra.mxu2 %vm289_vm0, %v6995_v35  ;;  %6647 = vmatmul.msk.bf16.gmra.mxu3 %vm289_vm0, %v6995_v35 }
 0x195   : > { %v5628_v26 = vadd.f32 %v5627_v22, %v5373_v23 }
 0x196   : > { %v7219_v32 = vpop.f32.mrf.mxu2  ;;  %v7221_v38 = vpop.f32.mrf.mxu3 }
 0x197   : > { %9133 = vst [vmem:[#allocation29_spill] sm:$0xff] %v7219_v32  ;;  %v5629_v29 = vadd.f32 %v5628_v26, %v5374_v30  ;;  %v5375_v41 = vmul.f32 %v7219_v32, %v7219_v32  ;;  %v7225_v46 = vpop.f32.mrf.mxu0  ;;  %v7227_v51 = vpop.f32.mrf.mxu1  ;;  %v5376_v35 = vmul.f32 %v7221_v38, %v7221_v38 }
 0x198   : > { %9134 = vst [vmem:[#allocation30_spill] sm:$0xff] %v7221_v38  ;;  %v5377_v62 = vmul.f32 %v7225_v46, %v7225_v46  ;;  %v5378_v0 = vmul.f32 %v7227_v51, %v7227_v51 }
 0x199   : > { %9135 = vst [vmem:[#allocation31_spill] sm:$0xff] %v7225_v46  ;;  %v5630_v58 = vadd.f32 %v5629_v29, %v5375_v41  ;;  %v7251_v29 = vpop.trf.xlu0 }
 0x19a   : > { %9136 = vst [vmem:[#allocation32_spill] sm:$0xff] %v7227_v51 }
 0x19b   : > { %v5631_v61 = vadd.f32 %v5630_v58, %v5376_v35 }
 0x19d   : > { %v5632_v63 = vadd.f32 %v5631_v61, %v5377_v62 }
 0x19e   : > { %v7235_v11 = vpop.f32.mrf.mxu2  ;;  %v7237_v31 = vpop.f32.mrf.mxu3 }
 0x19f   : > { %9137 = vst [vmem:[#allocation33_spill] sm:$0xff] %v7235_v11  ;;  %v5633_v14 = vadd.f32 %v5632_v63, %v5378_v0  ;;  %v5379_v17 = vmul.f32 %v7235_v11, %v7235_v11  ;;  %v7241_v22 = vpop.f32.mrf.mxu0  ;;  %v7243_v23 = vpop.f32.mrf.mxu1  ;;  %v5380_v30 = vmul.f32 %v7237_v31, %v7237_v31 }
 0x1a0   : > { %9138 = vst [vmem:[#allocation34_spill] sm:$0xff] %v7237_v31  ;;  %v5381_v58 = vmul.f32 %v7241_v22, %v7241_v22  ;;  %v5382_v61 = vmul.f32 %v7243_v23, %v7243_v23 }
 0x1a1   : > { %9139 = vst [vmem:[#allocation35_spill] sm:$0xff] %v7241_v22  ;;  %v5634_v26 = vadd.f32 %v5633_v14, %v5379_v17 }
 0x1a2   : > { %9140 = vst [vmem:[#allocation36_spill] sm:$0xff] %v7243_v23  ;;  %6552 = vmatmul.msk.bf16.gmra.mxu0 %vm289_vm0, %v7001_v37  ;;  %6584 = vmatmul.msk.bf16.gmra.mxu1 %vm289_vm0, %v7001_v37 }
 0x1a3   : > { %v5635_v41 = vadd.f32 %v5634_v26, %v5380_v30  ;;  %6616 = vmatmul.msk.bf16.gmra.mxu2 %vm289_vm0, %v7001_v37  ;;  %6648 = vmatmul.msk.bf16.gmra.mxu3 %vm289_vm0, %v7001_v37 }
 0x1a5   : > { %v5636_v35 = vadd.f32 %v5635_v41, %v5381_v58  ;;  %v7273_v41 = vpop.trf.xlu0 }
 0x1a6   : > { %v7261_v62 = vpop.f32.mrf.mxu2  ;;  %v7263_v63 = vpop.f32.mrf.mxu3 }
 0x1a7   : > { %9141 = vst [vmem:[#allocation37_spill] sm:$0xff] %v7261_v62  ;;  %v5637_v0 = vadd.f32 %v5636_v35, %v5382_v61  ;;  %v5383_v14 = vmul.f32 %v7261_v62, %v7261_v62  ;;  %v7267_v17 = vpop.f32.mrf.mxu0  ;;  %v7269_v26 = vpop.f32.mrf.mxu1  ;;  %v5384_v37 = vmul.f32 %v7263_v63, %v7263_v63 }
 0x1a8   : > { %9142 = vst [vmem:[#allocation38_spill] sm:$0xff] %v7263_v63  ;;  %v5385_v23 = vmul.f32 %v7267_v17, %v7267_v17  ;;  %v5386_v35 = vmul.f32 %v7269_v26, %v7269_v26 }
 0x1a9   : > { %9143 = vst [vmem:[#allocation39_spill] sm:$0xff] %v7267_v17  ;;  %v5638_v30 = vadd.f32 %v5637_v0, %v5383_v14 }
 0x1aa   : > { %9144 = vst [vmem:[#allocation40_spill] sm:$0xff] %v7269_v26 }
 0x1ab   : > { %v5639_v58 = vadd.f32 %v5638_v30, %v5384_v37 }
 0x1ad   : > { %v5640_v22 = vadd.f32 %v5639_v58, %v5385_v23  ;;  %v7293_v23 = vpop.trf.xlu0 }
 0x1ae   : > { %v7279_v61 = vpop.f32.mrf.mxu2  ;;  %v7281_v62 = vpop.f32.mrf.mxu3 }
 0x1af   : > { %9145 = vst [vmem:[#allocation41_spill] sm:$0xff] %v7279_v61  ;;  %v5641_v31 = vadd.f32 %v5640_v22, %v5386_v35  ;;  %v5387_v0 = vmul.f32 %v7279_v61, %v7279_v61  ;;  %v7285_v14 = vpop.f32.mrf.mxu0  ;;  %v7287_v63 = vpop.f32.mrf.mxu1  ;;  %v5388_v37 = vmul.f32 %v7281_v62, %v7281_v62 }
 0x1b0   : > { %9146 = vst [vmem:[#allocation42_spill] sm:$0xff] %v7281_v62  ;;  %v5389_v22 = vmul.f32 %v7285_v14, %v7285_v14 }
 0x1b1   : > { %9147 = vst [vmem:[#allocation43_spill] sm:$0xff] %v7285_v14  ;;  %v5642_v30 = vadd.f32 %v5641_v31, %v5387_v0  ;;  %v5390_v31 = vmul.f32 %v7287_v63, %v7287_v63 }
 0x1b2   : > { %9148 = vst [vmem:[#allocation44_spill] sm:$0xff] %v7287_v63  ;;  %6553 = vmatmul.msk.bf16.gmra.mxu0 %vm289_vm0, %v264_v33  ;;  %6585 = vmatmul.msk.bf16.gmra.mxu1 %vm289_vm0, %v264_v33 }
 0x1b3   : > { %v5643_v58 = vadd.f32 %v5642_v30, %v5388_v37  ;;  %6617 = vmatmul.msk.bf16.gmra.mxu2 %vm289_vm0, %v264_v33  ;;  %6649 = vmatmul.msk.bf16.gmra.mxu3 %vm289_vm0, %v264_v33 }
 0x1b5   : > { %v5644_v35 = vadd.f32 %v5643_v58, %v5389_v22  ;;  %v7313_v58 = vpop.trf.xlu0 }
 0x1b6   : > { %v7301_v0 = vpop.f32.mrf.mxu2  ;;  %v7303_v62 = vpop.f32.mrf.mxu3 }
 0x1b7   : > { %9149 = vst [vmem:[#allocation45_spill] sm:$0xff] %v7301_v0  ;;  %v5645_v61 = vadd.f32 %v5644_v35, %v5390_v31  ;;  %v5391_v26 = vmul.f32 %v7301_v0, %v7301_v0  ;;  %v7307_v30 = vpop.f32.mrf.mxu0  ;;  %v7309_v37 = vpop.f32.mrf.mxu1  ;;  %v5392_v33 = vmul.f32 %v7303_v62, %v7303_v62 }
 0x1b8   : > { %9150 = vst [vmem:[#allocation46_spill] sm:$0xff] %v7303_v62  ;;  %v5393_v63 = vmul.f32 %v7307_v30, %v7307_v30  ;;  %v5394_v35 = vmul.f32 %v7309_v37, %v7309_v37 }
 0x1b9   : > { %9151 = vst [vmem:[#allocation47_spill] sm:$0xff] %v7307_v30  ;;  %v5646_v14 = vadd.f32 %v5645_v61, %v5391_v26 }
 0x1ba   : > { %9152 = vst [vmem:[#allocation48_spill] sm:$0xff] %v7309_v37 }
 0x1bb   : > { %v5647_v22 = vadd.f32 %v5646_v14, %v5392_v33 }
 0x1bd   : > { %v5648_v17 = vadd.f32 %v5647_v22, %v5393_v63 }
 0x1be   : > { %v7319_v31 = vpop.f32.mrf.mxu2  ;;  %v7321_v0 = vpop.f32.mrf.mxu3 }
 0x1bf   : > { %9153 = vst [vmem:[#allocation49_spill] sm:$0xff] %v7319_v31  ;;  %v5649_v11 = vadd.f32 %v5648_v17, %v5394_v35  ;;  %v5395_v26 = vmul.f32 %v7319_v31, %v7319_v31  ;;  %v7325_v61 = vpop.f32.mrf.mxu0  ;;  %v7327_v62 = vpop.f32.mrf.mxu1  ;;  %v5396_v33 = vmul.f32 %v7321_v0, %v7321_v0 }
 0x1c0   : > { %9154 = vst [vmem:[#allocation50_spill] sm:$0xff] %v7321_v0  ;;  %v5397_v17 = vmul.f32 %v7325_v61, %v7325_v61  ;;  %v5398_v35 = vmul.f32 %v7327_v62, %v7327_v62 }
 0x1c1   : > { %9155 = vst [vmem:[#allocation51_spill] sm:$0xff] %v7325_v61  ;;  %v5650_v14 = vadd.f32 %v5649_v11, %v5395_v26  ;;  %v277_v11 = vpop.trf.xlu0 }
 0x1c2   : > { %9156 = vst [vmem:[#allocation52_spill] sm:$0xff] %v7327_v62  ;;  %6554 = vmatmul.msk.bf16.gmra.mxu0 %vm289_vm0, %v7251_v29  ;;  %6586 = vmatmul.msk.bf16.gmra.mxu1 %vm289_vm0, %v7251_v29 }
 0x1c3   : > { %v5651_v63 = vadd.f32 %v5650_v14, %v5396_v33  ;;  %6618 = vmatmul.msk.bf16.gmra.mxu2 %vm289_vm0, %v7251_v29  ;;  %6650 = vmatmul.msk.bf16.gmra.mxu3 %vm289_vm0, %v7251_v29 }
 0x1c5   : > { %v5652_v22 = vadd.f32 %v5651_v63, %v5397_v17 }
 0x1c6   : > { %v7343_v26 = vpop.f32.mrf.mxu2  ;;  %v7345_v0 = vpop.f32.mrf.mxu3 }
 0x1c7   : > { %9157 = vst [vmem:[#allocation53_spill] sm:$0xff] %v7343_v26  ;;  %v5653_v31 = vadd.f32 %v5652_v22, %v5398_v35  ;;  %v5399_v14 = vmul.f32 %v7343_v26, %v7343_v26  ;;  %v7349_v33 = vpop.f32.mrf.mxu0  ;;  %v7351_v61 = vpop.f32.mrf.mxu1  ;;  %v5400_v29 = vmul.f32 %v7345_v0, %v7345_v0 }
 0x1c8   : > { %9158 = vst [vmem:[#allocation54_spill] sm:$0xff] %v7345_v0  ;;  %v5401_v17 = vmul.f32 %v7349_v33, %v7349_v33  ;;  %v5402_v30 = vmul.f32 %v7351_v61, %v7351_v61 }
 0x1c9   : > { %9159 = vst [vmem:[#allocation55_spill] sm:$0xff] %v7349_v33  ;;  %v5654_v37 = vadd.f32 %v5653_v31, %v5399_v14  ;;  %v7359_v22 = vpop.trf.xlu0 }
 0x1ca   : > { %9160 = vst [vmem:[#allocation56_spill] sm:$0xff] %v7351_v61 }
 0x1cb   : > { %v5655_v63 = vadd.f32 %v5654_v37, %v5400_v29 }
 0x1cd   : > { %v5656_v62 = vadd.f32 %v5655_v63, %v5401_v17 }
 0x1ce   : > { %v7361_v35 = vpop.f32.mrf.mxu2  ;;  %v7363_v26 = vpop.f32.mrf.mxu3 }
 0x1cf   : > { %9161 = vst [vmem:[#allocation57_spill] sm:$0xff] %v7361_v35  ;;  %v5657_v51 = vadd.f32 %v5656_v62, %v5402_v30  ;;  %v5403_v31 = vmul.f32 %v7361_v35, %v7361_v35  ;;  %v7367_v14 = vpop.f32.mrf.mxu0  ;;  %v7369_v37 = vpop.f32.mrf.mxu1  ;;  %v5404_v63 = vmul.f32 %v7363_v26, %v7363_v26 }
 0x1d0   : > { %9162 = vst [vmem:[#allocation58_spill] sm:$0xff] %v7363_v26  ;;  %v5405_v62 = vmul.f32 %v7367_v14, %v7367_v14  ;;  %v5406_v30 = vmul.f32 %v7369_v37, %v7369_v37 }
 0x1d1   : > { %9163 = vst [vmem:[#allocation59_spill] sm:$0xff] %v7367_v14  ;;  %v5658_v29 = vadd.f32 %v5657_v51, %v5403_v31 }
 0x1d2   : > { %9164 = vst [vmem:[#allocation60_spill] sm:$0xff] %v7369_v37  ;;  %6555 = vmatmul.msk.bf16.gmra.mxu0 %vm289_vm0, %v7293_v23  ;;  %6587 = vmatmul.msk.bf16.gmra.mxu1 %vm289_vm0, %v7293_v23 }
 0x1d3   : > { %v5659_v17 = vadd.f32 %v5658_v29, %v5404_v63  ;;  %6619 = vmatmul.msk.bf16.gmra.mxu2 %vm289_vm0, %v7293_v23  ;;  %6651 = vmatmul.msk.bf16.gmra.mxu3 %vm289_vm0, %v7293_v23 }
 0x1d5   : > { %v5660_v51 = vadd.f32 %v5659_v17, %v5405_v62  ;;  %v279_v17 = vpop.trf.xlu0 }
 0x1d6   : > { %v7385_v31 = vpop.f32.mrf.mxu2  ;;  %v7387_v26 = vpop.f32.mrf.mxu3 }
 0x1d7   : > { %9165 = vst [vmem:[#allocation61_spill] sm:$0xff] %v7385_v31  ;;  %v5661_v35 = vadd.f32 %v5660_v51, %v5406_v30  ;;  %v5407_v29 = vmul.f32 %v7385_v31, %v7385_v31  ;;  %v7391_v63 = vpop.f32.mrf.mxu0  ;;  %v7393_v14 = vpop.f32.mrf.mxu1  ;;  %v5408_v23 = vmul.f32 %v7387_v26, %v7387_v26 }
 0x1d8   : > { %9166 = vst [vmem:[#allocation62_spill] sm:$0xff] %v7387_v26  ;;  %v5409_v37 = vmul.f32 %v7391_v63, %v7391_v63  ;;  %v5410_v51 = vmul.f32 %v7393_v14, %v7393_v14 }
 0x1d9   : > { %9167 = vst [vmem:[#allocation63_spill] sm:$0xff] %v7391_v63  ;;  %v5662_v61 = vadd.f32 %v5661_v35, %v5407_v29 }
 0x1da   : > { %9168 = vst [vmem:[#allocation64_spill] sm:$0xff] %v7393_v14 }
 0x1db   : > { %v5663_v62 = vadd.f32 %v5662_v61, %v5408_v23 }
 0x1dd   : > { %v5664_v33 = vadd.f32 %v5663_v62, %v5409_v37 }
 0x1de   : > { %v7401_v30 = vpop.f32.mrf.mxu2  ;;  %v7403_v31 = vpop.f32.mrf.mxu3 }
 0x1df   : > { %9169 = vst [vmem:[#allocation65_spill] sm:$0xff] %v7401_v30  ;;  %v5665_v0 = vadd.f32 %v5664_v33, %v5410_v51  ;;  %v5411_v35 = vmul.f32 %v7401_v30, %v7401_v30  ;;  %v7407_v29 = vpop.f32.mrf.mxu0  ;;  %v7409_v26 = vpop.f32.mrf.mxu1  ;;  %v5412_v23 = vmul.f32 %v7403_v31, %v7403_v31 }
 0x1e0   : > { %9170 = vst [vmem:[#allocation66_spill] sm:$0xff] %v7403_v31  ;;  %v5413_v62 = vmul.f32 %v7407_v29, %v7407_v29  ;;  %v7419_v33 = vpop.trf.xlu0 }
 0x1e1   : > { %9171 = vst [vmem:[#allocation67_spill] sm:$0xff] %v7407_v29  ;;  %v5666_v61 = vadd.f32 %v5665_v0, %v5411_v35  ;;  %v5414_v0 = vmul.f32 %v7409_v26, %v7409_v26 }
 0x1e2   : > { %9172 = vst [vmem:[#allocation68_spill] sm:$0xff] %v7409_v26  ;;  %6556 = vmatmul.msk.bf16.gmra.mxu0 %vm289_vm0, %v277_v11  ;;  %6588 = vmatmul.msk.bf16.gmra.mxu1 %vm289_vm0, %v277_v11 }
 0x1e3   : > { %v5667_v37 = vadd.f32 %v5666_v61, %v5412_v23  ;;  %6620 = vmatmul.msk.bf16.gmra.mxu2 %vm289_vm0, %v277_v11  ;;  %6652 = vmatmul.msk.bf16.gmra.mxu3 %vm289_vm0, %v277_v11 }
 0x1e5   : > { %v5668_v51 = vadd.f32 %v5667_v37, %v5413_v62 }
 0x1e6   : > { %v7423_v35 = vpop.f32.mrf.mxu2  ;;  %v7425_v31 = vpop.f32.mrf.mxu3 }
 0x1e7   : > { %9173 = vst [vmem:[#allocation69_spill] sm:$0xff] %v7423_v35  ;;  %v5669_v30 = vadd.f32 %v5668_v51, %v5414_v0  ;;  %v5415_v61 = vmul.f32 %v7423_v35, %v7423_v35  ;;  %v7429_v23 = vpop.f32.mrf.mxu0  ;;  %v7431_v29 = vpop.f32.mrf.mxu1  ;;  %v5416_v11 = vmul.f32 %v7425_v31, %v7425_v31 }
 0x1e8   : > { %9174 = vst [vmem:[#allocation70_spill] sm:$0xff] %v7425_v31  ;;  %v5417_v62 = vmul.f32 %v7429_v23, %v7429_v23  ;;  %v5418_v63 = vmul.f32 %v7431_v29, %v7431_v29  ;;  %v281_v51 = vpop.trf.xlu0 }
 0x1e9   : > { %9175 = vst [vmem:[#allocation71_spill] sm:$0xff] %v7429_v23  ;;  %v5670_v14 = vadd.f32 %v5669_v30, %v5415_v61 }
 0x1ea   : > { %9176 = vst [vmem:[#allocation72_spill] sm:$0xff] %v7431_v29 }
 0x1eb   : > { %v5671_v37 = vadd.f32 %v5670_v14, %v5416_v11 }
 0x1ed   : > { %v5672_v26 = vadd.f32 %v5671_v37, %v5417_v62 }
 0x1ee   : > { %v7439_v0 = vpop.f32.mrf.mxu2  ;;  %v7441_v35 = vpop.f32.mrf.mxu3 }
 0x1ef   : > { %9177 = vst [vmem:[#allocation73_spill] sm:$0xff] %v7439_v0  ;;  %v5673_v46 = vadd.f32 %v5672_v26, %v5418_v63  ;;  %v5419_v30 = vmul.f32 %v7439_v0, %v7439_v0  ;;  %v7445_v61 = vpop.f32.mrf.mxu0  ;;  %v7447_v31 = vpop.f32.mrf.mxu1  ;;  %v5420_v11 = vmul.f32 %v7441_v35, %v7441_v35 }
 0x1f0   : > { %9178 = vst [vmem:[#allocation74_spill] sm:$0xff] %v7441_v35  ;;  %v5421_v62 = vmul.f32 %v7445_v61, %v7445_v61  ;;  %v5422_v63 = vmul.f32 %v7447_v31, %v7447_v31 }
 0x1f1   : > { %9179 = vst [vmem:[#allocation75_spill] sm:$0xff] %v7445_v61  ;;  %v5674_v14 = vadd.f32 %v5673_v46, %v5419_v30 }
 0x1f2   : > { %9180 = vst [vmem:[#allocation76_spill] sm:$0xff] %v7447_v31  ;;  %6557 = vmatmul.msk.bf16.gmra.mxu0 %vm289_vm0, %v279_v17  ;;  %6589 = vmatmul.msk.bf16.gmra.mxu1 %vm289_vm0, %v279_v17 }
 0x1f3   : > { %v5675_v37 = vadd.f32 %v5674_v14, %v5420_v11  ;;  %6621 = vmatmul.msk.bf16.gmra.mxu2 %vm289_vm0, %v279_v17  ;;  %6653 = vmatmul.msk.bf16.gmra.mxu3 %vm289_vm0, %v279_v17 }
 0x1f5   : > { %v5676_v26 = vadd.f32 %v5675_v37, %v5421_v62  ;;  %v7471_v37 = vpop.trf.xlu0 }
 0x1f6   : > { %v7459_v46 = vpop.f32.mrf.mxu2  ;;  %v7461_v30 = vpop.f32.mrf.mxu3 }
 0x1f7   : > { %9181 = vst [vmem:[#allocation77_spill] sm:$0xff] %v7459_v46  ;;  %v5677_v35 = vadd.f32 %v5676_v26, %v5422_v63  ;;  %v5423_v0 = vmul.f32 %v7459_v46, %v7459_v46  ;;  %v7465_v14 = vpop.f32.mrf.mxu0  ;;  %v7467_v11 = vpop.f32.mrf.mxu1  ;;  %v5424_v17 = vmul.f32 %v7461_v30, %v7461_v30 }
 0x1f8   : > { %9182 = vst [vmem:[#allocation78_spill] sm:$0xff] %v7461_v30  ;;  %v5425_v31 = vmul.f32 %v7465_v14, %v7465_v14  ;;  %v5426_v26 = vmul.f32 %v7467_v11, %v7467_v11 }
 0x1f9   : > { %9183 = vst [vmem:[#allocation79_spill] sm:$0xff] %v7465_v14  ;;  %v5678_v61 = vadd.f32 %v5677_v35, %v5423_v0 }
 0x1fa   : > { %9184 = vst [vmem:[#allocation80_spill] sm:$0xff] %v7467_v11 }
 0x1fb   : > { %v5679_v62 = vadd.f32 %v5678_v61, %v5424_v17 }
 0x1fd   : > { %v5680_v29 = vadd.f32 %v5679_v62, %v5425_v31 }
 0x1fe   : > { %v7477_v63 = vpop.f32.mrf.mxu2  ;;  %v7479_v46 = vpop.f32.mrf.mxu3 }
 0x1ff   : > { %9185 = vst [vmem:[#allocation81_spill] sm:$0xff] %v7477_v63  ;;  %v5681_v23 = vadd.f32 %v5680_v29, %v5426_v26  ;;  %v5427_v35 = vmul.f32 %v7477_v63, %v7477_v63  ;;  %v7483_v0 = vpop.f32.mrf.mxu0  ;;  %v7485_v30 = vpop.f32.mrf.mxu1  ;;  %v5428_v17 = vmul.f32 %v7479_v46, %v7479_v46 }
 0x200   : > { %9186 = vst [vmem:[#allocation82_spill] sm:$0xff] %v7479_v46  ;;  %v5429_v62 = vmul.f32 %v7483_v0, %v7483_v0  ;;  %v283_v29 = vpop.trf.xlu0 }
 0x201   : > { %9187 = vst [vmem:[#allocation83_spill] sm:$0xff] %v7483_v0  ;;  %v5682_v61 = vadd.f32 %v5681_v23, %v5427_v35  ;;  %v5430_v23 = vmul.f32 %v7485_v30, %v7485_v30 }
 0x202   : > { %9188 = vst [vmem:[#allocation84_spill] sm:$0xff] %v7485_v30  ;;  %6558 = vmatmul.msk.bf16.gmra.mxu0 %vm289_vm0, %v281_v51  ;;  %6590 = vmatmul.msk.bf16.gmra.mxu1 %vm289_vm0, %v281_v51 }
 0x203   : > { %v5683_v31 = vadd.f32 %v5682_v61, %v5428_v17  ;;  %6622 = vmatmul.msk.bf16.gmra.mxu2 %vm289_vm0, %v281_v51  ;;  %6654 = vmatmul.msk.bf16.gmra.mxu3 %vm289_vm0, %v281_v51 }
 0x205   : > { %v5684_v26 = vadd.f32 %v5683_v31, %v5429_v62 }
 0x206   : > { %v7497_v35 = vpop.f32.mrf.mxu2  ;;  %v7499_v46 = vpop.f32.mrf.mxu3 }
 0x207   : > { %9189 = vst [vmem:[#allocation85_spill] sm:$0xff] %v7497_v35  ;;  %v5685_v63 = vadd.f32 %v5684_v26, %v5430_v23  ;;  %v5431_v61 = vmul.f32 %v7497_v35, %v7497_v35  ;;  %v7503_v17 = vpop.f32.mrf.mxu0  ;;  %v7505_v0 = vpop.f32.mrf.mxu1  ;;  %v5432_v51 = vmul.f32 %v7499_v46, %v7499_v46 }
 0x208   : > { %9190 = vst [vmem:[#allocation86_spill] sm:$0xff] %v7499_v46  ;;  %v5433_v62 = vmul.f32 %v7503_v17, %v7503_v17  ;;  %v5434_v14 = vmul.f32 %v7505_v0, %v7505_v0  ;;  %v7513_v26 = vpop.trf.xlu0 }
 0x209   : > { %9191 = vst [vmem:[#allocation87_spill] sm:$0xff] %v7503_v17  ;;  %v5686_v11 = vadd.f32 %v5685_v63, %v5431_v61 }
 0x20a   : > { %9192 = vst [vmem:[#allocation88_spill] sm:$0xff] %v7505_v0 }
 0x20b   : > { %v5687_v31 = vadd.f32 %v5686_v11, %v5432_v51 }
 0x20d   : > { %v5688_v30 = vadd.f32 %v5687_v31, %v5433_v62 }
 0x20e   : > { %v7515_v23 = vpop.f32.mrf.mxu2  ;;  %v7517_v35 = vpop.f32.mrf.mxu3 }
 0x20f   : > { %9193 = vst [vmem:[#allocation89_spill] sm:$0xff] %v7515_v23  ;;  %v5689_v38 = vadd.f32 %v5688_v30, %v5434_v14  ;;  %v5435_v63 = vmul.f32 %v7515_v23, %v7515_v23  ;;  %v7521_v61 = vpop.f32.mrf.mxu0  ;;  %v7523_v11 = vpop.f32.mrf.mxu1  ;;  %v5436_v31 = vmul.f32 %v7517_v35, %v7517_v35 }
 0x210   : > { %9194 = vst [vmem:[#allocation90_spill] sm:$0xff] %v7517_v35  ;;  %v5437_v0 = vmul.f32 %v7521_v61, %v7521_v61  ;;  %v5438_v14 = vmul.f32 %v7523_v11, %v7523_v11 }
 0x211   : > { %9195 = vst [vmem:[#allocation91_spill] sm:$0xff] %v7521_v61  ;;  %v5690_v51 = vadd.f32 %v5689_v38, %v5435_v63 }
 0x212   : > { %9196 = vst [vmem:[#allocation92_spill] sm:$0xff] %v7523_v11  ;;  %6559 = vmatmul.msk.bf16.gmra.mxu0 %vm289_vm0, %v283_v29  ;;  %6591 = vmatmul.msk.bf16.gmra.mxu1 %vm289_vm0, %v283_v29 }
 0x213   : > { %v5691_v62 = vadd.f32 %v5690_v51, %v5436_v31  ;;  %6623 = vmatmul.msk.bf16.gmra.mxu2 %vm289_vm0, %v283_v29  ;;  %6655 = vmatmul.msk.bf16.gmra.mxu3 %vm289_vm0, %v283_v29 }
 0x215   : > { %v5692_v30 = vadd.f32 %v5691_v62, %v5437_v0  ;;  %v285_v0 = vpop.trf.xlu0 }
 0x216   : > { %v7535_v38 = vpop.f32.mrf.mxu2  ;;  %v7537_v63 = vpop.f32.mrf.mxu3 }
 0x217   : > { %9197 = vst [vmem:[#allocation93_spill] sm:$0xff] %v7535_v38  ;;  %v5693_v35 = vadd.f32 %v5692_v30, %v5438_v14  ;;  %v5439_v23 = vmul.f32 %v7535_v38, %v7535_v38  ;;  %v7541_v51 = vpop.f32.mrf.mxu0  ;;  %v7543_v31 = vpop.f32.mrf.mxu1  ;;  %v5440_v29 = vmul.f32 %v7537_v63, %v7537_v63 }
 0x218   : > { %9198 = vst [vmem:[#allocation94_spill] sm:$0xff] %v7537_v63  ;;  %v5441_v11 = vmul.f32 %v7541_v51, %v7541_v51  ;;  %v5442_v30 = vmul.f32 %v7543_v31, %v7543_v31 }
 0x219   : > { %9199 = vst [vmem:[#allocation95_spill] sm:$0xff] %v7541_v51  ;;  %v5694_v61 = vadd.f32 %v5693_v35, %v5439_v23 }
 0x21a   : > { %9200 = vst [vmem:[#allocation96_spill] sm:$0xff] %v7543_v31 }
 0x21b   : > { %v5695_v62 = vadd.f32 %v5694_v61, %v5440_v29 }
 0x21d   : > { %v5696_v17 = vadd.f32 %v5695_v62, %v5441_v11 }
 0x21e   : > { %v7551_v14 = vpop.f32.mrf.mxu2  ;;  %v7553_v38 = vpop.f32.mrf.mxu3 }
 0x21f   : > { %9201 = vst [vmem:[#allocation97_spill] sm:$0xff] %v7551_v14  ;;  %v5697_v46 = vadd.f32 %v5696_v17, %v5442_v30  ;;  %v5443_v35 = vmul.f32 %v7551_v14, %v7551_v14  ;;  %v7557_v23 = vpop.f32.mrf.mxu0  ;;  %v7559_v63 = vpop.f32.mrf.mxu1  ;;  %v5444_v29 = vmul.f32 %v7553_v38, %v7553_v38 }
 0x220   : > { %9202 = vst [vmem:[#allocation98_spill] sm:$0xff] %v7553_v38  ;;  %v5445_v62 = vmul.f32 %v7557_v23, %v7557_v23  ;;  %v7569_v17 = vpop.trf.xlu0 }
 0x221   : > { %9203 = vst [vmem:[#allocation99_spill] sm:$0xff] %v7557_v23  ;;  %v5698_v61 = vadd.f32 %v5697_v46, %v5443_v35  ;;  %v5446_v46 = vmul.f32 %v7559_v63, %v7559_v63 }
 0x222   : > { %9204 = vst [vmem:[#allocation100_spill] sm:$0xff] %v7559_v63  ;;  %6560 = vmatmul.msk.bf16.gmra.mxu0 %vm289_vm0, %v285_v0  ;;  %6592 = vmatmul.msk.bf16.gmra.mxu1 %vm289_vm0, %v285_v0 }
 0x223   : > { %v5699_v11 = vadd.f32 %v5698_v61, %v5444_v29  ;;  %6624 = vmatmul.msk.bf16.gmra.mxu2 %vm289_vm0, %v285_v0  ;;  %6656 = vmatmul.msk.bf16.gmra.mxu3 %vm289_vm0, %v285_v0 }
 0x225   : > { %v5700_v30 = vadd.f32 %v5699_v11, %v5445_v62 }
 0x226   : > { %v7573_v35 = vpop.f32.mrf.mxu2  ;;  %v7575_v38 = vpop.f32.mrf.mxu3 }
 0x227   : > { %9205 = vst [vmem:[#allocation101_spill] sm:$0xff] %v7573_v35  ;;  %v5701_v14 = vadd.f32 %v5700_v30, %v5446_v46  ;;  %v5447_v61 = vmul.f32 %v7573_v35, %v7573_v35  ;;  %v7579_v29 = vpop.f32.mrf.mxu0  ;;  %v7581_v23 = vpop.f32.mrf.mxu1  ;;  %v5448_v0 = vmul.f32 %v7575_v38, %v7575_v38 }
 0x228   : > { %9206 = vst [vmem:[#allocation102_spill] sm:$0xff] %v7575_v38  ;;  %v5449_v62 = vmul.f32 %v7579_v29, %v7579_v29  ;;  %v5450_v51 = vmul.f32 %v7581_v23, %v7581_v23  ;;  %v287_v30 = vpop.trf.xlu0 }
 0x229   : > { %9207 = vst [vmem:[#allocation103_spill] sm:$0xff] %v7579_v29  ;;  %v5702_v31 = vadd.f32 %v5701_v14, %v5447_v61 }
 0x22a   : > { %9208 = vst [vmem:[#allocation104_spill] sm:$0xff] %v7581_v23 }
 0x22b   : > { %v5703_v11 = vadd.f32 %v5702_v31, %v5448_v0 }
 0x22d   : > { %v5704_v63 = vadd.f32 %v5703_v11, %v5449_v62 }
 0x22e   : > { %v7589_v46 = vpop.f32.mrf.mxu2  ;;  %v7591_v35 = vpop.f32.mrf.mxu3 }
 0x22f   : > { %9209 = vst [vmem:[#allocation105_spill] sm:$0xff] %v7589_v46  ;;  %v5705_v32 = vadd.f32 %v5704_v63, %v5450_v51  ;;  %v5451_v14 = vmul.f32 %v7589_v46, %v7589_v46  ;;  %v7595_v61 = vpop.f32.mrf.mxu0  ;;  %v7597_v38 = vpop.f32.mrf.mxu1  ;;  %v5452_v0 = vmul.f32 %v7591_v35, %v7591_v35 }
 0x230   : > { %9210 = vst [vmem:[#allocation106_spill] sm:$0xff] %v7591_v35  ;;  %v5453_v62 = vmul.f32 %v7595_v61, %v7595_v61  ;;  %v5454_v51 = vmul.f32 %v7597_v38, %v7597_v38 }
 0x231   : > { %9211 = vst [vmem:[#allocation107_spill] sm:$0xff] %v7595_v61  ;;  %v5706_v31 = vadd.f32 %v5705_v32, %v5451_v14 }
 0x232   : > { %9212 = vst [vmem:[#allocation108_spill] sm:$0xff] %v7597_v38  ;;  %6561 = vmatmul.msk.bf16.gmra.mxu0 %vm289_vm0, %v287_v30  ;;  %6593 = vmatmul.msk.bf16.gmra.mxu1 %vm289_vm0, %v287_v30 }
 0x233   : > { %v5707_v11 = vadd.f32 %v5706_v31, %v5452_v0  ;;  %6625 = vmatmul.msk.bf16.gmra.mxu2 %vm289_vm0, %v287_v30  ;;  %6657 = vmatmul.msk.bf16.gmra.mxu3 %vm289_vm0, %v287_v30 }
 0x235   : > { %v5708_v63 = vadd.f32 %v5707_v11, %v5453_v62 }
 0x236   : > { %v7609_v32 = vpop.f32.mrf.mxu2  ;;  %v7611_v14 = vpop.f32.mrf.mxu3 }
 0x237   : > { %9213 = vst [vmem:[#allocation109_spill] sm:$0xff] %v7609_v32  ;;  %v5709_v35 = vadd.f32 %v5708_v63, %v5454_v51  ;;  %v5455_v46 = vmul.f32 %v7609_v32, %v7609_v32  ;;  %v7615_v31 = vpop.f32.mrf.mxu0  ;;  %v7617_v0 = vpop.f32.mrf.mxu1  ;;  %v5456_v30 = vmul.f32 %v7611_v14, %v7611_v14 }
 0x238   : > { %9214 = vst [vmem:[#allocation110_spill] sm:$0xff] %v7611_v14  ;;  %v5457_v62 = vmul.f32 %v7615_v31, %v7615_v31  ;;  %v5458_v23 = vmul.f32 %v7617_v0, %v7617_v0 }
 0x239   : > { %9215 = vst [vmem:[#allocation111_spill] sm:$0xff] %v7615_v31  ;;  %v5710_v61 = vadd.f32 %v5709_v35, %v5455_v46 }
 0x23a   : > { %9216 = vst [vmem:[#allocation112_spill] sm:$0xff] %v7617_v0 }
 0x23b   : > { %v5711_v11 = vadd.f32 %v5710_v61, %v5456_v30 }
 0x23d   : > { %v5712_v38 = vadd.f32 %v5711_v11, %v5457_v62 }
 0x23e   : > { %v7625_v63 = vpop.f32.mrf.mxu2  ;;  %v7627_v51 = vpop.f32.mrf.mxu3 }
 0x23f   : > { %9217 = vst [vmem:[#allocation113_spill] sm:$0xff] %v7625_v63  ;;  %v5713_v32 = vadd.f32 %v5712_v38, %v5458_v23  ;;  %v5459_v29 = vmul.f32 %v7625_v63, %v7625_v63  ;;  %v7631_v35 = vpop.f32.mrf.mxu0  ;;  %v7633_v46 = vpop.f32.mrf.mxu1  ;;  %v5460_v30 = vmul.f32 %v7627_v51, %v7627_v51 }
 0x240   : > { %9218 = vst [vmem:[#allocation114_spill] sm:$0xff] %v7627_v51  ;;  %v5461_v38 = vmul.f32 %v7631_v35, %v7631_v35 }
 0x241   : > { %9219 = vst [vmem:[#allocation115_spill] sm:$0xff] %v7631_v35  ;;  %v5714_v61 = vadd.f32 %v5713_v32, %v5459_v29  ;;  %v5462_v29 = vmul.f32 %v7633_v46, %v7633_v46 }
 0x242   : > { %9220 = vst [vmem:[#allocation116_spill] sm:$0xff] %v7633_v46  ;;  %6562 = vmatmul.msk.bf16.gmra.mxu0 %vm289_vm0, %v7273_v41  ;;  %6594 = vmatmul.msk.bf16.gmra.mxu1 %vm289_vm0, %v7273_v41 }
 0x243   : > { %v5715_v11 = vadd.f32 %v5714_v61, %v5460_v30  ;;  %6626 = vmatmul.msk.bf16.gmra.mxu2 %vm289_vm0, %v7273_v41  ;;  %6658 = vmatmul.msk.bf16.gmra.mxu3 %vm289_vm0, %v7273_v41 }
 0x245   : > { %v5716_v23 = vadd.f32 %v5715_v11, %v5461_v38 }
 0x246   : > { %v7649_v32 = vpop.f32.mrf.mxu2  ;;  %v7651_v62 = vpop.f32.mrf.mxu3 }
 0x247   : > { %9221 = vst [vmem:[#allocation117_spill] sm:$0xff] %v7649_v32  ;;  %v5717_v51 = vadd.f32 %v5716_v23, %v5462_v29  ;;  %v5463_v61 = vmul.f32 %v7649_v32, %v7649_v32  ;;  %v7655_v30 = vpop.f32.mrf.mxu0  ;;  %v7657_v35 = vpop.f32.mrf.mxu1  ;;  %v5464_v41 = vmul.f32 %v7651_v62, %v7651_v62 }
 0x248   : > { %9222 = vst [vmem:[#allocation118_spill] sm:$0xff] %v7651_v62  ;;  %v5465_v38 = vmul.f32 %v7655_v30, %v7655_v30  ;;  %v5466_v0 = vmul.f32 %v7657_v35, %v7657_v35 }
 0x249   : > { %9223 = vst [vmem:[#allocation119_spill] sm:$0xff] %v7655_v30  ;;  %v5718_v63 = vadd.f32 %v5717_v51, %v5463_v61 }
 0x24a   : > { %9224 = vst [vmem:[#allocation120_spill] sm:$0xff] %v7657_v35 }
 0x24b   : > { %v5719_v11 = vadd.f32 %v5718_v63, %v5464_v41 }
 0x24d   : > { %v5720_v46 = vadd.f32 %v5719_v11, %v5465_v38 }
 0x24e   : > { %v7665_v23 = vpop.f32.mrf.mxu2  ;;  %v7667_v29 = vpop.f32.mrf.mxu3 }
 0x24f   : > { %9225 = vst [vmem:[#allocation121_spill] sm:$0xff] %v7665_v23  ;;  %v5721_v32 = vadd.f32 %v5720_v46, %v5466_v0  ;;  %v5467_v31 = vmul.f32 %v7665_v23, %v7665_v23  ;;  %v7671_v51 = vpop.f32.mrf.mxu0  ;;  %v7673_v61 = vpop.f32.mrf.mxu1  ;;  %v5468_v41 = vmul.f32 %v7667_v29, %v7667_v29 }
 0x250   : > { %9226 = vst [vmem:[#allocation122_spill] sm:$0xff] %v7667_v29  ;;  %v5469_v0 = vmul.f32 %v7671_v51, %v7671_v51  ;;  %v5470_v46 = vmul.f32 %v7673_v61, %v7673_v61 }
 0x251   : > { %9227 = vst [vmem:[#allocation123_spill] sm:$0xff] %v7671_v51  ;;  %v5722_v63 = vadd.f32 %v5721_v32, %v5467_v31 }
 0x252   : > { %9228 = vst [vmem:[#allocation124_spill] sm:$0xff] %v7673_v61  ;;  %6563 = vmatmul.msk.bf16.gmra.mxu0 %vm289_vm0, %v7313_v58  ;;  %6595 = vmatmul.msk.bf16.gmra.mxu1 %vm289_vm0, %v7313_v58 }
 0x253   : > { %v5723_v11 = vadd.f32 %v5722_v63, %v5468_v41  ;;  %6627 = vmatmul.msk.bf16.gmra.mxu2 %vm289_vm0, %v7313_v58  ;;  %6659 = vmatmul.msk.bf16.gmra.mxu3 %vm289_vm0, %v7313_v58 }
 0x255   : > { %v5724_v31 = vadd.f32 %v5723_v11, %v5469_v0 }
 0x256   : > { %v7689_v32 = vpop.f32.mrf.mxu2  ;;  %v7691_v38 = vpop.f32.mrf.mxu3 }
 0x257   : > { %9229 = vst [vmem:[#allocation125_spill] sm:$0xff] %v7689_v32  ;;  %v5725_v29 = vadd.f32 %v5724_v31, %v5470_v46  ;;  %v5471_v63 = vmul.f32 %v7689_v32, %v7689_v32  ;;  %v7695_v41 = vpop.f32.mrf.mxu0  ;;  %v7697_v51 = vpop.f32.mrf.mxu1  ;;  %v5472_v58 = vmul.f32 %v7691_v38, %v7691_v38 }
 0x258   : > { %9230 = vst [vmem:[#allocation126_spill] sm:$0xff] %v7691_v38  ;;  %v5473_v0 = vmul.f32 %v7695_v41, %v7695_v41  ;;  %v5474_v35 = vmul.f32 %v7697_v51, %v7697_v51 }
 0x259   : > { %9231 = vst [vmem:[#allocation127_spill] sm:$0xff] %v7695_v41  ;;  %v5726_v23 = vadd.f32 %v5725_v29, %v5471_v63 }
 0x25a   : > { %9232 = vst [vmem:[#allocation128_spill] sm:$0xff] %v7697_v51 }
 0x25b   : > { %v5727_v11 = vadd.f32 %v5726_v23, %v5472_v58 }
 0x25d   : > { %v5728_v61 = vadd.f32 %v5727_v11, %v5473_v0 }
 0x25e   : > { %v7705_v31 = vpop.f32.mrf.mxu2  ;;  %v7707_v46 = vpop.f32.mrf.mxu3 }
 0x25f   : > { %9233 = vst [vmem:[#allocation129_spill] sm:$0xff] %v7705_v31  ;;  %v5729_v32 = vadd.f32 %v5728_v61, %v5474_v35  ;;  %v5475_v30 = vmul.f32 %v7705_v31, %v7705_v31  ;;  %v7711_v29 = vpop.f32.mrf.mxu0  ;;  %v7713_v63 = vpop.f32.mrf.mxu1  ;;  %v5476_v58 = vmul.f32 %v7707_v46, %v7707_v46 }
 0x260   : > { %9234 = vst [vmem:[#allocation130_spill] sm:$0xff] %v7707_v46  ;;  %v5477_v35 = vmul.f32 %v7711_v29, %v7711_v29  ;;  %v5478_v61 = vmul.f32 %v7713_v63, %v7713_v63 }
 0x261   : > { %9235 = vst [vmem:[#allocation131_spill] sm:$0xff] %v7711_v29  ;;  %v5730_v23 = vadd.f32 %v5729_v32, %v5475_v30 }
 0x262   : > { %9236 = vst [vmem:[#allocation132_spill] sm:$0xff] %v7713_v63  ;;  %6564 = vmatmul.msk.bf16.gmra.mxu0 %vm289_vm0, %v7359_v22  ;;  %6596 = vmatmul.msk.bf16.gmra.mxu1 %vm289_vm0, %v7359_v22 }
 0x263   : > { %v5731_v11 = vadd.f32 %v5730_v23, %v5476_v58  ;;  %6628 = vmatmul.msk.bf16.gmra.mxu2 %vm289_vm0, %v7359_v22  ;;  %6660 = vmatmul.msk.bf16.gmra.mxu3 %vm289_vm0, %v7359_v22 }
 0x265   : > { %v5732_v30 = vadd.f32 %v5731_v11, %v5477_v35 }
 0x266   : > { %v7729_v32 = vpop.f32.mrf.mxu2  ;;  %v7731_v0 = vpop.f32.mrf.mxu3 }
 0x267   : > { %9237 = vst [vmem:[#allocation133_spill] sm:$0xff] %v7729_v32  ;;  %v5733_v46 = vadd.f32 %v5732_v30, %v5478_v61  ;;  %v5479_v23 = vmul.f32 %v7729_v32, %v7729_v32  ;;  %v7735_v58 = vpop.f32.mrf.mxu0  ;;  %v7737_v29 = vpop.f32.mrf.mxu1  ;;  %v5480_v22 = vmul.f32 %v7731_v0, %v7731_v0 }
 0x268   : > { %9238 = vst [vmem:[#allocation134_spill] sm:$0xff] %v7731_v0  ;;  %v5481_v35 = vmul.f32 %v7735_v58, %v7735_v58  ;;  %v5482_v51 = vmul.f32 %v7737_v29, %v7737_v29 }
 0x269   : > { %9239 = vst [vmem:[#allocation135_spill] sm:$0xff] %v7735_v58  ;;  %v5734_v31 = vadd.f32 %v5733_v46, %v5479_v23 }
 0x26a   : > { %9240 = vst [vmem:[#allocation136_spill] sm:$0xff] %v7737_v29 }
 0x26b   : > { %v5735_v11 = vadd.f32 %v5734_v31, %v5480_v22 }
 0x26d   : > { %v5736_v63 = vadd.f32 %v5735_v11, %v5481_v35 }
 0x26e   : > { %v7745_v30 = vpop.f32.mrf.mxu2  ;;  %v7747_v61 = vpop.f32.mrf.mxu3 }
 0x26f   : > { %9241 = vst [vmem:[#allocation137_spill] sm:$0xff] %v7745_v30  ;;  %v5737_v32 = vadd.f32 %v5736_v63, %v5482_v51  ;;  %v5483_v41 = vmul.f32 %v7745_v30, %v7745_v30  ;;  %v7751_v46 = vpop.f32.mrf.mxu0  ;;  %v7753_v23 = vpop.f32.mrf.mxu1  ;;  %v5484_v22 = vmul.f32 %v7747_v61, %v7747_v61 }
 0x270   : > { %9242 = vst [vmem:[#allocation138_spill] sm:$0xff] %v7747_v61  ;;  %v5485_v51 = vmul.f32 %v7751_v46, %v7751_v46  ;;  %v5486_v63 = vmul.f32 %v7753_v23, %v7753_v23 }
 0x271   : > { %9243 = vst [vmem:[#allocation139_spill] sm:$0xff] %v7751_v46  ;;  %v5738_v31 = vadd.f32 %v5737_v32, %v5483_v41 }
 0x272   : > { %9244 = vst [vmem:[#allocation140_spill] sm:$0xff] %v7753_v23  ;;  %6565 = vmatmul.msk.bf16.gmra.mxu0 %vm289_vm0, %v7419_v33  ;;  %6597 = vmatmul.msk.bf16.gmra.mxu1 %vm289_vm0, %v7419_v33 }
 0x273   : > { %v5739_v11 = vadd.f32 %v5738_v31, %v5484_v22  ;;  %6629 = vmatmul.msk.bf16.gmra.mxu2 %vm289_vm0, %v7419_v33  ;;  %6661 = vmatmul.msk.bf16.gmra.mxu3 %vm289_vm0, %v7419_v33 }
 0x275   : > { %v5740_v41 = vadd.f32 %v5739_v11, %v5485_v51 }
 0x276   : > { %v7769_v32 = vpop.f32.mrf.mxu2  ;;  %v7771_v35 = vpop.f32.mrf.mxu3 }
 0x277   : > { %9245 = vst [vmem:[#allocation141_spill] sm:$0xff] %v7769_v32  ;;  %v5741_v61 = vadd.f32 %v5740_v41, %v5486_v63  ;;  %v5487_v31 = vmul.f32 %v7769_v32, %v7769_v32  ;;  %v7775_v22 = vpop.f32.mrf.mxu0  ;;  %v7777_v46 = vpop.f32.mrf.mxu1  ;;  %v5488_v33 = vmul.f32 %v7771_v35, %v7771_v35 }
 0x278   : > { %9246 = vst [vmem:[#allocation142_spill] sm:$0xff] %v7771_v35  ;;  %v5489_v51 = vmul.f32 %v7775_v22, %v7775_v22  ;;  %v5490_v29 = vmul.f32 %v7777_v46, %v7777_v46 }
 0x279   : > { %9247 = vst [vmem:[#allocation143_spill] sm:$0xff] %v7775_v22  ;;  %v5742_v30 = vadd.f32 %v5741_v61, %v5487_v31 }
 0x27a   : > { %9248 = vst [vmem:[#allocation144_spill] sm:$0xff] %v7777_v46 }
 0x27b   : > { %v5743_v11 = vadd.f32 %v5742_v30, %v5488_v33 }
 0x27d   : > { %v5744_v23 = vadd.f32 %v5743_v11, %v5489_v51 }
 0x27e   : > { %v7785_v41 = vpop.f32.mrf.mxu2  ;;  %v7787_v63 = vpop.f32.mrf.mxu3 }
 0x27f   : > { %9249 = vst [vmem:[#allocation145_spill] sm:$0xff] %v7785_v41  ;;  %v5745_v32 = vadd.f32 %v5744_v23, %v5490_v29  ;;  %v5491_v58 = vmul.f32 %v7785_v41, %v7785_v41  ;;  %v7791_v61 = vpop.f32.mrf.mxu0  ;;  %v7793_v31 = vpop.f32.mrf.mxu1  ;;  %v5492_v33 = vmul.f32 %v7787_v63, %v7787_v63 }
 0x280   : > { %9250 = vst [vmem:[#allocation146_spill] sm:$0xff] %v7787_v63  ;;  %v5493_v29 = vmul.f32 %v7791_v61, %v7791_v61  ;;  %v5494_v23 = vmul.f32 %v7793_v31, %v7793_v31 }
 0x281   : > { %9251 = vst [vmem:[#allocation147_spill] sm:$0xff] %v7791_v61  ;;  %v5746_v30 = vadd.f32 %v5745_v32, %v5491_v58 }
 0x282   : > { %9252 = vst [vmem:[#allocation148_spill] sm:$0xff] %v7793_v31  ;;  %6566 = vmatmul.msk.bf16.gmra.mxu0 %vm289_vm0, %v7471_v37  ;;  %6598 = vmatmul.msk.bf16.gmra.mxu1 %vm289_vm0, %v7471_v37 }
 0x283   : > { %v5747_v11 = vadd.f32 %v5746_v30, %v5492_v33  ;;  %6630 = vmatmul.msk.bf16.gmra.mxu2 %vm289_vm0, %v7471_v37  ;;  %6662 = vmatmul.msk.bf16.gmra.mxu3 %vm289_vm0, %v7471_v37 }
 0x285   : > { %v5748_v58 = vadd.f32 %v5747_v11, %v5493_v29 }
 0x286   : > { %v7809_v32 = vpop.f32.mrf.mxu2  ;;  %v7811_v51 = vpop.f32.mrf.mxu3 }
 0x287   : > { %9253 = vst [vmem:[#allocation149_spill] sm:$0xff] %v7809_v32  ;;  %v5749_v63 = vadd.f32 %v5748_v58, %v5494_v23  ;;  %v5495_v30 = vmul.f32 %v7809_v32, %v7809_v32  ;;  %v7815_v33 = vpop.f32.mrf.mxu0  ;;  %v7817_v61 = vpop.f32.mrf.mxu1  ;;  %v5496_v37 = vmul.f32 %v7811_v51, %v7811_v51 }
 0x288   : > { %9254 = vst [vmem:[#allocation150_spill] sm:$0xff] %v7811_v51  ;;  %v5497_v29 = vmul.f32 %v7815_v33, %v7815_v33  ;;  %v5498_v46 = vmul.f32 %v7817_v61, %v7817_v61 }
 0x289   : > { %9255 = vst [vmem:[#allocation151_spill] sm:$0xff] %v7815_v33  ;;  %v5750_v41 = vadd.f32 %v5749_v63, %v5495_v30 }
 0x28a   : > { %9256 = vst [vmem:[#allocation152_spill] sm:$0xff] %v7817_v61 }
 0x28b   : > { %v5751_v11 = vadd.f32 %v5750_v41, %v5496_v37 }
 0x28d   : > { %v5752_v31 = vadd.f32 %v5751_v11, %v5497_v29 }
 0x28e   : > { %v7825_v58 = vpop.f32.mrf.mxu2  ;;  %v7827_v23 = vpop.f32.mrf.mxu3 }
 0x28f   : > { %9257 = vst [vmem:[#allocation153_spill] sm:$0xff] %v7825_v58  ;;  %v5753_v32 = vadd.f32 %v5752_v31, %v5498_v46  ;;  %v5499_v22 = vmul.f32 %v7825_v58, %v7825_v58  ;;  %v7831_v63 = vpop.f32.mrf.mxu0  ;;  %v7833_v30 = vpop.f32.mrf.mxu1  ;;  %v5500_v37 = vmul.f32 %v7827_v23, %v7827_v23 }
 0x290   : > { %9258 = vst [vmem:[#allocation154_spill] sm:$0xff] %v7827_v23  ;;  %v5501_v46 = vmul.f32 %v7831_v63, %v7831_v63  ;;  %v5502_v31 = vmul.f32 %v7833_v30, %v7833_v30 }
 0x291   : > { %9259 = vst [vmem:[#allocation155_spill] sm:$0xff] %v7831_v63  ;;  %v5754_v41 = vadd.f32 %v5753_v32, %v5499_v22 }
 0x292   : > { %9260 = vst [vmem:[#allocation156_spill] sm:$0xff] %v7833_v30  ;;  %6567 = vmatmul.msk.bf16.gmra.mxu0 %vm289_vm0, %v7513_v26  ;;  %6599 = vmatmul.msk.bf16.gmra.mxu1 %vm289_vm0, %v7513_v26 }
 0x293   : > { %v5755_v11 = vadd.f32 %v5754_v41, %v5500_v37  ;;  %6631 = vmatmul.msk.bf16.gmra.mxu2 %vm289_vm0, %v7513_v26  ;;  %6663 = vmatmul.msk.bf16.gmra.mxu3 %vm289_vm0, %v7513_v26 }
 0x295   : > { %v5756_v22 = vadd.f32 %v5755_v11, %v5501_v46 }
 0x296   : > { %v7849_v32 = vpop.f32.mrf.mxu2  ;;  %v7851_v29 = vpop.f32.mrf.mxu3 }
 0x297   : > { %9261 = vst [vmem:[#allocation157_spill] sm:$0xff] %v7849_v32  ;;  %v5757_v23 = vadd.f32 %v5756_v22, %v5502_v31  ;;  %v5503_v41 = vmul.f32 %v7849_v32, %v7849_v32  ;;  %v7855_v37 = vpop.f32.mrf.mxu0  ;;  %v7857_v63 = vpop.f32.mrf.mxu1  ;;  %v5504_v26 = vmul.f32 %v7851_v29, %v7851_v29 }
 0x298   : > { %9262 = vst [vmem:[#allocation158_spill] sm:$0xff] %v7851_v29  ;;  %v5505_v46 = vmul.f32 %v7855_v37, %v7855_v37  ;;  %v5506_v61 = vmul.f32 %v7857_v63, %v7857_v63 }
 0x299   : > { %9263 = vst [vmem:[#allocation159_spill] sm:$0xff] %v7855_v37  ;;  %v5758_v58 = vadd.f32 %v5757_v23, %v5503_v41 }
 0x29a   : > { %9264 = vst [vmem:[#allocation160_spill] sm:$0xff] %v7857_v63 }
 0x29b   : > { %v5759_v11 = vadd.f32 %v5758_v58, %v5504_v26 }
 0x29d   : > { %v5760_v30 = vadd.f32 %v5759_v11, %v5505_v46  ;;  %v7881_v11 = vpop.trf.xlu1 }
 0x29e   : > { %v7865_v22 = vpop.f32.mrf.mxu2  ;;  %v7867_v31 = vpop.f32.mrf.mxu3 }
 0x29f   : > { %9265 = vst [vmem:[#allocation161_spill] sm:$0xff] %v7865_v22  ;;  %v5761_v32 = vadd.f32 %v5760_v30, %v5506_v61  ;;  %v5507_v33 = vmul.f32 %v7865_v22, %v7865_v22  ;;  %v7871_v23 = vpop.f32.mrf.mxu0  ;;  %v7873_v41 = vpop.f32.mrf.mxu1  ;;  %v5508_v26 = vmul.f32 %v7867_v31, %v7867_v31 }
 0x2a0   : > { %9266 = vst [vmem:[#allocation162_spill] sm:$0xff] %v7867_v31  ;;  %v5509_v30 = vmul.f32 %v7871_v23, %v7871_v23 }
 0x2a1   : > { %9267 = vst [vmem:[#allocation163_spill] sm:$0xff] %v7871_v23  ;;  %v5762_v58 = vadd.f32 %v5761_v32, %v5507_v33  ;;  %v5510_v32 = vmul.f32 %v7873_v41, %v7873_v41 }
 0x2a2   : > { %9268 = vst [vmem:[#allocation164_spill] sm:$0xff] %v7873_v41  ;;  %6568 = vmatmul.msk.bf16.gmra.mxu0 %vm289_vm0, %v7569_v17  ;;  %6600 = vmatmul.msk.bf16.gmra.mxu1 %vm289_vm0, %v7569_v17 }
 0x2a3   : > { %v5763_v61 = vadd.f32 %v5762_v58, %v5508_v26  ;;  %6632 = vmatmul.msk.bf16.gmra.mxu2 %vm289_vm0, %v7569_v17  ;;  %6664 = vmatmul.msk.bf16.gmra.mxu3 %vm289_vm0, %v7569_v17 }
 0x2a5   : > { %v5764_v33 = vadd.f32 %v5763_v61, %v5509_v30  ;;  %v7903_v61 = vpop.trf.xlu1 }
 0x2a6   : > { %v7891_v46 = vpop.f32.mrf.mxu2  ;;  %v7893_v31 = vpop.f32.mrf.mxu3 }
 0x2a7   : > { %9269 = vst [vmem:[#allocation165_spill] sm:$0xff] %v7891_v46  ;;  %v5765_v22 = vadd.f32 %v5764_v33, %v5510_v32  ;;  %v5511_v58 = vmul.f32 %v7891_v46, %v7891_v46  ;;  %v7897_v26 = vpop.f32.mrf.mxu0  ;;  %v7899_v23 = vpop.f32.mrf.mxu1  ;;  %v5512_v17 = vmul.f32 %v7893_v31, %v7893_v31 }
 0x2a8   : > { %9270 = vst [vmem:[#allocation166_spill] sm:$0xff] %v7893_v31  ;;  %v5513_v41 = vmul.f32 %v7897_v26, %v7897_v26  ;;  %v5514_v33 = vmul.f32 %v7899_v23, %v7899_v23  ;;  %v288_v32 = vpop.trf.xlu0 }
 0x2a9   : > { %9271 = vst [vmem:[#allocation167_spill] sm:$0xff] %v7897_v26  ;;  %v5766_v63 = vadd.f32 %v5765_v22, %v5511_v58 }
 0x2aa   : > { %9272 = vst [vmem:[#allocation168_spill] sm:$0xff] %v7899_v23 }
 0x2ab   : > { %v5767_v30 = vadd.f32 %v5766_v63, %v5512_v17 }
 0x2ad   : > { %v5768_v37 = vadd.f32 %v5767_v30, %v5513_v41  ;;  %v7923_v17 = vpop.trf.xlu1 }
 0x2ae   : > { %v7909_v46 = vpop.f32.mrf.mxu2  ;;  %v7911_v29 = vpop.f32.mrf.mxu3 }
 0x2af   : > { %9273 = vst [vmem:[#allocation169_spill] sm:$0xff] %v7909_v46  ;;  %v5769_v51 = vadd.f32 %v5768_v37, %v5514_v33  ;;  %v5515_v22 = vmul.f32 %v7909_v46, %v7909_v46  ;;  %v7915_v58 = vpop.f32.mrf.mxu0  ;;  %v7917_v31 = vpop.f32.mrf.mxu1  ;;  %v5516_v41 = vmul.f32 %v7911_v29, %v7911_v29 }
 0x2b0   : > { %9274 = vst [vmem:[#allocation170_spill] sm:$0xff] %v7911_v29  ;;  %v5517_v37 = vmul.f32 %v7915_v58, %v7915_v58 }
 0x2b1   : > { %9275 = vst [vmem:[#allocation171_spill] sm:$0xff] %v7915_v58  ;;  %v5770_v63 = vadd.f32 %v5769_v51, %v5515_v22  ;;  %v5518_v51 = vmul.f32 %v7917_v31, %v7917_v31 }
 0x2b2   : > { %9276 = vst [vmem:[#allocation172_spill] sm:$0xff] %v7917_v31  ;;  %6569 = vmatmul.msk.bf16.gmra.mxu0 %vm289_vm0, %v288_v32  ;;  %6601 = vmatmul.msk.bf16.gmra.mxu1 %vm289_vm0, %v288_v32 }
 0x2b3   : > { %v5771_v30 = vadd.f32 %v5770_v63, %v5516_v41  ;;  %6633 = vmatmul.msk.bf16.gmra.mxu2 %vm289_vm0, %v288_v32  ;;  %6665 = vmatmul.msk.bf16.gmra.mxu3 %vm289_vm0, %v288_v32 }
 0x2b5   : > { %v5772_v33 = vadd.f32 %v5771_v30, %v5517_v37  ;;  %v7943_v30 = vpop.trf.xlu1 }
 0x2b6   : > { %v7931_v22 = vpop.f32.mrf.mxu2  ;;  %v7933_v29 = vpop.f32.mrf.mxu3 }
 0x2b7   : > { %9277 = vst [vmem:[#allocation173_spill] sm:$0xff] %v7931_v22  ;;  %v5773_v46 = vadd.f32 %v5772_v33, %v5518_v51  ;;  %v5519_v23 = vmul.f32 %v7931_v22, %v7931_v22  ;;  %v7937_v63 = vpop.f32.mrf.mxu0  ;;  %v7939_v41 = vpop.f32.mrf.mxu1  ;;  %v5520_v32 = vmul.f32 %v7933_v29, %v7933_v29 }
 0x2b8   : > { %9278 = vst [vmem:[#allocation174_spill] sm:$0xff] %v7933_v29  ;;  %v5521_v31 = vmul.f32 %v7937_v63, %v7937_v63  ;;  %v5522_v33 = vmul.f32 %v7939_v41, %v7939_v41 }
 0x2b9   : > { %9279 = vst [vmem:[#allocation175_spill] sm:$0xff] %v7937_v63  ;;  %v5774_v58 = vadd.f32 %v5773_v46, %v5519_v23 }
 0x2ba   : > { %9280 = vst [vmem:[#allocation176_spill] sm:$0xff] %v7939_v41 }
 0x2bb   : > { %v5775_v37 = vadd.f32 %v5774_v58, %v5520_v32 }
 0x2bd   : > { %v5776_v26 = vadd.f32 %v5775_v37, %v5521_v31 }
 0x2be   : > { %v7949_v51 = vpop.f32.mrf.mxu2  ;;  %v7951_v22 = vpop.f32.mrf.mxu3 }
 0x2bf   : > { %9281 = vst [vmem:[#allocation177_spill] sm:$0xff] %v7949_v51  ;;  %v5777_v35 = vadd.f32 %v5776_v26, %v5522_v33  ;;  %v5523_v23 = vmul.f32 %v7949_v51, %v7949_v51  ;;  %v7955_v46 = vpop.f32.mrf.mxu0  ;;  %v7957_v29 = vpop.f32.mrf.mxu1  ;;  %v5524_v32 = vmul.f32 %v7951_v22, %v7951_v22 }
 0x2c0   : > { %9282 = vst [vmem:[#allocation178_spill] sm:$0xff] %v7951_v22  ;;  %v5525_v26 = vmul.f32 %v7955_v46, %v7955_v46  ;;  %v5526_v33 = vmul.f32 %v7957_v29, %v7957_v29 }
 0x2c1   : > { %9283 = vst [vmem:[#allocation179_spill] sm:$0xff] %v7955_v46  ;;  %v5778_v58 = vadd.f32 %v5777_v35, %v5523_v23  ;;  %v1094_v35 = vpop.trf.xlu1 }
 0x2c2   : > { %9284 = vst [vmem:[#allocation180_spill] sm:$0xff] %v7957_v29  ;;  %6682 = vmatmul.msk.bf16.vlgmr.msrb.gmra.mxu0 %vm289_vm0, %v7881_v11  ;;  %6714 = vmatmul.msk.bf16.vlgmr.msrb.gmra.mxu1 %vm289_vm0, %v7881_v11 }
 0x2c3   : > { %v5779_v31 = vadd.f32 %v5778_v58, %v5524_v32  ;;  %6746 = vmatmul.msk.bf16.vlgmr.msrb.gmra.mxu2 %vm289_vm0, %v7881_v11  ;;  %6778 = vmatmul.msk.bf16.vlgmr.msrb.gmra.mxu3 %vm289_vm0, %v7881_v11 }
 0x2c5   : > { %v5780_v37 = vadd.f32 %v5779_v31, %v5525_v26 }
 0x2c6   : > { %v7973_v23 = vpop.f32.mrf.mxu2  ;;  %v7975_v22 = vpop.f32.mrf.mxu3 }
 0x2c7   : > { %9285 = vst [vmem:[#allocation181_spill] sm:$0xff] %v7973_v23  ;;  %v5781_v51 = vadd.f32 %v5780_v37, %v5526_v33  ;;  %v5527_v58 = vmul.f32 %v7973_v23, %v7973_v23  ;;  %v7979_v32 = vpop.f32.mrf.mxu0  ;;  %v7981_v46 = vpop.f32.mrf.mxu1  ;;  %v5528_v11 = vmul.f32 %v7975_v22, %v7975_v22 }
 0x2c8   : > { %9286 = vst [vmem:[#allocation182_spill] sm:$0xff] %v7975_v22  ;;  %v5529_v26 = vmul.f32 %v7979_v32, %v7979_v32  ;;  %v5530_v63 = vmul.f32 %v7981_v46, %v7981_v46 }
 0x2c9   : > { %9287 = vst [vmem:[#allocation183_spill] sm:$0xff] %v7979_v32  ;;  %v5782_v41 = vadd.f32 %v5781_v51, %v5527_v58  ;;  %v7989_v37 = vpop.trf.xlu1 }
 0x2ca   : > { %9288 = vst [vmem:[#allocation184_spill] sm:$0xff] %v7981_v46 }
 0x2cb   : > { %v5783_v31 = vadd.f32 %v5782_v41, %v5528_v11 }
 0x2cd   : > { %v5784_v29 = vadd.f32 %v5783_v31, %v5529_v26 }
 0x2ce   : > { %v7991_v33 = vpop.f32.mrf.mxu2  ;;  %v7993_v23 = vpop.f32.mrf.mxu3 }
 0x2cf   : > { %9289 = vst [vmem:[#allocation185_spill] sm:$0xff] %v7991_v33  ;;  %v5785_v0 = vadd.f32 %v5784_v29, %v5530_v63  ;;  %v5531_v51 = vmul.f32 %v7991_v33, %v7991_v33  ;;  %v7997_v58 = vpop.f32.mrf.mxu0  ;;  %v7999_v41 = vpop.f32.mrf.mxu1  ;;  %v5532_v31 = vmul.f32 %v7993_v23, %v7993_v23 }
 0x2d0   : > { %9290 = vst [vmem:[#allocation186_spill] sm:$0xff] %v7993_v23  ;;  %v5533_v29 = vmul.f32 %v7997_v58, %v7997_v58  ;;  %v5534_v63 = vmul.f32 %v7999_v41, %v7999_v41 }
 0x2d1   : > { %9291 = vst [vmem:[#allocation187_spill] sm:$0xff] %v7997_v58  ;;  %v5786_v11 = vadd.f32 %v5785_v0, %v5531_v51 }
 0x2d2   : > { %9292 = vst [vmem:[#allocation188_spill] sm:$0xff] %v7999_v41  ;;  %6683 = vmatmul.msk.bf16.gmra.mxu0 %vm289_vm0, %v7923_v17  ;;  %6715 = vmatmul.msk.bf16.gmra.mxu1 %vm289_vm0, %v7923_v17 }
 0x2d3   : > { %v5787_v26 = vadd.f32 %v5786_v11, %v5532_v31  ;;  %6747 = vmatmul.msk.bf16.gmra.mxu2 %vm289_vm0, %v7923_v17  ;;  %6779 = vmatmul.msk.bf16.gmra.mxu3 %vm289_vm0, %v7923_v17 }
 0x2d5   : > { %v5788_v0 = vadd.f32 %v5787_v26, %v5533_v29  ;;  %v8027_v26 = vpop.trf.xlu1 }
 0x2d6   : > { %v8015_v51 = vpop.f32.mrf.mxu2  ;;  %v8017_v23 = vpop.f32.mrf.mxu3 }
 0x2d7   : > { %9293 = vst [vmem:[#allocation189_spill] sm:$0xff] %v8015_v51  ;;  %v5789_v33 = vadd.f32 %v5788_v0, %v5534_v63  ;;  %v5535_v11 = vmul.f32 %v8015_v51, %v8015_v51  ;;  %v8021_v31 = vpop.f32.mrf.mxu0  ;;  %v8023_v58 = vpop.f32.mrf.mxu1  ;;  %v5536_v17 = vmul.f32 %v8017_v23, %v8017_v23 }
 0x2d8   : > { %9294 = vst [vmem:[#allocation190_spill] sm:$0xff] %v8017_v23  ;;  %v5537_v41 = vmul.f32 %v8021_v31, %v8021_v31  ;;  %v5538_v0 = vmul.f32 %v8023_v58, %v8023_v58 }
 0x2d9   : > { %9295 = vst [vmem:[#allocation191_spill] sm:$0xff] %v8021_v31  ;;  %v5790_v46 = vadd.f32 %v5789_v33, %v5535_v11 }
 0x2da   : > { %9296 = vst [vmem:[#allocation192_spill] sm:$0xff] %v8023_v58  ;;  %v215_v58 = vld [vmem:[%s6940_s16 + $0x10] sm:$0xff] }
 0x2db   : > { %v5791_v29 = vadd.f32 %v5790_v46, %v5536_v17 }
 0x2dd   : > { %v5792_v32 = vadd.f32 %v5791_v29, %v5537_v41 }
 0x2de   : > { %v8033_v63 = vpop.f32.mrf.mxu2  ;;  %v8035_v51 = vpop.f32.mrf.mxu3 }
 0x2df   : > { %9297 = vst [vmem:[#allocation193_spill] sm:$0xff] %v8033_v63  ;;  %v5793_v22 = vadd.f32 %v5792_v32, %v5538_v0  ;;  %v5539_v33 = vmul.f32 %v8033_v63, %v8033_v63  ;;  %v8039_v11 = vpop.f32.mrf.mxu0  ;;  %v8041_v46 = vpop.f32.mrf.mxu1  ;;  %v5540_v41 = vmul.f32 %v8035_v51, %v8035_v51  ;;  %v214_v63 = vld [vmem:[%s6940_s16 + $0x8] sm:$0xff] }
 0x2e0   : > { %9298 = vst [vmem:[#allocation194_spill] sm:$0xff] %v8035_v51  ;;  %v5541_v29 = vmul.f32 %v8039_v11, %v8039_v11  ;;  %v8051_v0 = vpop.trf.xlu1  ;;  %v213_v51 = vld [vmem:[%s6940_s16] sm:$0xff]  ;;  %v8066_v38 = vunpack.c.h.bf16 %v214_v63 }
 0x2e1   : > { %9299 = vst [vmem:[#allocation195_spill] sm:$0xff] %v8039_v11  ;;  %v5794_v17 = vadd.f32 %v5793_v22, %v5539_v33  ;;  %v5542_v33 = vmul.f32 %v8041_v46, %v8041_v46  ;;  %v217_v11 = vld [vmem:[%s6953_s19] sm:$0xff]  ;;  %v1903_v23 = vunpack.c.h.bf16 %v213_v51  ;;  %v1902_v57 = vunpack.c.l.bf16 %v213_v51 }
 0x2e2   : > { %9300 = vst [vmem:[#allocation196_spill] sm:$0xff] %v8041_v46  ;;  %6684 = vmatmul.msk.bf16.gmra.mxu0 %vm289_vm0, %v1094_v35  ;;  %6716 = vmatmul.msk.bf16.gmra.mxu1 %vm289_vm0, %v1094_v35  ;;  %v8091_v42 = vunpack.c.h.bf16 %v217_v11  ;;  %v1921_v12 = vmul.f32 %v8095_v24, %v8066_v38 }
 0x2e3   : > { %v5795_v32 = vadd.f32 %v5794_v17, %v5540_v41  ;;  %6748 = vmatmul.msk.bf16.gmra.mxu2 %vm289_vm0, %v1094_v35  ;;  %6780 = vmatmul.msk.bf16.gmra.mxu3 %vm289_vm0, %v1094_v35  ;;  %9301 = vst [vmem:[#allocation197_spill] sm:$0xff] %v8051_v0  ;;  %v216_v41 = vld [vmem:[%s6940_s16 + $0x18] sm:$0xff]  ;;  %v8064_v35 = vunpack.c.l.bf16 %v214_v63  ;;  %s211_s16 = scalar_lea.vmem %s8888_s2, %s6521_s8 }
 0x2e4   : > { %v8080_v5 = vunpack.c.l.bf16 %v216_v41  ;;  %v8087_v45 = vunpack.c.h.bf16 %v216_v41 }
 0x2e5   : > { %v5796_v22 = vadd.f32 %v5795_v32, %v5541_v29  ;;  %v8068_v32 = vunpack.c.h.bf16 %v215_v58 }
 0x2e6   : > { %v8058_v31 = vpop.f32.mrf.mxu2  ;;  %v8060_v17 = vpop.f32.mrf.mxu3 }
 0x2e7   : > { %9302 = vst [vmem:[#allocation198_spill] sm:$0xff] %v8058_v31  ;;  %v5797_v29 = vadd.f32 %v5796_v22, %v5542_v33  ;;  %v5543_v46 = vmul.f32 %v8058_v31, %v8058_v31  ;;  %v5544_v62 = vmul.f32 %v8060_v17, %v8060_v17  ;;  %v8074_v14 = vpop.f32.mrf.mxu0  ;;  %v8076_v13 = vpop.f32.mrf.mxu1  ;;  %v220_v33 = vld [vmem:[%s6953_s19 + $0x18] sm:$0xff]  ;;  %v1906_v31 = vunpack.c.l.bf16 %v215_v58 }
 0x2e8   : > { %9303 = vst [vmem:[#allocation199_spill] sm:$0xff] %v8060_v17  ;;  %v5545_v63 = vmul.f32 %v8074_v14, %v8074_v14  ;;  %v5546_v22 = vmul.f32 %v8076_v13, %v8076_v13  ;;  %v8089_v17 = vunpack.c.l.bf16 %v217_v11  ;;  %v8103_v51 = vunpack.c.h.bf16 %v220_v33 }
 0x2e9   : > { %9304 = vst [vmem:[#allocation200_spill] sm:$0xff] %v8074_v14  ;;  %v5798_v52 = vadd.f32 %v5797_v29, %v5543_v46  ;;  %v8099_v14 = vunpack.c.h.bf16 %v219_v6  ;;  %v1919_v46 = vmul.f32 %v8091_v42, %v1903_v23  ;;  %v1920_v11 = vmul.f32 %v8093_v25, %v8064_v35  ;;  %v8112_v6 = vpop.trf.xlu1 }
 0x2ea   : > { %9305 = vst [vmem:[#allocation201_spill] sm:$0xff] %v8076_v13  ;;  %v8101_v13 = vunpack.c.l.bf16 %v220_v33  ;;  %v1918_v58 = vmul.f32 %v8089_v17, %v1902_v57  ;;  %v1922_v41 = vmul.f32 %v8097_v21, %v1906_v31  ;;  %v1925_v33 = vmul.f32 %v8103_v51, %v8087_v45 }
 0x2eb   : > { %v5799_v18 = vadd.f32 %v5798_v52, %v5544_v62  ;;  %v1923_v52 = vmul.f32 %v8099_v14, %v8068_v32 }
 0x2ec   : > { %v1924_v62 = vmul.f32 %v8101_v13, %v8080_v5  ;;  %v1926_v2 = vadd.f32 %v1922_v41, %v1918_v58  ;;  %v1947_v58 = vadd.f32 %v1925_v33, %v1921_v12  ;;  %v1954_v12 = vmul.f32 %v1902_v57, %v1902_v57 }
 0x2ed   : > { %v5800_v29 = vadd.f32 %v5799_v18, %v5545_v63  ;;  %v1933_v0 = vadd.f32 %v1923_v52, %v1919_v46  ;;  %v1960_v57 = vmul.f32 %v8080_v5, %v8080_v5 }
 0x2ee   : > { %v8120_v10 = vpop.f32.mrf.mxu2  ;;  %v8122_v9 = vpop.f32.mrf.mxu3  ;;  %v1927_v50 = vrot.slane %v1926_v2, 4  ;;  %v1940_v49 = vadd.f32 %v1924_v62, %v1920_v11  ;;  %v1948_v11 = vrot.slane %v1947_v58, 4 }
 0x2ef   : > { %9306 = vst [vmem:[#allocation202_spill] sm:$0xff] %v8120_v10  ;;  %v5801_v1 = vadd.f32 %v5800_v29, %v5546_v22  ;;  %v5547_v18 = vmul.f32 %v8120_v10, %v8120_v10  ;;  %v8126_v63 = vpop.f32.mrf.mxu0  ;;  %v8128_v54 = vpop.f32.mrf.mxu1  ;;  %v5548_v53 = vmul.f32 %v8122_v9, %v8122_v9  ;;  %v1934_v28 = vrot.slane %v1933_v0, 4 }
 0x2f0   : > { %9307 = vst [vmem:[#allocation203_spill] sm:$0xff] %v8122_v9  ;;  %v5549_v34 = vmul.f32 %v8126_v63, %v8126_v63  ;;  %v5550_v22 = vmul.f32 %v8128_v54, %v8128_v54  ;;  %v1928_v46 = vadd.f32 %v1927_v50, %v1926_v2  ;;  %v1941_v41 = vrot.slane %v1940_v49, 4 }
 0x2f1   : > { %9308 = vst [vmem:[#allocation204_spill] sm:$0xff] %v8126_v63  ;;  %v5802_v36 = vadd.f32 %v5801_v1, %v5547_v18  ;;  %v1955_v29 = vmul.f32 %v1903_v23, %v1903_v23  ;;  %v1935_v1 = vadd.f32 %v1934_v28, %v1933_v0  ;;  %v1956_v18 = vmul.f32 %v8064_v35, %v8064_v35 }
 0x2f2   : > { %9309 = vst [vmem:[#allocation205_spill] sm:$0xff] %v8128_v54  ;;  %6685 = vmatmul.msk.bf16.gmra.mxu0 %vm289_vm0, %v8027_v26  ;;  %6717 = vmatmul.msk.bf16.gmra.mxu1 %vm289_vm0, %v8027_v26  ;;  %v1929_v62 = vrot.slane %v1928_v46, 2  ;;  %v1942_v33 = vadd.f32 %v1941_v41, %v1940_v49  ;;  %v1958_v54 = vmul.f32 %v1906_v31, %v1906_v31 }
 0x2f3   : > { %v5803_v52 = vadd.f32 %v5802_v36, %v5548_v53  ;;  %6749 = vmatmul.msk.bf16.gmra.mxu2 %vm289_vm0, %v8027_v26  ;;  %6781 = vmatmul.msk.bf16.gmra.mxu3 %vm289_vm0, %v8027_v26  ;;  %v1936_v50 = vrot.slane %v1935_v1, 2  ;;  %v1949_v2 = vadd.f32 %v1948_v11, %v1947_v58  ;;  %v8148_v36 = vmul.f32 %v8066_v38, %v8066_v38 }
 0x2f4   : > { %v1930_v28 = vadd.f32 %v1929_v62, %v1928_v46  ;;  %v1943_v26 = vrot.slane %v1942_v33, 2  ;;  %v1959_v49 = vmul.f32 %v8068_v32, %v8068_v32  ;;  %v1961_v58 = vmul.f32 %v8087_v45, %v8087_v45 }
 0x2f5   : > { %v5804_v63 = vadd.f32 %v5803_v52, %v5549_v34  ;;  %v1937_v35 = vadd.f32 %v1936_v50, %v1935_v1  ;;  %v1962_v52 = vadd.f32 %v1958_v54, %v1954_v12  ;;  %v1950_v62 = vrot.slane %v1949_v2, 2 }
 0x2f6   : > { %v8150_v53 = vpop.f32.mrf.mxu2  ;;  %v8152_v23 = vpop.f32.mrf.mxu3  ;;  %v1931_v41 = vrot.slane %v1930_v28, 1  ;;  %v1944_v32 = vadd.f32 %v1943_v26, %v1942_v33  ;;  %v1969_v12 = vadd.f32 %v1959_v49, %v1955_v29  ;;  %v1976_v26 = vadd.f32 %v1960_v57, %v1956_v18 }
 0x2f7   : > { %9310 = vst [vmem:[#allocation206_spill] sm:$0xff] %v8150_v53  ;;  %v5805_v31 = vadd.f32 %v5804_v63, %v5550_v22  ;;  %v5551_v34 = vmul.f32 %v8150_v53, %v8150_v53  ;;  %v8160_v0 = vpop.f32.mrf.mxu0  ;;  %v8162_v38 = vpop.f32.mrf.mxu1  ;;  %v5552_v46 = vmul.f32 %v8152_v23, %v8152_v23  ;;  %v1938_v22 = vrot.slane %v1937_v35, 1 }
 0x2f8   : > { %9311 = vst [vmem:[#allocation207_spill] sm:$0xff] %v8152_v23  ;;  %v5553_v5 = vmul.f32 %v8160_v0, %v8160_v0  ;;  %v8170_v63 = vpop.trf.xlu1  ;;  %v5554_v1 = vmul.f32 %v8162_v38, %v8162_v38  ;;  %v1932_v50 = vadd.f32 %v1931_v41, %v1930_v28  ;;  %v1945_v53 = vrot.slane %v1944_v32, 1 }
 0x2f9   : > { %9312 = vst [vmem:[#allocation208_spill] sm:$0xff] %v8160_v0  ;;  %v5806_v11 = vadd.f32 %v5805_v31, %v5551_v34  ;;  %v1939_v9 = vadd.f32 %v1938_v22, %v1937_v35  ;;  %v1951_v23 = vadd.f32 %v1950_v62, %v1949_v2  ;;  %v1963_v54 = vrot.slane %v1962_v52, 4 }
 0x2fa   : > { %9313 = vst [vmem:[#allocation209_spill] sm:$0xff] %v8162_v38  ;;  %v1946_v33 = vadd.f32 %v1945_v53, %v1944_v32  ;;  %v9095_v38 = vlaneseq  ;;  %v1970_v41 = vrot.slane %v1969_v12, 4  ;;  %v1977_v27 = vrot.slane %v1976_v26, 4 }
 0x2fb   : > { %9314 = vst [vmem:[#allocation210_spill] sm:$0xff] %v8170_v63  ;;  %v5807_v45 = vadd.f32 %v5806_v11, %v5552_v46  ;;  %v1952_v34 = vrot.slane %v1951_v23, 1  ;;  %v2546_v0 = vrot.slane %v1939_v9, 7  ;;  %v1964_v28 = vadd.f32 %v1963_v54, %v1962_v52 }
 0x2fc   : > { %v2547_v49 = vrot.slane %v1946_v33, 6  ;;  %v1978_v22 = vadd.f32 %v1977_v27, %v1976_v26  ;;  %vm8196_vm4 = vcmp.lt.s32.totalorder %v9095_v38, 512 }
 0x2fd   : > { %v5808_v31 = vadd.f32 %v5807_v45, %v5553_v5  ;;  %v1953_v18 = vadd.f32 %v1952_v34, %v1951_v23  ;;  %v2550_v35 = vsel %vm2549_vm1, %v1932_v50, %v2546_v0  ;;  %v1965_v32 = vrot.slane %v1964_v28, 2 }
 0x2fe   : > { %v8174_v10 = vpop.f32.mrf.mxu2  ;;  %v8176_v63 = vpop.f32.mrf.mxu3  ;;  %v1971_v5 = vadd.f32 %v1970_v41, %v1969_v12  ;;  %v1979_v54 = vrot.slane %v1978_v22, 2 }
 0x2ff   : > { %v5809_v46 = vadd.f32 %v5808_v31, %v5554_v1  ;;  %v5555_v2 = vmul.f32 %v8174_v10, %v8174_v10  ;;  %v8180_v53 = vpop.f32.mrf.mxu0  ;;  %v8182_v29 = vpop.f32.mrf.mxu1  ;;  %v5556_v9 = vmul.f32 %v8176_v63, %v8176_v63  ;;  %v2548_v11 = vrot.slane %v1953_v18, 5 }
 0x300   : > { %v5557_v57 = vmul.f32 %v8180_v53, %v8180_v53  ;;  %v5558_v62 = vmul.f32 %v8182_v29, %v8182_v29  ;;  %v1966_v0 = vadd.f32 %v1965_v32, %v1964_v28  ;;  %v1983_v1 = vadd.f32 %v1961_v58, %v8148_v36  ;;  %v8205_v27 = vpop.trf.xlu1 }
 0x301   : > { %v5810_v52 = vadd.f32 %v5809_v46, %v5555_v2  ;;  %v2552_v45 = vsel %vm2551_vm2, %v2547_v49, %v2548_v11  ;;  %v1972_v33 = vrot.slane %v1971_v5, 2  ;;  %v1990_v36 = vmul.f32 %v8089_v17, %v8089_v17 }
 0x302   : > { %6686 = vmatmul.msk.bf16.gmra.mxu0 %vm289_vm0, %v8112_v6  ;;  %6718 = vmatmul.msk.bf16.gmra.mxu1 %vm289_vm0, %v8112_v6  ;;  %v2554_v12 = vsel %vm2553_vm3, %v2550_v35, %v2552_v45  ;;  %v1967_v26 = vrot.slane %v1966_v0, 1  ;;  %v1984_v31 = vrot.slane %v1983_v1, 4  ;;  %v1980_v28 = vadd.f32 %v1979_v54, %v1978_v22 }
 0x303   : > { %v5811_v50 = vadd.f32 %v5810_v52, %v5556_v9  ;;  %6750 = vmatmul.msk.bf16.gmra.mxu2 %vm289_vm0, %v8112_v6  ;;  %6782 = vmatmul.msk.bf16.gmra.mxu3 %vm289_vm0, %v8112_v6  ;;  %2560 = vst.msk [vmem:[#allocation4] ss:$8 sm:$0xf] %vm8196_vm4, %v2554_v12  ;;  %v1973_v34 = vadd.f32 %v1972_v33, %v1971_v5 }
 0x304   : > { %v1991_v6 = vmul.f32 %v8091_v42, %v8091_v42  ;;  %v1968_v2 = vadd.f32 %v1967_v26, %v1966_v0  ;;  %v1985_v18 = vadd.f32 %v1984_v31, %v1983_v1  ;;  %v1992_v49 = vmul.f32 %v8093_v25, %v8093_v25 }
 0x305   : > { %v5812_v58 = vadd.f32 %v5811_v50, %v5557_v57  ;;  %v1994_v17 = vmul.f32 %v8097_v21, %v8097_v21  ;;  %v1974_v42 = vrot.slane %v1973_v34, 1  ;;  %v1993_v52 = vmul.f32 %v8095_v24, %v8095_v24 }
 0x306   : > { %v8215_v41 = vpop.f32.mrf.mxu2  ;;  %v8217_v46 = vpop.f32.mrf.mxu3  ;;  %v1981_v5 = vrot.slane %v1980_v28, 1  ;;  %v1986_v21 = vrot.slane %v1985_v18, 2  ;;  %v1995_v0 = vmul.f32 %v8099_v14, %v8099_v14  ;;  %v1996_v1 = vmul.f32 %v8101_v13, %v8101_v13 }
 0x307   : > { %v5813_v9 = vadd.f32 %v5812_v58, %v5558_v62  ;;  %v5559_v57 = vmul.f32 %v8215_v41, %v8215_v41  ;;  %v8225_v35 = vpop.f32.mrf.mxu0  ;;  %v8227_v32 = vpop.f32.mrf.mxu1  ;;  %v5560_v11 = vmul.f32 %v8217_v46, %v8217_v46  ;;  %v1975_v62 = vadd.f32 %v1974_v42, %v1973_v34 }
 0x308   : > { %v5561_v25 = vmul.f32 %v8225_v35, %v8225_v35  ;;  %v1982_v50 = vadd.f32 %v1981_v5, %v1980_v28  ;;  %v1987_v45 = vadd.f32 %v1986_v21, %v1985_v18  ;;  %v1997_v24 = vmul.f32 %v8103_v51, %v8103_v51  ;;  %v8243_v38 = vpop.trf.xlu1 }
 0x309   : > { %v5814_v22 = vadd.f32 %v5813_v9, %v5559_v57  ;;  %v1998_v33 = vadd.f32 %v1994_v17, %v1990_v36  ;;  %v5562_v12 = vmul.f32 %v8227_v32, %v8227_v32  ;;  %v2566_v26 = vrot.slane %v1975_v62, 7 }
 0x30a   : > { %v2005_v31 = vadd.f32 %v1995_v0, %v1991_v6  ;;  %v4187_v58 = vld [vmem:[#allocation4] ss:$8 sm:$0xf]  ;;  %v1988_v34 = vrot.slane %v1987_v45, 1  ;;  %v2567_v9 = vrot.slane %v1982_v50, 6  ;;  %v2012_v14 = vadd.f32 %v1996_v1, %v1992_v49 }
 0x30b   : > { %v5815_v54 = vadd.f32 %v5814_v22, %v5560_v11  ;;  %v1999_v57 = vrot.slane %v1998_v33, 4  ;;  %v4189_v13 = vperm.slane %v4187_v58, 0  ;;  %v4190_v28 = vperm.slane %v4187_v58, 1 }
 0x30c   : > { %v4191_v18 = vperm.slane %v4187_v58, 2  ;;  %v4192_v36 = vperm.slane %v4187_v58, 3  ;;  %v1989_v17 = vadd.f32 %v1988_v34, %v1987_v45  ;;  %v2019_v21 = vadd.f32 %v1997_v24, %v1993_v52 }
 0x30d   : > { %v5816_v42 = vadd.f32 %v5815_v54, %v5561_v25  ;;  %v2000_v11 = vadd.f32 %v1999_v57, %v1998_v33  ;;  %v4198_v25 = vsel %vm2549_vm1, %v4189_v13, 0.0  ;;  %v2569_v0 = vsel %vm2549_vm1, %v1968_v2, %v2566_v26 }
 0x30e   : > { %v8245_v5 = vpop.f32.mrf.mxu2  ;;  %v8247_v51 = vpop.f32.mrf.mxu3  ;;  %v4199_v52 = vsel %vm2549_vm1, %v4190_v28, 0.0  ;;  %v4201_v45 = vsel %vm2549_vm1, %v4191_v18, 0.0  ;;  %v4203_v54 = vsel %vm2549_vm1, %v4192_v36, 0.0  ;;  %v2006_v26 = vrot.slane %v2005_v31, 4 }
 0x30f   : > { %v5817_v6 = vadd.f32 %v5816_v42, %v5562_v12  ;;  %v5563_v22 = vmul.f32 %v8245_v5, %v8245_v5  ;;  %v8251_v62 = vpop.f32.mrf.mxu0  ;;  %v8253_v49 = vpop.f32.mrf.mxu1  ;;  %v5564_v1 = vmul.f32 %v8247_v51, %v8247_v51  ;;  %v4200_v33 = vadd.f32 %v4199_v52, %v4198_v25 }
 0x310   : > { %v5565_v50 = vmul.f32 %v8251_v62, %v8251_v62  ;;  %v2568_v12 = vrot.slane %v1989_v17, 5  ;;  %v2001_v2 = vrot.slane %v2000_v11, 2  ;;  %v2013_v58 = vrot.slane %v2012_v14, 4 }
 0x311   : > { %v5818_v24 = vadd.f32 %v5817_v6, %v5563_v22  ;;  %v2020_v34 = vrot.slane %v2019_v21, 4  ;;  %v4202_v42 = vadd.f32 %v4201_v45, %v4200_v33  ;;  %v2007_v36 = vadd.f32 %v2006_v26, %v2005_v31 }
 0x312   : > { %6687 = vmatmul.msk.bf16.gmra.mxu0 %vm289_vm0, %v8205_v27  ;;  %6719 = vmatmul.msk.bf16.gmra.mxu1 %vm289_vm0, %v8205_v27  ;;  %v2570_v13 = vsel %vm2551_vm2, %v2567_v9, %v2568_v12  ;;  %v2002_v18 = vadd.f32 %v2001_v2, %v2000_v11  ;;  %v2014_v17 = vadd.f32 %v2013_v58, %v2012_v14  ;;  %v1102_v12 = vpop.trf.xlu1 }
 0x313   : > { %v5819_v57 = vadd.f32 %v5818_v24, %v5564_v1  ;;  %6751 = vmatmul.msk.bf16.gmra.mxu2 %vm289_vm0, %v8205_v27  ;;  %6783 = vmatmul.msk.bf16.gmra.mxu3 %vm289_vm0, %v8205_v27  ;;  %v2571_v28 = vsel %vm2553_vm3, %v2569_v0, %v2570_v13  ;;  %v5566_v22 = vmul.f32 %v8253_v49, %v8253_v49  ;;  %v2008_v45 = vrot.slane %v2007_v36, 2 }
 0x314   : > { %v4204_v25 = vadd.f32 %v4203_v54, %v4202_v42  ;;  %2574 = vst.msk [vmem:[#allocation4 + $0x1] ss:$8 sm:$0xf] %vm8196_vm4, %v2571_v28  ;;  %v2021_v1 = vadd.f32 %v2020_v34, %v2019_v21  ;;  %v2015_v9 = vrot.slane %v2014_v17, 2 }
 0x315   : > { %v5820_v6 = vadd.f32 %v5819_v57, %v5565_v50  ;;  %v2003_v50 = vrot.slane %v2002_v18, 1  ;;  %v2009_v33 = vadd.f32 %v2008_v45, %v2007_v36 }
 0x316   : > { %v8278_v52 = vpop.f32.mrf.mxu2  ;;  %v8280_v27 = vpop.f32.mrf.mxu3  ;;  %4205 = vadd.xlane.f32.xlu2 %v4204_v25  ;;  %v2022_v0 = vrot.slane %v2021_v1, 2  ;;  %v2016_v2 = vadd.f32 %v2015_v9, %v2014_v17 }
 0x317   : > { %9317 = vst [vmem:[#allocation211_spill] sm:$0xff] %v8280_v27  ;;  %v5821_v24 = vadd.f32 %v5820_v6, %v5566_v22  ;;  %v5567_v31 = vmul.f32 %v8278_v52, %v8278_v52  ;;  %v8284_v14 = vpop.f32.mrf.mxu0  ;;  %v8286_v11 = vpop.f32.mrf.mxu1  ;;  %v5568_v21 = vmul.f32 %v8280_v27, %v8280_v27  ;;  %v2010_v58 = vrot.slane %v2009_v33, 1 }
 0x318   : > { %9318 = vst [vmem:[#allocation212_spill] sm:$0xff] %v8284_v14  ;;  %v2023_v26 = vadd.f32 %v2022_v0, %v2021_v1  ;;  %v5569_v57 = vmul.f32 %v8284_v14, %v8284_v14  ;;  %v2017_v42 = vrot.slane %v2016_v2, 1  ;;  %v5570_v28 = vmul.f32 %v8286_v11, %v8286_v11 }
 0x319   : > { %9319 = vst [vmem:[#allocation213_spill] sm:$0xff] %v8286_v11  ;;  %v5822_v54 = vadd.f32 %v5821_v24, %v5567_v31  ;;  %v2004_v22 = vadd.f32 %v2003_v50, %v2002_v18  ;;  %v2011_v36 = vadd.f32 %v2010_v58, %v2009_v33 }
 0x31a   : > { %v2024_v13 = vrot.slane %v2023_v26, 1  ;;  %v2018_v9 = vadd.f32 %v2017_v42, %v2016_v2 }
 0x31b   : > { %v5823_v34 = vadd.f32 %v5822_v54, %v5568_v21  ;;  %v4215_v6 = vld [vmem:[#allocation4 + $0x1] ss:$8 sm:$0xf]  ;;  %v2580_v54 = vrot.slane %v2011_v36, 7 }
 0x31c   : > { %v4217_v45 = vperm.slane %v4215_v6, 0  ;;  %v4218_v24 = vperm.slane %v4215_v6, 1  ;;  %v4219_v31 = vperm.slane %v4215_v6, 2  ;;  %v4220_v1 = vperm.slane %v4215_v6, 3 }
 0x31d   : > { %v5824_v25 = vadd.f32 %v5823_v34, %v5569_v57  ;;  %v2025_v0 = vadd.f32 %v2024_v13, %v2023_v26  ;;  %v2581_v57 = vrot.slane %v2018_v9, 6 }
 0x31e   : > { %v8294_v27 = vpop.f32.mrf.mxu2  ;;  %v8296_v17 = vpop.f32.mrf.mxu3  ;;  %v4225_v50 = vsel %vm2549_vm1, %v4217_v45, 0.0  ;;  %v4226_v33 = vsel %vm2549_vm1, %v4218_v24, 0.0  ;;  %v4228_v58 = vsel %vm2549_vm1, %v4219_v31, 0.0  ;;  %v4230_v42 = vsel %vm2549_vm1, %v4220_v1, 0.0 }
 0x31f   : > { %v5825_v21 = vadd.f32 %v5824_v25, %v5570_v28  ;;  %v5571_v14 = vmul.f32 %v8294_v27, %v8294_v27  ;;  %v8300_v11 = vpop.f32.mrf.mxu0  ;;  %v8302_v18 = vpop.f32.mrf.mxu1  ;;  %v5572_v2 = vmul.f32 %v8296_v17, %v8296_v17  ;;  %v4227_v26 = vadd.f32 %v4226_v33, %v4225_v50 }
 0x320   : > { %v2582_v13 = vrot.slane %v2025_v0, 5  ;;  %v2583_v28 = vsel %vm2549_vm1, %v2004_v22, %v2580_v54  ;;  %v5573_v36 = vmul.f32 %v8300_v11, %v8300_v11  ;;  %v5574_v31 = vmul.f32 %v8302_v18, %v8302_v18 }
 0x321   : > { %v5826_v34 = vadd.f32 %v5825_v21, %v5571_v14  ;;  %v8317_v14 = vpop.trf.xlu1  ;;  %v4229_v25 = vadd.f32 %v4228_v58, %v4227_v26 }
 0x322   : > { %6688 = vmatmul.msk.bf16.gmra.mxu0 %vm289_vm0, %v1102_v12  ;;  %6720 = vmatmul.msk.bf16.gmra.mxu1 %vm289_vm0, %v1102_v12  ;;  %v2584_v45 = vsel %vm2551_vm2, %v2581_v57, %v2582_v13 }
 0x323   : > { %v5827_v6 = vadd.f32 %v5826_v34, %v5572_v2  ;;  %6752 = vmatmul.msk.bf16.gmra.mxu2 %vm289_vm0, %v1102_v12  ;;  %6784 = vmatmul.msk.bf16.gmra.mxu3 %vm289_vm0, %v1102_v12  ;;  %v4231_v1 = vadd.f32 %v4230_v42, %v4229_v25  ;;  %v2585_v22 = vsel %vm2553_vm3, %v2583_v28, %v2584_v45 }
 0x324   : > { %2588 = vst.msk [vmem:[#allocation4 + $0x2] ss:$8 sm:$0xf] %vm8196_vm4, %v2585_v22 }
 0x325   : > { %v5828_v24 = vadd.f32 %v5827_v6, %v5573_v36  ;;  %4232 = vadd.xlane.f32.xlu2 %v4231_v1 }
 0x326   : > { %v8323_v9 = vpop.f32.mrf.mxu2  ;;  %v8325_v0 = vpop.f32.mrf.mxu3 }
 0x327   : > { %v5829_v12 = vadd.f32 %v5828_v24, %v5574_v31  ;;  %v5575_v54 = vmul.f32 %v8323_v9, %v8323_v9  ;;  %v8331_v21 = vpop.f32.mrf.mxu0  ;;  %v8333_v50 = vpop.f32.mrf.mxu1  ;;  %v5576_v58 = vmul.f32 %v8325_v0, %v8325_v0 }
 0x328   : > { %v5577_v2 = vmul.f32 %v8331_v21, %v8331_v21  ;;  %v5578_v23 = vmul.f32 %v8333_v50, %v8333_v50 }
 0x329   : > { %v5830_v33 = vadd.f32 %v5829_v12, %v5575_v54  ;;  %v1104_v57 = vpop.trf.xlu1 }
 0x32b   : > { %v5831_v34 = vadd.f32 %v5830_v33, %v5576_v58  ;;  %v4242_v42 = vld [vmem:[#allocation4 + $0x2] ss:$8 sm:$0xf] }
 0x32c   : > { %v4244_v6 = vperm.slane %v4242_v42, 0  ;;  %v4245_v36 = vperm.slane %v4242_v42, 1  ;;  %v4246_v25 = vperm.slane %v4242_v42, 2  ;;  %v4247_v45 = vperm.slane %v4242_v42, 3 }
 0x32d   : > { %v5832_v26 = vadd.f32 %v5831_v34, %v5577_v2 }
 0x32e   : > { %v8341_v13 = vpop.f32.mrf.mxu2  ;;  %v8343_v28 = vpop.f32.mrf.mxu3  ;;  %v4252_v12 = vsel %vm2549_vm1, %v4244_v6, 0.0  ;;  %v4253_v54 = vsel %vm2549_vm1, %v4245_v36, 0.0  ;;  %v4255_v2 = vsel %vm2549_vm1, %v4246_v25, 0.0 }
 0x32f   : > { %9320 = vst [vmem:[#allocation214_spill] sm:$0xff] %v8343_v28  ;;  %v5833_v24 = vadd.f32 %v5832_v26, %v5578_v23  ;;  %v5579_v31 = vmul.f32 %v8341_v13, %v8341_v13  ;;  %v8347_v1 = vpop.f32.mrf.mxu0  ;;  %v8349_v22 = vpop.f32.mrf.mxu1  ;;  %v5580_v58 = vmul.f32 %v8343_v28, %v8343_v28  ;;  %v4254_v34 = vadd.f32 %v4253_v54, %v4252_v12 }
 0x330   : > { %9321 = vst [vmem:[#allocation215_spill] sm:$0xff] %v8347_v1  ;;  %v4257_v26 = vsel %vm2549_vm1, %v4247_v45, 0.0  ;;  %v5581_v42 = vmul.f32 %v8347_v1, %v8347_v1 }
 0x331   : > { %9322 = vst [vmem:[#allocation216_spill] sm:$0xff] %v8349_v22  ;;  %v5834_v33 = vadd.f32 %v5833_v24, %v5579_v31  ;;  %v4256_v6 = vadd.f32 %v4255_v2, %v4254_v34  ;;  %v5582_v24 = vmul.f32 %v8349_v22, %v8349_v22 }
 0x332   : > { %6689 = vmatmul.msk.bf16.gmra.mxu0 %vm289_vm0, %v1104_v57  ;;  %6721 = vmatmul.msk.bf16.gmra.mxu1 %vm289_vm0, %v1104_v57 }
 0x333   : > { %v5835_v23 = vadd.f32 %v5834_v33, %v5580_v58  ;;  %6753 = vmatmul.msk.bf16.gmra.mxu2 %vm289_vm0, %v1104_v57  ;;  %6785 = vmatmul.msk.bf16.gmra.mxu3 %vm289_vm0, %v1104_v57  ;;  %v4258_v25 = vadd.f32 %v4257_v26, %v4256_v6 }
 0x335   : > { %v5836_v36 = vadd.f32 %v5835_v23, %v5581_v42  ;;  %4259 = vadd.xlane.f32.xlu2 %v4258_v25 }
 0x336   : > { %v8365_v31 = vpop.f32.mrf.mxu2  ;;  %v8367_v12 = vpop.f32.mrf.mxu3 }
 0x337   : > { %9323 = vst [vmem:[#allocation217_spill] sm:$0xff] %v8365_v31  ;;  %v5837_v54 = vadd.f32 %v5836_v36, %v5582_v24  ;;  %v5583_v45 = vmul.f32 %v8365_v31, %v8365_v31  ;;  %v8371_v33 = vpop.f32.mrf.mxu0  ;;  %v8373_v58 = vpop.f32.mrf.mxu1  ;;  %v5584_v34 = vmul.f32 %v8367_v12, %v8367_v12 }
 0x338   : > { %9324 = vst [vmem:[#allocation218_spill] sm:$0xff] %v8367_v12  ;;  %v5585_v26 = vmul.f32 %v8371_v33, %v8371_v33  ;;  %v5586_v42 = vmul.f32 %v8373_v58, %v8373_v58 }
 0x339   : > { %9325 = vst [vmem:[#allocation219_spill] sm:$0xff] %v8371_v33  ;;  %v5838_v57 = vadd.f32 %v5837_v54, %v5583_v45 }
 0x33a   : > { %9326 = vst [vmem:[#allocation220_spill] sm:$0xff] %v8373_v58 }
 0x33b   : > { %v5839_v2 = vadd.f32 %v5838_v57, %v5584_v34 }
 0x33d   : > { %v5840_v23 = vadd.f32 %v5839_v2, %v5585_v26 }
 0x33e   : > { %v8381_v6 = vpop.f32.mrf.mxu2  ;;  %v8383_v36 = vpop.f32.mrf.mxu3 }
 0x33f   : > { %9327 = vst [vmem:[#allocation221_spill] sm:$0xff] %v8381_v6  ;;  %v5587_v24 = vmul.f32 %v8381_v6, %v8381_v6  ;;  %v1235_v25 = vpop.f32.mrf.mxu0  ;;  %v1404_v54 = vpop.f32.mrf.mxu1  ;;  %v5841_v45 = vadd.f32 %v5840_v23, %v5586_v42  ;;  %v5588_v57 = vmul.f32 %v8383_v36, %v8383_v36 }
 0x340   : > { %9328 = vst [vmem:[#allocation222_spill] sm:$0xff] %v8383_v36  ;;  %v4813_v33 = vmul.f32 %v1235_v25, %v7007_v39  ;;  %v5853_v2 = vmul.f32 %v1235_v25, %v1235_v25  ;;  %v4814_v26 = vmul.f32 %v1404_v54, %v7009_v40  ;;  %v5854_v58 = vmul.f32 %v1404_v54, %v1404_v54 }
 0x341   : > { %v5842_v34 = vadd.f32 %v5841_v45, %v5587_v24 }
 0x342   : > { %6690 = vmatmul.msk.bf16.gmra.mxu0 %vm289_vm0, %v7903_v61  ;;  %6722 = vmatmul.msk.bf16.gmra.mxu1 %vm289_vm0, %v7903_v61  ;;  %v5069_v24 = vadd.f32 %v4814_v26, %v4813_v33  ;;  %v6109_v25 = vadd.f32 %v5854_v58, %v5853_v2 }
 0x343   : > { %6754 = vmatmul.msk.bf16.gmra.mxu2 %vm289_vm0, %v7903_v61  ;;  %6786 = vmatmul.msk.bf16.gmra.mxu3 %vm289_vm0, %v7903_v61  ;;  %v5843_v23 = vadd.f32 %v5842_v34, %v5588_v57 }
 0x345   : > { %5844 = vadd.xlane.f32.xlu2 %v5843_v23 }
 0x346   : > { %v1573_v42 = vpop.f32.mrf.mxu2  ;;  %v1742_v39 = vpop.f32.mrf.mxu3 }
 0x347   : > { %v4815_v45 = vmul.f32 %v1573_v42, %v7019_v43  ;;  %v5855_v36 = vmul.f32 %v1573_v42, %v1573_v42  ;;  %v1237_v6 = vpop.f32.mrf.mxu0  ;;  %v1406_v12 = vpop.f32.mrf.mxu1  ;;  %v4816_v54 = vmul.f32 %v1742_v39, %v7021_v44  ;;  %v5856_v22 = vmul.f32 %v1742_v39, %v1742_v39 }
 0x348   : > { %v4817_v61 = vmul.f32 %v1237_v6, %v7025_v47  ;;  %v5857_v57 = vmul.f32 %v1237_v6, %v1237_v6  ;;  %v4818_v33 = vmul.f32 %v1406_v12, %v7027_v48  ;;  %v5858_v58 = vmul.f32 %v1406_v12, %v1406_v12 }
 0x349   : > { %v5070_v31 = vadd.f32 %v5069_v24, %v4815_v45  ;;  %v6110_v40 = vadd.f32 %v6109_v25, %v5855_v36 }
 0x34b   : > { %v5071_v1 = vadd.f32 %v5070_v31, %v4816_v54  ;;  %v6111_v28 = vadd.f32 %v6110_v40, %v5856_v22 }
 0x34d   : > { %v5072_v34 = vadd.f32 %v5071_v1, %v4817_v61  ;;  %v6112_v23 = vadd.f32 %v6111_v28, %v5857_v57 }
 0x34e   : > { %v1575_v2 = vpop.f32.mrf.mxu2  ;;  %v1744_v43 = vpop.f32.mrf.mxu3 }
 0x34f   : > { %v5073_v26 = vadd.f32 %v5072_v34, %v4818_v33  ;;  %v6113_v42 = vadd.f32 %v6112_v23, %v5858_v58  ;;  %v4819_v24 = vmul.f32 %v1575_v2, %v7035_v55  ;;  %v5859_v36 = vmul.f32 %v1575_v2, %v1575_v2  ;;  %v1240_v25 = vpop.f32.mrf.mxu0  ;;  %v1409_v44 = vpop.f32.mrf.mxu1 }
 0x350   : > { %v4820_v22 = vmul.f32 %v1744_v43, %v7037_v56  ;;  %v5860_v47 = vmul.f32 %v1744_v43, %v1744_v43  ;;  %v4821_v1 = vmul.f32 %v1240_v25, %v7041_v59  ;;  %v5861_v12 = vmul.f32 %v1240_v25, %v1240_v25 }
 0x351   : > { %v5074_v39 = vadd.f32 %v5073_v26, %v4819_v24  ;;  %v6114_v31 = vadd.f32 %v6113_v42, %v5859_v36  ;;  %v4822_v6 = vmul.f32 %v1409_v44, %v7043_v60  ;;  %v5862_v59 = vmul.f32 %v1409_v44, %v1409_v44 }
 0x352   : > { %6691 = vmatmul.msk.bf16.gmra.mxu0 %vm289_vm0, %v7943_v30  ;;  %6723 = vmatmul.msk.bf16.gmra.mxu1 %vm289_vm0, %v7943_v30 }
 0x353   : > { %v5075_v48 = vadd.f32 %v5074_v39, %v4820_v22  ;;  %v6115_v28 = vadd.f32 %v6114_v31, %v5860_v47  ;;  %6755 = vmatmul.msk.bf16.gmra.mxu2 %vm289_vm0, %v7943_v30  ;;  %6787 = vmatmul.msk.bf16.gmra.mxu3 %vm289_vm0, %v7943_v30 }
 0x355   : > { %v5076_v55 = vadd.f32 %v5075_v48, %v4821_v1  ;;  %v6116_v56 = vadd.f32 %v6115_v28, %v5861_v12 }
 0x356   : > { %v1578_v45 = vpop.f32.mrf.mxu2  ;;  %v1747_v40 = vpop.f32.mrf.mxu3 }
 0x357   : > { %v5077_v54 = vadd.f32 %v5076_v55, %v4822_v6  ;;  %v6117_v61 = vadd.f32 %v6116_v56, %v5862_v59  ;;  %v4823_v57 = vmul.f32 %v1578_v45, %v7059_v3  ;;  %v5863_v34 = vmul.f32 %v1578_v45, %v1578_v45  ;;  %v1242_v23 = vpop.f32.mrf.mxu0  ;;  %v1411_v33 = vpop.f32.mrf.mxu1 }
 0x358   : > { %v4824_v43 = vmul.f32 %v1747_v40, %v7061_v4  ;;  %v5864_v26 = vmul.f32 %v1747_v40, %v1747_v40  ;;  %v4825_v24 = vmul.f32 %v1242_v23, %v7065_v7  ;;  %v5865_v60 = vmul.f32 %v1242_v23, %v1242_v23  ;;  %v9329_v23 = vld [vmem:[#allocation5_spill] sm:$0xff] }
 0x359   : > { %v5078_v58 = vadd.f32 %v5077_v54, %v4823_v57  ;;  %v6118_v2 = vadd.f32 %v6117_v61, %v5863_v34  ;;  %v4826_v44 = vmul.f32 %v1411_v33, %v7067_v8  ;;  %v5866_v39 = vmul.f32 %v1411_v33, %v1411_v33 }
 0x35b   : > { %v5079_v30 = vadd.f32 %v5078_v58, %v4824_v43  ;;  %v6119_v42 = vadd.f32 %v6118_v2, %v5864_v26 }
 0x35d   : > { %v5080_v36 = vadd.f32 %v5079_v30, %v4825_v24  ;;  %v6120_v25 = vadd.f32 %v6119_v42, %v5865_v60  ;;  %v9330_v42 = vld [vmem:[#allocation6_spill] sm:$0xff] }
 0x35e   : > { %v1580_v31 = vpop.f32.mrf.mxu2  ;;  %v1749_v3 = vpop.f32.mrf.mxu3 }
 0x35f   : > { %v5081_v22 = vadd.f32 %v5080_v36, %v4826_v44  ;;  %v6121_v47 = vadd.f32 %v6120_v25, %v5866_v39  ;;  %v4827_v1 = vmul.f32 %v1580_v31, %v7075_v15  ;;  %v5867_v48 = vmul.f32 %v1580_v31, %v1580_v31  ;;  %v1245_v28 = vpop.f32.mrf.mxu0  ;;  %v1414_v4 = vpop.f32.mrf.mxu1  ;;  %v9331_v25 = vld [vmem:[#allocation7_spill] sm:$0xff] }
 0x360   : > { %v4828_v56 = vmul.f32 %v1749_v3, %v7077_v16  ;;  %v5868_v7 = vmul.f32 %v1749_v3, %v1749_v3  ;;  %v4829_v6 = vmul.f32 %v1245_v28, %v7081_v19  ;;  %v5869_v45 = vmul.f32 %v1245_v28, %v1245_v28  ;;  %v9332_v3 = vld [vmem:[#allocation8_spill] sm:$0xff] }
 0x361   : > { %v5082_v12 = vadd.f32 %v5081_v22, %v4827_v1  ;;  %v6122_v55 = vadd.f32 %v6121_v47, %v5867_v48  ;;  %v4830_v40 = vmul.f32 %v1414_v4, %v7083_v20  ;;  %v5870_v19 = vmul.f32 %v1414_v4, %v1414_v4 }
 0x362   : > { %6692 = vmatmul.msk.bf16.gmra.mxu0 %vm289_vm0, %v7989_v37  ;;  %6724 = vmatmul.msk.bf16.gmra.mxu1 %vm289_vm0, %v7989_v37 }
 0x363   : > { %v5083_v8 = vadd.f32 %v5082_v12, %v4828_v56  ;;  %v6123_v59 = vadd.f32 %v6122_v55, %v5868_v7  ;;  %6756 = vmatmul.msk.bf16.gmra.mxu2 %vm289_vm0, %v7989_v37  ;;  %6788 = vmatmul.msk.bf16.gmra.mxu3 %vm289_vm0, %v7989_v37  ;;  %v9333_v12 = vld [vmem:[#allocation9_spill] sm:$0xff] }
 0x365   : > { %v5084_v15 = vadd.f32 %v5083_v8, %v4829_v6  ;;  %v6124_v16 = vadd.f32 %v6123_v59, %v5869_v45  ;;  %v9334_v45 = vld [vmem:[#allocation10_spill] sm:$0xff] }
 0x366   : > { %v1583_v54 = vpop.f32.mrf.mxu2  ;;  %v1752_v61 = vpop.f32.mrf.mxu3 }
 0x367   : > { %v5085_v57 = vadd.f32 %v5084_v15, %v4830_v40  ;;  %v6125_v34 = vadd.f32 %v6124_v16, %v5870_v19  ;;  %v4831_v33 = vmul.f32 %v1583_v54, %v9329_v23  ;;  %v5871_v58 = vmul.f32 %v1583_v54, %v1583_v54  ;;  %v1247_v2 = vpop.f32.mrf.mxu0  ;;  %v1416_v43 = vpop.f32.mrf.mxu1  ;;  %v9335_v40 = vld [vmem:[#allocation11_spill] sm:$0xff]  ;;  %v9336_v54 = vld [vmem:[#allocation197_spill] sm:$0xff] }
 0x368   : > { %v4832_v24 = vmul.f32 %v1752_v61, %v9330_v42  ;;  %v5872_v60 = vmul.f32 %v1752_v61, %v1752_v61  ;;  %v4833_v44 = vmul.f32 %v1247_v2, %v9331_v25  ;;  %v5873_v20 = vmul.f32 %v1247_v2, %v1247_v2 }
 0x369   : > { %v5086_v26 = vadd.f32 %v5085_v57, %v4831_v33  ;;  %v6126_v30 = vadd.f32 %v6125_v34, %v5871_v58  ;;  %v4834_v22 = vmul.f32 %v1416_v43, %v9332_v3  ;;  %v5874_v47 = vmul.f32 %v1416_v43, %v1416_v43  ;;  %v9337_v58 = vld [vmem:[#allocation12_spill] sm:$0xff] }
 0x36b   : > { %v5087_v37 = vadd.f32 %v5086_v26, %v4832_v24  ;;  %v6127_v36 = vadd.f32 %v6126_v30, %v5872_v60  ;;  %v9338_v60 = vld [vmem:[#allocation13_spill] sm:$0xff] }
 0x36d   : > { %v5088_v39 = vadd.f32 %v5087_v37, %v4833_v44  ;;  %v6128_v31 = vadd.f32 %v6127_v36, %v5873_v20 }
 0x36e   : > { %v1585_v1 = vpop.f32.mrf.mxu2  ;;  %v1754_v48 = vpop.f32.mrf.mxu3 }
 0x36f   : > { %v5089_v28 = vadd.f32 %v5088_v39, %v4834_v22  ;;  %v6129_v4 = vadd.f32 %v6128_v31, %v5874_v47  ;;  %v4835_v55 = vmul.f32 %v1585_v1, %v9333_v12  ;;  %v5875_v56 = vmul.f32 %v1585_v1, %v1585_v1  ;;  %v1250_v7 = vpop.f32.mrf.mxu0  ;;  %v1419_v6 = vpop.f32.mrf.mxu1  ;;  %v9339_v31 = vld [vmem:[#allocation14_spill] sm:$0xff] }
 0x370   : > { %v4836_v15 = vmul.f32 %v1754_v48, %v9334_v45  ;;  %v5876_v16 = vmul.f32 %v1754_v48, %v1754_v48  ;;  %v4837_v19 = vmul.f32 %v1250_v7, %v9335_v40  ;;  %v5877_v34 = vmul.f32 %v1250_v7, %v1250_v7  ;;  %v9340_v48 = vld [vmem:[#allocation15_spill] sm:$0xff] }
 0x371   : > { %v5090_v8 = vadd.f32 %v5089_v28, %v4835_v55  ;;  %v6130_v59 = vadd.f32 %v6129_v4, %v5875_v56  ;;  %v4838_v2 = vmul.f32 %v1419_v6, %v9337_v58  ;;  %v5878_v43 = vmul.f32 %v1419_v6, %v1419_v6  ;;  %v9341_v56 = vld [vmem:[#allocation16_spill] sm:$0xff] }
 0x372   : > { %6693 = vmatmul.msk.bf16.gmra.mxu0 %vm289_vm0, %v9336_v54  ;;  %6725 = vmatmul.msk.bf16.gmra.mxu1 %vm289_vm0, %v9336_v54 }
 0x373   : > { %v5091_v61 = vadd.f32 %v5090_v8, %v4836_v15  ;;  %v6131_v57 = vadd.f32 %v6130_v59, %v5876_v16  ;;  %6757 = vmatmul.msk.bf16.gmra.mxu2 %vm289_vm0, %v9336_v54  ;;  %6789 = vmatmul.msk.bf16.gmra.mxu3 %vm289_vm0, %v9336_v54  ;;  %v9342_v16 = vld [vmem:[#allocation17_spill] sm:$0xff] }
 0x375   : > { %v5092_v23 = vadd.f32 %v5091_v61, %v4837_v19  ;;  %v6132_v33 = vadd.f32 %v6131_v57, %v5877_v34 }
 0x376   : > { %v1588_v26 = vpop.f32.mrf.mxu2  ;;  %v1757_v30 = vpop.f32.mrf.mxu3 }
 0x377   : > { %v5093_v42 = vadd.f32 %v5092_v23, %v4838_v2  ;;  %v6133_v24 = vadd.f32 %v6132_v33, %v5878_v43  ;;  %v4839_v37 = vmul.f32 %v1588_v26, %v9338_v60  ;;  %v5879_v36 = vmul.f32 %v1588_v26, %v1588_v26  ;;  %v1252_v25 = vpop.f32.mrf.mxu0  ;;  %v1421_v44 = vpop.f32.mrf.mxu1  ;;  %v9343_v23 = vld [vmem:[#allocation18_spill] sm:$0xff]  ;;  %v9344_v2 = vld [vmem:[#allocation19_spill] sm:$0xff] }
 0x378   : > { %v4840_v3 = vmul.f32 %v1757_v30, %v9339_v31  ;;  %v5880_v22 = vmul.f32 %v1757_v30, %v1757_v30  ;;  %v4841_v28 = vmul.f32 %v1252_v25, %v9340_v48  ;;  %v5881_v4 = vmul.f32 %v1252_v25, %v1252_v25  ;;  %v9345_v26 = vld [vmem:[#allocation210_spill] sm:$0xff] }
 0x379   : > { %v5094_v20 = vadd.f32 %v5093_v42, %v4839_v37  ;;  %v6134_v39 = vadd.f32 %v6133_v24, %v5879_v36  ;;  %v4842_v7 = vmul.f32 %v1421_v44, %v9341_v56  ;;  %v5882_v6 = vmul.f32 %v1421_v44, %v1421_v44  ;;  %v9346_v36 = vld [vmem:[#allocation20_spill] sm:$0xff] }
 0x37b   : > { %v5095_v47 = vadd.f32 %v5094_v20, %v4840_v3  ;;  %v6135_v1 = vadd.f32 %v6134_v39, %v5880_v22  ;;  %v9347_v22 = vld [vmem:[#allocation21_spill] sm:$0xff] }
 0x37d   : > { %v5096_v12 = vadd.f32 %v5095_v47, %v4841_v28  ;;  %v6136_v55 = vadd.f32 %v6135_v1, %v5881_v4 }
 0x37e   : > { %v1590_v8 = vpop.f32.mrf.mxu2  ;;  %v1759_v59 = vpop.f32.mrf.mxu3 }
 0x37f   : > { %v5097_v45 = vadd.f32 %v5096_v12, %v4842_v7  ;;  %v6137_v15 = vadd.f32 %v6136_v55, %v5882_v6  ;;  %v4843_v40 = vmul.f32 %v1590_v8, %v9342_v16  ;;  %v5883_v19 = vmul.f32 %v1590_v8, %v1590_v8  ;;  %v1255_v54 = vpop.f32.mrf.mxu0  ;;  %v1424_v61 = vpop.f32.mrf.mxu1  ;;  %v9348_v55 = vld [vmem:[#allocation22_spill] sm:$0xff] }
 0x380   : > { %v4844_v33 = vmul.f32 %v1759_v59, %v9343_v23  ;;  %v5884_v58 = vmul.f32 %v1759_v59, %v1759_v59  ;;  %v4845_v43 = vmul.f32 %v1255_v54, %v9344_v2  ;;  %v5885_v24 = vmul.f32 %v1255_v54, %v1255_v54  ;;  %v9349_v59 = vld [vmem:[#allocation23_spill] sm:$0xff] }
 0x381   : > { %v5098_v57 = vadd.f32 %v5097_v45, %v4843_v40  ;;  %v6138_v34 = vadd.f32 %v6137_v15, %v5883_v19  ;;  %v4846_v25 = vmul.f32 %v1424_v61, %v9346_v36  ;;  %v5886_v44 = vmul.f32 %v1424_v61, %v1424_v61  ;;  %v9350_v19 = vld [vmem:[#allocation24_spill] sm:$0xff] }
 0x382   : > { %6694 = vmatmul.msk.bf16.gmra.mxu0 %vm289_vm0, %v9345_v26  ;;  %6726 = vmatmul.msk.bf16.gmra.mxu1 %vm289_vm0, %v9345_v26 }
 0x383   : > { %v5099_v30 = vadd.f32 %v5098_v57, %v4844_v33  ;;  %v6139_v42 = vadd.f32 %v6138_v34, %v5884_v58  ;;  %6758 = vmatmul.msk.bf16.gmra.mxu2 %vm289_vm0, %v9345_v26  ;;  %6790 = vmatmul.msk.bf16.gmra.mxu3 %vm289_vm0, %v9345_v26  ;;  %v9351_v58 = vld [vmem:[#allocation25_spill] sm:$0xff] }
 0x385   : > { %v5100_v60 = vadd.f32 %v5099_v30, %v4845_v43  ;;  %v6140_v37 = vadd.f32 %v6139_v42, %v5885_v24 }
 0x386   : > { %v1593_v20 = vpop.f32.mrf.mxu2  ;;  %v1762_v39 = vpop.f32.mrf.mxu3 }
 0x387   : > { %v5101_v31 = vadd.f32 %v5100_v60, %v4846_v25  ;;  %v6141_v3 = vadd.f32 %v6140_v37, %v5886_v44  ;;  %v4847_v47 = vmul.f32 %v1593_v20, %v9347_v22  ;;  %v5887_v1 = vmul.f32 %v1593_v20, %v1593_v20  ;;  %v1257_v48 = vpop.f32.mrf.mxu0  ;;  %v1426_v28 = vpop.f32.mrf.mxu1  ;;  %v9352_v60 = vld [vmem:[#allocation26_spill] sm:$0xff]  ;;  %v9353_v25 = vld [vmem:[#allocation27_spill] sm:$0xff] }
 0x388   : > { %v4848_v56 = vmul.f32 %v1762_v39, %v9348_v55  ;;  %v5888_v7 = vmul.f32 %v1762_v39, %v1762_v39  ;;  %v4849_v45 = vmul.f32 %v1257_v48, %v9349_v59  ;;  %v5889_v15 = vmul.f32 %v1257_v48, %v1257_v48 }
 0x389   : > { %v5102_v4 = vadd.f32 %v5101_v31, %v4847_v47  ;;  %v6142_v12 = vadd.f32 %v6141_v3, %v5887_v1  ;;  %v4850_v54 = vmul.f32 %v1426_v28, %v9350_v19  ;;  %v5890_v61 = vmul.f32 %v1426_v28, %v1426_v28  ;;  %v9354_v47 = vld [vmem:[#allocation28_spill] sm:$0xff] }
 0x38b   : > { %v5103_v6 = vadd.f32 %v5102_v4, %v4848_v56  ;;  %v6143_v8 = vadd.f32 %v6142_v12, %v5888_v7  ;;  %v9355_v56 = vld [vmem:[#allocation29_spill] sm:$0xff] }
 0x38d   : > { %v5104_v16 = vadd.f32 %v5103_v6, %v4849_v45  ;;  %v6144_v40 = vadd.f32 %v6143_v8, %v5889_v15 }
 0x38e   : > { %v1595_v57 = vpop.f32.mrf.mxu2  ;;  %v1764_v34 = vpop.f32.mrf.mxu3 }
 0x38f   : > { %v5105_v23 = vadd.f32 %v5104_v16, %v4850_v54  ;;  %v6145_v33 = vadd.f32 %v6144_v40, %v5890_v61  ;;  %v4851_v2 = vmul.f32 %v1595_v57, %v9351_v58  ;;  %v5891_v43 = vmul.f32 %v1595_v57, %v1595_v57  ;;  %v1260_v26 = vpop.f32.mrf.mxu0  ;;  %v1429_v30 = vpop.f32.mrf.mxu1  ;;  %v9356_v16 = vld [vmem:[#allocation30_spill] sm:$0xff]  ;;  %v9357_v61 = vld [vmem:[#allocation31_spill] sm:$0xff] }
 0x390   : > { %v4852_v37 = vmul.f32 %v1764_v34, %v9352_v60  ;;  %v5892_v36 = vmul.f32 %v1764_v34, %v1764_v34  ;;  %v4853_v44 = vmul.f32 %v1260_v26, %v9353_v25  ;;  %v5893_v31 = vmul.f32 %v1260_v26, %v1260_v26 }
 0x391   : > { %v5106_v42 = vadd.f32 %v5105_v23, %v4851_v2  ;;  %v6146_v24 = vadd.f32 %v6145_v33, %v5891_v43  ;;  %v4854_v1 = vmul.f32 %v1429_v30, %v9354_v47  ;;  %v5894_v48 = vmul.f32 %v1429_v30, %v1429_v30  ;;  %v8482_v23 = vpop.trf.xlu1  ;;  %v9358_v2 = vld [vmem:[#allocation32_spill] sm:$0xff] }
 0x392   : > { %6695 = vmatmul.msk.bf16.gmra.mxu0 %vm289_vm0, %v8243_v38  ;;  %6727 = vmatmul.msk.bf16.gmra.mxu1 %vm289_vm0, %v8243_v38 }
 0x393   : > { %v5107_v20 = vadd.f32 %v5106_v42, %v4852_v37  ;;  %v6147_v39 = vadd.f32 %v6146_v24, %v5892_v36  ;;  %6759 = vmatmul.msk.bf16.gmra.mxu2 %vm289_vm0, %v8243_v38  ;;  %6791 = vmatmul.msk.bf16.gmra.mxu3 %vm289_vm0, %v8243_v38  ;;  %v9359_v37 = vld [vmem:[#allocation33_spill] sm:$0xff] }
 0x395   : > { %v5108_v3 = vadd.f32 %v5107_v20, %v4853_v44  ;;  %v6148_v22 = vadd.f32 %v6147_v39, %v5893_v31 }
 0x396   : > { %v1598_v28 = vpop.f32.mrf.mxu2  ;;  %v1767_v4 = vpop.f32.mrf.mxu3 }
 0x397   : > { %v5109_v12 = vadd.f32 %v5108_v3, %v4854_v1  ;;  %v6149_v55 = vadd.f32 %v6148_v22, %v5894_v48  ;;  %v4855_v7 = vmul.f32 %v1598_v28, %v9355_v56  ;;  %v5895_v6 = vmul.f32 %v1598_v28, %v1598_v28  ;;  %v1262_v8 = vpop.f32.mrf.mxu0  ;;  %v1431_v59 = vpop.f32.mrf.mxu1  ;;  %v9360_v3 = vld [vmem:[#allocation34_spill] sm:$0xff]  ;;  %v9361_v1 = vld [vmem:[#allocation35_spill] sm:$0xff] }
 0x398   : > { %v4856_v40 = vmul.f32 %v1767_v4, %v9356_v16  ;;  %v5896_v19 = vmul.f32 %v1767_v4, %v1767_v4  ;;  %v4857_v57 = vmul.f32 %v1262_v8, %v9357_v61  ;;  %v5897_v34 = vmul.f32 %v1262_v8, %v1262_v8 }
 0x399   : > { %v5110_v45 = vadd.f32 %v5109_v12, %v4855_v7  ;;  %v6150_v15 = vadd.f32 %v6149_v55, %v5895_v6  ;;  %v4858_v43 = vmul.f32 %v1431_v59, %v9358_v2  ;;  %v5898_v26 = vmul.f32 %v1431_v59, %v1431_v59  ;;  %v8496_v55 = vpop.trf.xlu1  ;;  %v9362_v6 = vld [vmem:[#allocation36_spill] sm:$0xff] }
 0x39b   : > { %v5111_v38 = vadd.f32 %v5110_v45, %v4856_v40  ;;  %v6151_v54 = vadd.f32 %v6150_v15, %v5896_v19  ;;  %v9363_v19 = vld [vmem:[#allocation37_spill] sm:$0xff] }
 0x39d   : > { %v5112_v33 = vadd.f32 %v5111_v38, %v4857_v57  ;;  %v6152_v58 = vadd.f32 %v6151_v54, %v5897_v34 }
 0x39e   : > { %v1600_v30 = vpop.f32.mrf.mxu2  ;;  %v1769_v42 = vpop.f32.mrf.mxu3 }
 0x39f   : > { %v5113_v24 = vadd.f32 %v5112_v33, %v4858_v43  ;;  %v6153_v60 = vadd.f32 %v6152_v58, %v5898_v26  ;;  %v4859_v36 = vmul.f32 %v1600_v30, %v9359_v37  ;;  %v5899_v25 = vmul.f32 %v1600_v30, %v1600_v30  ;;  %v1265_v44 = vpop.f32.mrf.mxu0  ;;  %v1434_v20 = vpop.f32.mrf.mxu1  ;;  %v9364_v58 = vld [vmem:[#allocation38_spill] sm:$0xff]  ;;  %v9365_v30 = vld [vmem:[#allocation39_spill] sm:$0xff] }
 0x3a0   : > { %v4860_v22 = vmul.f32 %v1769_v42, %v9360_v3  ;;  %v5900_v47 = vmul.f32 %v1769_v42, %v1769_v42  ;;  %v4861_v48 = vmul.f32 %v1265_v44, %v9361_v1  ;;  %v5901_v12 = vmul.f32 %v1265_v44, %v1265_v44 }
 0x3a1   : > { %v5114_v39 = vadd.f32 %v5113_v24, %v4859_v36  ;;  %v6154_v31 = vadd.f32 %v6153_v60, %v5899_v25  ;;  %v4862_v8 = vmul.f32 %v1434_v20, %v9362_v6  ;;  %v5902_v59 = vmul.f32 %v1434_v20, %v1434_v20  ;;  %v8502_v60 = vpop.trf.xlu1  ;;  %v9366_v25 = vld [vmem:[#allocation40_spill] sm:$0xff] }
 0x3a2   : > { %6696 = vmatmul.msk.bf16.gmra.mxu0 %vm289_vm0, %v8317_v14  ;;  %6728 = vmatmul.msk.bf16.gmra.mxu1 %vm289_vm0, %v8317_v14 }
 0x3a3   : > { %v5115_v28 = vadd.f32 %v5114_v39, %v4860_v22  ;;  %v6155_v4 = vadd.f32 %v6154_v31, %v5900_v47  ;;  %6760 = vmatmul.msk.bf16.gmra.mxu2 %vm289_vm0, %v8317_v14  ;;  %6792 = vmatmul.msk.bf16.gmra.mxu3 %vm289_vm0, %v8317_v14  ;;  %v9367_v47 = vld [vmem:[#allocation41_spill] sm:$0xff] }
 0x3a5   : > { %v5116_v56 = vadd.f32 %v5115_v28, %v4861_v48  ;;  %v6156_v7 = vadd.f32 %v6155_v4, %v5901_v12 }
 0x3a6   : > { %v1603_v45 = vpop.f32.mrf.mxu2  ;;  %v1772_v15 = vpop.f32.mrf.mxu3 }
 0x3a7   : > { %v5117_v16 = vadd.f32 %v5116_v56, %v4862_v8  ;;  %v6157_v40 = vadd.f32 %v6156_v7, %v5902_v59  ;;  %v4863_v38 = vmul.f32 %v1603_v45, %v9363_v19  ;;  %v5903_v54 = vmul.f32 %v1603_v45, %v1603_v45  ;;  %v1267_v61 = vpop.f32.mrf.mxu0  ;;  %v1436_v57 = vpop.f32.mrf.mxu1  ;;  %v9368_v7 = vld [vmem:[#allocation42_spill] sm:$0xff]  ;;  %v9369_v59 = vld [vmem:[#allocation43_spill] sm:$0xff] }
 0x3a8   : > { %v4864_v14 = vmul.f32 %v1772_v15, %v9364_v58  ;;  %v5904_v2 = vmul.f32 %v1772_v15, %v1772_v15  ;;  %v4865_v42 = vmul.f32 %v1267_v61, %v9365_v30  ;;  %v5905_v24 = vmul.f32 %v1267_v61, %v1267_v61  ;;  %v9370_v61 = vld [vmem:[#allocation44_spill] sm:$0xff] }
 0x3a9   : > { %v5118_v34 = vadd.f32 %v5117_v16, %v4863_v38  ;;  %v6158_v33 = vadd.f32 %v6157_v40, %v5903_v54  ;;  %v4866_v44 = vmul.f32 %v1436_v57, %v9366_v25  ;;  %v5906_v20 = vmul.f32 %v1436_v57, %v1436_v57  ;;  %v8516_v19 = vpop.trf.xlu1  ;;  %v9372_v25 = vld [vmem:[#allocation46_spill] sm:$0xff] }
 0x3ab   : > { %v5119_v43 = vadd.f32 %v5118_v34, %v4864_v14  ;;  %v6159_v26 = vadd.f32 %v6158_v33, %v5904_v2 }
 0x3ad   : > { %v5120_v37 = vadd.f32 %v5119_v43, %v4865_v42  ;;  %v6160_v36 = vadd.f32 %v6159_v26, %v5905_v24  ;;  %v9371_v43 = vld [vmem:[#allocation45_spill] sm:$0xff] }
 0x3ae   : > { %v1605_v39 = vpop.f32.mrf.mxu2  ;;  %v1774_v31 = vpop.f32.mrf.mxu3 }
 0x3af   : > { %v5121_v3 = vadd.f32 %v5120_v37, %v4866_v44  ;;  %v6161_v22 = vadd.f32 %v6160_v36, %v5906_v20  ;;  %v4867_v1 = vmul.f32 %v1605_v39, %v9367_v47  ;;  %v5907_v48 = vmul.f32 %v1605_v39, %v1605_v39  ;;  %v1270_v28 = vpop.f32.mrf.mxu0  ;;  %v1439_v4 = vpop.f32.mrf.mxu1 }
 0x3b0   : > { %v4868_v6 = vmul.f32 %v1774_v31, %v9368_v7  ;;  %v5908_v8 = vmul.f32 %v1774_v31, %v1774_v31  ;;  %v4869_v45 = vmul.f32 %v1270_v28, %v9369_v59  ;;  %v5909_v40 = vmul.f32 %v1270_v28, %v1270_v28  ;;  %v9373_v31 = vld [vmem:[#allocation47_spill] sm:$0xff]  ;;  %v9374_v28 = vld [vmem:[#allocation48_spill] sm:$0xff]  ;;  %v9375_v59 = vld [vmem:[#allocation49_spill] sm:$0xff] }
 0x3b1   : > { %v5122_v12 = vadd.f32 %v5121_v3, %v4867_v1  ;;  %v6162_v56 = vadd.f32 %v6161_v22, %v5907_v48  ;;  %v4870_v57 = vmul.f32 %v1439_v4, %v9370_v61  ;;  %v5910_v34 = vmul.f32 %v1439_v4, %v1439_v4  ;;  %v8522_v47 = vpop.trf.xlu1  ;;  %v9376_v61 = vld [vmem:[#allocation50_spill] sm:$0xff] }
 0x3b2   : > { %6697 = vmatmul.msk.bf16.gmra.mxu0 %vm289_vm0, %v8482_v23  ;;  %6729 = vmatmul.msk.bf16.gmra.mxu1 %vm289_vm0, %v8482_v23 }
 0x3b3   : > { %v5123_v15 = vadd.f32 %v5122_v12, %v4868_v6  ;;  %v6163_v16 = vadd.f32 %v6162_v56, %v5908_v8  ;;  %6761 = vmatmul.msk.bf16.gmra.mxu2 %vm289_vm0, %v8482_v23  ;;  %6793 = vmatmul.msk.bf16.gmra.mxu3 %vm289_vm0, %v8482_v23 }
 0x3b5   : > { %v5124_v38 = vadd.f32 %v5123_v15, %v4869_v45  ;;  %v6164_v54 = vadd.f32 %v6163_v16, %v5909_v40 }
 0x3b6   : > { %v1608_v33 = vpop.f32.mrf.mxu2  ;;  %v1777_v58 = vpop.f32.mrf.mxu3 }
 0x3b7   : > { %v5125_v14 = vadd.f32 %v5124_v38, %v4870_v57  ;;  %v6165_v2 = vadd.f32 %v6164_v54, %v5910_v34  ;;  %v4871_v26 = vmul.f32 %v1608_v33, %v9371_v43  ;;  %v5911_v30 = vmul.f32 %v1608_v33, %v1608_v33  ;;  %v1272_v42 = vpop.f32.mrf.mxu0  ;;  %v1441_v24 = vpop.f32.mrf.mxu1  ;;  %v9377_v33 = vld [vmem:[#allocation51_spill] sm:$0xff] }
 0x3b8   : > { %v4872_v23 = vmul.f32 %v1777_v58, %v9372_v25  ;;  %v5912_v44 = vmul.f32 %v1777_v58, %v1777_v58  ;;  %v4873_v3 = vmul.f32 %v1272_v42, %v9373_v31  ;;  %v5913_v22 = vmul.f32 %v1272_v42, %v1272_v42 }
 0x3b9   : > { %v5126_v37 = vadd.f32 %v5125_v14, %v4871_v26  ;;  %v6166_v36 = vadd.f32 %v6165_v2, %v5911_v30  ;;  %v4874_v4 = vmul.f32 %v1441_v24, %v9374_v28  ;;  %v5914_v12 = vmul.f32 %v1441_v24, %v1441_v24  ;;  %v8536_v26 = vpop.trf.xlu1  ;;  %v9378_v24 = vld [vmem:[#allocation52_spill] sm:$0xff] }
 0x3bb   : > { %v5127_v20 = vadd.f32 %v5126_v37, %v4872_v23  ;;  %v6167_v39 = vadd.f32 %v6166_v36, %v5912_v44 }
 0x3bd   : > { %v5128_v1 = vadd.f32 %v5127_v20, %v4873_v3  ;;  %v6168_v48 = vadd.f32 %v6167_v39, %v5913_v22  ;;  %v9379_v39 = vld [vmem:[#allocation53_spill] sm:$0xff] }
 0x3be   : > { %v1610_v56 = vpop.f32.mrf.mxu2  ;;  %v1779_v7 = vpop.f32.mrf.mxu3 }
 0x3bf   : > { %v5129_v6 = vadd.f32 %v5128_v1, %v4874_v4  ;;  %v6169_v8 = vadd.f32 %v6168_v48, %v5914_v12  ;;  %v4875_v45 = vmul.f32 %v1610_v56, %v9375_v59  ;;  %v5915_v15 = vmul.f32 %v1610_v56, %v1610_v56  ;;  %v1275_v16 = vpop.f32.mrf.mxu0  ;;  %v1444_v40 = vpop.f32.mrf.mxu1  ;;  %v9380_v4 = vld [vmem:[#allocation54_spill] sm:$0xff] }
 0x3c0   : > { %v4876_v57 = vmul.f32 %v1779_v7, %v9376_v61  ;;  %v5916_v34 = vmul.f32 %v1779_v7, %v1779_v7  ;;  %v4877_v58 = vmul.f32 %v1275_v16, %v9377_v33  ;;  %v5917_v43 = vmul.f32 %v1275_v16, %v1275_v16  ;;  %v9382_v16 = vld [vmem:[#allocation56_spill] sm:$0xff] }
 0x3c1   : > { %v5130_v38 = vadd.f32 %v5129_v6, %v4875_v45  ;;  %v6170_v54 = vadd.f32 %v6169_v8, %v5915_v15  ;;  %v4878_v37 = vmul.f32 %v1444_v40, %v9378_v24  ;;  %v5918_v36 = vmul.f32 %v1444_v40, %v1444_v40  ;;  %v9381_v6 = vld [vmem:[#allocation55_spill] sm:$0xff] }
 0x3c2   : > { %6698 = vmatmul.msk.bf16.gmra.mxu0 %vm289_vm0, %v8496_v55  ;;  %6730 = vmatmul.msk.bf16.gmra.mxu1 %vm289_vm0, %v8496_v55 }
 0x3c3   : > { %v5131_v14 = vadd.f32 %v5130_v38, %v4876_v57  ;;  %v6171_v2 = vadd.f32 %v6170_v54, %v5916_v34  ;;  %6762 = vmatmul.msk.bf16.gmra.mxu2 %vm289_vm0, %v8496_v55  ;;  %6794 = vmatmul.msk.bf16.gmra.mxu3 %vm289_vm0, %v8496_v55  ;;  %v8543_v54 = vpop.trf.xlu1 }
 0x3c5   : > { %v5132_v30 = vadd.f32 %v5131_v14, %v4877_v58  ;;  %v6172_v42 = vadd.f32 %v6171_v2, %v5917_v43  ;;  %v9383_v58 = vld [vmem:[#allocation57_spill] sm:$0xff] }
 0x3c6   : > { %v1613_v25 = vpop.f32.mrf.mxu2  ;;  %v1782_v23 = vpop.f32.mrf.mxu3 }
 0x3c7   : > { %v5133_v44 = vadd.f32 %v5132_v30, %v4878_v37  ;;  %v6173_v20 = vadd.f32 %v6172_v42, %v5918_v36  ;;  %v4879_v31 = vmul.f32 %v1613_v25, %v9379_v39  ;;  %v5919_v3 = vmul.f32 %v1613_v25, %v1613_v25  ;;  %v1277_v22 = vpop.f32.mrf.mxu0  ;;  %v1446_v1 = vpop.f32.mrf.mxu1  ;;  %v9384_v37 = vld [vmem:[#allocation58_spill] sm:$0xff] }
 0x3c8   : > { %v4880_v55 = vmul.f32 %v1782_v23, %v9380_v4  ;;  %v5920_v12 = vmul.f32 %v1782_v23, %v1782_v23  ;;  %v4881_v8 = vmul.f32 %v1277_v22, %v9381_v6  ;;  %v5921_v59 = vmul.f32 %v1277_v22, %v1277_v22  ;;  %v9385_v23 = vld [vmem:[#allocation59_spill] sm:$0xff] }
 0x3c9   : > { %v5134_v48 = vadd.f32 %v5133_v44, %v4879_v31  ;;  %v6174_v28 = vadd.f32 %v6173_v20, %v5919_v3  ;;  %v4882_v40 = vmul.f32 %v1446_v1, %v9382_v16  ;;  %v5922_v38 = vmul.f32 %v1446_v1, %v1446_v1  ;;  %v9386_v1 = vld [vmem:[#allocation60_spill] sm:$0xff] }
 0x3cb   : > { %v5135_v56 = vadd.f32 %v5134_v48, %v4880_v55  ;;  %v6175_v7 = vadd.f32 %v6174_v28, %v5920_v12 }
 0x3cd   : > { %v5136_v45 = vadd.f32 %v5135_v56, %v4881_v8  ;;  %v6176_v15 = vadd.f32 %v6175_v7, %v5921_v59  ;;  %v9387_v7 = vld [vmem:[#allocation61_spill] sm:$0xff] }
 0x3ce   : > { %v1615_v61 = vpop.f32.mrf.mxu2  ;;  %v1784_v57 = vpop.f32.mrf.mxu3 }
 0x3cf   : > { %v5137_v34 = vadd.f32 %v5136_v45, %v4882_v40  ;;  %v6177_v33 = vadd.f32 %v6176_v15, %v5922_v38  ;;  %v4883_v14 = vmul.f32 %v1615_v61, %v9383_v58  ;;  %v5923_v2 = vmul.f32 %v1615_v61, %v1615_v61  ;;  %v1280_v43 = vpop.f32.mrf.mxu0  ;;  %v1449_v30 = vpop.f32.mrf.mxu1  ;;  %v9388_v40 = vld [vmem:[#allocation62_spill] sm:$0xff] }
 0x3d0   : > { %v4884_v36 = vmul.f32 %v1784_v57, %v9384_v37  ;;  %v5924_v25 = vmul.f32 %v1784_v57, %v1784_v57  ;;  %v4885_v44 = vmul.f32 %v1280_v43, %v9385_v23  ;;  %v5925_v31 = vmul.f32 %v1280_v43, %v1280_v43 }
 0x3d1   : > { %v5138_v42 = vadd.f32 %v5137_v34, %v4883_v14  ;;  %v6178_v24 = vadd.f32 %v6177_v33, %v5923_v2  ;;  %v4886_v48 = vmul.f32 %v1449_v30, %v9386_v1  ;;  %v5926_v28 = vmul.f32 %v1449_v30, %v1449_v30  ;;  %v9389_v33 = vld [vmem:[#allocation63_spill] sm:$0xff]  ;;  %v9390_v30 = vld [vmem:[#allocation64_spill] sm:$0xff] }
 0x3d2   : > { %6699 = vmatmul.msk.bf16.gmra.mxu0 %vm289_vm0, %v8516_v19  ;;  %6731 = vmatmul.msk.bf16.gmra.mxu1 %vm289_vm0, %v8516_v19 }
 0x3d3   : > { %v5139_v20 = vadd.f32 %v5138_v42, %v4884_v36  ;;  %v6179_v39 = vadd.f32 %v6178_v24, %v5924_v25  ;;  %6763 = vmatmul.msk.bf16.gmra.mxu2 %vm289_vm0, %v8516_v19  ;;  %6795 = vmatmul.msk.bf16.gmra.mxu3 %vm289_vm0, %v8516_v19  ;;  %v8559_v19 = vpop.trf.xlu1 }
 0x3d5   : > { %v5140_v3 = vadd.f32 %v5139_v20, %v4885_v44  ;;  %v6180_v22 = vadd.f32 %v6179_v39, %v5925_v31  ;;  %v9391_v44 = vld [vmem:[#allocation65_spill] sm:$0xff] }
 0x3d6   : > { %v1618_v4 = vpop.f32.mrf.mxu2  ;;  %v1787_v55 = vpop.f32.mrf.mxu3 }
 0x3d7   : > { %v5141_v12 = vadd.f32 %v5140_v3, %v4886_v48  ;;  %v6181_v56 = vadd.f32 %v6180_v22, %v5926_v28  ;;  %v4887_v6 = vmul.f32 %v1618_v4, %v9387_v7  ;;  %v5927_v8 = vmul.f32 %v1618_v4, %v1618_v4  ;;  %v1282_v59 = vpop.f32.mrf.mxu0  ;;  %v1451_v45 = vpop.f32.mrf.mxu1  ;;  %v9392_v48 = vld [vmem:[#allocation66_spill] sm:$0xff] }
 0x3d8   : > { %v4888_v38 = vmul.f32 %v1787_v55, %v9388_v40  ;;  %v5928_v61 = vmul.f32 %v1787_v55, %v1787_v55  ;;  %v4889_v58 = vmul.f32 %v1282_v59, %v9389_v33  ;;  %v5929_v14 = vmul.f32 %v1282_v59, %v1282_v59  ;;  %v9393_v55 = vld [vmem:[#allocation67_spill] sm:$0xff]  ;;  %v9395_v33 = vld [vmem:[#allocation69_spill] sm:$0xff] }
 0x3d9   : > { %v5142_v15 = vadd.f32 %v5141_v12, %v4887_v6  ;;  %v6182_v16 = vadd.f32 %v6181_v56, %v5927_v8  ;;  %v4890_v42 = vmul.f32 %v1451_v45, %v9390_v30  ;;  %v5930_v24 = vmul.f32 %v1451_v45, %v1451_v45 }
 0x3db   : > { %v5143_v57 = vadd.f32 %v5142_v15, %v4888_v38  ;;  %v6183_v34 = vadd.f32 %v6182_v16, %v5928_v61  ;;  %v8574_v8 = vpop.trf.xlu1  ;;  %v9394_v15 = vld [vmem:[#allocation68_spill] sm:$0xff] }
 0x3dd   : > { %v5144_v2 = vadd.f32 %v5143_v57, %v4889_v58  ;;  %v6184_v43 = vadd.f32 %v6183_v34, %v5929_v14 }
 0x3de   : > { %v1620_v37 = vpop.f32.mrf.mxu2  ;;  %v1789_v36 = vpop.f32.mrf.mxu3 }
 0x3df   : > { %v5145_v25 = vadd.f32 %v5144_v2, %v4890_v42  ;;  %v6185_v23 = vadd.f32 %v6184_v43, %v5930_v24  ;;  %v4891_v20 = vmul.f32 %v1620_v37, %v9391_v44  ;;  %v5931_v39 = vmul.f32 %v1620_v37, %v1620_v37  ;;  %v1285_v31 = vpop.f32.mrf.mxu0  ;;  %v1454_v3 = vpop.f32.mrf.mxu1  ;;  %v9396_v24 = vld [vmem:[#allocation70_spill] sm:$0xff] }
 0x3e0   : > { %v4892_v28 = vmul.f32 %v1789_v36, %v9392_v48  ;;  %v5932_v4 = vmul.f32 %v1789_v36, %v1789_v36  ;;  %v4893_v12 = vmul.f32 %v1285_v31, %v9393_v55  ;;  %v5933_v6 = vmul.f32 %v1285_v31, %v1285_v31 }
 0x3e1   : > { %v5146_v22 = vadd.f32 %v5145_v25, %v4891_v20  ;;  %v6186_v1 = vadd.f32 %v6185_v23, %v5931_v39  ;;  %v4894_v16 = vmul.f32 %v1454_v3, %v9394_v15  ;;  %v5934_v40 = vmul.f32 %v1454_v3, %v1454_v3  ;;  %v9397_v23 = vld [vmem:[#allocation71_spill] sm:$0xff]  ;;  %v9398_v3 = vld [vmem:[#allocation72_spill] sm:$0xff] }
 0x3e2   : > { %6700 = vmatmul.msk.bf16.gmra.mxu0 %vm289_vm0, %v8536_v26  ;;  %6732 = vmatmul.msk.bf16.gmra.mxu1 %vm289_vm0, %v8536_v26 }
 0x3e3   : > { %v5147_v56 = vadd.f32 %v5146_v22, %v4892_v28  ;;  %v6187_v7 = vadd.f32 %v6186_v1, %v5932_v4  ;;  %6764 = vmatmul.msk.bf16.gmra.mxu2 %vm289_vm0, %v8536_v26  ;;  %6796 = vmatmul.msk.bf16.gmra.mxu3 %vm289_vm0, %v8536_v26  ;;  %v8581_v48 = vpop.trf.xlu1 }
 0x3e5   : > { %v5148_v59 = vadd.f32 %v5147_v56, %v4893_v12  ;;  %v6188_v45 = vadd.f32 %v6187_v7, %v5933_v6  ;;  %v9399_v56 = vld [vmem:[#allocation73_spill] sm:$0xff] }
 0x3e6   : > { %v1623_v38 = vpop.f32.mrf.mxu2  ;;  %v1792_v61 = vpop.f32.mrf.mxu3 }
 0x3e7   : > { %v5149_v57 = vadd.f32 %v5148_v59, %v4894_v16  ;;  %v6189_v34 = vadd.f32 %v6188_v45, %v5934_v40  ;;  %v4895_v58 = vmul.f32 %v1623_v38, %v9395_v33  ;;  %v5935_v14 = vmul.f32 %v1623_v38, %v1623_v38  ;;  %v1287_v2 = vpop.f32.mrf.mxu0  ;;  %v1456_v43 = vpop.f32.mrf.mxu1  ;;  %v9400_v40 = vld [vmem:[#allocation74_spill] sm:$0xff] }
 0x3e8   : > { %v4896_v26 = vmul.f32 %v1792_v61, %v9396_v24  ;;  %v5936_v37 = vmul.f32 %v1792_v61, %v1792_v61  ;;  %v4897_v44 = vmul.f32 %v1287_v2, %v9397_v23  ;;  %v5937_v20 = vmul.f32 %v1287_v2, %v1287_v2  ;;  %v9403_v23 = vld [vmem:[#allocation77_spill] sm:$0xff] }
 0x3e9   : > { %v5150_v30 = vadd.f32 %v5149_v57, %v4895_v58  ;;  %v6190_v42 = vadd.f32 %v6189_v34, %v5935_v14  ;;  %v4898_v22 = vmul.f32 %v1456_v43, %v9398_v3  ;;  %v5938_v1 = vmul.f32 %v1456_v43, %v1456_v43  ;;  %v9401_v57 = vld [vmem:[#allocation75_spill] sm:$0xff] }
 0x3eb   : > { %v5151_v36 = vadd.f32 %v5150_v30, %v4896_v26  ;;  %v6191_v25 = vadd.f32 %v6190_v42, %v5936_v37  ;;  %v9402_v30 = vld [vmem:[#allocation76_spill] sm:$0xff] }
 0x3ed   : > { %v5152_v39 = vadd.f32 %v5151_v36, %v4897_v44  ;;  %v6192_v31 = vadd.f32 %v6191_v25, %v5937_v20 }
 0x3ee   : > { %v1625_v28 = vpop.f32.mrf.mxu2  ;;  %v1794_v4 = vpop.f32.mrf.mxu3 }
 0x3ef   : > { %v5153_v55 = vadd.f32 %v5152_v39, %v4898_v22  ;;  %v6193_v12 = vadd.f32 %v6192_v31, %v5938_v1  ;;  %v4899_v7 = vmul.f32 %v1625_v28, %v9399_v56  ;;  %v5939_v6 = vmul.f32 %v1625_v28, %v1625_v28  ;;  %v1290_v59 = vpop.f32.mrf.mxu0  ;;  %v1459_v45 = vpop.f32.mrf.mxu1  ;;  %v9404_v1 = vld [vmem:[#allocation78_spill] sm:$0xff]  ;;  %v9405_v56 = vld [vmem:[#allocation79_spill] sm:$0xff] }
 0x3f0   : > { %v4900_v38 = vmul.f32 %v1794_v4, %v9400_v40  ;;  %v5940_v61 = vmul.f32 %v1794_v4, %v1794_v4  ;;  %v4901_v34 = vmul.f32 %v1290_v59, %v9401_v57  ;;  %v5941_v14 = vmul.f32 %v1290_v59, %v1290_v59 }
 0x3f1   : > { %v5154_v15 = vadd.f32 %v5153_v55, %v4899_v7  ;;  %v6194_v16 = vadd.f32 %v6193_v12, %v5939_v6  ;;  %v4902_v42 = vmul.f32 %v1459_v45, %v9402_v30  ;;  %v5942_v24 = vmul.f32 %v1459_v45, %v1459_v45 }
 0x3f2   : > { %6701 = vmatmul.msk.bf16.gmra.mxu0 %vm289_vm0, %v8559_v19  ;;  %6733 = vmatmul.msk.bf16.gmra.mxu1 %vm289_vm0, %v8559_v19 }
 0x3f3   : > { %v5155_v33 = vadd.f32 %v5154_v15, %v4900_v38  ;;  %v6195_v58 = vadd.f32 %v6194_v16, %v5940_v61  ;;  %6765 = vmatmul.msk.bf16.gmra.mxu2 %vm289_vm0, %v8559_v19  ;;  %6797 = vmatmul.msk.bf16.gmra.mxu3 %vm289_vm0, %v8559_v19  ;;  %v8597_v19 = vpop.trf.xlu1  ;;  %v9406_v15 = vld [vmem:[#allocation80_spill] sm:$0xff] }
 0x3f5   : > { %v5156_v2 = vadd.f32 %v5155_v33, %v4901_v34  ;;  %v6196_v43 = vadd.f32 %v6195_v58, %v5941_v14  ;;  %v9407_v33 = vld [vmem:[#allocation81_spill] sm:$0xff] }
 0x3f6   : > { %v1628_v26 = vpop.f32.mrf.mxu2  ;;  %v1797_v37 = vpop.f32.mrf.mxu3 }
 0x3f7   : > { %v5157_v36 = vadd.f32 %v5156_v2, %v4902_v42  ;;  %v6197_v25 = vadd.f32 %v6196_v43, %v5942_v24  ;;  %v4903_v44 = vmul.f32 %v1628_v26, %v9403_v23  ;;  %v5943_v20 = vmul.f32 %v1628_v26, %v1628_v26  ;;  %v1292_v39 = vpop.f32.mrf.mxu0  ;;  %v1461_v31 = vpop.f32.mrf.mxu1  ;;  %v9408_v24 = vld [vmem:[#allocation82_spill] sm:$0xff] }
 0x3f8   : > { %v4904_v28 = vmul.f32 %v1797_v37, %v9404_v1  ;;  %v5944_v4 = vmul.f32 %v1797_v37, %v1797_v37  ;;  %v4905_v7 = vmul.f32 %v1292_v39, %v9405_v56  ;;  %v5945_v6 = vmul.f32 %v1292_v39, %v1292_v39 }
 0x3f9   : > { %v5158_v3 = vadd.f32 %v5157_v36, %v4903_v44  ;;  %v6198_v22 = vadd.f32 %v6197_v25, %v5943_v20  ;;  %v4906_v16 = vmul.f32 %v1461_v31, %v9406_v15  ;;  %v5946_v40 = vmul.f32 %v1461_v31, %v1461_v31  ;;  %v9409_v36 = vld [vmem:[#allocation83_spill] sm:$0xff] }
 0x3fb   : > { %v5159_v55 = vadd.f32 %v5158_v3, %v4904_v28  ;;  %v6199_v12 = vadd.f32 %v6198_v22, %v5944_v4  ;;  %v1124_v39 = vpop.trf.xlu1  ;;  %v9410_v22 = vld [vmem:[#allocation84_spill] sm:$0xff] }
 0x3fd   : > { %v5160_v59 = vadd.f32 %v5159_v55, %v4905_v7  ;;  %v6200_v45 = vadd.f32 %v6199_v12, %v5945_v6  ;;  %v9411_v7 = vld [vmem:[#allocation85_spill] sm:$0xff] }
 0x3fe   : > { %v1630_v38 = vpop.f32.mrf.mxu2  ;;  %v1799_v61 = vpop.f32.mrf.mxu3 }
 0x3ff   : > { %v5161_v57 = vadd.f32 %v5160_v59, %v4906_v16  ;;  %v6201_v34 = vadd.f32 %v6200_v45, %v5946_v40  ;;  %v4907_v58 = vmul.f32 %v1630_v38, %v9407_v33  ;;  %v5947_v14 = vmul.f32 %v1630_v38, %v1630_v38  ;;  %v1295_v2 = vpop.f32.mrf.mxu0  ;;  %v1464_v43 = vpop.f32.mrf.mxu1  ;;  %v9412_v38 = vld [vmem:[#allocation86_spill] sm:$0xff]  ;;  %v9413_v33 = vld [vmem:[#allocation87_spill] sm:$0xff] }
 0x400   : > { %v4908_v26 = vmul.f32 %v1799_v61, %v9408_v24  ;;  %v5948_v37 = vmul.f32 %v1799_v61, %v1799_v61  ;;  %v4909_v25 = vmul.f32 %v1295_v2, %v9409_v36  ;;  %v5949_v20 = vmul.f32 %v1295_v2, %v1295_v2 }
 0x401   : > { %v5162_v30 = vadd.f32 %v5161_v57, %v4907_v58  ;;  %v6202_v42 = vadd.f32 %v6201_v34, %v5947_v14  ;;  %v4910_v1 = vmul.f32 %v1464_v43, %v9410_v22  ;;  %v5950_v28 = vmul.f32 %v1464_v43, %v1464_v43 }
 0x402   : > { %6702 = vmatmul.msk.bf16.gmra.mxu0 %vm289_vm0, %v8581_v48  ;;  %6734 = vmatmul.msk.bf16.gmra.mxu1 %vm289_vm0, %v8581_v48 }
 0x403   : > { %v5163_v23 = vadd.f32 %v5162_v30, %v4908_v26  ;;  %v6203_v44 = vadd.f32 %v6202_v42, %v5948_v37  ;;  %6766 = vmatmul.msk.bf16.gmra.mxu2 %vm289_vm0, %v8581_v48  ;;  %6798 = vmatmul.msk.bf16.gmra.mxu3 %vm289_vm0, %v8581_v48  ;;  %v9414_v30 = vld [vmem:[#allocation88_spill] sm:$0xff]  ;;  %v8617_v26 = vpop.trf.xlu1 }
 0x405   : > { %v5164_v31 = vadd.f32 %v5163_v23, %v4909_v25  ;;  %v6204_v3 = vadd.f32 %v6203_v44, %v5949_v20  ;;  %v9415_v44 = vld [vmem:[#allocation89_spill] sm:$0xff] }
 0x406   : > { %v1633_v4 = vpop.f32.mrf.mxu2  ;;  %v1802_v55 = vpop.f32.mrf.mxu3 }
 0x407   : > { %v5165_v12 = vadd.f32 %v5164_v31, %v4910_v1  ;;  %v6205_v56 = vadd.f32 %v6204_v3, %v5950_v28  ;;  %v4911_v6 = vmul.f32 %v1633_v4, %v9411_v7  ;;  %v5951_v59 = vmul.f32 %v1633_v4, %v1633_v4  ;;  %v1297_v45 = vpop.f32.mrf.mxu0  ;;  %v1466_v15 = vpop.f32.mrf.mxu1  ;;  %v9416_v4 = vld [vmem:[#allocation90_spill] sm:$0xff] }
 0x408   : > { %v4912_v61 = vmul.f32 %v1802_v55, %v9412_v38  ;;  %v5952_v48 = vmul.f32 %v1802_v55, %v1802_v55  ;;  %v4913_v58 = vmul.f32 %v1297_v45, %v9413_v33  ;;  %v5953_v14 = vmul.f32 %v1297_v45, %v1297_v45 }
 0x409   : > { %v5166_v16 = vadd.f32 %v5165_v12, %v4911_v6  ;;  %v6206_v40 = vadd.f32 %v6205_v56, %v5951_v59  ;;  %v4914_v42 = vmul.f32 %v1466_v15, %v9414_v30  ;;  %v5954_v24 = vmul.f32 %v1466_v15, %v1466_v15  ;;  %v9417_v56 = vld [vmem:[#allocation91_spill] sm:$0xff] }
 0x40b   : > { %v5167_v57 = vadd.f32 %v5166_v16, %v4912_v61  ;;  %v6207_v34 = vadd.f32 %v6206_v40, %v5952_v48  ;;  %v9418_v40 = vld [vmem:[#allocation92_spill] sm:$0xff] }
 0x40d   : > { %v5168_v2 = vadd.f32 %v5167_v57, %v4913_v58  ;;  %v6208_v43 = vadd.f32 %v6207_v34, %v5953_v14  ;;  %v9419_v58 = vld [vmem:[#allocation93_spill] sm:$0xff] }
 0x40e   : > { %v1635_v37 = vpop.f32.mrf.mxu2  ;;  %v1804_v36 = vpop.f32.mrf.mxu3 }
 0x40f   : > { %v5169_v25 = vadd.f32 %v5168_v2, %v4914_v42  ;;  %v6209_v23 = vadd.f32 %v6208_v43, %v5954_v24  ;;  %v4915_v20 = vmul.f32 %v1635_v37, %v9415_v44  ;;  %v5955_v31 = vmul.f32 %v1635_v37, %v1635_v37  ;;  %v1300_v3 = vpop.f32.mrf.mxu0  ;;  %v1469_v22 = vpop.f32.mrf.mxu1  ;;  %v9420_v37 = vld [vmem:[#allocation94_spill] sm:$0xff] }
 0x410   : > { %v4916_v55 = vmul.f32 %v1804_v36, %v9416_v4  ;;  %v5956_v12 = vmul.f32 %v1804_v36, %v1804_v36  ;;  %v4917_v7 = vmul.f32 %v1300_v3, %v9417_v56  ;;  %v5957_v45 = vmul.f32 %v1300_v3, %v1300_v3 }
 0x411   : > { %v5170_v1 = vadd.f32 %v5169_v25, %v4915_v20  ;;  %v6210_v28 = vadd.f32 %v6209_v23, %v5955_v31  ;;  %v4918_v38 = vmul.f32 %v1469_v22, %v9418_v40  ;;  %v5958_v61 = vmul.f32 %v1469_v22, %v1469_v22  ;;  %v9421_v20 = vld [vmem:[#allocation95_spill] sm:$0xff] }
 0x412   : > { %6703 = vmatmul.msk.bf16.gmra.mxu0 %vm289_vm0, %v1124_v39  ;;  %6735 = vmatmul.msk.bf16.gmra.mxu1 %vm289_vm0, %v1124_v39 }
 0x413   : > { %v5171_v6 = vadd.f32 %v5170_v1, %v4916_v55  ;;  %v6211_v59 = vadd.f32 %v6210_v28, %v5956_v12  ;;  %6767 = vmatmul.msk.bf16.gmra.mxu2 %vm289_vm0, %v1124_v39  ;;  %6799 = vmatmul.msk.bf16.gmra.mxu3 %vm289_vm0, %v1124_v39  ;;  %v1126_v39 = vpop.trf.xlu1  ;;  %v9422_v28 = vld [vmem:[#allocation96_spill] sm:$0xff] }
 0x415   : > { %v5172_v15 = vadd.f32 %v5171_v6, %v4917_v7  ;;  %v6212_v16 = vadd.f32 %v6211_v59, %v5957_v45  ;;  %v9423_v59 = vld [vmem:[#allocation97_spill] sm:$0xff] }
 0x416   : > { %v1638_v48 = vpop.f32.mrf.mxu2  ;;  %v1807_v57 = vpop.f32.mrf.mxu3 }
 0x417   : > { %v5173_v34 = vadd.f32 %v5172_v15, %v4918_v38  ;;  %v6213_v33 = vadd.f32 %v6212_v16, %v5958_v61  ;;  %v4919_v14 = vmul.f32 %v1638_v48, %v9419_v58  ;;  %v5959_v2 = vmul.f32 %v1638_v48, %v1638_v48  ;;  %v1302_v43 = vpop.f32.mrf.mxu0  ;;  %v1471_v30 = vpop.f32.mrf.mxu1  ;;  %v9424_v48 = vld [vmem:[#allocation98_spill] sm:$0xff] }
 0x418   : > { %v4920_v36 = vmul.f32 %v1807_v57, %v9420_v37  ;;  %v5960_v25 = vmul.f32 %v1807_v57, %v1807_v57  ;;  %v4921_v31 = vmul.f32 %v1302_v43, %v9421_v20  ;;  %v5961_v3 = vmul.f32 %v1302_v43, %v1302_v43  ;;  %v9426_v37 = vld [vmem:[#allocation100_spill] sm:$0xff] }
 0x419   : > { %v5174_v42 = vadd.f32 %v5173_v34, %v4919_v14  ;;  %v6214_v24 = vadd.f32 %v6213_v33, %v5959_v2  ;;  %v4922_v4 = vmul.f32 %v1471_v30, %v9422_v28  ;;  %v5962_v55 = vmul.f32 %v1471_v30, %v1471_v30  ;;  %v9425_v33 = vld [vmem:[#allocation99_spill] sm:$0xff] }
 0x41b   : > { %v5175_v23 = vadd.f32 %v5174_v42, %v4920_v36  ;;  %v6215_v44 = vadd.f32 %v6214_v24, %v5960_v25  ;;  %v8638_v30 = vpop.trf.xlu1 }
 0x41d   : > { %v5176_v22 = vadd.f32 %v5175_v23, %v4921_v31  ;;  %v6216_v1 = vadd.f32 %v6215_v44, %v5961_v3  ;;  %v9427_v3 = vld [vmem:[#allocation101_spill] sm:$0xff] }
 0x41e   : > { %v1640_v12 = vpop.f32.mrf.mxu2  ;;  %v1809_v56 = vpop.f32.mrf.mxu3 }
 0x41f   : > { %v5177_v7 = vadd.f32 %v5176_v22, %v4922_v4  ;;  %v6217_v6 = vadd.f32 %v6216_v1, %v5962_v55  ;;  %v4923_v45 = vmul.f32 %v1640_v12, %v9423_v59  ;;  %v5963_v15 = vmul.f32 %v1640_v12, %v1640_v12  ;;  %v1305_v16 = vpop.f32.mrf.mxu0  ;;  %v1474_v40 = vpop.f32.mrf.mxu1 }
 0x420   : > { %v4924_v57 = vmul.f32 %v1809_v56, %v9424_v48  ;;  %v5964_v34 = vmul.f32 %v1809_v56, %v1809_v56  ;;  %v4925_v58 = vmul.f32 %v1305_v16, %v9425_v33  ;;  %v5965_v43 = vmul.f32 %v1305_v16, %v1305_v16  ;;  %v9428_v56 = vld [vmem:[#allocation102_spill] sm:$0xff] }
 0x421   : > { %v5178_v38 = vadd.f32 %v5177_v7, %v4923_v45  ;;  %v6218_v61 = vadd.f32 %v6217_v6, %v5963_v15  ;;  %v4926_v36 = vmul.f32 %v1474_v40, %v9426_v37  ;;  %v5966_v25 = vmul.f32 %v1474_v40, %v1474_v40  ;;  %v9429_v45 = vld [vmem:[#allocation103_spill] sm:$0xff] }
 0x422   : > { %6704 = vmatmul.msk.bf16.gmra.mxu0 %vm289_vm0, %v1126_v39  ;;  %6736 = vmatmul.msk.bf16.gmra.mxu1 %vm289_vm0, %v1126_v39 }
 0x423   : > { %v5179_v14 = vadd.f32 %v5178_v38, %v4924_v57  ;;  %v6219_v2 = vadd.f32 %v6218_v61, %v5964_v34  ;;  %6768 = vmatmul.msk.bf16.gmra.mxu2 %vm289_vm0, %v1126_v39  ;;  %6800 = vmatmul.msk.bf16.gmra.mxu3 %vm289_vm0, %v1126_v39  ;;  %v9430_v61 = vld [vmem:[#allocation104_spill] sm:$0xff]  ;;  %v1128_v34 = vpop.trf.xlu1 }
 0x425   : > { %v5180_v42 = vadd.f32 %v5179_v14, %v4925_v58  ;;  %v6220_v24 = vadd.f32 %v6219_v2, %v5965_v43  ;;  %v9431_v43 = vld [vmem:[#allocation105_spill] sm:$0xff] }
 0x426   : > { %v1643_v23 = vpop.f32.mrf.mxu2  ;;  %v1812_v44 = vpop.f32.mrf.mxu3 }
 0x427   : > { %v5181_v20 = vadd.f32 %v5180_v42, %v4926_v36  ;;  %v6221_v31 = vadd.f32 %v6220_v24, %v5966_v25  ;;  %v4927_v22 = vmul.f32 %v1643_v23, %v9427_v3  ;;  %v5967_v1 = vmul.f32 %v1643_v23, %v1643_v23  ;;  %v1307_v28 = vpop.f32.mrf.mxu0  ;;  %v1476_v4 = vpop.f32.mrf.mxu1  ;;  %v9433_v3 = vld [vmem:[#allocation107_spill] sm:$0xff] }
 0x428   : > { %v4928_v39 = vmul.f32 %v1812_v44, %v9428_v56  ;;  %v5968_v7 = vmul.f32 %v1812_v44, %v1812_v44  ;;  %v4929_v15 = vmul.f32 %v1307_v28, %v9429_v45  ;;  %v5969_v16 = vmul.f32 %v1307_v28, %v1307_v28  ;;  %v9432_v44 = vld [vmem:[#allocation106_spill] sm:$0xff]  ;;  %v9434_v56 = vld [vmem:[#allocation108_spill] sm:$0xff] }
 0x429   : > { %v5182_v55 = vadd.f32 %v5181_v20, %v4927_v22  ;;  %v6222_v12 = vadd.f32 %v6221_v31, %v5967_v1  ;;  %v4930_v48 = vmul.f32 %v1476_v4, %v9430_v61  ;;  %v5970_v57 = vmul.f32 %v1476_v4, %v1476_v4 }
 0x42b   : > { %v5183_v6 = vadd.f32 %v5182_v55, %v4928_v39  ;;  %v6223_v59 = vadd.f32 %v6222_v12, %v5968_v7 }
 0x42d   : > { %v5184_v40 = vadd.f32 %v5183_v6, %v4929_v15  ;;  %v6224_v38 = vadd.f32 %v6223_v59, %v5969_v16  ;;  %v9435_v16 = vld [vmem:[#allocation109_spill] sm:$0xff] }
 0x42e   : > { %v1645_v33 = vpop.f32.mrf.mxu2  ;;  %v1814_v58 = vpop.f32.mrf.mxu3 }
 0x42f   : > { %v5185_v14 = vadd.f32 %v5184_v40, %v4930_v48  ;;  %v6225_v2 = vadd.f32 %v6224_v38, %v5970_v57  ;;  %v4931_v42 = vmul.f32 %v1645_v33, %v9431_v43  ;;  %v5971_v24 = vmul.f32 %v1645_v33, %v1645_v33  ;;  %v1310_v37 = vpop.f32.mrf.mxu0  ;;  %v1479_v36 = vpop.f32.mrf.mxu1 }
 0x430   : > { %v4932_v20 = vmul.f32 %v1814_v58, %v9432_v44  ;;  %v5972_v31 = vmul.f32 %v1814_v58, %v1814_v58  ;;  %v4933_v22 = vmul.f32 %v1310_v37, %v9433_v3  ;;  %v5973_v4 = vmul.f32 %v1310_v37, %v1310_v37  ;;  %v9436_v58 = vld [vmem:[#allocation110_spill] sm:$0xff] }
 0x431   : > { %v5186_v25 = vadd.f32 %v5185_v14, %v4931_v42  ;;  %v6226_v23 = vadd.f32 %v6225_v2, %v5971_v24  ;;  %v4934_v39 = vmul.f32 %v1479_v36, %v9434_v56  ;;  %v5974_v7 = vmul.f32 %v1479_v36, %v1479_v36  ;;  %v9437_v42 = vld [vmem:[#allocation111_spill] sm:$0xff] }
 0x432   : > { %6705 = vmatmul.msk.bf16.gmra.mxu0 %vm289_vm0, %v1128_v34  ;;  %6737 = vmatmul.msk.bf16.gmra.mxu1 %vm289_vm0, %v1128_v34 }
 0x433   : > { %v5187_v1 = vadd.f32 %v5186_v25, %v4932_v20  ;;  %v6227_v28 = vadd.f32 %v6226_v23, %v5972_v31  ;;  %6769 = vmatmul.msk.bf16.gmra.mxu2 %vm289_vm0, %v1128_v34  ;;  %6801 = vmatmul.msk.bf16.gmra.mxu3 %vm289_vm0, %v1128_v34  ;;  %v9438_v23 = vld [vmem:[#allocation112_spill] sm:$0xff] }
 0x435   : > { %v5188_v55 = vadd.f32 %v5187_v1, %v4933_v22  ;;  %v6228_v12 = vadd.f32 %v6227_v28, %v5973_v4  ;;  %v9439_v28 = vld [vmem:[#allocation113_spill] sm:$0xff] }
 0x436   : > { %v1648_v6 = vpop.f32.mrf.mxu2  ;;  %v1817_v59 = vpop.f32.mrf.mxu3 }
 0x437   : > { %v5189_v45 = vadd.f32 %v5188_v55, %v4934_v39  ;;  %v6229_v15 = vadd.f32 %v6228_v12, %v5974_v7  ;;  %v4935_v40 = vmul.f32 %v1648_v6, %v9435_v16  ;;  %v5975_v38 = vmul.f32 %v1648_v6, %v1648_v6  ;;  %v1312_v61 = vpop.f32.mrf.mxu0  ;;  %v1481_v48 = vpop.f32.mrf.mxu1  ;;  %v9440_v6 = vld [vmem:[#allocation114_spill] sm:$0xff] }
 0x438   : > { %v4936_v14 = vmul.f32 %v1817_v59, %v9436_v58  ;;  %v5976_v2 = vmul.f32 %v1817_v59, %v1817_v59  ;;  %v4937_v24 = vmul.f32 %v1312_v61, %v9437_v42  ;;  %v5977_v37 = vmul.f32 %v1312_v61, %v1312_v61 }
 0x439   : > { %v5190_v57 = vadd.f32 %v5189_v45, %v4935_v40  ;;  %v6230_v33 = vadd.f32 %v6229_v15, %v5975_v38  ;;  %v4938_v44 = vmul.f32 %v1481_v48, %v9438_v23  ;;  %v5978_v20 = vmul.f32 %v1481_v48, %v1481_v48  ;;  %v9441_v15 = vld [vmem:[#allocation115_spill] sm:$0xff] }
 0x43b   : > { %v5191_v34 = vadd.f32 %v5190_v57, %v4936_v14  ;;  %v6231_v43 = vadd.f32 %v6230_v33, %v5976_v2  ;;  %v9442_v33 = vld [vmem:[#allocation116_spill] sm:$0xff] }
 0x43d   : > { %v5192_v36 = vadd.f32 %v5191_v34, %v4937_v24  ;;  %v6232_v25 = vadd.f32 %v6231_v43, %v5977_v37  ;;  %v9443_v24 = vld [vmem:[#allocation117_spill] sm:$0xff] }
 0x43e   : > { %v1650_v31 = vpop.f32.mrf.mxu2  ;;  %v1819_v3 = vpop.f32.mrf.mxu3 }
 0x43f   : > { %v5193_v22 = vadd.f32 %v5192_v36, %v4938_v44  ;;  %v6233_v1 = vadd.f32 %v6232_v25, %v5978_v20  ;;  %v4939_v4 = vmul.f32 %v1650_v31, %v9439_v28  ;;  %v5979_v55 = vmul.f32 %v1650_v31, %v1650_v31  ;;  %v1315_v12 = vpop.f32.mrf.mxu0  ;;  %v1484_v56 = vpop.f32.mrf.mxu1  ;;  %v9444_v31 = vld [vmem:[#allocation118_spill] sm:$0xff]  ;;  %v9445_v28 = vld [vmem:[#allocation119_spill] sm:$0xff] }
 0x440   : > { %v4940_v59 = vmul.f32 %v1819_v3, %v9440_v6  ;;  %v5980_v45 = vmul.f32 %v1819_v3, %v1819_v3  ;;  %v4941_v16 = vmul.f32 %v1315_v12, %v9441_v15  ;;  %v5981_v61 = vmul.f32 %v1315_v12, %v1315_v12 }
 0x441   : > { %v5194_v39 = vadd.f32 %v5193_v22, %v4939_v4  ;;  %v6234_v7 = vadd.f32 %v6233_v1, %v5979_v55  ;;  %v4942_v58 = vmul.f32 %v1484_v56, %v9442_v33  ;;  %v5982_v14 = vmul.f32 %v1484_v56, %v1484_v56  ;;  %v8674_v33 = vpop.xlane.xlu2 %4205 }
 0x442   : > { %6706 = vmatmul.msk.bf16.gmra.mxu0 %vm289_vm0, %v8502_v60  ;;  %6738 = vmatmul.msk.bf16.gmra.mxu1 %vm289_vm0, %v8502_v60 }
 0x443   : > { %v5195_v40 = vadd.f32 %v5194_v39, %v4940_v59  ;;  %v6235_v38 = vadd.f32 %v6234_v7, %v5980_v45  ;;  %6770 = vmatmul.msk.bf16.gmra.mxu2 %vm289_vm0, %v8502_v60  ;;  %6802 = vmatmul.msk.bf16.gmra.mxu3 %vm289_vm0, %v8502_v60  ;;  %v9446_v39 = vld [vmem:[#allocation120_spill] sm:$0xff] }
 0x445   : > { %v5196_v48 = vadd.f32 %v5195_v40, %v4941_v16  ;;  %v6236_v57 = vadd.f32 %v6235_v38, %v5981_v61  ;;  %v9447_v40 = vld [vmem:[#allocation121_spill] sm:$0xff] }
 0x446   : > { %v1653_v2 = vpop.f32.mrf.mxu2  ;;  %v1822_v34 = vpop.f32.mrf.mxu3 }
 0x447   : > { %v5197_v43 = vadd.f32 %v5196_v48, %v4942_v58  ;;  %v6237_v42 = vadd.f32 %v6236_v57, %v5982_v14  ;;  %v4943_v37 = vmul.f32 %v1653_v2, %v9443_v24  ;;  %v5983_v36 = vmul.f32 %v1653_v2, %v1653_v2  ;;  %v1317_v25 = vpop.f32.mrf.mxu0  ;;  %v1486_v23 = vpop.f32.mrf.mxu1  ;;  %v9448_v2 = vld [vmem:[#allocation122_spill] sm:$0xff] }
 0x448   : > { %v4944_v3 = vmul.f32 %v1822_v34, %v9444_v31  ;;  %v5984_v22 = vmul.f32 %v1822_v34, %v1822_v34  ;;  %v4945_v4 = vmul.f32 %v1317_v25, %v9445_v28  ;;  %v5985_v55 = vmul.f32 %v1317_v25, %v1317_v25 }
 0x449   : > { %v5198_v44 = vadd.f32 %v5197_v43, %v4943_v37  ;;  %v6238_v20 = vadd.f32 %v6237_v42, %v5983_v36  ;;  %v4946_v7 = vmul.f32 %v1486_v23, %v9446_v39  ;;  %v5986_v6 = vmul.f32 %v1486_v23, %v1486_v23  ;;  %v9449_v42 = vld [vmem:[#allocation123_spill] sm:$0xff] }
 0x44b   : > { %v5199_v60 = vadd.f32 %v5198_v44, %v4944_v3  ;;  %v6239_v1 = vadd.f32 %v6238_v20, %v5984_v22  ;;  %v9450_v20 = vld [vmem:[#allocation124_spill] sm:$0xff] }
 0x44d   : > { %v5200_v12 = vadd.f32 %v5199_v60, %v4945_v4  ;;  %v6240_v56 = vadd.f32 %v6239_v1, %v5985_v55  ;;  %v9451_v4 = vld [vmem:[#allocation125_spill] sm:$0xff] }
 0x44e   : > { %v1655_v59 = vpop.f32.mrf.mxu2  ;;  %v1824_v45 = vpop.f32.mrf.mxu3 }
 0x44f   : > { %v5201_v15 = vadd.f32 %v5200_v12, %v4946_v7  ;;  %v6241_v16 = vadd.f32 %v6240_v56, %v5986_v6  ;;  %v4947_v38 = vmul.f32 %v1655_v59, %v9447_v40  ;;  %v5987_v61 = vmul.f32 %v1655_v59, %v1655_v59  ;;  %v1320_v48 = vpop.f32.mrf.mxu0  ;;  %v1489_v57 = vpop.f32.mrf.mxu1  ;;  %v9452_v59 = vld [vmem:[#allocation126_spill] sm:$0xff] }
 0x450   : > { %v4948_v34 = vmul.f32 %v1824_v45, %v9448_v2  ;;  %v5988_v43 = vmul.f32 %v1824_v45, %v1824_v45  ;;  %v4949_v24 = vmul.f32 %v1320_v48, %v9449_v42  ;;  %v5989_v25 = vmul.f32 %v1320_v48, %v1320_v48 }
 0x451   : > { %v5202_v58 = vadd.f32 %v5201_v15, %v4947_v38  ;;  %v6242_v14 = vadd.f32 %v6241_v16, %v5987_v61  ;;  %v4950_v31 = vmul.f32 %v1489_v57, %v9450_v20  ;;  %v5990_v3 = vmul.f32 %v1489_v57, %v1489_v57  ;;  %v9453_v38 = vld [vmem:[#allocation127_spill] sm:$0xff] }
 0x452   : > { %6707 = vmatmul.msk.bf16.gmra.mxu0 %vm289_vm0, %v8522_v47  ;;  %6739 = vmatmul.msk.bf16.gmra.mxu1 %vm289_vm0, %v8522_v47 }
 0x453   : > { %v5203_v37 = vadd.f32 %v5202_v58, %v4948_v34  ;;  %v6243_v36 = vadd.f32 %v6242_v14, %v5988_v43  ;;  %6771 = vmatmul.msk.bf16.gmra.mxu2 %vm289_vm0, %v8522_v47  ;;  %6803 = vmatmul.msk.bf16.gmra.mxu3 %vm289_vm0, %v8522_v47  ;;  %v4233_v47 = vpop.xlane.xlu2 %4232  ;;  %v9454_v14 = vld [vmem:[#allocation128_spill] sm:$0xff] }
 0x455   : > { %v5204_v23 = vadd.f32 %v5203_v37, %v4949_v24  ;;  %v6244_v44 = vadd.f32 %v6243_v36, %v5989_v25  ;;  %v9455_v36 = vld [vmem:[#allocation129_spill] sm:$0xff] }
 0x456   : > { %v1658_v22 = vpop.f32.mrf.mxu2  ;;  %v1827_v60 = vpop.f32.mrf.mxu3 }
 0x457   : > { %v5205_v1 = vadd.f32 %v5204_v23, %v4950_v31  ;;  %v6245_v28 = vadd.f32 %v6244_v44, %v5990_v3  ;;  %v4951_v55 = vmul.f32 %v1658_v22, %v9451_v4  ;;  %v5991_v12 = vmul.f32 %v1658_v22, %v1658_v22  ;;  %v1322_v56 = vpop.f32.mrf.mxu0  ;;  %v1491_v39 = vpop.f32.mrf.mxu1  ;;  %v9456_v22 = vld [vmem:[#allocation130_spill] sm:$0xff] }
 0x458   : > { %v4952_v45 = vmul.f32 %v1827_v60, %v9452_v59  ;;  %v5992_v15 = vmul.f32 %v1827_v60, %v1827_v60  ;;  %v4953_v61 = vmul.f32 %v1322_v56, %v9453_v38  ;;  %v5993_v48 = vmul.f32 %v1322_v56, %v1322_v56  ;;  %v9458_v59 = vld [vmem:[#allocation132_spill] sm:$0xff] }
 0x459   : > { %v5206_v7 = vadd.f32 %v5205_v1, %v4951_v55  ;;  %v6246_v6 = vadd.f32 %v6245_v28, %v5991_v12  ;;  %v4954_v2 = vmul.f32 %v1491_v39, %v9454_v14  ;;  %v5994_v34 = vmul.f32 %v1491_v39, %v1491_v39  ;;  %v9457_v28 = vld [vmem:[#allocation131_spill] sm:$0xff] }
 0x45b   : > { %v5207_v16 = vadd.f32 %v5206_v7, %v4952_v45  ;;  %v6247_v40 = vadd.f32 %v6246_v6, %v5992_v15  ;;  %v4260_v39 = vpop.xlane.xlu2 %4259 }
 0x45d   : > { %v5208_v57 = vadd.f32 %v5207_v16, %v4953_v61  ;;  %v6248_v58 = vadd.f32 %v6247_v40, %v5993_v48  ;;  %v9459_v48 = vld [vmem:[#allocation133_spill] sm:$0xff] }
 0x45e   : > { %v1660_v43 = vpop.f32.mrf.mxu2  ;;  %v1829_v42 = vpop.f32.mrf.mxu3 }
 0x45f   : > { %v5209_v24 = vadd.f32 %v5208_v57, %v4954_v2  ;;  %v6249_v37 = vadd.f32 %v6248_v58, %v5994_v34  ;;  %v4955_v25 = vmul.f32 %v1660_v43, %v9455_v36  ;;  %v5995_v23 = vmul.f32 %v1660_v43, %v1660_v43  ;;  %v1325_v44 = vpop.f32.mrf.mxu0  ;;  %v1494_v20 = vpop.f32.mrf.mxu1 }
 0x460   : > { %v4956_v60 = vmul.f32 %v1829_v42, %v9456_v22  ;;  %v5996_v1 = vmul.f32 %v1829_v42, %v1829_v42  ;;  %v4957_v4 = vmul.f32 %v1325_v44, %v9457_v28  ;;  %v5997_v56 = vmul.f32 %v1325_v44, %v1325_v44 }
 0x461   : > { %v5210_v31 = vadd.f32 %v5209_v24, %v4955_v25  ;;  %v6250_v3 = vadd.f32 %v6249_v37, %v5995_v23  ;;  %v4958_v45 = vmul.f32 %v1494_v20, %v9458_v59  ;;  %v5998_v15 = vmul.f32 %v1494_v20, %v1494_v20  ;;  %v9460_v37 = vld [vmem:[#allocation134_spill] sm:$0xff]  ;;  %v9461_v20 = vld [vmem:[#allocation135_spill] sm:$0xff] }
 0x462   : > { %6708 = vmatmul.msk.bf16.gmra.mxu0 %vm289_vm0, %v8543_v54  ;;  %6740 = vmatmul.msk.bf16.gmra.mxu1 %vm289_vm0, %v8543_v54  ;;  %v4207_v34 = vrot.slane %v8674_v33, 4  ;;  %v4234_v43 = vrot.slane %v4233_v47, 4  ;;  %v4261_v42 = vrot.slane %v4260_v39, 4 }
 0x463   : > { %v5211_v55 = vadd.f32 %v5210_v31, %v4956_v60  ;;  %v6251_v12 = vadd.f32 %v6250_v3, %v5996_v1  ;;  %6772 = vmatmul.msk.bf16.gmra.mxu2 %vm289_vm0, %v8543_v54  ;;  %6804 = vmatmul.msk.bf16.gmra.mxu3 %vm289_vm0, %v8543_v54 }
 0x464   : > { %v4208_v22 = vadd.f32 %v4207_v34, %v8674_v33  ;;  %v4235_v60 = vadd.f32 %v4234_v43, %v4233_v47  ;;  %v4262_v1 = vadd.f32 %v4261_v42, %v4260_v39  ;;  %v9464_v39 = vld [vmem:[#allocation138_spill] sm:$0xff]  ;;  %v9465_v43 = vld [vmem:[#allocation139_spill] sm:$0xff] }
 0x465   : > { %v5212_v7 = vadd.f32 %v5211_v55, %v4957_v4  ;;  %v6252_v6 = vadd.f32 %v6251_v12, %v5997_v56  ;;  %v9462_v55 = vld [vmem:[#allocation136_spill] sm:$0xff] }
 0x466   : > { %v1663_v16 = vpop.f32.mrf.mxu2  ;;  %v1832_v40 = vpop.f32.mrf.mxu3 }
 0x467   : > { %v5213_v38 = vadd.f32 %v5212_v7, %v4958_v45  ;;  %v6253_v61 = vadd.f32 %v6252_v6, %v5998_v15  ;;  %v4959_v57 = vmul.f32 %v1663_v16, %v9459_v48  ;;  %v5999_v58 = vmul.f32 %v1663_v16, %v1663_v16  ;;  %v1327_v14 = vpop.f32.mrf.mxu0  ;;  %v1496_v2 = vpop.f32.mrf.mxu1  ;;  %v9463_v15 = vld [vmem:[#allocation137_spill] sm:$0xff] }
 0x468   : > { %v4960_v36 = vmul.f32 %v1832_v40, %v9460_v37  ;;  %v6000_v25 = vmul.f32 %v1832_v40, %v1832_v40  ;;  %v4961_v31 = vmul.f32 %v1327_v14, %v9461_v20  ;;  %v6001_v3 = vmul.f32 %v1327_v14, %v1327_v14  ;;  %v9466_v20 = vld [vmem:[#allocation140_spill] sm:$0xff] }
 0x469   : > { %v5214_v54 = vadd.f32 %v5213_v38, %v4959_v57  ;;  %v6254_v24 = vadd.f32 %v6253_v61, %v5999_v58  ;;  %v4962_v12 = vmul.f32 %v1496_v2, %v9462_v55  ;;  %v6002_v56 = vmul.f32 %v1496_v2, %v1496_v2 }
 0x46a   : > { %v4209_v48 = vrot.slane %v4208_v22, 2  ;;  %v4236_v57 = vrot.slane %v4235_v60, 2  ;;  %v4263_v58 = vrot.slane %v4262_v1, 2 }
 0x46b   : > { %v5215_v23 = vadd.f32 %v5214_v54, %v4960_v36  ;;  %v6255_v44 = vadd.f32 %v6254_v24, %v6000_v25 }
 0x46c   : > { %v4210_v37 = vadd.f32 %v4209_v48, %v4208_v22  ;;  %v4237_v36 = vadd.f32 %v4236_v57, %v4235_v60  ;;  %v4264_v25 = vadd.f32 %v4263_v58, %v4262_v1  ;;  %v9468_v1 = vld [vmem:[#allocation142_spill] sm:$0xff] }
 0x46d   : > { %v5216_v28 = vadd.f32 %v5215_v23, %v4961_v31  ;;  %v6256_v4 = vadd.f32 %v6255_v44, %v6001_v3 }
 0x46e   : > { %v1665_v7 = vpop.f32.mrf.mxu2  ;;  %v1834_v6 = vpop.f32.mrf.mxu3  ;;  %v4211_v55 = vrot.slane %v4210_v37, 1 }
 0x46f   : > { %v5217_v59 = vadd.f32 %v5216_v28, %v4962_v12  ;;  %v6257_v45 = vadd.f32 %v6256_v4, %v6002_v56  ;;  %v4963_v16 = vmul.f32 %v1665_v7, %v9463_v15  ;;  %v6003_v40 = vmul.f32 %v1665_v7, %v1665_v7  ;;  %v1330_v38 = vpop.f32.mrf.mxu0  ;;  %v1499_v61 = vpop.f32.mrf.mxu1 }
 0x470   : > { %v4964_v14 = vmul.f32 %v1834_v6, %v9464_v39  ;;  %v6004_v34 = vmul.f32 %v1834_v6, %v1834_v6  ;;  %v4965_v42 = vmul.f32 %v1330_v38, %v9465_v43  ;;  %v6005_v24 = vmul.f32 %v1330_v38, %v1330_v38 }
 0x471   : > { %v5218_v33 = vadd.f32 %v5217_v59, %v4963_v16  ;;  %v6258_v47 = vadd.f32 %v6257_v45, %v6003_v40  ;;  %v4966_v31 = vmul.f32 %v1499_v61, %v9466_v20  ;;  %v6006_v3 = vmul.f32 %v1499_v61, %v1499_v61  ;;  %v9467_v59 = vld [vmem:[#allocation141_spill] sm:$0xff] }
 0x472   : > { %6709 = vmatmul.msk.bf16.gmra.mxu0 %vm289_vm0, %v8574_v8  ;;  %6741 = vmatmul.msk.bf16.gmra.mxu1 %vm289_vm0, %v8574_v8  ;;  %v4238_v12 = vrot.slane %v4237_v36, 1  ;;  %v4265_v56 = vrot.slane %v4264_v25, 1  ;;  %v4212_v48 = vadd.f32 %v4211_v55, %v4210_v37  ;;  %v9471_v37 = vld [vmem:[#allocation145_spill] sm:$0xff]  ;;  %v9472_v55 = vld [vmem:[#allocation146_spill] sm:$0xff] }
 0x473   : > { %v5219_v2 = vadd.f32 %v5218_v33, %v4964_v14  ;;  %v6259_v54 = vadd.f32 %v6258_v47, %v6004_v34  ;;  %6773 = vmatmul.msk.bf16.gmra.mxu2 %vm289_vm0, %v8574_v8  ;;  %6805 = vmatmul.msk.bf16.gmra.mxu3 %vm289_vm0, %v8574_v8  ;;  %v9469_v47 = vld [vmem:[#allocation143_spill] sm:$0xff] }
 0x474   : > { %v4239_v57 = vadd.f32 %v4238_v12, %v4237_v36  ;;  %v4266_v61 = vadd.f32 %v4265_v56, %v4264_v25  ;;  %6822 = vpush %v4212_v48 }
 0x475   : > { %v5220_v23 = vadd.f32 %v5219_v2, %v4965_v42  ;;  %v6260_v44 = vadd.f32 %v6259_v54, %v6005_v24  ;;  %v9470_v42 = vld [vmem:[#allocation144_spill] sm:$0xff] }
 0x476   : > { %v1668_v28 = vpop.f32.mrf.mxu2  ;;  %v1837_v4 = vpop.f32.mrf.mxu3  ;;  %6824 = vpush %v4239_v57 }
 0x477   : > { %v5221_v7 = vadd.f32 %v5220_v23, %v4966_v31  ;;  %v6261_v6 = vadd.f32 %v6260_v44, %v6006_v3  ;;  %v4967_v45 = vmul.f32 %v1668_v28, %v9467_v59  ;;  %v6007_v15 = vmul.f32 %v1668_v28, %v1668_v28  ;;  %v1332_v16 = vpop.f32.mrf.mxu0  ;;  %v1501_v8 = vpop.f32.mrf.mxu1  ;;  %6826 = vpush %v4266_v61  ;;  %v9475_v61 = vld [vmem:[#allocation149_spill] sm:$0xff] }
 0x478   : > { %v4968_v40 = vmul.f32 %v1837_v4, %v9468_v1  ;;  %v6008_v38 = vmul.f32 %v1837_v4, %v1837_v4  ;;  %v4969_v39 = vmul.f32 %v1332_v16, %v9469_v47  ;;  %v6009_v14 = vmul.f32 %v1332_v16, %v1332_v16 }
 0x479   : > { %v5222_v22 = vadd.f32 %v5221_v7, %v4967_v45  ;;  %v6262_v60 = vadd.f32 %v6261_v6, %v6007_v15  ;;  %v4970_v2 = vmul.f32 %v1501_v8, %v9470_v42  ;;  %v6010_v54 = vmul.f32 %v1501_v8, %v1501_v8  ;;  %v9473_v7 = vld [vmem:[#allocation147_spill] sm:$0xff] }
 0x47b   : > { %v5223_v58 = vadd.f32 %v5222_v22, %v4968_v40  ;;  %v6263_v33 = vadd.f32 %v6262_v60, %v6008_v38  ;;  %v9474_v22 = vld [vmem:[#allocation148_spill] sm:$0xff] }
 0x47d   : > { %v5224_v34 = vadd.f32 %v5223_v58, %v4969_v39  ;;  %v6264_v43 = vadd.f32 %v6263_v33, %v6009_v14 }
 0x47e   : > { %v1670_v24 = vpop.f32.mrf.mxu2  ;;  %v1839_v23 = vpop.f32.mrf.mxu3 }
 0x47f   : > { %v5225_v44 = vadd.f32 %v5224_v34, %v4970_v2  ;;  %v6265_v20 = vadd.f32 %v6264_v43, %v6010_v54  ;;  %v4971_v36 = vmul.f32 %v1670_v24, %v9471_v37  ;;  %v6011_v25 = vmul.f32 %v1670_v24, %v1670_v24  ;;  %v1335_v31 = vpop.f32.mrf.mxu0  ;;  %v1504_v3 = vpop.f32.mrf.mxu1  ;;  %v9476_v43 = vld [vmem:[#allocation150_spill] sm:$0xff]  ;;  %v9477_v24 = vld [vmem:[#allocation151_spill] sm:$0xff] }
 0x480   : > { %v4972_v12 = vmul.f32 %v1839_v23, %v9472_v55  ;;  %v6012_v56 = vmul.f32 %v1839_v23, %v1839_v23  ;;  %v4973_v6 = vmul.f32 %v1335_v31, %v9473_v7  ;;  %v6013_v15 = vmul.f32 %v1335_v31, %v1335_v31 }
 0x481   : > { %v5226_v28 = vadd.f32 %v5225_v44, %v4971_v36  ;;  %v6266_v4 = vadd.f32 %v6265_v20, %v6011_v25  ;;  %v4974_v60 = vmul.f32 %v1504_v3, %v9474_v22  ;;  %v6014_v1 = vmul.f32 %v1504_v3, %v1504_v3  ;;  %v9478_v36 = vld [vmem:[#allocation152_spill] sm:$0xff] }
 0x482   : > { %6710 = vmatmul.msk.bf16.gmra.mxu0 %vm289_vm0, %v8597_v19  ;;  %6742 = vmatmul.msk.bf16.gmra.mxu1 %vm289_vm0, %v8597_v19 }
 0x483   : > { %v5227_v59 = vadd.f32 %v5226_v28, %v4972_v12  ;;  %v6267_v45 = vadd.f32 %v6266_v4, %v6012_v56  ;;  %6774 = vmatmul.msk.bf16.gmra.mxu2 %vm289_vm0, %v8597_v19  ;;  %6806 = vmatmul.msk.bf16.gmra.mxu3 %vm289_vm0, %v8597_v19  ;;  %v9479_v12 = vld [vmem:[#allocation153_spill] sm:$0xff] }
 0x485   : > { %v5228_v16 = vadd.f32 %v5227_v59, %v4973_v6  ;;  %v6268_v8 = vadd.f32 %v6267_v45, %v6013_v15 }
 0x486   : > { %v1673_v40 = vpop.f32.mrf.mxu2  ;;  %v1842_v38 = vpop.f32.mrf.mxu3 }
 0x487   : > { %v5229_v48 = vadd.f32 %v5228_v16, %v4974_v60  ;;  %v6269_v57 = vadd.f32 %v6268_v8, %v6014_v1  ;;  %v4975_v58 = vmul.f32 %v1673_v40, %v9475_v61  ;;  %v6015_v33 = vmul.f32 %v1673_v40, %v1673_v40  ;;  %v1337_v47 = vpop.f32.mrf.mxu0  ;;  %v1506_v39 = vpop.f32.mrf.mxu1  ;;  %v9480_v16 = vld [vmem:[#allocation154_spill] sm:$0xff]  ;;  %v9481_v60 = vld [vmem:[#allocation155_spill] sm:$0xff] }
 0x488   : > { %v4976_v42 = vmul.f32 %v1842_v38, %v9476_v43  ;;  %v6016_v2 = vmul.f32 %v1842_v38, %v1842_v38  ;;  %v4977_v23 = vmul.f32 %v1337_v47, %v9477_v24  ;;  %v6017_v44 = vmul.f32 %v1337_v47, %v1337_v47 }
 0x489   : > { %v5230_v14 = vadd.f32 %v5229_v48, %v4975_v58  ;;  %v6270_v34 = vadd.f32 %v6269_v57, %v6015_v33  ;;  %v4978_v25 = vmul.f32 %v1506_v39, %v9478_v36  ;;  %v6018_v31 = vmul.f32 %v1506_v39, %v1506_v39  ;;  %v9482_v58 = vld [vmem:[#allocation156_spill] sm:$0xff] }
 0x48b   : > { %v5231_v19 = vadd.f32 %v5230_v14, %v4976_v42  ;;  %v6271_v54 = vadd.f32 %v6270_v34, %v6016_v2  ;;  %v9483_v42 = vld [vmem:[#allocation157_spill] sm:$0xff] }
 0x48d   : > { %v5232_v20 = vadd.f32 %v5231_v19, %v4977_v23  ;;  %v6272_v37 = vadd.f32 %v6271_v54, %v6017_v44 }
 0x48e   : > { %v1675_v3 = vpop.f32.mrf.mxu2  ;;  %v1844_v28 = vpop.f32.mrf.mxu3 }
 0x48f   : > { %v5233_v4 = vadd.f32 %v5232_v20, %v4978_v25  ;;  %v6273_v55 = vadd.f32 %v6272_v37, %v6018_v31  ;;  %v4979_v56 = vmul.f32 %v1675_v3, %v9479_v12  ;;  %v6019_v7 = vmul.f32 %v1675_v3, %v1675_v3  ;;  %v1340_v6 = vpop.f32.mrf.mxu0  ;;  %v1509_v59 = vpop.f32.mrf.mxu1  ;;  %v9484_v20 = vld [vmem:[#allocation158_spill] sm:$0xff]  ;;  %v9485_v31 = vld [vmem:[#allocation159_spill] sm:$0xff]  ;;  %v9486_v12 = vld [vmem:[#allocation160_spill] sm:$0xff] }
 0x490   : > { %v4980_v8 = vmul.f32 %v1844_v28, %v9480_v16  ;;  %v6020_v22 = vmul.f32 %v1844_v28, %v1844_v28  ;;  %v4981_v1 = vmul.f32 %v1340_v6, %v9481_v60  ;;  %v6021_v48 = vmul.f32 %v1340_v6, %v1340_v6  ;;  %v9487_v16 = vld [vmem:[#allocation161_spill] sm:$0xff] }
 0x491   : > { %v5234_v45 = vadd.f32 %v5233_v4, %v4979_v56  ;;  %v6274_v15 = vadd.f32 %v6273_v55, %v6019_v7  ;;  %v4982_v33 = vmul.f32 %v1509_v59, %v9482_v58  ;;  %v6022_v47 = vmul.f32 %v1509_v59, %v1509_v59  ;;  %v9489_v58 = vld [vmem:[#allocation163_spill] sm:$0xff] }
 0x492   : > { %6711 = vmatmul.msk.bf16.gmra.mxu0 %vm289_vm0, %v8617_v26  ;;  %6743 = vmatmul.msk.bf16.gmra.mxu1 %vm289_vm0, %v8617_v26 }
 0x493   : > { %v5235_v40 = vadd.f32 %v5234_v45, %v4980_v8  ;;  %v6275_v38 = vadd.f32 %v6274_v15, %v6020_v22  ;;  %6775 = vmatmul.msk.bf16.gmra.mxu2 %vm289_vm0, %v8617_v26  ;;  %6807 = vmatmul.msk.bf16.gmra.mxu3 %vm289_vm0, %v8617_v26 }
 0x495   : > { %v5236_v57 = vadd.f32 %v5235_v40, %v4981_v1  ;;  %v6276_v61 = vadd.f32 %v6275_v38, %v6021_v48  ;;  %v9488_v48 = vld [vmem:[#allocation162_spill] sm:$0xff] }
 0x496   : > { %v1678_v39 = vpop.f32.mrf.mxu2  ;;  %v1847_v14 = vpop.f32.mrf.mxu3 }
 0x497   : > { %v5237_v34 = vadd.f32 %v5236_v57, %v4982_v33  ;;  %v6277_v43 = vadd.f32 %v6276_v61, %v6022_v47  ;;  %v4983_v2 = vmul.f32 %v1678_v39, %v9483_v42  ;;  %v6023_v19 = vmul.f32 %v1678_v39, %v1678_v39  ;;  %v1342_v54 = vpop.f32.mrf.mxu0  ;;  %v1511_v24 = vpop.f32.mrf.mxu1  ;;  %v9490_v42 = vld [vmem:[#allocation164_spill] sm:$0xff] }
 0x498   : > { %v4984_v37 = vmul.f32 %v1847_v14, %v9484_v20  ;;  %v6024_v36 = vmul.f32 %v1847_v14, %v1847_v14  ;;  %v4985_v3 = vmul.f32 %v1342_v54, %v9485_v31  ;;  %v6025_v28 = vmul.f32 %v1342_v54, %v1342_v54  ;;  %v9491_v20 = vld [vmem:[#allocation165_spill] sm:$0xff] }
 0x499   : > { %v5238_v23 = vadd.f32 %v5237_v34, %v4983_v2  ;;  %v6278_v44 = vadd.f32 %v6277_v43, %v6023_v19  ;;  %v4986_v56 = vmul.f32 %v1511_v24, %v9486_v12  ;;  %v6026_v7 = vmul.f32 %v1511_v24, %v1511_v24 }
 0x49b   : > { %v5239_v26 = vadd.f32 %v5238_v23, %v4984_v37  ;;  %v6279_v25 = vadd.f32 %v6278_v44, %v6024_v36 }
 0x49d   : > { %v5240_v4 = vadd.f32 %v5239_v26, %v4985_v3  ;;  %v6280_v55 = vadd.f32 %v6279_v25, %v6025_v28  ;;  %v9492_v28 = vld [vmem:[#allocation166_spill] sm:$0xff] }
 0x49e   : > { %v1680_v6 = vpop.f32.mrf.mxu2  ;;  %v1849_v59 = vpop.f32.mrf.mxu3 }
 0x49f   : > { %v5241_v45 = vadd.f32 %v5240_v4, %v4986_v56  ;;  %v6281_v15 = vadd.f32 %v6280_v55, %v6026_v7  ;;  %v4987_v8 = vmul.f32 %v1680_v6, %v9487_v16  ;;  %v6027_v22 = vmul.f32 %v1680_v6, %v1680_v6  ;;  %v1345_v60 = vpop.f32.mrf.mxu0  ;;  %v1514_v1 = vpop.f32.mrf.mxu1  ;;  %v9493_v56 = vld [vmem:[#allocation167_spill] sm:$0xff] }
 0x4a0   : > { %v4988_v57 = vmul.f32 %v1849_v59, %v9488_v48  ;;  %v6028_v61 = vmul.f32 %v1849_v59, %v1849_v59  ;;  %v4989_v33 = vmul.f32 %v1345_v60, %v9489_v58  ;;  %v6029_v14 = vmul.f32 %v1345_v60, %v1345_v60  ;;  %v9495_v48 = vld [vmem:[#allocation169_spill] sm:$0xff] }
 0x4a1   : > { %v5242_v40 = vadd.f32 %v5241_v45, %v4987_v8  ;;  %v6282_v38 = vadd.f32 %v6281_v15, %v6027_v22  ;;  %v4990_v2 = vmul.f32 %v1514_v1, %v9490_v42  ;;  %v6030_v19 = vmul.f32 %v1514_v1, %v1514_v1  ;;  %v9494_v15 = vld [vmem:[#allocation168_spill] sm:$0xff]  ;;  %v1129_v22 = vpop.trf.xlu1  ;;  %v9497_v42 = vld [vmem:[#allocation171_spill] sm:$0xff] }
 0x4a2   : > { %6712 = vmatmul.msk.bf16.gmra.mxu0 %vm289_vm0, %v8638_v30  ;;  %6744 = vmatmul.msk.bf16.gmra.mxu1 %vm289_vm0, %v8638_v30 }
 0x4a3   : > { %v5243_v47 = vadd.f32 %v5242_v40, %v4988_v57  ;;  %v6283_v39 = vadd.f32 %v6282_v38, %v6028_v61  ;;  %6776 = vmatmul.msk.bf16.gmra.mxu2 %vm289_vm0, %v8638_v30  ;;  %6808 = vmatmul.msk.bf16.gmra.mxu3 %vm289_vm0, %v8638_v30 }
 0x4a5   : > { %v5244_v34 = vadd.f32 %v5243_v47, %v4989_v33  ;;  %v6284_v43 = vadd.f32 %v6283_v39, %v6029_v14  ;;  %s8773_s20 = spop %6822  ;;  %v9496_v14 = vld [vmem:[#allocation170_spill] sm:$0xff] }
 0x4a6   : > { %v1683_v54 = vpop.f32.mrf.mxu2  ;;  %v1852_v24 = vpop.f32.mrf.mxu3 }
 0x4a7   : > { %v5245_v23 = vadd.f32 %v5244_v34, %v4990_v2  ;;  %v6285_v44 = vadd.f32 %v6284_v43, %v6030_v19  ;;  %v4991_v37 = vmul.f32 %v1683_v54, %v9491_v20  ;;  %v6031_v36 = vmul.f32 %v1683_v54, %v1683_v54  ;;  %v1347_v26 = vpop.f32.mrf.mxu0  ;;  %v1516_v25 = vpop.f32.mrf.mxu1  ;;  %s6825_s21 = spop %6824 }
 0x4a8   : > { %v4992_v4 = vmul.f32 %v1852_v24, %v9492_v28  ;;  %v6032_v55 = vmul.f32 %v1852_v24, %v1852_v24  ;;  %v4993_v7 = vmul.f32 %v1347_v26, %v9493_v56  ;;  %v6033_v6 = vmul.f32 %v1347_v26, %v1347_v26  ;;  %s6827_s22 = spop %6826 }
 0x4a9   : > { %v5246_v31 = vadd.f32 %v5245_v23, %v4991_v37  ;;  %v6286_v3 = vadd.f32 %v6285_v44, %v6031_v36  ;;  %v4994_v16 = vmul.f32 %v1516_v25, %v9494_v15  ;;  %v6034_v8 = vmul.f32 %v1516_v25, %v1516_v25  ;;  %s4268_s23 = smul.f32 %s6827_s22, %s6825_s21  ;;  %v9498_v37 = vld [vmem:[#allocation172_spill] sm:$0xff] }
 0x4ab   : > { %v5247_v30 = vadd.f32 %v5246_v31, %v4992_v4  ;;  %v6287_v12 = vadd.f32 %v6286_v3, %v6032_v55  ;;  %v8780_v19 = vstv %s4268_s23  ;;  %v9499_v4 = vld [vmem:[#allocation173_spill] sm:$0xff] }
 0x4ac   : > { %6868 = vrsqrt.f32 %v8780_v19  ;;  %vm4277_vm5 = vcmp.eq.f32.partialorder %v8780_v19, inf  ;;  %vm4279_vm6 = vcmp.eq.f32.partialorder %v8780_v19, 0.0 }
 0x4ad   : > { %v5248_v59 = vadd.f32 %v5247_v30, %v4993_v7  ;;  %v6288_v45 = vadd.f32 %v6287_v12, %v6033_v6 }
 0x4ae   : > { %v1685_v60 = vpop.f32.mrf.mxu2  ;;  %v1854_v1 = vpop.f32.mrf.mxu3 }
 0x4af   : > { %v5249_v40 = vadd.f32 %v5248_v59, %v4994_v16  ;;  %v6289_v38 = vadd.f32 %v6288_v45, %v6034_v8  ;;  %v4995_v57 = vmul.f32 %v1685_v60, %v9495_v48  ;;  %v6035_v61 = vmul.f32 %v1685_v60, %v1685_v60  ;;  %v1350_v58 = vpop.f32.mrf.mxu0  ;;  %v1519_v33 = vpop.f32.mrf.mxu1  ;;  %v9500_v45 = vld [vmem:[#allocation174_spill] sm:$0xff] }
 0x4b0   : > { %v4996_v34 = vmul.f32 %v1854_v1, %v9496_v14  ;;  %v6036_v43 = vmul.f32 %v1854_v1, %v1854_v1  ;;  %v4997_v2 = vmul.f32 %v1350_v58, %v9497_v42  ;;  %v6037_v23 = vmul.f32 %v1350_v58, %v1350_v58  ;;  %v9501_v1 = vld [vmem:[#allocation175_spill] sm:$0xff]  ;;  %v9502_v58 = vld [vmem:[#allocation176_spill] sm:$0xff] }
 0x4b1   : > { %v5250_v47 = vadd.f32 %v5249_v40, %v4995_v57  ;;  %v6290_v39 = vadd.f32 %v6289_v38, %v6035_v61  ;;  %v4998_v36 = vmul.f32 %v1519_v33, %v9498_v37  ;;  %v6038_v26 = vmul.f32 %v1519_v33, %v1519_v33 }
 0x4b2   : > { %6713 = vmatmul.msk.bf16.gmra.mxu0 %vm289_vm0, %v1129_v22  ;;  %6745 = vmatmul.msk.bf16.gmra.mxu1 %vm289_vm0, %v1129_v22  ;;  %v6869_v7 = vpop.eup %6868 }
 0x4b3   : > { %v5251_v54 = vadd.f32 %v5250_v47, %v4996_v34  ;;  %v6291_v24 = vadd.f32 %v6290_v39, %v6036_v43  ;;  %6777 = vmatmul.msk.bf16.gmra.mxu2 %vm289_vm0, %v1129_v22  ;;  %6809 = vmatmul.msk.bf16.gmra.mxu3 %vm289_vm0, %v1129_v22  ;;  %v4271_v8 = vmul.f32 %v6869_v7, %v8780_v19 }
 0x4b5   : > { %v5252_v44 = vadd.f32 %v5251_v54, %v4997_v2  ;;  %v6292_v20 = vadd.f32 %v6291_v24, %v6037_v23  ;;  %v4272_v48 = vmul.f32 %v6869_v7, %v4271_v8  ;;  %v9503_v2 = vld [vmem:[#allocation177_spill] sm:$0xff] }
 0x4b6   : > { %v1688_v25 = vpop.f32.mrf.mxu2  ;;  %v1857_v31 = vpop.f32.mrf.mxu3 }
 0x4b7   : > { %v5253_v3 = vadd.f32 %v5252_v44, %v4998_v36  ;;  %v6293_v28 = vadd.f32 %v6292_v20, %v6038_v26  ;;  %v4999_v55 = vmul.f32 %v1688_v25, %v9499_v4  ;;  %v6039_v30 = vmul.f32 %v1688_v25, %v1688_v25  ;;  %v1352_v12 = vpop.f32.mrf.mxu0  ;;  %v1521_v56 = vpop.f32.mrf.mxu1  ;;  %v9504_v36 = vld [vmem:[#allocation178_spill] sm:$0xff]  ;;  %v9505_v4 = vld [vmem:[#allocation179_spill] sm:$0xff] }
 0x4b8   : > { %v5000_v15 = vmul.f32 %v1857_v31, %v9500_v45  ;;  %v6040_v16 = vmul.f32 %v1857_v31, %v1857_v31  ;;  %v5001_v40 = vmul.f32 %v1352_v12, %v9501_v1  ;;  %v6041_v38 = vmul.f32 %v1352_v12, %v1352_v12 }
 0x4b9   : > { %v5254_v6 = vadd.f32 %v5253_v3, %v4999_v55  ;;  %v6294_v59 = vadd.f32 %v6293_v28, %v6039_v30  ;;  %v5002_v33 = vmul.f32 %v1521_v56, %v9502_v58  ;;  %v6042_v47 = vmul.f32 %v1521_v56, %v1521_v56 }
 0x4ba   : > { %v4273_v34 = vmul.f32 0.5, %v4272_v48 }
 0x4bb   : > { %v5255_v22 = vadd.f32 %v5254_v6, %v5000_v15  ;;  %v6295_v60 = vadd.f32 %v6294_v59, %v6040_v16  ;;  %v9506_v59 = vld [vmem:[#allocation180_spill] sm:$0xff] }
 0x4bc   : > { %v4274_v31 = vsub.f32 1.5, %v4273_v34  ;;  %v9509_v34 = vld [vmem:[#allocation183_spill] sm:$0xff] }
 0x4bd   : > { %v5256_v57 = vadd.f32 %v5255_v22, %v5001_v40  ;;  %v6296_v61 = vadd.f32 %v6295_v60, %v6041_v38  ;;  %v4280_v60 = vand.u32 2147483648, %v8780_v19  ;;  %v9507_v38 = vld [vmem:[#allocation181_spill] sm:$0xff] }
 0x4be   : > { %v1690_v39 = vpop.f32.mrf.mxu2  ;;  %v1859_v14 = vpop.f32.mrf.mxu3  ;;  %v4275_v12 = vmul.f32 %v6869_v7, %v4274_v31 }
 0x4bf   : > { %v5257_v43 = vadd.f32 %v5256_v57, %v5002_v33  ;;  %v6297_v42 = vadd.f32 %v6296_v61, %v6042_v47  ;;  %v5003_v54 = vmul.f32 %v1690_v39, %v9503_v2  ;;  %v6043_v24 = vmul.f32 %v1690_v39, %v1690_v39  ;;  %v1355_v23 = vpop.f32.mrf.mxu0  ;;  %v1524_v44 = vpop.f32.mrf.mxu1  ;;  %v9508_v47 = vld [vmem:[#allocation182_spill] sm:$0xff] }
 0x4c0   : > { %v5004_v26 = vmul.f32 %v1859_v14, %v9504_v36  ;;  %v6044_v25 = vmul.f32 %v1859_v14, %v1859_v14  ;;  %v5005_v55 = vmul.f32 %v1355_v23, %v9505_v4  ;;  %v6045_v30 = vmul.f32 %v1355_v23, %v1355_v23  ;;  %v9511_v4 = vld [vmem:[#allocation185_spill] sm:$0xff] }
 0x4c1   : > { %v5258_v20 = vadd.f32 %v5257_v43, %v5003_v54  ;;  %v6298_v37 = vadd.f32 %v6297_v42, %v6043_v24  ;;  %v5006_v45 = vmul.f32 %v1524_v44, %v9506_v59  ;;  %v6046_v15 = vmul.f32 %v1524_v44, %v1524_v44  ;;  %v9512_v59 = vld [vmem:[#allocation186_spill] sm:$0xff] }
 0x4c2   : > { %v4276_v22 = vmul.f32 %v4275_v12, %v8780_v19 }
 0x4c3   : > { %v5259_v3 = vadd.f32 %v5258_v20, %v5004_v26  ;;  %v6299_v28 = vadd.f32 %v6298_v37, %v6044_v25  ;;  %v9510_v37 = vld [vmem:[#allocation184_spill] sm:$0xff] }
 0x4c4   : > { %v4278_v42 = vsel %vm4277_vm5, %v8780_v19, %v4276_v22  ;;  %v9513_v22 = vld [vmem:[#allocation187_spill] sm:$0xff] }
 0x4c5   : > { %v5260_v56 = vadd.f32 %v5259_v3, %v5005_v55  ;;  %v6300_v6 = vadd.f32 %v6299_v28, %v6045_v30  ;;  %v4281_v23 = vsel %vm4279_vm6, %v4280_v60, %v4278_v42 }
 0x4c6   : > { %v1693_v16 = vpop.f32.mrf.mxu2  ;;  %v1862_v8 = vpop.f32.mrf.mxu3  ;;  %6828 = vpush %v4281_v23 }
 0x4c7   : > { %v5261_v1 = vadd.f32 %v5260_v56, %v5006_v45  ;;  %v6301_v40 = vadd.f32 %v6300_v6, %v6046_v15  ;;  %v5007_v48 = vmul.f32 %v1693_v16, %v9507_v38  ;;  %v6047_v57 = vmul.f32 %v1693_v16, %v1693_v16  ;;  %v1357_v61 = vpop.f32.mrf.mxu0  ;;  %v1526_v7 = vpop.f32.mrf.mxu1 }
 0x4c8   : > { %v5008_v39 = vmul.f32 %v1862_v8, %v9508_v47  ;;  %v6048_v14 = vmul.f32 %v1862_v8, %v1862_v8  ;;  %v5009_v43 = vmul.f32 %v1357_v61, %v9509_v34  ;;  %v6049_v24 = vmul.f32 %v1357_v61, %v1357_v61 }
 0x4c9   : > { %v5262_v58 = vadd.f32 %v5261_v1, %v5007_v48  ;;  %v6302_v33 = vadd.f32 %v6301_v40, %v6047_v57  ;;  %v5010_v36 = vmul.f32 %v1526_v7, %v9510_v37  ;;  %v6050_v26 = vmul.f32 %v1526_v7, %v1526_v7  ;;  %v9514_v48 = vld [vmem:[#allocation188_spill] sm:$0xff] }
 0x4cb   : > { %v5263_v2 = vadd.f32 %v5262_v58, %v5008_v39  ;;  %v6303_v54 = vadd.f32 %v6302_v33, %v6048_v14  ;;  %v9515_v39 = vld [vmem:[#allocation189_spill] sm:$0xff] }
 0x4cd   : > { %v5264_v44 = vadd.f32 %v5263_v2, %v5009_v43  ;;  %v6304_v20 = vadd.f32 %v6303_v54, %v6049_v24  ;;  %v9516_v24 = vld [vmem:[#allocation190_spill] sm:$0xff] }
 0x4ce   : > { %v1695_v25 = vpop.f32.mrf.mxu2  ;;  %v1864_v31 = vpop.f32.mrf.mxu3 }
 0x4cf   : > { %v5265_v3 = vadd.f32 %v5264_v44, %v5010_v36  ;;  %v6305_v28 = vadd.f32 %v6304_v20, %v6050_v26  ;;  %v5011_v55 = vmul.f32 %v1695_v25, %v9511_v4  ;;  %v6051_v30 = vmul.f32 %v1695_v25, %v1695_v25  ;;  %v1360_v12 = vpop.f32.mrf.mxu0  ;;  %v1529_v56 = vpop.f32.mrf.mxu1  ;;  %v9517_v36 = vld [vmem:[#allocation191_spill] sm:$0xff] }
 0x4d0   : > { %v5012_v45 = vmul.f32 %v1864_v31, %v9512_v59  ;;  %v6052_v15 = vmul.f32 %v1864_v31, %v1864_v31  ;;  %v5013_v60 = vmul.f32 %v1360_v12, %v9513_v22  ;;  %v6053_v1 = vmul.f32 %v1360_v12, %v1360_v12 }
 0x4d1   : > { %v5266_v19 = vadd.f32 %v5265_v3, %v5011_v55  ;;  %v6306_v6 = vadd.f32 %v6305_v28, %v6051_v30  ;;  %v5014_v57 = vmul.f32 %v1529_v56, %v9514_v48  ;;  %v6054_v61 = vmul.f32 %v1529_v56, %v1529_v56  ;;  %v9518_v28 = vld [vmem:[#allocation192_spill] sm:$0xff] }
 0x4d3   : > { %v5267_v16 = vadd.f32 %v5266_v19, %v5012_v45  ;;  %v6307_v8 = vadd.f32 %v6306_v6, %v6052_v15  ;;  %v9519_v6 = vld [vmem:[#allocation193_spill] sm:$0xff] }
 0x4d5   : > { %v5268_v40 = vadd.f32 %v5267_v16, %v5013_v60  ;;  %v6308_v38 = vadd.f32 %v6307_v8, %v6053_v1  ;;  %v9520_v60 = vld [vmem:[#allocation194_spill] sm:$0xff] }
 0x4d6   : > { %v1698_v7 = vpop.f32.mrf.mxu2  ;;  %v1867_v58 = vpop.f32.mrf.mxu3 }
 0x4d7   : > { %v5269_v33 = vadd.f32 %v5268_v40, %v5014_v57  ;;  %v6309_v47 = vadd.f32 %v6308_v38, %v6054_v61  ;;  %v5015_v14 = vmul.f32 %v1698_v7, %v9515_v39  ;;  %v6055_v34 = vmul.f32 %v1698_v7, %v1698_v7  ;;  %v1362_v43 = vpop.f32.mrf.mxu0  ;;  %v1531_v42 = vpop.f32.mrf.mxu1  ;;  %v9521_v57 = vld [vmem:[#allocation195_spill] sm:$0xff] }
 0x4d8   : > { %v5016_v23 = vmul.f32 %v1867_v58, %v9516_v24  ;;  %v6056_v44 = vmul.f32 %v1867_v58, %v1867_v58  ;;  %v5017_v26 = vmul.f32 %v1362_v43, %v9517_v36  ;;  %v6057_v25 = vmul.f32 %v1362_v43, %v1362_v43 }
 0x4d9   : > { %v5270_v2 = vadd.f32 %v5269_v33, %v5015_v14  ;;  %v6310_v54 = vadd.f32 %v6309_v47, %v6055_v34  ;;  %v5018_v4 = vmul.f32 %v1531_v42, %v9518_v28  ;;  %v6058_v55 = vmul.f32 %v1531_v42, %v1531_v42  ;;  %v9522_v47 = vld [vmem:[#allocation196_spill] sm:$0xff] }
 0x4db   : > { %v5271_v20 = vadd.f32 %v5270_v2, %v5016_v23  ;;  %v6311_v37 = vadd.f32 %v6310_v54, %v6056_v44  ;;  %v9523_v54 = vld [vmem:[#allocation198_spill] sm:$0xff] }
 0x4dd   : > { %v5272_v31 = vadd.f32 %v5271_v20, %v5017_v26  ;;  %v6312_v3 = vadd.f32 %v6311_v37, %v6057_v25  ;;  %v9524_v26 = vld [vmem:[#allocation199_spill] sm:$0xff] }
 0x4de   : > { %v1700_v30 = vpop.f32.mrf.mxu2  ;;  %v1869_v12 = vpop.f32.mrf.mxu3 }
 0x4df   : > { %v5273_v56 = vadd.f32 %v5272_v31, %v5018_v4  ;;  %v6313_v19 = vadd.f32 %v6312_v3, %v6058_v55  ;;  %v5019_v59 = vmul.f32 %v1700_v30, %v9519_v6  ;;  %v6059_v45 = vmul.f32 %v1700_v30, %v1700_v30  ;;  %v1365_v15 = vpop.f32.mrf.mxu0  ;;  %v1534_v16 = vpop.f32.mrf.mxu1  ;;  %v9525_v4 = vld [vmem:[#allocation200_spill] sm:$0xff] }
 0x4e0   : > { %v5020_v1 = vmul.f32 %v1869_v12, %v9520_v60  ;;  %v6060_v40 = vmul.f32 %v1869_v12, %v1869_v12  ;;  %v5021_v61 = vmul.f32 %v1365_v15, %v9521_v57  ;;  %v6061_v7 = vmul.f32 %v1365_v15, %v1365_v15 }
 0x4e1   : > { %v5274_v8 = vadd.f32 %v5273_v56, %v5019_v59  ;;  %v6314_v22 = vadd.f32 %v6313_v19, %v6059_v45  ;;  %v5022_v39 = vmul.f32 %v1534_v16, %v9522_v47  ;;  %v6062_v14 = vmul.f32 %v1534_v16, %v1534_v16  ;;  %v9526_v19 = vld [vmem:[#allocation201_spill] sm:$0xff] }
 0x4e3   : > { %v5275_v38 = vadd.f32 %v5274_v8, %v5020_v1  ;;  %v6315_v48 = vadd.f32 %v6314_v22, %v6060_v40  ;;  %v9527_v22 = vld [vmem:[#allocation202_spill] sm:$0xff] }
 0x4e5   : > { %v5276_v58 = vadd.f32 %v5275_v38, %v5021_v61  ;;  %v6316_v33 = vadd.f32 %v6315_v48, %v6061_v7  ;;  %v9528_v61 = vld [vmem:[#allocation203_spill] sm:$0xff] }
 0x4e6   : > { %v1703_v34 = vpop.f32.mrf.mxu2  ;;  %v1872_v43 = vpop.f32.mrf.mxu3 }
 0x4e7   : > { %v5277_v42 = vadd.f32 %v5276_v58, %v5022_v39  ;;  %v6317_v2 = vadd.f32 %v6316_v33, %v6062_v14  ;;  %v5023_v24 = vmul.f32 %v1703_v34, %v9523_v54  ;;  %v6063_v23 = vmul.f32 %v1703_v34, %v1703_v34  ;;  %v1367_v44 = vpop.f32.mrf.mxu0  ;;  %v1536_v20 = vpop.f32.mrf.mxu1  ;;  %v9529_v39 = vld [vmem:[#allocation204_spill] sm:$0xff] }
 0x4e8   : > { %v5024_v25 = vmul.f32 %v1872_v43, %v9524_v26  ;;  %v6064_v31 = vmul.f32 %v1872_v43, %v1872_v43  ;;  %v5025_v55 = vmul.f32 %v1367_v44, %v9525_v4  ;;  %v6065_v30 = vmul.f32 %v1367_v44, %v1367_v44 }
 0x4e9   : > { %v5278_v37 = vadd.f32 %v5277_v42, %v5023_v24  ;;  %v6318_v36 = vadd.f32 %v6317_v2, %v6063_v23  ;;  %v5026_v6 = vmul.f32 %v1536_v20, %v9526_v19  ;;  %v6066_v59 = vmul.f32 %v1536_v20, %v1536_v20  ;;  %v9530_v2 = vld [vmem:[#allocation205_spill] sm:$0xff] }
 0x4eb   : > { %v5279_v3 = vadd.f32 %v5278_v37, %v5024_v25  ;;  %v6319_v28 = vadd.f32 %v6318_v36, %v6064_v31  ;;  %v9531_v36 = vld [vmem:[#allocation206_spill] sm:$0xff] }
 0x4ed   : > { %v5280_v12 = vadd.f32 %v5279_v3, %v5025_v55  ;;  %v6320_v56 = vadd.f32 %v6319_v28, %v6065_v30  ;;  %v9532_v55 = vld [vmem:[#allocation207_spill] sm:$0xff] }
 0x4ee   : > { %v1705_v45 = vpop.f32.mrf.mxu2  ;;  %v1874_v15 = vpop.f32.mrf.mxu3 }
 0x4ef   : > { %v5281_v16 = vadd.f32 %v5280_v12, %v5026_v6  ;;  %v6321_v8 = vadd.f32 %v6320_v56, %v6066_v59  ;;  %v5027_v60 = vmul.f32 %v1705_v45, %v9527_v22  ;;  %v6067_v1 = vmul.f32 %v1705_v45, %v1705_v45  ;;  %v1370_v40 = vpop.f32.mrf.mxu0  ;;  %v1539_v38 = vpop.f32.mrf.mxu1  ;;  %v9533_v6 = vld [vmem:[#allocation208_spill] sm:$0xff] }
 0x4f0   : > { %v5028_v7 = vmul.f32 %v1874_v15, %v9528_v61  ;;  %v6068_v58 = vmul.f32 %v1874_v15, %v1874_v15  ;;  %v5029_v14 = vmul.f32 %v1370_v40, %v9529_v39  ;;  %v6069_v34 = vmul.f32 %v1370_v40, %v1370_v40 }
 0x4f1   : > { %v5282_v48 = vadd.f32 %v5281_v16, %v5027_v60  ;;  %v6322_v57 = vadd.f32 %v6321_v8, %v6067_v1  ;;  %v5030_v54 = vmul.f32 %v1539_v38, %v9530_v2  ;;  %v6070_v24 = vmul.f32 %v1539_v38, %v1539_v38  ;;  %v9534_v8 = vld [vmem:[#allocation209_spill] sm:$0xff] }
 0x4f3   : > { %v5283_v33 = vadd.f32 %v5282_v48, %v5028_v7  ;;  %v6323_v47 = vadd.f32 %v6322_v57, %v6068_v58 }
 0x4f5   : > { %v5284_v43 = vadd.f32 %v5283_v33, %v5029_v14  ;;  %v6324_v42 = vadd.f32 %v6323_v47, %v6069_v34 }
 0x4f6   : > { %v1708_v23 = vpop.f32.mrf.mxu2  ;;  %v1877_v44 = vpop.f32.mrf.mxu3 }
 0x4f7   : > { %v5285_v20 = vadd.f32 %v5284_v43, %v5030_v54  ;;  %v6325_v37 = vadd.f32 %v6324_v42, %v6070_v24  ;;  %v5031_v26 = vmul.f32 %v1708_v23, %v9531_v36  ;;  %v6071_v25 = vmul.f32 %v1708_v23, %v1708_v23  ;;  %v1372_v31 = vpop.f32.mrf.mxu0  ;;  %v1541_v3 = vpop.f32.mrf.mxu1  ;;  %s6829_s24 = spop %6828 }
 0x4f8   : > { %v5032_v30 = vmul.f32 %v1877_v44, %v9532_v55  ;;  %v6072_v12 = vmul.f32 %v1877_v44, %v1877_v44  ;;  %v5033_v59 = vmul.f32 %v1372_v31, %v9533_v6  ;;  %v6073_v45 = vmul.f32 %v1372_v31, %v1372_v31  ;;  %s4283_s26 = smax.f32 %s6900_s25, %s6829_s24 }
 0x4f9   : > { %v5286_v28 = vadd.f32 %v5285_v20, %v5031_v26  ;;  %v6326_v4 = vadd.f32 %v6325_v37, %v6071_v25  ;;  %v5034_v22 = vmul.f32 %v1541_v3, %v9534_v8  ;;  %v6074_v60 = vmul.f32 %v1541_v3, %v1541_v3 }
 0x4fa   : > { %v4284_v43 = vstv %s4283_s26 }
 0x4fb   : > { %v5287_v56 = vadd.f32 %v5286_v28, %v5032_v30  ;;  %v6327_v19 = vadd.f32 %v6326_v4, %v6072_v12  ;;  %6870 = vrcp.f32 %v4284_v43  ;;  %vm4290_vm7 = vweird.f32 %v4284_v43 }
 0x4fd   : > { %v5288_v15 = vadd.f32 %v5287_v56, %v5033_v59  ;;  %v6328_v16 = vadd.f32 %v6327_v19, %v6073_v45  ;;  %v4296_v45 = vand.u32 2147483648, %v4284_v43 }
 0x4fe   : > { %v1710_v1 = vpop.f32.mrf.mxu2  ;;  %v1879_v40 = vpop.f32.mrf.mxu3 }
 0x4ff   : > { %v5289_v38 = vadd.f32 %v5288_v15, %v5034_v22  ;;  %v6329_v48 = vadd.f32 %v6328_v16, %v6074_v60  ;;  %v5035_v57 = vmul.f32 %v1710_v1, %v8174_v10  ;;  %v6075_v61 = vmul.f32 %v1710_v1, %v1710_v1  ;;  %v1375_v7 = vpop.f32.mrf.mxu0  ;;  %v1544_v58 = vpop.f32.mrf.mxu1 }
 0x500   : > { %v5036_v39 = vmul.f32 %v1879_v40, %v8176_v63  ;;  %v6076_v14 = vmul.f32 %v1879_v40, %v1879_v40  ;;  %v5037_v34 = vmul.f32 %v1375_v7, %v8180_v53  ;;  %v6077_v54 = vmul.f32 %v1375_v7, %v1375_v7 }
 0x501   : > { %v5290_v33 = vadd.f32 %v5289_v38, %v5035_v57  ;;  %v6330_v47 = vadd.f32 %v6329_v48, %v6075_v61  ;;  %v5038_v23 = vmul.f32 %v1544_v58, %v8182_v29  ;;  %v6078_v44 = vmul.f32 %v1544_v58, %v1544_v58  ;;  %v6871_v53 = vpop.eup %6870 }
 0x502   : > { %v4286_v12 = vmul.f32 %v6871_v53, %v4284_v43  ;;  %vm4291_vm8 = vweird.f32 %v6871_v53  ;;  %v4297_v7 = vor.u32 1.1754944e-38, %v4296_v45 }
 0x503   : > { %v5291_v42 = vadd.f32 %v5290_v33, %v5036_v39  ;;  %v6331_v2 = vadd.f32 %v6330_v47, %v6076_v14  ;;  %vm4292_vm9 = vmor %vm4290_vm7, %vm4291_vm8 }
 0x504   : > { %v4287_v59 = vsub.f32 1.0, %v4286_v12 }
 0x505   : > { %v5292_v24 = vadd.f32 %v5291_v42, %v5037_v34  ;;  %v6332_v10 = vadd.f32 %v6331_v2, %v6077_v54 }
 0x506   : > { %v1713_v20 = vpop.f32.mrf.mxu2  ;;  %v1882_v37 = vpop.f32.mrf.mxu3  ;;  %v4288_v1 = vmul.f32 %v6871_v53, %v4287_v59 }
 0x507   : > { %v5293_v36 = vadd.f32 %v5292_v24, %v5038_v23  ;;  %v6333_v26 = vadd.f32 %v6332_v10, %v6078_v44  ;;  %v5039_v25 = vmul.f32 %v1713_v20, %v8215_v41  ;;  %v6079_v63 = vmul.f32 %v1713_v20, %v1713_v20  ;;  %v1377_v31 = vpop.f32.mrf.mxu0  ;;  %v1546_v3 = vpop.f32.mrf.mxu1 }
 0x508   : > { %v5040_v55 = vmul.f32 %v1882_v37, %v8217_v46  ;;  %v6080_v30 = vmul.f32 %v1882_v37, %v1882_v37  ;;  %v5041_v29 = vmul.f32 %v1377_v31, %v8225_v35  ;;  %v6081_v6 = vmul.f32 %v1377_v31, %v1377_v31 }
 0x509   : > { %v5294_v28 = vadd.f32 %v5293_v36, %v5039_v25  ;;  %v6334_v4 = vadd.f32 %v6333_v26, %v6079_v63  ;;  %v5042_v41 = vmul.f32 %v1546_v3, %v8227_v32  ;;  %v6082_v8 = vmul.f32 %v1546_v3, %v1546_v3  ;;  %v9535_v3 = vld [vmem:[#allocation211_spill] sm:$0xff] }
 0x50a   : > { %v4294_v46 = vand.u32 2147483647, %v4284_v43  ;;  %v4289_v39 = vadd.f32 %v6871_v53, %v4288_v1 }
 0x50b   : > { %v5295_v56 = vadd.f32 %v5294_v28, %v5040_v55  ;;  %v6335_v19 = vadd.f32 %v6334_v4, %v6080_v30  ;;  %v9536_v55 = vld [vmem:[#allocation212_spill] sm:$0xff] }
 0x50c   : > { %vm4295_vm10 = vcmp.eq.f32.partialorder %v4294_v46, 8.507059e+37 }
 0x50d   : > { %v5296_v15 = vadd.f32 %v5295_v56, %v5041_v29  ;;  %v6336_v16 = vadd.f32 %v6335_v19, %v6081_v6  ;;  %v9537_v29 = vld [vmem:[#allocation213_spill] sm:$0xff] }
 0x50e   : > { %v1715_v22 = vpop.f32.mrf.mxu2  ;;  %v1884_v60 = vpop.f32.mrf.mxu3 }
 0x50f   : > { %v5297_v40 = vadd.f32 %v5296_v15, %v5042_v41  ;;  %v6337_v38 = vadd.f32 %v6336_v16, %v6082_v8  ;;  %v5043_v48 = vmul.f32 %v1715_v22, %v8245_v5  ;;  %v6083_v57 = vmul.f32 %v1715_v22, %v1715_v22  ;;  %v1380_v35 = vpop.f32.mrf.mxu0  ;;  %v1549_v61 = vpop.f32.mrf.mxu1 }
 0x510   : > { %v5044_v47 = vmul.f32 %v1884_v60, %v8247_v51  ;;  %v6084_v32 = vmul.f32 %v1884_v60, %v1884_v60  ;;  %v5045_v43 = vmul.f32 %v1380_v35, %v8251_v62  ;;  %v6085_v42 = vmul.f32 %v1380_v35, %v1380_v35 }
 0x511   : > { %v5298_v58 = vadd.f32 %v5297_v40, %v5043_v48  ;;  %v6338_v33 = vadd.f32 %v6337_v38, %v6083_v57  ;;  %v5046_v2 = vmul.f32 %v1549_v61, %v8253_v49  ;;  %v4293_v5 = vsel %vm4292_vm9, %v6871_v53, %v4289_v39 }
 0x512   : > { %v6086_v10 = vmul.f32 %v1549_v61, %v1549_v61  ;;  %v4298_v23 = vsel %vm4295_vm10, %v4297_v7, %v4293_v5 }
 0x513   : > { %v5299_v14 = vadd.f32 %v5298_v58, %v5044_v47  ;;  %v6339_v34 = vadd.f32 %v6338_v33, %v6084_v32  ;;  %6830 = vpush %v4298_v23 }
 0x515   : > { %v5300_v54 = vadd.f32 %v5299_v14, %v5045_v43  ;;  %v6340_v24 = vadd.f32 %v6339_v34, %v6085_v42 }
 0x516   : > { %v1718_v44 = vpop.f32.mrf.mxu2  ;;  %v1887_v20 = vpop.f32.mrf.mxu3 }
 0x517   : > { %v5301_v51 = vadd.f32 %v5300_v54, %v5046_v2  ;;  %v6341_v37 = vadd.f32 %v6340_v24, %v6086_v10  ;;  %v5047_v36 = vmul.f32 %v1718_v44, %v8278_v52  ;;  %v6087_v26 = vmul.f32 %v1718_v44, %v1718_v44  ;;  %v1382_v25 = vpop.f32.mrf.mxu0  ;;  %v1551_v63 = vpop.f32.mrf.mxu1 }
 0x518   : > { %v5048_v28 = vmul.f32 %v1887_v20, %v9535_v3  ;;  %v6088_v49 = vmul.f32 %v1887_v20, %v1887_v20  ;;  %v5049_v30 = vmul.f32 %v1382_v25, %v9536_v55  ;;  %v6089_v12 = vmul.f32 %v1382_v25, %v1382_v25 }
 0x519   : > { %v5302_v31 = vadd.f32 %v5301_v51, %v5047_v36  ;;  %v6342_v62 = vadd.f32 %v6341_v37, %v6087_v26  ;;  %v5050_v6 = vmul.f32 %v1551_v63, %v9537_v29  ;;  %v6090_v59 = vmul.f32 %v1551_v63, %v1551_v63  ;;  %v9540_v29 = vld [vmem:[#allocation216_spill] sm:$0xff] }
 0x51b   : > { %v5303_v53 = vadd.f32 %v5302_v31, %v5048_v28  ;;  %v6343_v4 = vadd.f32 %v6342_v62, %v6088_v49  ;;  %v9538_v49 = vld [vmem:[#allocation214_spill] sm:$0xff] }
 0x51d   : > { %v5304_v56 = vadd.f32 %v5303_v53, %v5049_v30  ;;  %v6344_v19 = vadd.f32 %v6343_v4, %v6089_v12  ;;  %v9539_v30 = vld [vmem:[#allocation215_spill] sm:$0xff] }
 0x51e   : > { %v1720_v45 = vpop.f32.mrf.mxu2  ;;  %v1889_v52 = vpop.f32.mrf.mxu3 }
 0x51f   : > { %v5305_v15 = vadd.f32 %v5304_v56, %v5050_v6  ;;  %v6345_v16 = vadd.f32 %v6344_v19, %v6090_v59  ;;  %v5051_v41 = vmul.f32 %v1720_v45, %v8294_v27  ;;  %v6091_v8 = vmul.f32 %v1720_v45, %v1720_v45  ;;  %v1385_v22 = vpop.f32.mrf.mxu0  ;;  %v1554_v60 = vpop.f32.mrf.mxu1 }
 0x520   : > { %v5052_v40 = vmul.f32 %v1889_v52, %v8296_v17  ;;  %v6092_v38 = vmul.f32 %v1889_v52, %v1889_v52  ;;  %v5053_v35 = vmul.f32 %v1385_v22, %v8300_v11  ;;  %v6093_v61 = vmul.f32 %v1385_v22, %v1385_v22 }
 0x521   : > { %v5306_v1 = vadd.f32 %v5305_v15, %v5051_v41  ;;  %v6346_v46 = vadd.f32 %v6345_v16, %v6091_v8  ;;  %v5054_v33 = vmul.f32 %v1554_v60, %v8302_v18  ;;  %v6094_v47 = vmul.f32 %v1554_v60, %v1554_v60  ;;  %v9541_v16 = vld [vmem:[#allocation217_spill] sm:$0xff] }
 0x523   : > { %v5307_v48 = vadd.f32 %v5306_v1, %v5052_v40  ;;  %v6347_v57 = vadd.f32 %v6346_v46, %v6092_v38  ;;  %v9542_v46 = vld [vmem:[#allocation218_spill] sm:$0xff] }
 0x525   : > { %v5308_v7 = vadd.f32 %v5307_v48, %v5053_v35  ;;  %v6348_v58 = vadd.f32 %v6347_v57, %v6093_v61  ;;  %v9543_v61 = vld [vmem:[#allocation219_spill] sm:$0xff] }
 0x526   : > { %v1723_v32 = vpop.f32.mrf.mxu2  ;;  %v1892_v27 = vpop.f32.mrf.mxu3 }
 0x527   : > { %v5309_v39 = vadd.f32 %v5308_v7, %v5054_v33  ;;  %v6349_v14 = vadd.f32 %v6348_v58, %v6094_v47  ;;  %v5055_v34 = vmul.f32 %v1723_v32, %v8323_v9  ;;  %v6095_v43 = vmul.f32 %v1723_v32, %v1723_v32  ;;  %v1387_v42 = vpop.f32.mrf.mxu0  ;;  %v1556_v17 = vpop.f32.mrf.mxu1  ;;  %v9544_v47 = vld [vmem:[#allocation220_spill] sm:$0xff] }
 0x528   : > { %v5056_v54 = vmul.f32 %v1892_v27, %v8325_v0  ;;  %v6096_v11 = vmul.f32 %v1892_v27, %v1892_v27  ;;  %v5057_v23 = vmul.f32 %v1387_v42, %v8331_v21  ;;  %v6097_v18 = vmul.f32 %v1387_v42, %v1387_v42 }
 0x529   : > { %v5310_v2 = vadd.f32 %v5309_v39, %v5055_v34  ;;  %v6350_v5 = vadd.f32 %v6349_v14, %v6095_v43  ;;  %v5058_v51 = vmul.f32 %v1556_v17, %v8333_v50  ;;  %v6098_v37 = vmul.f32 %v1556_v17, %v1556_v17  ;;  %v9545_v43 = vld [vmem:[#allocation221_spill] sm:$0xff] }
 0x52b   : > { %v5311_v24 = vadd.f32 %v5310_v2, %v5056_v54  ;;  %v6351_v10 = vadd.f32 %v6350_v5, %v6096_v11  ;;  %v9546_v5 = vld [vmem:[#allocation222_spill] sm:$0xff] }
 0x52d   : > { %v5312_v44 = vadd.f32 %v5311_v24, %v5057_v23  ;;  %v6352_v20 = vadd.f32 %v6351_v10, %v6097_v18 }
 0x52e   : > { %v1725_v36 = vpop.f32.mrf.mxu2  ;;  %v1894_v9 = vpop.f32.mrf.mxu3 }
 0x52f   : > { %v5313_v26 = vadd.f32 %v5312_v44, %v5058_v51  ;;  %v6353_v25 = vadd.f32 %v6352_v20, %v6098_v37  ;;  %v5059_v63 = vmul.f32 %v1725_v36, %v8341_v13  ;;  %v6099_v31 = vmul.f32 %v1725_v36, %v1725_v36  ;;  %v1390_v62 = vpop.f32.mrf.mxu0  ;;  %v1559_v0 = vpop.f32.mrf.mxu1 }
 0x530   : > { %v5060_v53 = vmul.f32 %v1894_v9, %v9538_v49  ;;  %v6100_v21 = vmul.f32 %v1894_v9, %v1894_v9  ;;  %v5061_v12 = vmul.f32 %v1390_v62, %v9539_v30  ;;  %v6101_v50 = vmul.f32 %v1390_v62, %v1390_v62  ;;  %v5845_v20 = vpop.xlane.xlu2 %5844 }
 0x531   : > { %v5314_v3 = vadd.f32 %v5313_v26, %v5059_v63  ;;  %v6354_v28 = vadd.f32 %v6353_v25, %v6099_v31  ;;  %v5062_v6 = vmul.f32 %v1559_v0, %v9540_v29  ;;  %v6102_v59 = vmul.f32 %v1559_v0, %v1559_v0 }
 0x532   : > { %v5846_v51 = vrot.slane %v5845_v20, 4 }
 0x533   : > { %v5315_v4 = vadd.f32 %v5314_v3, %v5060_v53  ;;  %v6355_v55 = vadd.f32 %v6354_v28, %v6100_v21 }
 0x534   : > { %v5847_v37 = vadd.f32 %v5846_v51, %v5845_v20 }
 0x535   : > { %v5316_v56 = vadd.f32 %v5315_v4, %v5061_v12  ;;  %v6356_v19 = vadd.f32 %v6355_v55, %v6101_v50 }
 0x536   : > { %v1728_v45 = vpop.f32.mrf.mxu2  ;;  %v1897_v13 = vpop.f32.mrf.mxu3  ;;  %v5848_v36 = vrot.slane %v5847_v37, 2 }
 0x537   : > { %v5317_v52 = vadd.f32 %v5316_v56, %v5062_v6  ;;  %v6357_v15 = vadd.f32 %v6356_v19, %v6102_v59  ;;  %v5063_v41 = vmul.f32 %v1728_v45, %v9541_v16  ;;  %v6103_v8 = vmul.f32 %v1728_v45, %v1728_v45  ;;  %v1392_v22 = vpop.f32.mrf.mxu0  ;;  %v1561_v48 = vpop.f32.mrf.mxu1 }
 0x538   : > { %v5064_v40 = vmul.f32 %v1897_v13, %v9542_v46  ;;  %v6104_v38 = vmul.f32 %v1897_v13, %v1897_v13  ;;  %v5065_v7 = vmul.f32 %v1392_v22, %v9543_v61  ;;  %v6105_v33 = vmul.f32 %v1392_v22, %v1392_v22 }
 0x539   : > { %v5318_v60 = vadd.f32 %v5317_v52, %v5063_v41  ;;  %v6358_v1 = vadd.f32 %v6357_v15, %v6103_v8  ;;  %v5066_v32 = vmul.f32 %v1561_v48, %v9544_v47  ;;  %v6106_v17 = vmul.f32 %v1561_v48, %v1561_v48 }
 0x53a   : > { %v5849_v63 = vadd.f32 %v5848_v36, %v5847_v37 }
 0x53b   : > { %v5319_v57 = vadd.f32 %v5318_v60, %v5064_v40  ;;  %v6359_v35 = vadd.f32 %v6358_v1, %v6104_v38 }
 0x53c   : > { %v5850_v3 = vrot.slane %v5849_v63, 1 }
 0x53d   : > { %v5320_v58 = vadd.f32 %v5319_v57, %v5065_v7  ;;  %v6360_v14 = vadd.f32 %v6359_v35, %v6105_v33  ;;  %v9547_v7 = vlaneseq }
 0x53e   : > { %v1730_v27 = vpop.f32.mrf.mxu2  ;;  %v1899_v39 = vpop.f32.mrf.mxu3  ;;  %v5851_v4 = vadd.f32 %v5850_v3, %v5849_v63 }
 0x53f   : > { %v5321_v34 = vadd.f32 %v5320_v58, %v5066_v32  ;;  %v5067_v42 = vmul.f32 %v1730_v27, %v9545_v43  ;;  %v5068_v54 = vmul.f32 %v1899_v39, %v9546_v5  ;;  %v6361_v11 = vadd.f32 %v6360_v14, %v6106_v17 }
 0x540   : > { %v6107_v24 = vmul.f32 %v1730_v27, %v1730_v27  ;;  %v6108_v18 = vmul.f32 %v1899_v39, %v1899_v39  ;;  %v6407_v58 = vshrl.u32 %v9547_v7, 7  ;;  %v6409_v33 = vand.u32 127, %v9547_v7 }
 0x541   : > { %v5322_v2 = vadd.f32 %v5321_v34, %v5067_v42 }
 0x542   : > { %v6362_v23 = vadd.f32 %v6361_v11, %v6107_v24  ;;  %vm6410_vm1 = vcmp.eq.s32.totalorder %v6407_v58, 0  ;;  %vm6411_vm2 = vcmp.eq.s32.totalorder %v6409_v33, 0  ;;  %vm6415_vm3 = vcmp.eq.s32.totalorder %v6409_v33, 1 }
 0x543   : > { %v5323_v10 = vadd.f32 %v5322_v2, %v5068_v54  ;;  %vm6412_vm4 = vmand %vm6410_vm1, %vm6411_vm2 }
 0x544   : > { %v6363_v44 = vadd.f32 %v6362_v23, %v6108_v18  ;;  %s8863_s27 = spop %6830  ;;  %vm6416_vm5 = vmand %vm6410_vm1, %vm6415_vm3 }
 0x545   : > { %5324 = vadd.xlane.f32.xlu2 %v5323_v10  ;;  %s4300_s6 = smul.f32 %s8863_s27, %s8773_s20 }
 0x547   : > { %v6413_v47 = vstv %s4300_s6 }
 0x548   : > { %v6414_v27 = vsel %vm6412_vm4, %v6413_v47, 0.0 }
 0x54d   : > { %6364 = vadd.xlane.f32.xlu2 %v6363_v44 }
 0x5b8   : > { %v5325_v9 = vpop.xlane.xlu2 %5324 }
 0x5b9   : > { %v5326_v26 = vrot.slane %v5325_v9, 4 }
 0x5bb   : > { %v5327_v25 = vadd.f32 %v5326_v26, %v5325_v9 }
 0x5bd   : > { %v5328_v31 = vrot.slane %v5327_v25, 2 }
 0x5bf   : > { %v5329_v62 = vadd.f32 %v5328_v31, %v5327_v25 }
 0x5c0   : > { %v6365_v0 = vpop.xlane.xlu2 %6364 }
 0x5c1   : > { %v6366_v28 = vrot.slane %v6365_v0, 4  ;;  %v5330_v49 = vrot.slane %v5329_v62, 1 }
 0x5c3   : > { %v6367_v53 = vadd.f32 %v6366_v28, %v6365_v0  ;;  %v5331_v21 = vadd.f32 %v5330_v49, %v5329_v62 }
 0x5c5   : > { %v6368_v55 = vrot.slane %v6367_v53, 2  ;;  %6832 = vpush %v5331_v21 }
 0x5c6   : > { %6834 = vpush %v5851_v4 }
 0x5c7   : > { %v6369_v30 = vadd.f32 %v6368_v55, %v6367_v53 }
 0x5c9   : > { %v6370_v12 = vrot.slane %v6369_v30, 1 }
 0x5cb   : > { %v6371_v50 = vadd.f32 %v6370_v12, %v6369_v30 }
 0x5cd   : > { %6836 = vpush %v6371_v50 }
 0x5f6   : > { %s8865_s28 = spop %6832 }
 0x5f7   : > { %s6835_s29 = spop %6834 }
 0x5fe   : > { %s6837_s30 = spop %6836 }
 0x5ff   : > { %s6373_s3 = smul.f32 %s6837_s30, %s6835_s29 }
 0x601   : > { %v6374_v56 = vstv %s6373_s3 }
 0x602   : > { %6872 = vrsqrt.f32 %v6374_v56  ;;  %vm6382_vm11 = vcmp.eq.f32.partialorder %v6374_v56, inf  ;;  %v6385_v15 = vand.u32 2147483648, %v6374_v56  ;;  %vm6384_vm12 = vcmp.eq.f32.partialorder %v6374_v56, 0.0 }
 0x608   : > { %v6873_v19 = vpop.eup %6872 }
 0x609   : > { %v6376_v29 = vmul.f32 %v6873_v19, %v6374_v56 }
 0x60b   : > { %v6377_v6 = vmul.f32 %v6873_v19, %v6376_v29 }
 0x60d   : > { %v6378_v59 = vmul.f32 0.5, %v6377_v6 }
 0x60f   : > { %v6379_v45 = vsub.f32 1.5, %v6378_v59 }
 0x611   : > { %v6380_v13 = vmul.f32 %v6873_v19, %v6379_v45 }
 0x613   : > { %v6381_v52 = vmul.f32 %v6380_v13, %v6374_v56 }
 0x615   : > { %v6383_v16 = vsel %vm6382_vm11, %v6374_v56, %v6381_v52 }
 0x616   : > { %v6386_v41 = vsel %vm6384_vm12, %v6385_v15, %v6383_v16 }
 0x617   : > { %6838 = vpush %v6386_v41 }
 0x648   : > { %s6839_s4 = spop %6838 }
 0x649   : > { %s6388_s5 = smax.f32 %s6900_s25, %s6839_s4 }
 0x64a   : > { %v6389_v8 = vstv %s6388_s5 }
 0x64b   : > { %6874 = vrcp.f32 %v6389_v8  ;;  %v6401_v46 = vand.u32 2147483648, %v6389_v8  ;;  %v6399_v38 = vand.u32 2147483647, %v6389_v8  ;;  %vm6395_vm14 = vweird.f32 %v6389_v8 }
 0x64d   : > { %v6402_v57 = vor.u32 1.1754944e-38, %v6401_v46  ;;  %vm6400_vm0 = vcmp.eq.f32.partialorder %v6399_v38, 8.507059e+37 }
 0x651   : > { %v6875_v22 = vpop.eup %6874 }
 0x652   : > { %v6391_v60 = vmul.f32 %v6875_v22, %v6389_v8  ;;  %vm6396_vm13 = vweird.f32 %v6875_v22 }
 0x653   : > { %vm6397_vm15 = vmor %vm6395_vm14, %vm6396_vm13 }
 0x654   : > { %v6392_v1 = vsub.f32 1.0, %v6391_v60 }
 0x656   : > { %v6393_v40 = vmul.f32 %v6875_v22, %v6392_v1 }
 0x658   : > { %v6394_v48 = vadd.f32 %v6875_v22, %v6393_v40 }
 0x65a   : > { %v6398_v35 = vsel %vm6397_vm15, %v6875_v22, %v6394_v48 }
 0x65b   : > { %v6403_v61 = vsel %vm6400_vm0, %v6402_v57, %v6398_v35 }
 0x65c   : > { %6840 = vpush %v6403_v61 }
 0x68d   : > { %s6841_s7 = spop %6840 }
 0x68e   : > { %s6405_s13 = smul.f32 %s6841_s7, %s8865_s28 }
 0x690   : > { %v6417_v32 = vstv %s6405_s13 }
 0x691   : > { %v6418_v39 = vsel %vm6416_vm5, %v6417_v32, 0.0 }
 0x692   : > { %v6419_v14 = vadd.f32 %v6418_v39, %v6414_v27 }
 0x694   : > { %6420 = vst [vmem:[%s211_s16] sm:$0xff] %v6419_v14 }
 0x695 PF: > { %s12_s11 = sadd.s32 1, %s6898_s11   ;;  %s9548_s9 = smov %s6894_s10 }
 0x696   : > { %p9_p5 = scmp.ge.s32.totalorder %s12_s11, 4   ;;  %s9549_s10 = smov %s9551_s12 }
 0x698   :  { %11 = sbr.rel (!%p9_p5) target bundleno = 2 (0x2), region = 79 }

</bundles_post_ra>
